<compile_context>
chip_gen: v6e
topology: v6e:2x2x1
jax: 0.10.0
libtpu: 0.0.40
codegen_flags: <defaults>
</compile_context>

<pallas_src>
import functools
import math

import jax
import jax.numpy as jnp
import numpy as np
from jax import lax
from jax.experimental import pallas as pl
from jax.experimental.pallas import tpu as pltpu

EMBED_DIM = 32
NUM_HEADS = 4
NUM_LAYERS = 2                 # GNN_layers = ['self', 'cross'] * NUM_LAYERS
SINKHORN_ITERS = 10
MATCH_THRESHOLD = 0.2
BN_EPS = 1e-5                  # eval-mode BatchNorm1d with default running stats


# ----------------------------------------------------------------------------- #
# Fused Pallas kernel
# ----------------------------------------------------------------------------- #
def _attentional_propagation(x, src, wq, bq, wk, bk, wv, bv, wm, w1, b1, w2, b2):
    """delta = MLP(cat([x, MHA(x, src, src)])).

    Weights are pre-transposed to (in, out), head channels pre-permuted to contiguous
    blocks, and both the BN scale and the merge bias are pre-folded into (w1, b1)."""
    D = x.shape[-1]
    H = NUM_HEADS
    dh = D // H
    scale = 1.0 / math.sqrt(dh)

    q = jnp.dot(x,   wq, preferred_element_type=jnp.float32) + bq
    k = jnp.dot(src, wk, preferred_element_type=jnp.float32) + bk
    v = jnp.dot(src, wv, preferred_element_type=jnp.float32) + bv

    msg = None
    for h in range(H):                       # heads are contiguous channel blocks
        sl = slice(h * dh, (h + 1) * dh)
        qh, kh, vh = q[:, sl], k[:, sl], v[:, sl]
        s = lax.dot_general(qh, kh, (((1,), (1,)), ((), ())),
                            preferred_element_type=jnp.float32) * scale   # (Nx, Ns)
        s = s - jnp.max(s, axis=-1, keepdims=True)
        e = jnp.exp(s)
        p = e * pl.reciprocal(jnp.sum(e, axis=-1, keepdims=True), approx=True)
        ctx_h = jnp.dot(p, vh, preferred_element_type=jnp.float32)        # (Nx, dh)
        part = jnp.dot(ctx_h, wm[sl, :], preferred_element_type=jnp.float32)
        msg = part if msg is None else msg + part

    # MLP([2D, 2D, D]) on cat([x, message]); cat expressed as two sublane-sliced
    # matmuls; merge bias + BN scale already folded into (w1, b1).
    h1 = (jnp.dot(x,   w1[:D, :], preferred_element_type=jnp.float32)
          + jnp.dot(msg, w1[D:, :], preferred_element_type=jnp.float32)
          + b1)
    h1 = jnp.maximum(h1, 0.0)
    return jnp.dot(h1, w2, preferred_element_type=jnp.float32) + b2


def _superglue_fused_kernel(obj_ref, hint_ref,
                            wq_ref, bq_ref, wk_ref, bk_ref, wv_ref, bv_ref,
                            wm_ref, w1_ref, b1_ref, w2_ref, b2_ref,
                            wf_ref, bf_ref, bin_ref,
                            ow1_ref, ob1_ref, ow2_ref, ob2_ref,
                            p_ref, off_ref, *, layer_names):
    N, D = obj_ref.shape
    M, _ = hint_ref.shape

    def l2n(x):
        n = jnp.sqrt(jnp.sum(x * x, axis=-1, keepdims=True))
        return x / jnp.maximum(n, 1e-12)

    d0 = l2n(obj_ref[...])            # object encodings (N, D)
    d1 = l2n(hint_ref[...])           # hint encodings   (M, D)
    hint_enc = d1                     # offsets are regressed from pre-GNN hints

    # --- attentional GNN: all layers unrolled, activations stay in VMEM ----------
    for li, name in enumerate(layer_names):
        w = (wq_ref[li], bq_ref[li], wk_ref[li], bk_ref[li],
             wv_ref[li], bv_ref[li], wm_ref[li],
             w1_ref[li], b1_ref[li], w2_ref[li], b2_ref[li])
        if name == "cross":
            s0, s1 = d1, d0
        else:
            s0, s1 = d0, d1
        # s0/s1 are bound to the PRE-update descriptors, matching SuperGlue semantics.
        d0 = d0 + _attentional_propagation(d0, s0, *w)
        d1 = d1 + _attentional_propagation(d1, s1, *w)

    # --- final projection + score matrix ----------------------------------------
    m0 = jnp.dot(d0, wf_ref[...], preferred_element_type=jnp.float32) + bf_ref[...]
    m1 = jnp.dot(d1, wf_ref[...], preferred_element_type=jnp.float32) + bf_ref[...]
    se = lax.dot_general(m0, m1, (((1,), (1,)), ((), ())),
                         preferred_element_type=jnp.float32) * (1.0 / math.sqrt(D))

    # --- couplings with dustbins, built directly in the output block ------------
    bin_v = bin_ref[0, 0]
    p_ref[...] = jnp.full((N + 1, M + 1), bin_v, jnp.float32)
    p_ref[:N, :M] = se
    Z = p_ref[...]

    # --- log-space Sinkhorn (log_optimal_transport) ------------------------------
    norm = -math.log(N + M)
    log_mu = jnp.where(lax.broadcasted_iota(jnp.int32, (N + 1, 1), 0) < N,
                       norm, math.log(M) + norm)                     # (N+1, 1)
    log_nu = jnp.where(lax.broadcasted_iota(jnp.int32, (1, M + 1), 1) < M,
                       norm, math.log(N) + norm)                     # (1, M+1)

    def lse(a, axis):
        mx = jnp.max(a, axis=axis, keepdims=True)
        return mx + jnp.log(jnp.sum(jnp.exp(a - mx), axis=axis, keepdims=True))

    u = jnp.zeros((N + 1, 1), jnp.float32)
    v = jnp.zeros((1, M + 1), jnp.float32)
    for _ in range(SINKHORN_ITERS):
        u = log_mu - lse(Z + v, axis=1)
        v = log_nu - lse(Z + u, axis=0)
    p_ref[...] = Z + u + v - norm

    # --- offset regression MLP (get_mlp_offset: D -> D//2 -> 2) ------------------
    oh = jnp.maximum(jnp.dot(hint_enc, ow1_ref[...],
                             preferred_element_type=jnp.float32) + ob1_ref[...], 0.0)
    off_ref[...] = jnp.dot(oh, ow2_ref[...],
                           preferred_element_type=jnp.float32) + ob2_ref[...]


# ----------------------------------------------------------------------------- #
# Wrapper (single pallas_call for the whole forward hot path)
# ----------------------------------------------------------------------------- #
def superglue_match_forward(object_feats, hint_feats, params):
    B, N, D = object_feats.shape
    _, M, _ = hint_feats.shape
    names = params["gnn_names"]
    L = len(names)
    D2 = 2 * D
    Dh = D // 2

    def wspec(shape):
        if len(shape) == 2:
            return pl.BlockSpec(shape, lambda b: (0, 0))
        return pl.BlockSpec(shape, lambda b: (0, 0, 0))

    kernel = functools.partial(_superglue_fused_kernel, layer_names=names)

    P, offsets = pl.pallas_call(
        kernel,
        grid=(B,),
        in_specs=[
            pl.BlockSpec((None, N, D), lambda b: (b, 0, 0)),     # objects
            pl.BlockSpec((None, M, D), lambda b: (b, 0, 0)),     # hints
            wspec((L, D, D)), wspec((L, 1, D)),                  # q proj
            wspec((L, D, D)), wspec((L, 1, D)),                  # k proj
            wspec((L, D, D)), wspec((L, 1, D)),                  # v proj
            wspec((L, D, D)),                                    # merge (bias folded)
            wspec((L, D2, D2)), wspec((L, 1, D2)),               # MLP layer 1 (BN + bm folded)
            wspec((L, D2, D)), wspec((L, 1, D)),                 # MLP layer 2
            wspec((D, D)), wspec((1, D)),                        # final proj
            pl.BlockSpec(memory_space=pltpu.MemorySpace.SMEM),   # bin score scalar
            wspec((D, Dh)), wspec((1, Dh)),                      # offsets MLP layer 1
            wspec((Dh, 2)), wspec((1, 2)),                       # offsets MLP layer 2
        ],
        out_specs=(
            pl.BlockSpec((None, N + 1, M + 1), lambda b: (b, 0, 0)),
            pl.BlockSpec((None, M, 2), lambda b: (b, 0, 0)),
        ),
        out_shape=(
            jax.ShapeDtypeStruct((B, N + 1, M + 1), jnp.float32),
            jax.ShapeDtypeStruct((B, M, 2), jnp.float32),
        ),
        compiler_params=pltpu.CompilerParams(dimension_semantics=("parallel",)),
    )(object_feats, hint_feats,
      params["wq"], params["bq"], params["wk"], params["bk"],
      params["wv"], params["bv"], params["wm"],
      params["w1"], params["b1"], params["w2"], params["b2"],
      params["final_w"], params["final_b"], params["bin_score"],
      params["off_w1"], params["off_b1"], params["off_w2"], params["off_b2"])

    # match extraction (tiny int/gather bookkeeping) stays in plain JAX
    sc = P[:, :-1, :-1]
    indices0 = jnp.argmax(sc, axis=2)                   # (B, N)
    indices1 = jnp.argmax(sc, axis=1)                   # (B, M)
    max0 = jnp.max(sc, axis=2)
    mutual0 = jnp.arange(N)[None, :] == jnp.take_along_axis(indices1, indices0, axis=1)
    mutual1 = jnp.arange(M)[None, :] == jnp.take_along_axis(indices0, indices1, axis=1)
    mscores0 = jnp.where(mutual0, jnp.exp(max0), 0.0)
    mscores1 = jnp.where(mutual1, jnp.take_along_axis(mscores0, indices1, axis=1), 0.0)
    valid0 = mutual0 & (mscores0 > MATCH_THRESHOLD)
    valid1 = mutual1 & jnp.take_along_axis(valid0, indices1, axis=1)
    matches0 = jnp.where(valid0, indices0, -1)
    matches1 = jnp.where(valid1, indices1, -1)

    return dict(P=P, matches0=matches0, matches1=matches1, offsets=offsets,
                matching_scores0=mscores0, matching_scores1=mscores1)


# ----------------------------------------------------------------------------- #
# Parameters: PyTorch-like init, then one-time conversion to kernel layout
# ----------------------------------------------------------------------------- #
def init_params(key, D=EMBED_DIM, num_layers=NUM_LAYERS):
    keys = iter(jax.random.split(key, 128))

    def lin(out_d, in_d):
        bound = 1.0 / math.sqrt(in_d)
        w = jax.random.uniform(next(keys), (out_d, in_d), jnp.float32, -bound, bound)
        b = jax.random.uniform(next(keys), (1, out_d), jnp.float32, -bound, bound)
        return w, b

    names = ["self", "cross"] * num_layers
    gnn = []
    for _ in names:
        wq, bq = lin(D, D); wk, bk = lin(D, D); wv, bv = lin(D, D); wm, bm = lin(D, D)
        w1, b1 = lin(2 * D, 2 * D)
        w2, _ = lin(D, 2 * D)
        b2 = jnp.zeros((1, D), jnp.float32)      # SuperGlue zero-inits the last MLP bias
        gnn.append(dict(wq=wq, bq=bq, wk=wk, bk=bk, wv=wv, bv=bv, wm=wm, bm=bm,
                        w1=w1, b1=b1, w2=w2, b2=b2))

    wf, bf = lin(D, D)                           # final_proj (1x1 conv)
    ow1, ob1 = lin(D // 2, D)                    # mlp_offsets: D -> D//2 -> 2
    ow2, ob2 = lin(2, D // 2)
    return dict(gnn=gnn, gnn_names=names, final_w=wf, final_b=bf,
                bin_score=jnp.ones((1, 1), jnp.float32),
                offsets=dict(w1=ow1, b1=ob1, w2=ow2, b2=ob2))


def prepare_params(raw, D=EMBED_DIM, heads=NUM_HEADS):
    """One-time (zero runtime cost) conversion to the fused-kernel layout:
    pre-transpose all weights to (in, out), permute attention head channels to
    contiguous blocks, fold the eval-mode BatchNorm scale AND the attention-merge
    bias into MLP layer 1, and stack per-layer GNN weights along a leading axis."""
    dh = D // heads
    # PyTorch's .view(b, dim, heads, n) interleaves heads across channels
    # (old channel = d*heads + h); permute so head h is a contiguous block in-kernel.
    perm = np.array([d * heads + h for h in range(heads) for d in range(dh)])
    # TODO(synk): BN fold assumes eval-mode default running stats (mean=0, var=1) and
    # identity affine; replace with real (gamma, beta, mean, var) fold for trained nets.
    bn_scale = 1.0 / math.sqrt(1.0 + BN_EPS)

    def stack(fn):
        return jnp.stack([fn(lp) for lp in raw["gnn"]], axis=0)

    def fold_b1(lp):
        # b1' = b1*s + bm @ (w1*s).T[D:, :]  (merge bias is linear into the MLP input)
        w1_k = (lp["w1"] * bn_scale).T                  # (2D, 2D), (in, out)
        return lp["b1"] * bn_scale + lp["bm"] @ w1_k[D:, :]

    return dict(
        gnn_names=tuple(raw["gnn_names"]),
        wq=stack(lambda lp: lp["wq"][perm].T), bq=stack(lambda lp: lp["bq"][:, perm]),
        wk=stack(lambda lp: lp["wk"][perm].T), bk=stack(lambda lp: lp["bk"][:, perm]),
        wv=stack(lambda lp: lp["wv"][perm].T), bv=stack(lambda lp: lp["bv"][:, perm]),
        wm=stack(lambda lp: lp["wm"][:, perm].T),
        w1=stack(lambda lp: (lp["w1"] * bn_scale).T),
        b1=stack(fold_b1),
        w2=stack(lambda lp: lp["w2"].T), b2=stack(lambda lp: lp["b2"]),
        final_w=raw["final_w"].T, final_b=raw["final_b"],
        bin_score=raw["bin_score"],
        off_w1=raw["offsets"]["w1"].T, off_b1=raw["offsets"]["b1"],
        off_w2=raw["offsets"]["w2"].T, off_b2=raw["offsets"]["b2"],
    )


# ----------------------------------------------------------------------------- #
if __name__ == "__main__":
    key = jax.random.PRNGKey(0)
    kp, ko, kh = jax.random.split(key, 3)

    B, N_OBJ, N_HINT, D = 2, 8, 6, EMBED_DIM
    params = prepare_params(init_params(kp))

    # TODO(synk): stand-ins for ObjectEncoder(objects, object_points) and stacked
    # LanguageEncoder(hints) outputs (modules not defined in the reference).
    object_feats = jax.random.normal(ko, (B, N_OBJ, D), jnp.float32)
    hint_feats = jax.random.normal(kh, (B, N_HINT, D), jnp.float32)

    fwd = jax.jit(functools.partial(superglue_match_forward, params=params))
    out = fwd(object_feats, hint_feats)
    jax.block_until_ready(out)

    assert out["P"].shape == (B, N_OBJ + 1, N_HINT + 1)
    assert out["matches0"].shape == (B, N_OBJ)
    assert out["matches1"].shape == (B, N_HINT)
    assert out["offsets"].shape == (B, N_HINT, 2)
    assert bool(jnp.all(jnp.isfinite(out["P"])))
    assert bool(jnp.all(jnp.isfinite(out["offsets"])))
    print("KERNEL_OK")
</pallas_src>

<mosaic_0001>
module attributes {stable_mosaic.version = 11 : i64} {
  func.func @_superglue_fused_kernel(%arg0: i32, %arg1: memref<1x8x32xf32, #tpu.memory_space<vmem>>, %arg2: memref<1x6x32xf32, #tpu.memory_space<vmem>>, %arg3: memref<4x32x32xf32, #tpu.memory_space<vmem>>, %arg4: memref<4x1x32xf32, #tpu.memory_space<vmem>>, %arg5: memref<4x32x32xf32, #tpu.memory_space<vmem>>, %arg6: memref<4x1x32xf32, #tpu.memory_space<vmem>>, %arg7: memref<4x32x32xf32, #tpu.memory_space<vmem>>, %arg8: memref<4x1x32xf32, #tpu.memory_space<vmem>>, %arg9: memref<4x32x32xf32, #tpu.memory_space<vmem>>, %arg10: memref<4x64x64xf32, #tpu.memory_space<vmem>>, %arg11: memref<4x1x64xf32, #tpu.memory_space<vmem>>, %arg12: memref<4x64x32xf32, #tpu.memory_space<vmem>>, %arg13: memref<4x1x32xf32, #tpu.memory_space<vmem>>, %arg14: memref<32x32xf32, #tpu.memory_space<vmem>>, %arg15: memref<1x32xf32, #tpu.memory_space<vmem>>, %arg16: memref<1x1xf32, #tpu.memory_space<smem>>, %arg17: memref<32x16xf32, #tpu.memory_space<vmem>>, %arg18: memref<1x16xf32, #tpu.memory_space<vmem>>, %arg19: memref<16x2xf32, #tpu.memory_space<vmem>>, %arg20: memref<1x2xf32, #tpu.memory_space<vmem>>, %arg21: memref<1x9x7xf32, #tpu.memory_space<vmem>>, %arg22: memref<1x6x2xf32, #tpu.memory_space<vmem>>) attributes {dimension_semantics = [#tpu.dimension_semantics<parallel>], iteration_bounds = array<i64: 2>, scalar_prefetch = 0 : i64, scratch_operands = 0 : i64, tpu.core_type = #tpu.core_type<tc>, window_params = [{transform_indices = @transform_0, window_bounds = array<i64: 1, 8, 32>}, {transform_indices = @transform_1, window_bounds = array<i64: 1, 6, 32>}, {pipeline_mode = #tpu.pipeline_mode<synchronous>, transform_indices = @transform_2, window_bounds = array<i64: 4, 32, 32>}, {pipeline_mode = #tpu.pipeline_mode<synchronous>, transform_indices = @transform_3, window_bounds = array<i64: 4, 1, 32>}, {pipeline_mode = #tpu.pipeline_mode<synchronous>, transform_indices = @transform_4, window_bounds = array<i64: 4, 32, 32>}, {pipeline_mode = #tpu.pipeline_mode<synchronous>, transform_indices = @transform_5, window_bounds = array<i64: 4, 1, 32>}, {pipeline_mode = #tpu.pipeline_mode<synchronous>, transform_indices = @transform_6, window_bounds = array<i64: 4, 32, 32>}, {pipeline_mode = #tpu.pipeline_mode<synchronous>, transform_indices = @transform_7, window_bounds = array<i64: 4, 1, 32>}, {pipeline_mode = #tpu.pipeline_mode<synchronous>, transform_indices = @transform_8, window_bounds = array<i64: 4, 32, 32>}, {pipeline_mode = #tpu.pipeline_mode<synchronous>, transform_indices = @transform_9, window_bounds = array<i64: 4, 64, 64>}, {pipeline_mode = #tpu.pipeline_mode<synchronous>, transform_indices = @transform_10, window_bounds = array<i64: 4, 1, 64>}, {pipeline_mode = #tpu.pipeline_mode<synchronous>, transform_indices = @transform_11, window_bounds = array<i64: 4, 64, 32>}, {pipeline_mode = #tpu.pipeline_mode<synchronous>, transform_indices = @transform_12, window_bounds = array<i64: 4, 1, 32>}, {pipeline_mode = #tpu.pipeline_mode<synchronous>, transform_indices = @transform_13, window_bounds = array<i64: 32, 32>}, {pipeline_mode = #tpu.pipeline_mode<synchronous>, transform_indices = @transform_14, window_bounds = array<i64: 1, 32>}, {transform_indices = @transform_15, window_bounds = array<i64: 1, 1>}, {pipeline_mode = #tpu.pipeline_mode<synchronous>, transform_indices = @transform_16, window_bounds = array<i64: 32, 16>}, {pipeline_mode = #tpu.pipeline_mode<synchronous>, transform_indices = @transform_17, window_bounds = array<i64: 1, 16>}, {pipeline_mode = #tpu.pipeline_mode<synchronous>, transform_indices = @transform_18, window_bounds = array<i64: 16, 2>}, {pipeline_mode = #tpu.pipeline_mode<synchronous>, transform_indices = @transform_19, window_bounds = array<i64: 1, 2>}, {transform_indices = @transform_20, window_bounds = array<i64: 1, 9, 7>}, {transform_indices = @transform_21, window_bounds = array<i64: 1, 6, 2>}]} {
    %c0 = arith.constant 0 : index
    %c0_0 = arith.constant 0 : index
    %c0_1 = arith.constant 0 : index
    %0 = vector.load %arg1[%c0, %c0_0, %c0_1] : memref<1x8x32xf32, #tpu.memory_space<vmem>>, vector<1x8x32xf32>
    %1 = vector.shape_cast %0 : vector<1x8x32xf32> to vector<8x32xf32>
    %2 = arith.mulf %1, %1 : vector<8x32xf32>
    %cst = arith.constant dense<0.000000e+00> : vector<8xf32>
    %3 = vector.multi_reduction <add>, %2, %cst [1] : vector<8x32xf32> to vector<8xf32>
    %4 = vector.shape_cast %3 : vector<8xf32> to vector<8x1xf32>
    %5 = math.sqrt %4 : vector<8x1xf32>
    %cst_2 = arith.constant 9.99999996E-13 : f32
    %6 = vector.broadcast %cst_2 : f32 to vector<8x1xf32>
    %7 = arith.maximumf %5, %6 : vector<8x1xf32>
    %8 = vector.broadcast %7 : vector<8x1xf32> to vector<8x32xf32>
    %9 = arith.divf %1, %8 : vector<8x32xf32>
    %c0_3 = arith.constant 0 : index
    %c0_4 = arith.constant 0 : index
    %c0_5 = arith.constant 0 : index
    %10 = vector.load %arg2[%c0_3, %c0_4, %c0_5] : memref<1x6x32xf32, #tpu.memory_space<vmem>>, vector<1x6x32xf32>
    %11 = vector.shape_cast %10 : vector<1x6x32xf32> to vector<6x32xf32>
    %12 = arith.mulf %11, %11 : vector<6x32xf32>
    %cst_6 = arith.constant dense<0.000000e+00> : vector<6xf32>
    %13 = vector.multi_reduction <add>, %12, %cst_6 [1] : vector<6x32xf32> to vector<6xf32>
    %14 = vector.shape_cast %13 : vector<6xf32> to vector<6x1xf32>
    %15 = math.sqrt %14 : vector<6x1xf32>
    %cst_7 = arith.constant 9.99999996E-13 : f32
    %16 = vector.broadcast %cst_7 : f32 to vector<6x1xf32>
    %17 = arith.maximumf %15, %16 : vector<6x1xf32>
    %18 = vector.broadcast %17 : vector<6x1xf32> to vector<6x32xf32>
    %19 = arith.divf %11, %18 : vector<6x32xf32>
    %c0_8 = arith.constant 0 : index
    %c0_9 = arith.constant 0 : index
    %c0_10 = arith.constant 0 : index
    %20 = vector.load %arg3[%c0_8, %c0_9, %c0_10] : memref<4x32x32xf32, #tpu.memory_space<vmem>>, vector<1x32x32xf32>
    %21 = vector.shape_cast %20 : vector<1x32x32xf32> to vector<32x32xf32>
    %c0_11 = arith.constant 0 : index
    %c0_12 = arith.constant 0 : index
    %c0_13 = arith.constant 0 : index
    %22 = vector.load %arg4[%c0_11, %c0_12, %c0_13] : memref<4x1x32xf32, #tpu.memory_space<vmem>>, vector<1x1x32xf32>
    %23 = vector.shape_cast %22 : vector<1x1x32xf32> to vector<1x32xf32>
    %c0_14 = arith.constant 0 : index
    %c0_15 = arith.constant 0 : index
    %c0_16 = arith.constant 0 : index
    %24 = vector.load %arg5[%c0_14, %c0_15, %c0_16] : memref<4x32x32xf32, #tpu.memory_space<vmem>>, vector<1x32x32xf32>
    %25 = vector.shape_cast %24 : vector<1x32x32xf32> to vector<32x32xf32>
    %c0_17 = arith.constant 0 : index
    %c0_18 = arith.constant 0 : index
    %c0_19 = arith.constant 0 : index
    %26 = vector.load %arg6[%c0_17, %c0_18, %c0_19] : memref<4x1x32xf32, #tpu.memory_space<vmem>>, vector<1x1x32xf32>
    %27 = vector.shape_cast %26 : vector<1x1x32xf32> to vector<1x32xf32>
    %c0_20 = arith.constant 0 : index
    %c0_21 = arith.constant 0 : index
    %c0_22 = arith.constant 0 : index
    %28 = vector.load %arg7[%c0_20, %c0_21, %c0_22] : memref<4x32x32xf32, #tpu.memory_space<vmem>>, vector<1x32x32xf32>
    %29 = vector.shape_cast %28 : vector<1x32x32xf32> to vector<32x32xf32>
    %c0_23 = arith.constant 0 : index
    %c0_24 = arith.constant 0 : index
    %c0_25 = arith.constant 0 : index
    %30 = vector.load %arg8[%c0_23, %c0_24, %c0_25] : memref<4x1x32xf32, #tpu.memory_space<vmem>>, vector<1x1x32xf32>
    %31 = vector.shape_cast %30 : vector<1x1x32xf32> to vector<1x32xf32>
    %c0_26 = arith.constant 0 : index
    %c0_27 = arith.constant 0 : index
    %c0_28 = arith.constant 0 : index
    %32 = vector.load %arg9[%c0_26, %c0_27, %c0_28] : memref<4x32x32xf32, #tpu.memory_space<vmem>>, vector<1x32x32xf32>
    %33 = vector.shape_cast %32 : vector<1x32x32xf32> to vector<32x32xf32>
    %c0_29 = arith.constant 0 : index
    %c0_30 = arith.constant 0 : index
    %c0_31 = arith.constant 0 : index
    %34 = vector.load %arg10[%c0_29, %c0_30, %c0_31] : memref<4x64x64xf32, #tpu.memory_space<vmem>>, vector<1x64x64xf32>
    %35 = vector.shape_cast %34 : vector<1x64x64xf32> to vector<64x64xf32>
    %c0_32 = arith.constant 0 : index
    %c0_33 = arith.constant 0 : index
    %c0_34 = arith.constant 0 : index
    %36 = vector.load %arg11[%c0_32, %c0_33, %c0_34] : memref<4x1x64xf32, #tpu.memory_space<vmem>>, vector<1x1x64xf32>
    %37 = vector.shape_cast %36 : vector<1x1x64xf32> to vector<1x64xf32>
    %c0_35 = arith.constant 0 : index
    %c0_36 = arith.constant 0 : index
    %c0_37 = arith.constant 0 : index
    %38 = vector.load %arg12[%c0_35, %c0_36, %c0_37] : memref<4x64x32xf32, #tpu.memory_space<vmem>>, vector<1x64x32xf32>
    %39 = vector.shape_cast %38 : vector<1x64x32xf32> to vector<64x32xf32>
    %c0_38 = arith.constant 0 : index
    %c0_39 = arith.constant 0 : index
    %c0_40 = arith.constant 0 : index
    %40 = vector.load %arg13[%c0_38, %c0_39, %c0_40] : memref<4x1x32xf32, #tpu.memory_space<vmem>>, vector<1x1x32xf32>
    %41 = vector.shape_cast %40 : vector<1x1x32xf32> to vector<1x32xf32>
    %cst_41 = arith.constant dense<0.000000e+00> : vector<8x32xf32>
    %42 = tpu.matmul %9, %21, %cst_41 {dimension_numbers = #tpu.dot_dimension_numbers<[1], [0], [0], [1], [0, 0, 1, 1], [], []>} : vector<8x32xf32>, vector<32x32xf32>, vector<8x32xf32> -> vector<8x32xf32>
    %43 = vector.broadcast %23 : vector<1x32xf32> to vector<8x32xf32>
    %44 = arith.addf %42, %43 : vector<8x32xf32>
    %cst_42 = arith.constant dense<0.000000e+00> : vector<8x32xf32>
    %45 = tpu.matmul %9, %25, %cst_42 {dimension_numbers = #tpu.dot_dimension_numbers<[1], [0], [0], [1], [0, 0, 1, 1], [], []>} : vector<8x32xf32>, vector<32x32xf32>, vector<8x32xf32> -> vector<8x32xf32>
    %46 = vector.broadcast %27 : vector<1x32xf32> to vector<8x32xf32>
    %47 = arith.addf %45, %46 : vector<8x32xf32>
    %cst_43 = arith.constant dense<0.000000e+00> : vector<8x32xf32>
    %48 = tpu.matmul %9, %29, %cst_43 {dimension_numbers = #tpu.dot_dimension_numbers<[1], [0], [0], [1], [0, 0, 1, 1], [], []>} : vector<8x32xf32>, vector<32x32xf32>, vector<8x32xf32> -> vector<8x32xf32>
    %49 = vector.broadcast %31 : vector<1x32xf32> to vector<8x32xf32>
    %50 = arith.addf %48, %49 : vector<8x32xf32>
    %51 = vector.extract_strided_slice %44 {offsets = [0, 0], sizes = [8, 8], strides = [1, 1]} : vector<8x32xf32> to vector<8x8xf32>
    %52 = vector.extract_strided_slice %47 {offsets = [0, 0], sizes = [8, 8], strides = [1, 1]} : vector<8x32xf32> to vector<8x8xf32>
    %53 = vector.extract_strided_slice %50 {offsets = [0, 0], sizes = [8, 8], strides = [1, 1]} : vector<8x32xf32> to vector<8x8xf32>
    %cst_44 = arith.constant dense<0.000000e+00> : vector<8x8xf32>
    %54 = tpu.matmul %51, %52, %cst_44 {dimension_numbers = #tpu.dot_dimension_numbers<[1], [1], [0], [0], [0, 0, 1, 0], [], []>} : vector<8x8xf32>, vector<8x8xf32>, vector<8x8xf32> -> vector<8x8xf32>
    %cst_45 = arith.constant 0.353553385 : f32
    %55 = vector.broadcast %cst_45 : f32 to vector<8x8xf32>
    %56 = arith.mulf %54, %55 : vector<8x8xf32>
    %cst_46 = arith.constant dense<0xFF800000> : vector<8xf32>
    %57 = vector.multi_reduction <maximumf>, %56, %cst_46 [1] : vector<8x8xf32> to vector<8xf32>
    %58 = vector.shape_cast %57 : vector<8xf32> to vector<8x1xf32>
    %59 = vector.broadcast %58 : vector<8x1xf32> to vector<8x8xf32>
    %60 = arith.subf %56, %59 : vector<8x8xf32>
    %61 = math.exp %60 : vector<8x8xf32>
    %cst_47 = arith.constant dense<0.000000e+00> : vector<8xf32>
    %62 = vector.multi_reduction <add>, %61, %cst_47 [1] : vector<8x8xf32> to vector<8xf32>
    %63 = vector.shape_cast %62 : vector<8xf32> to vector<8x1xf32>
    %64 = tpu.reciprocal %63 {approx = true} : vector<8x1xf32> -> vector<8x1xf32>
    %65 = vector.broadcast %64 : vector<8x1xf32> to vector<8x8xf32>
    %66 = arith.mulf %61, %65 : vector<8x8xf32>
    %cst_48 = arith.constant dense<0.000000e+00> : vector<8x8xf32>
    %67 = tpu.matmul %66, %53, %cst_48 {dimension_numbers = #tpu.dot_dimension_numbers<[1], [0], [0], [1], [0, 0, 1, 1], [], []>} : vector<8x8xf32>, vector<8x8xf32>, vector<8x8xf32> -> vector<8x8xf32>
    %68 = vector.extract_strided_slice %33 {offsets = [0, 0], sizes = [8, 32], strides = [1, 1]} : vector<32x32xf32> to vector<8x32xf32>
    %cst_49 = arith.constant dense<0.000000e+00> : vector<8x32xf32>
    %69 = tpu.matmul %67, %68, %cst_49 {dimension_numbers = #tpu.dot_dimension_numbers<[1], [0], [0], [1], [0, 0, 1, 1], [], []>} : vector<8x8xf32>, vector<8x32xf32>, vector<8x32xf32> -> vector<8x32xf32>
    %70 = vector.extract_strided_slice %44 {offsets = [0, 8], sizes = [8, 8], strides = [1, 1]} : vector<8x32xf32> to vector<8x8xf32>
    %71 = vector.extract_strided_slice %47 {offsets = [0, 8], sizes = [8, 8], strides = [1, 1]} : vector<8x32xf32> to vector<8x8xf32>
    %72 = vector.extract_strided_slice %50 {offsets = [0, 8], sizes = [8, 8], strides = [1, 1]} : vector<8x32xf32> to vector<8x8xf32>
    %cst_50 = arith.constant dense<0.000000e+00> : vector<8x8xf32>
    %73 = tpu.matmul %70, %71, %cst_50 {dimension_numbers = #tpu.dot_dimension_numbers<[1], [1], [0], [0], [0, 0, 1, 0], [], []>} : vector<8x8xf32>, vector<8x8xf32>, vector<8x8xf32> -> vector<8x8xf32>
    %cst_51 = arith.constant 0.353553385 : f32
    %74 = vector.broadcast %cst_51 : f32 to vector<8x8xf32>
    %75 = arith.mulf %73, %74 : vector<8x8xf32>
    %cst_52 = arith.constant dense<0xFF800000> : vector<8xf32>
    %76 = vector.multi_reduction <maximumf>, %75, %cst_52 [1] : vector<8x8xf32> to vector<8xf32>
    %77 = vector.shape_cast %76 : vector<8xf32> to vector<8x1xf32>
    %78 = vector.broadcast %77 : vector<8x1xf32> to vector<8x8xf32>
    %79 = arith.subf %75, %78 : vector<8x8xf32>
    %80 = math.exp %79 : vector<8x8xf32>
    %cst_53 = arith.constant dense<0.000000e+00> : vector<8xf32>
    %81 = vector.multi_reduction <add>, %80, %cst_53 [1] : vector<8x8xf32> to vector<8xf32>
    %82 = vector.shape_cast %81 : vector<8xf32> to vector<8x1xf32>
    %83 = tpu.reciprocal %82 {approx = true} : vector<8x1xf32> -> vector<8x1xf32>
    %84 = vector.broadcast %83 : vector<8x1xf32> to vector<8x8xf32>
    %85 = arith.mulf %80, %84 : vector<8x8xf32>
    %cst_54 = arith.constant dense<0.000000e+00> : vector<8x8xf32>
    %86 = tpu.matmul %85, %72, %cst_54 {dimension_numbers = #tpu.dot_dimension_numbers<[1], [0], [0], [1], [0, 0, 1, 1], [], []>} : vector<8x8xf32>, vector<8x8xf32>, vector<8x8xf32> -> vector<8x8xf32>
    %87 = vector.extract_strided_slice %33 {offsets = [8, 0], sizes = [8, 32], strides = [1, 1]} : vector<32x32xf32> to vector<8x32xf32>
    %cst_55 = arith.constant dense<0.000000e+00> : vector<8x32xf32>
    %88 = tpu.matmul %86, %87, %cst_55 {dimension_numbers = #tpu.dot_dimension_numbers<[1], [0], [0], [1], [0, 0, 1, 1], [], []>} : vector<8x8xf32>, vector<8x32xf32>, vector<8x32xf32> -> vector<8x32xf32>
    %89 = arith.addf %69, %88 : vector<8x32xf32>
    %90 = vector.extract_strided_slice %44 {offsets = [0, 16], sizes = [8, 8], strides = [1, 1]} : vector<8x32xf32> to vector<8x8xf32>
    %91 = vector.extract_strided_slice %47 {offsets = [0, 16], sizes = [8, 8], strides = [1, 1]} : vector<8x32xf32> to vector<8x8xf32>
    %92 = vector.extract_strided_slice %50 {offsets = [0, 16], sizes = [8, 8], strides = [1, 1]} : vector<8x32xf32> to vector<8x8xf32>
    %cst_56 = arith.constant dense<0.000000e+00> : vector<8x8xf32>
    %93 = tpu.matmul %90, %91, %cst_56 {dimension_numbers = #tpu.dot_dimension_numbers<[1], [1], [0], [0], [0, 0, 1, 0], [], []>} : vector<8x8xf32>, vector<8x8xf32>, vector<8x8xf32> -> vector<8x8xf32>
    %cst_57 = arith.constant 0.353553385 : f32
    %94 = vector.broadcast %cst_57 : f32 to vector<8x8xf32>
    %95 = arith.mulf %93, %94 : vector<8x8xf32>
    %cst_58 = arith.constant dense<0xFF800000> : vector<8xf32>
    %96 = vector.multi_reduction <maximumf>, %95, %cst_58 [1] : vector<8x8xf32> to vector<8xf32>
    %97 = vector.shape_cast %96 : vector<8xf32> to vector<8x1xf32>
    %98 = vector.broadcast %97 : vector<8x1xf32> to vector<8x8xf32>
    %99 = arith.subf %95, %98 : vector<8x8xf32>
    %100 = math.exp %99 : vector<8x8xf32>
    %cst_59 = arith.constant dense<0.000000e+00> : vector<8xf32>
    %101 = vector.multi_reduction <add>, %100, %cst_59 [1] : vector<8x8xf32> to vector<8xf32>
    %102 = vector.shape_cast %101 : vector<8xf32> to vector<8x1xf32>
    %103 = tpu.reciprocal %102 {approx = true} : vector<8x1xf32> -> vector<8x1xf32>
    %104 = vector.broadcast %103 : vector<8x1xf32> to vector<8x8xf32>
    %105 = arith.mulf %100, %104 : vector<8x8xf32>
    %cst_60 = arith.constant dense<0.000000e+00> : vector<8x8xf32>
    %106 = tpu.matmul %105, %92, %cst_60 {dimension_numbers = #tpu.dot_dimension_numbers<[1], [0], [0], [1], [0, 0, 1, 1], [], []>} : vector<8x8xf32>, vector<8x8xf32>, vector<8x8xf32> -> vector<8x8xf32>
    %107 = vector.extract_strided_slice %33 {offsets = [16, 0], sizes = [8, 32], strides = [1, 1]} : vector<32x32xf32> to vector<8x32xf32>
    %cst_61 = arith.constant dense<0.000000e+00> : vector<8x32xf32>
    %108 = tpu.matmul %106, %107, %cst_61 {dimension_numbers = #tpu.dot_dimension_numbers<[1], [0], [0], [1], [0, 0, 1, 1], [], []>} : vector<8x8xf32>, vector<8x32xf32>, vector<8x32xf32> -> vector<8x32xf32>
    %109 = arith.addf %89, %108 : vector<8x32xf32>
    %110 = vector.extract_strided_slice %44 {offsets = [0, 24], sizes = [8, 8], strides = [1, 1]} : vector<8x32xf32> to vector<8x8xf32>
    %111 = vector.extract_strided_slice %47 {offsets = [0, 24], sizes = [8, 8], strides = [1, 1]} : vector<8x32xf32> to vector<8x8xf32>
    %112 = vector.extract_strided_slice %50 {offsets = [0, 24], sizes = [8, 8], strides = [1, 1]} : vector<8x32xf32> to vector<8x8xf32>
    %cst_62 = arith.constant dense<0.000000e+00> : vector<8x8xf32>
    %113 = tpu.matmul %110, %111, %cst_62 {dimension_numbers = #tpu.dot_dimension_numbers<[1], [1], [0], [0], [0, 0, 1, 0], [], []>} : vector<8x8xf32>, vector<8x8xf32>, vector<8x8xf32> -> vector<8x8xf32>
    %cst_63 = arith.constant 0.353553385 : f32
    %114 = vector.broadcast %cst_63 : f32 to vector<8x8xf32>
    %115 = arith.mulf %113, %114 : vector<8x8xf32>
    %cst_64 = arith.constant dense<0xFF800000> : vector<8xf32>
    %116 = vector.multi_reduction <maximumf>, %115, %cst_64 [1] : vector<8x8xf32> to vector<8xf32>
    %117 = vector.shape_cast %116 : vector<8xf32> to vector<8x1xf32>
    %118 = vector.broadcast %117 : vector<8x1xf32> to vector<8x8xf32>
    %119 = arith.subf %115, %118 : vector<8x8xf32>
    %120 = math.exp %119 : vector<8x8xf32>
    %cst_65 = arith.constant dense<0.000000e+00> : vector<8xf32>
    %121 = vector.multi_reduction <add>, %120, %cst_65 [1] : vector<8x8xf32> to vector<8xf32>
    %122 = vector.shape_cast %121 : vector<8xf32> to vector<8x1xf32>
    %123 = tpu.reciprocal %122 {approx = true} : vector<8x1xf32> -> vector<8x1xf32>
    %124 = vector.broadcast %123 : vector<8x1xf32> to vector<8x8xf32>
    %125 = arith.mulf %120, %124 : vector<8x8xf32>
    %cst_66 = arith.constant dense<0.000000e+00> : vector<8x8xf32>
    %126 = tpu.matmul %125, %112, %cst_66 {dimension_numbers = #tpu.dot_dimension_numbers<[1], [0], [0], [1], [0, 0, 1, 1], [], []>} : vector<8x8xf32>, vector<8x8xf32>, vector<8x8xf32> -> vector<8x8xf32>
    %127 = vector.extract_strided_slice %33 {offsets = [24, 0], sizes = [8, 32], strides = [1, 1]} : vector<32x32xf32> to vector<8x32xf32>
    %cst_67 = arith.constant dense<0.000000e+00> : vector<8x32xf32>
    %128 = tpu.matmul %126, %127, %cst_67 {dimension_numbers = #tpu.dot_dimension_numbers<[1], [0], [0], [1], [0, 0, 1, 1], [], []>} : vector<8x8xf32>, vector<8x32xf32>, vector<8x32xf32> -> vector<8x32xf32>
    %129 = arith.addf %109, %128 : vector<8x32xf32>
    %130 = vector.extract_strided_slice %35 {offsets = [0, 0], sizes = [32, 64], strides = [1, 1]} : vector<64x64xf32> to vector<32x64xf32>
    %cst_68 = arith.constant dense<0.000000e+00> : vector<8x64xf32>
    %131 = tpu.matmul %9, %130, %cst_68 {dimension_numbers = #tpu.dot_dimension_numbers<[1], [0], [0], [1], [0, 0, 1, 1], [], []>} : vector<8x32xf32>, vector<32x64xf32>, vector<8x64xf32> -> vector<8x64xf32>
    %132 = vector.extract_strided_slice %35 {offsets = [32, 0], sizes = [32, 64], strides = [1, 1]} : vector<64x64xf32> to vector<32x64xf32>
    %cst_69 = arith.constant dense<0.000000e+00> : vector<8x64xf32>
    %133 = tpu.matmul %129, %132, %cst_69 {dimension_numbers = #tpu.dot_dimension_numbers<[1], [0], [0], [1], [0, 0, 1, 1], [], []>} : vector<8x32xf32>, vector<32x64xf32>, vector<8x64xf32> -> vector<8x64xf32>
    %134 = arith.addf %131, %133 : vector<8x64xf32>
    %135 = vector.broadcast %37 : vector<1x64xf32> to vector<8x64xf32>
    %136 = arith.addf %134, %135 : vector<8x64xf32>
    %cst_70 = arith.constant 0.000000e+00 : f32
    %137 = vector.broadcast %cst_70 : f32 to vector<8x64xf32>
    %138 = arith.maximumf %136, %137 : vector<8x64xf32>
    %cst_71 = arith.constant dense<0.000000e+00> : vector<8x32xf32>
    %139 = tpu.matmul %138, %39, %cst_71 {dimension_numbers = #tpu.dot_dimension_numbers<[1], [0], [0], [1], [0, 0, 1, 1], [], []>} : vector<8x64xf32>, vector<64x32xf32>, vector<8x32xf32> -> vector<8x32xf32>
    %140 = vector.broadcast %41 : vector<1x32xf32> to vector<8x32xf32>
    %141 = arith.addf %139, %140 : vector<8x32xf32>
    %142 = arith.addf %9, %141 : vector<8x32xf32>
    %cst_72 = arith.constant dense<0.000000e+00> : vector<6x32xf32>
    %143 = tpu.matmul %19, %21, %cst_72 {dimension_numbers = #tpu.dot_dimension_numbers<[1], [0], [0], [1], [0, 0, 1, 1], [], []>} : vector<6x32xf32>, vector<32x32xf32>, vector<6x32xf32> -> vector<6x32xf32>
    %144 = vector.broadcast %23 : vector<1x32xf32> to vector<6x32xf32>
    %145 = arith.addf %143, %144 : vector<6x32xf32>
    %cst_73 = arith.constant dense<0.000000e+00> : vector<6x32xf32>
    %146 = tpu.matmul %19, %25, %cst_73 {dimension_numbers = #tpu.dot_dimension_numbers<[1], [0], [0], [1], [0, 0, 1, 1], [], []>} : vector<6x32xf32>, vector<32x32xf32>, vector<6x32xf32> -> vector<6x32xf32>
    %147 = vector.broadcast %27 : vector<1x32xf32> to vector<6x32xf32>
    %148 = arith.addf %146, %147 : vector<6x32xf32>
    %cst_74 = arith.constant dense<0.000000e+00> : vector<6x32xf32>
    %149 = tpu.matmul %19, %29, %cst_74 {dimension_numbers = #tpu.dot_dimension_numbers<[1], [0], [0], [1], [0, 0, 1, 1], [], []>} : vector<6x32xf32>, vector<32x32xf32>, vector<6x32xf32> -> vector<6x32xf32>
    %150 = vector.broadcast %31 : vector<1x32xf32> to vector<6x32xf32>
    %151 = arith.addf %149, %150 : vector<6x32xf32>
    %152 = vector.extract_strided_slice %145 {offsets = [0, 0], sizes = [6, 8], strides = [1, 1]} : vector<6x32xf32> to vector<6x8xf32>
    %153 = vector.extract_strided_slice %148 {offsets = [0, 0], sizes = [6, 8], strides = [1, 1]} : vector<6x32xf32> to vector<6x8xf32>
    %154 = vector.extract_strided_slice %151 {offsets = [0, 0], sizes = [6, 8], strides = [1, 1]} : vector<6x32xf32> to vector<6x8xf32>
    %cst_75 = arith.constant dense<0.000000e+00> : vector<6x6xf32>
    %155 = tpu.matmul %152, %153, %cst_75 {dimension_numbers = #tpu.dot_dimension_numbers<[1], [1], [0], [0], [0, 0, 1, 0], [], []>} : vector<6x8xf32>, vector<6x8xf32>, vector<6x6xf32> -> vector<6x6xf32>
    %cst_76 = arith.constant 0.353553385 : f32
    %156 = vector.broadcast %cst_76 : f32 to vector<6x6xf32>
    %157 = arith.mulf %155, %156 : vector<6x6xf32>
    %cst_77 = arith.constant dense<0xFF800000> : vector<6xf32>
    %158 = vector.multi_reduction <maximumf>, %157, %cst_77 [1] : vector<6x6xf32> to vector<6xf32>
    %159 = vector.shape_cast %158 : vector<6xf32> to vector<6x1xf32>
    %160 = vector.broadcast %159 : vector<6x1xf32> to vector<6x6xf32>
    %161 = arith.subf %157, %160 : vector<6x6xf32>
    %162 = math.exp %161 : vector<6x6xf32>
    %cst_78 = arith.constant dense<0.000000e+00> : vector<6xf32>
    %163 = vector.multi_reduction <add>, %162, %cst_78 [1] : vector<6x6xf32> to vector<6xf32>
    %164 = vector.shape_cast %163 : vector<6xf32> to vector<6x1xf32>
    %165 = tpu.reciprocal %164 {approx = true} : vector<6x1xf32> -> vector<6x1xf32>
    %166 = vector.broadcast %165 : vector<6x1xf32> to vector<6x6xf32>
    %167 = arith.mulf %162, %166 : vector<6x6xf32>
    %cst_79 = arith.constant dense<0.000000e+00> : vector<6x8xf32>
    %168 = tpu.matmul %167, %154, %cst_79 {dimension_numbers = #tpu.dot_dimension_numbers<[1], [0], [0], [1], [0, 0, 1, 1], [], []>} : vector<6x6xf32>, vector<6x8xf32>, vector<6x8xf32> -> vector<6x8xf32>
    %169 = vector.extract_strided_slice %33 {offsets = [0, 0], sizes = [8, 32], strides = [1, 1]} : vector<32x32xf32> to vector<8x32xf32>
    %cst_80 = arith.constant dense<0.000000e+00> : vector<6x32xf32>
    %170 = tpu.matmul %168, %169, %cst_80 {dimension_numbers = #tpu.dot_dimension_numbers<[1], [0], [0], [1], [0, 0, 1, 1], [], []>} : vector<6x8xf32>, vector<8x32xf32>, vector<6x32xf32> -> vector<6x32xf32>
    %171 = vector.extract_strided_slice %145 {offsets = [0, 8], sizes = [6, 8], strides = [1, 1]} : vector<6x32xf32> to vector<6x8xf32>
    %172 = vector.extract_strided_slice %148 {offsets = [0, 8], sizes = [6, 8], strides = [1, 1]} : vector<6x32xf32> to vector<6x8xf32>
    %173 = vector.extract_strided_slice %151 {offsets = [0, 8], sizes = [6, 8], strides = [1, 1]} : vector<6x32xf32> to vector<6x8xf32>
    %cst_81 = arith.constant dense<0.000000e+00> : vector<6x6xf32>
    %174 = tpu.matmul %171, %172, %cst_81 {dimension_numbers = #tpu.dot_dimension_numbers<[1], [1], [0], [0], [0, 0, 1, 0], [], []>} : vector<6x8xf32>, vector<6x8xf32>, vector<6x6xf32> -> vector<6x6xf32>
    %cst_82 = arith.constant 0.353553385 : f32
    %175 = vector.broadcast %cst_82 : f32 to vector<6x6xf32>
    %176 = arith.mulf %174, %175 : vector<6x6xf32>
    %cst_83 = arith.constant dense<0xFF800000> : vector<6xf32>
    %177 = vector.multi_reduction <maximumf>, %176, %cst_83 [1] : vector<6x6xf32> to vector<6xf32>
    %178 = vector.shape_cast %177 : vector<6xf32> to vector<6x1xf32>
    %179 = vector.broadcast %178 : vector<6x1xf32> to vector<6x6xf32>
    %180 = arith.subf %176, %179 : vector<6x6xf32>
    %181 = math.exp %180 : vector<6x6xf32>
    %cst_84 = arith.constant dense<0.000000e+00> : vector<6xf32>
    %182 = vector.multi_reduction <add>, %181, %cst_84 [1] : vector<6x6xf32> to vector<6xf32>
    %183 = vector.shape_cast %182 : vector<6xf32> to vector<6x1xf32>
    %184 = tpu.reciprocal %183 {approx = true} : vector<6x1xf32> -> vector<6x1xf32>
    %185 = vector.broadcast %184 : vector<6x1xf32> to vector<6x6xf32>
    %186 = arith.mulf %181, %185 : vector<6x6xf32>
    %cst_85 = arith.constant dense<0.000000e+00> : vector<6x8xf32>
    %187 = tpu.matmul %186, %173, %cst_85 {dimension_numbers = #tpu.dot_dimension_numbers<[1], [0], [0], [1], [0, 0, 1, 1], [], []>} : vector<6x6xf32>, vector<6x8xf32>, vector<6x8xf32> -> vector<6x8xf32>
    %188 = vector.extract_strided_slice %33 {offsets = [8, 0], sizes = [8, 32], strides = [1, 1]} : vector<32x32xf32> to vector<8x32xf32>
    %cst_86 = arith.constant dense<0.000000e+00> : vector<6x32xf32>
    %189 = tpu.matmul %187, %188, %cst_86 {dimension_numbers = #tpu.dot_dimension_numbers<[1], [0], [0], [1], [0, 0, 1, 1], [], []>} : vector<6x8xf32>, vector<8x32xf32>, vector<6x32xf32> -> vector<6x32xf32>
    %190 = arith.addf %170, %189 : vector<6x32xf32>
    %191 = vector.extract_strided_slice %145 {offsets = [0, 16], sizes = [6, 8], strides = [1, 1]} : vector<6x32xf32> to vector<6x8xf32>
    %192 = vector.extract_strided_slice %148 {offsets = [0, 16], sizes = [6, 8], strides = [1, 1]} : vector<6x32xf32> to vector<6x8xf32>
    %193 = vector.extract_strided_slice %151 {offsets = [0, 16], sizes = [6, 8], strides = [1, 1]} : vector<6x32xf32> to vector<6x8xf32>
    %cst_87 = arith.constant dense<0.000000e+00> : vector<6x6xf32>
    %194 = tpu.matmul %191, %192, %cst_87 {dimension_numbers = #tpu.dot_dimension_numbers<[1], [1], [0], [0], [0, 0, 1, 0], [], []>} : vector<6x8xf32>, vector<6x8xf32>, vector<6x6xf32> -> vector<6x6xf32>
    %cst_88 = arith.constant 0.353553385 : f32
    %195 = vector.broadcast %cst_88 : f32 to vector<6x6xf32>
    %196 = arith.mulf %194, %195 : vector<6x6xf32>
    %cst_89 = arith.constant dense<0xFF800000> : vector<6xf32>
    %197 = vector.multi_reduction <maximumf>, %196, %cst_89 [1] : vector<6x6xf32> to vector<6xf32>
    %198 = vector.shape_cast %197 : vector<6xf32> to vector<6x1xf32>
    %199 = vector.broadcast %198 : vector<6x1xf32> to vector<6x6xf32>
    %200 = arith.subf %196, %199 : vector<6x6xf32>
    %201 = math.exp %200 : vector<6x6xf32>
    %cst_90 = arith.constant dense<0.000000e+00> : vector<6xf32>
    %202 = vector.multi_reduction <add>, %201, %cst_90 [1] : vector<6x6xf32> to vector<6xf32>
    %203 = vector.shape_cast %202 : vector<6xf32> to vector<6x1xf32>
    %204 = tpu.reciprocal %203 {approx = true} : vector<6x1xf32> -> vector<6x1xf32>
    %205 = vector.broadcast %204 : vector<6x1xf32> to vector<6x6xf32>
    %206 = arith.mulf %201, %205 : vector<6x6xf32>
    %cst_91 = arith.constant dense<0.000000e+00> : vector<6x8xf32>
    %207 = tpu.matmul %206, %193, %cst_91 {dimension_numbers = #tpu.dot_dimension_numbers<[1], [0], [0], [1], [0, 0, 1, 1], [], []>} : vector<6x6xf32>, vector<6x8xf32>, vector<6x8xf32> -> vector<6x8xf32>
    %208 = vector.extract_strided_slice %33 {offsets = [16, 0], sizes = [8, 32], strides = [1, 1]} : vector<32x32xf32> to vector<8x32xf32>
    %cst_92 = arith.constant dense<0.000000e+00> : vector<6x32xf32>
    %209 = tpu.matmul %207, %208, %cst_92 {dimension_numbers = #tpu.dot_dimension_numbers<[1], [0], [0], [1], [0, 0, 1, 1], [], []>} : vector<6x8xf32>, vector<8x32xf32>, vector<6x32xf32> -> vector<6x32xf32>
    %210 = arith.addf %190, %209 : vector<6x32xf32>
    %211 = vector.extract_strided_slice %145 {offsets = [0, 24], sizes = [6, 8], strides = [1, 1]} : vector<6x32xf32> to vector<6x8xf32>
    %212 = vector.extract_strided_slice %148 {offsets = [0, 24], sizes = [6, 8], strides = [1, 1]} : vector<6x32xf32> to vector<6x8xf32>
    %213 = vector.extract_strided_slice %151 {offsets = [0, 24], sizes = [6, 8], strides = [1, 1]} : vector<6x32xf32> to vector<6x8xf32>
    %cst_93 = arith.constant dense<0.000000e+00> : vector<6x6xf32>
    %214 = tpu.matmul %211, %212, %cst_93 {dimension_numbers = #tpu.dot_dimension_numbers<[1], [1], [0], [0], [0, 0, 1, 0], [], []>} : vector<6x8xf32>, vector<6x8xf32>, vector<6x6xf32> -> vector<6x6xf32>
    %cst_94 = arith.constant 0.353553385 : f32
    %215 = vector.broadcast %cst_94 : f32 to vector<6x6xf32>
    %216 = arith.mulf %214, %215 : vector<6x6xf32>
    %cst_95 = arith.constant dense<0xFF800000> : vector<6xf32>
    %217 = vector.multi_reduction <maximumf>, %216, %cst_95 [1] : vector<6x6xf32> to vector<6xf32>
    %218 = vector.shape_cast %217 : vector<6xf32> to vector<6x1xf32>
    %219 = vector.broadcast %218 : vector<6x1xf32> to vector<6x6xf32>
    %220 = arith.subf %216, %219 : vector<6x6xf32>
    %221 = math.exp %220 : vector<6x6xf32>
    %cst_96 = arith.constant dense<0.000000e+00> : vector<6xf32>
    %222 = vector.multi_reduction <add>, %221, %cst_96 [1] : vector<6x6xf32> to vector<6xf32>
    %223 = vector.shape_cast %222 : vector<6xf32> to vector<6x1xf32>
    %224 = tpu.reciprocal %223 {approx = true} : vector<6x1xf32> -> vector<6x1xf32>
    %225 = vector.broadcast %224 : vector<6x1xf32> to vector<6x6xf32>
    %226 = arith.mulf %221, %225 : vector<6x6xf32>
    %cst_97 = arith.constant dense<0.000000e+00> : vector<6x8xf32>
    %227 = tpu.matmul %226, %213, %cst_97 {dimension_numbers = #tpu.dot_dimension_numbers<[1], [0], [0], [1], [0, 0, 1, 1], [], []>} : vector<6x6xf32>, vector<6x8xf32>, vector<6x8xf32> -> vector<6x8xf32>
    %228 = vector.extract_strided_slice %33 {offsets = [24, 0], sizes = [8, 32], strides = [1, 1]} : vector<32x32xf32> to vector<8x32xf32>
    %cst_98 = arith.constant dense<0.000000e+00> : vector<6x32xf32>
    %229 = tpu.matmul %227, %228, %cst_98 {dimension_numbers = #tpu.dot_dimension_numbers<[1], [0], [0], [1], [0, 0, 1, 1], [], []>} : vector<6x8xf32>, vector<8x32xf32>, vector<6x32xf32> -> vector<6x32xf32>
    %230 = arith.addf %210, %229 : vector<6x32xf32>
    %231 = vector.extract_strided_slice %35 {offsets = [0, 0], sizes = [32, 64], strides = [1, 1]} : vector<64x64xf32> to vector<32x64xf32>
    %cst_99 = arith.constant dense<0.000000e+00> : vector<6x64xf32>
    %232 = tpu.matmul %19, %231, %cst_99 {dimension_numbers = #tpu.dot_dimension_numbers<[1], [0], [0], [1], [0, 0, 1, 1], [], []>} : vector<6x32xf32>, vector<32x64xf32>, vector<6x64xf32> -> vector<6x64xf32>
    %233 = vector.extract_strided_slice %35 {offsets = [32, 0], sizes = [32, 64], strides = [1, 1]} : vector<64x64xf32> to vector<32x64xf32>
    %cst_100 = arith.constant dense<0.000000e+00> : vector<6x64xf32>
    %234 = tpu.matmul %230, %233, %cst_100 {dimension_numbers = #tpu.dot_dimension_numbers<[1], [0], [0], [1], [0, 0, 1, 1], [], []>} : vector<6x32xf32>, vector<32x64xf32>, vector<6x64xf32> -> vector<6x64xf32>
    %235 = arith.addf %232, %234 : vector<6x64xf32>
    %236 = vector.broadcast %37 : vector<1x64xf32> to vector<6x64xf32>
    %237 = arith.addf %235, %236 : vector<6x64xf32>
    %cst_101 = arith.constant 0.000000e+00 : f32
    %238 = vector.broadcast %cst_101 : f32 to vector<6x64xf32>
    %239 = arith.maximumf %237, %238 : vector<6x64xf32>
    %cst_102 = arith.constant dense<0.000000e+00> : vector<6x32xf32>
    %240 = tpu.matmul %239, %39, %cst_102 {dimension_numbers = #tpu.dot_dimension_numbers<[1], [0], [0], [1], [0, 0, 1, 1], [], []>} : vector<6x64xf32>, vector<64x32xf32>, vector<6x32xf32> -> vector<6x32xf32>
    %241 = vector.broadcast %41 : vector<1x32xf32> to vector<6x32xf32>
    %242 = arith.addf %240, %241 : vector<6x32xf32>
    %243 = arith.addf %19, %242 : vector<6x32xf32>
    %c1 = arith.constant 1 : index
    %c0_103 = arith.constant 0 : index
    %c0_104 = arith.constant 0 : index
    %244 = vector.load %arg3[%c1, %c0_103, %c0_104] : memref<4x32x32xf32, #tpu.memory_space<vmem>>, vector<1x32x32xf32>
    %245 = vector.shape_cast %244 : vector<1x32x32xf32> to vector<32x32xf32>
    %c1_105 = arith.constant 1 : index
    %c0_106 = arith.constant 0 : index
    %c0_107 = arith.constant 0 : index
    %246 = vector.load %arg4[%c1_105, %c0_106, %c0_107] : memref<4x1x32xf32, #tpu.memory_space<vmem>>, vector<1x1x32xf32>
    %247 = vector.shape_cast %246 : vector<1x1x32xf32> to vector<1x32xf32>
    %c1_108 = arith.constant 1 : index
    %c0_109 = arith.constant 0 : index
    %c0_110 = arith.constant 0 : index
    %248 = vector.load %arg5[%c1_108, %c0_109, %c0_110] : memref<4x32x32xf32, #tpu.memory_space<vmem>>, vector<1x32x32xf32>
    %249 = vector.shape_cast %248 : vector<1x32x32xf32> to vector<32x32xf32>
    %c1_111 = arith.constant 1 : index
    %c0_112 = arith.constant 0 : index
    %c0_113 = arith.constant 0 : index
    %250 = vector.load %arg6[%c1_111, %c0_112, %c0_113] : memref<4x1x32xf32, #tpu.memory_space<vmem>>, vector<1x1x32xf32>
    %251 = vector.shape_cast %250 : vector<1x1x32xf32> to vector<1x32xf32>
    %c1_114 = arith.constant 1 : index
    %c0_115 = arith.constant 0 : index
    %c0_116 = arith.constant 0 : index
    %252 = vector.load %arg7[%c1_114, %c0_115, %c0_116] : memref<4x32x32xf32, #tpu.memory_space<vmem>>, vector<1x32x32xf32>
    %253 = vector.shape_cast %252 : vector<1x32x32xf32> to vector<32x32xf32>
    %c1_117 = arith.constant 1 : index
    %c0_118 = arith.constant 0 : index
    %c0_119 = arith.constant 0 : index
    %254 = vector.load %arg8[%c1_117, %c0_118, %c0_119] : memref<4x1x32xf32, #tpu.memory_space<vmem>>, vector<1x1x32xf32>
    %255 = vector.shape_cast %254 : vector<1x1x32xf32> to vector<1x32xf32>
    %c1_120 = arith.constant 1 : index
    %c0_121 = arith.constant 0 : index
    %c0_122 = arith.constant 0 : index
    %256 = vector.load %arg9[%c1_120, %c0_121, %c0_122] : memref<4x32x32xf32, #tpu.memory_space<vmem>>, vector<1x32x32xf32>
    %257 = vector.shape_cast %256 : vector<1x32x32xf32> to vector<32x32xf32>
    %c1_123 = arith.constant 1 : index
    %c0_124 = arith.constant 0 : index
    %c0_125 = arith.constant 0 : index
    %258 = vector.load %arg10[%c1_123, %c0_124, %c0_125] : memref<4x64x64xf32, #tpu.memory_space<vmem>>, vector<1x64x64xf32>
    %259 = vector.shape_cast %258 : vector<1x64x64xf32> to vector<64x64xf32>
    %c1_126 = arith.constant 1 : index
    %c0_127 = arith.constant 0 : index
    %c0_128 = arith.constant 0 : index
    %260 = vector.load %arg11[%c1_126, %c0_127, %c0_128] : memref<4x1x64xf32, #tpu.memory_space<vmem>>, vector<1x1x64xf32>
    %261 = vector.shape_cast %260 : vector<1x1x64xf32> to vector<1x64xf32>
    %c1_129 = arith.constant 1 : index
    %c0_130 = arith.constant 0 : index
    %c0_131 = arith.constant 0 : index
    %262 = vector.load %arg12[%c1_129, %c0_130, %c0_131] : memref<4x64x32xf32, #tpu.memory_space<vmem>>, vector<1x64x32xf32>
    %263 = vector.shape_cast %262 : vector<1x64x32xf32> to vector<64x32xf32>
    %c1_132 = arith.constant 1 : index
    %c0_133 = arith.constant 0 : index
    %c0_134 = arith.constant 0 : index
    %264 = vector.load %arg13[%c1_132, %c0_133, %c0_134] : memref<4x1x32xf32, #tpu.memory_space<vmem>>, vector<1x1x32xf32>
    %265 = vector.shape_cast %264 : vector<1x1x32xf32> to vector<1x32xf32>
    %cst_135 = arith.constant dense<0.000000e+00> : vector<8x32xf32>
    %266 = tpu.matmul %142, %245, %cst_135 {dimension_numbers = #tpu.dot_dimension_numbers<[1], [0], [0], [1], [0, 0, 1, 1], [], []>} : vector<8x32xf32>, vector<32x32xf32>, vector<8x32xf32> -> vector<8x32xf32>
    %267 = vector.broadcast %247 : vector<1x32xf32> to vector<8x32xf32>
    %268 = arith.addf %266, %267 : vector<8x32xf32>
    %cst_136 = arith.constant dense<0.000000e+00> : vector<6x32xf32>
    %269 = tpu.matmul %243, %249, %cst_136 {dimension_numbers = #tpu.dot_dimension_numbers<[1], [0], [0], [1], [0, 0, 1, 1], [], []>} : vector<6x32xf32>, vector<32x32xf32>, vector<6x32xf32> -> vector<6x32xf32>
    %270 = vector.broadcast %251 : vector<1x32xf32> to vector<6x32xf32>
    %271 = arith.addf %269, %270 : vector<6x32xf32>
    %cst_137 = arith.constant dense<0.000000e+00> : vector<6x32xf32>
    %272 = tpu.matmul %243, %253, %cst_137 {dimension_numbers = #tpu.dot_dimension_numbers<[1], [0], [0], [1], [0, 0, 1, 1], [], []>} : vector<6x32xf32>, vector<32x32xf32>, vector<6x32xf32> -> vector<6x32xf32>
    %273 = vector.broadcast %255 : vector<1x32xf32> to vector<6x32xf32>
    %274 = arith.addf %272, %273 : vector<6x32xf32>
    %275 = vector.extract_strided_slice %268 {offsets = [0, 0], sizes = [8, 8], strides = [1, 1]} : vector<8x32xf32> to vector<8x8xf32>
    %276 = vector.extract_strided_slice %271 {offsets = [0, 0], sizes = [6, 8], strides = [1, 1]} : vector<6x32xf32> to vector<6x8xf32>
    %277 = vector.extract_strided_slice %274 {offsets = [0, 0], sizes = [6, 8], strides = [1, 1]} : vector<6x32xf32> to vector<6x8xf32>
    %cst_138 = arith.constant dense<0.000000e+00> : vector<8x6xf32>
    %278 = tpu.matmul %275, %276, %cst_138 {dimension_numbers = #tpu.dot_dimension_numbers<[1], [1], [0], [0], [0, 0, 1, 0], [], []>} : vector<8x8xf32>, vector<6x8xf32>, vector<8x6xf32> -> vector<8x6xf32>
    %cst_139 = arith.constant 0.353553385 : f32
    %279 = vector.broadcast %cst_139 : f32 to vector<8x6xf32>
    %280 = arith.mulf %278, %279 : vector<8x6xf32>
    %cst_140 = arith.constant dense<0xFF800000> : vector<8xf32>
    %281 = vector.multi_reduction <maximumf>, %280, %cst_140 [1] : vector<8x6xf32> to vector<8xf32>
    %282 = vector.shape_cast %281 : vector<8xf32> to vector<8x1xf32>
    %283 = vector.broadcast %282 : vector<8x1xf32> to vector<8x6xf32>
    %284 = arith.subf %280, %283 : vector<8x6xf32>
    %285 = math.exp %284 : vector<8x6xf32>
    %cst_141 = arith.constant dense<0.000000e+00> : vector<8xf32>
    %286 = vector.multi_reduction <add>, %285, %cst_141 [1] : vector<8x6xf32> to vector<8xf32>
    %287 = vector.shape_cast %286 : vector<8xf32> to vector<8x1xf32>
    %288 = tpu.reciprocal %287 {approx = true} : vector<8x1xf32> -> vector<8x1xf32>
    %289 = vector.broadcast %288 : vector<8x1xf32> to vector<8x6xf32>
    %290 = arith.mulf %285, %289 : vector<8x6xf32>
    %cst_142 = arith.constant dense<0.000000e+00> : vector<8x8xf32>
    %291 = tpu.matmul %290, %277, %cst_142 {dimension_numbers = #tpu.dot_dimension_numbers<[1], [0], [0], [1], [0, 0, 1, 1], [], []>} : vector<8x6xf32>, vector<6x8xf32>, vector<8x8xf32> -> vector<8x8xf32>
    %292 = vector.extract_strided_slice %257 {offsets = [0, 0], sizes = [8, 32], strides = [1, 1]} : vector<32x32xf32> to vector<8x32xf32>
    %cst_143 = arith.constant dense<0.000000e+00> : vector<8x32xf32>
    %293 = tpu.matmul %291, %292, %cst_143 {dimension_numbers = #tpu.dot_dimension_numbers<[1], [0], [0], [1], [0, 0, 1, 1], [], []>} : vector<8x8xf32>, vector<8x32xf32>, vector<8x32xf32> -> vector<8x32xf32>
    %294 = vector.extract_strided_slice %268 {offsets = [0, 8], sizes = [8, 8], strides = [1, 1]} : vector<8x32xf32> to vector<8x8xf32>
    %295 = vector.extract_strided_slice %271 {offsets = [0, 8], sizes = [6, 8], strides = [1, 1]} : vector<6x32xf32> to vector<6x8xf32>
    %296 = vector.extract_strided_slice %274 {offsets = [0, 8], sizes = [6, 8], strides = [1, 1]} : vector<6x32xf32> to vector<6x8xf32>
    %cst_144 = arith.constant dense<0.000000e+00> : vector<8x6xf32>
    %297 = tpu.matmul %294, %295, %cst_144 {dimension_numbers = #tpu.dot_dimension_numbers<[1], [1], [0], [0], [0, 0, 1, 0], [], []>} : vector<8x8xf32>, vector<6x8xf32>, vector<8x6xf32> -> vector<8x6xf32>
    %cst_145 = arith.constant 0.353553385 : f32
    %298 = vector.broadcast %cst_145 : f32 to vector<8x6xf32>
    %299 = arith.mulf %297, %298 : vector<8x6xf32>
    %cst_146 = arith.constant dense<0xFF800000> : vector<8xf32>
    %300 = vector.multi_reduction <maximumf>, %299, %cst_146 [1] : vector<8x6xf32> to vector<8xf32>
    %301 = vector.shape_cast %300 : vector<8xf32> to vector<8x1xf32>
    %302 = vector.broadcast %301 : vector<8x1xf32> to vector<8x6xf32>
    %303 = arith.subf %299, %302 : vector<8x6xf32>
    %304 = math.exp %303 : vector<8x6xf32>
    %cst_147 = arith.constant dense<0.000000e+00> : vector<8xf32>
    %305 = vector.multi_reduction <add>, %304, %cst_147 [1] : vector<8x6xf32> to vector<8xf32>
    %306 = vector.shape_cast %305 : vector<8xf32> to vector<8x1xf32>
    %307 = tpu.reciprocal %306 {approx = true} : vector<8x1xf32> -> vector<8x1xf32>
    %308 = vector.broadcast %307 : vector<8x1xf32> to vector<8x6xf32>
    %309 = arith.mulf %304, %308 : vector<8x6xf32>
    %cst_148 = arith.constant dense<0.000000e+00> : vector<8x8xf32>
    %310 = tpu.matmul %309, %296, %cst_148 {dimension_numbers = #tpu.dot_dimension_numbers<[1], [0], [0], [1], [0, 0, 1, 1], [], []>} : vector<8x6xf32>, vector<6x8xf32>, vector<8x8xf32> -> vector<8x8xf32>
    %311 = vector.extract_strided_slice %257 {offsets = [8, 0], sizes = [8, 32], strides = [1, 1]} : vector<32x32xf32> to vector<8x32xf32>
    %cst_149 = arith.constant dense<0.000000e+00> : vector<8x32xf32>
    %312 = tpu.matmul %310, %311, %cst_149 {dimension_numbers = #tpu.dot_dimension_numbers<[1], [0], [0], [1], [0, 0, 1, 1], [], []>} : vector<8x8xf32>, vector<8x32xf32>, vector<8x32xf32> -> vector<8x32xf32>
    %313 = arith.addf %293, %312 : vector<8x32xf32>
    %314 = vector.extract_strided_slice %268 {offsets = [0, 16], sizes = [8, 8], strides = [1, 1]} : vector<8x32xf32> to vector<8x8xf32>
    %315 = vector.extract_strided_slice %271 {offsets = [0, 16], sizes = [6, 8], strides = [1, 1]} : vector<6x32xf32> to vector<6x8xf32>
    %316 = vector.extract_strided_slice %274 {offsets = [0, 16], sizes = [6, 8], strides = [1, 1]} : vector<6x32xf32> to vector<6x8xf32>
    %cst_150 = arith.constant dense<0.000000e+00> : vector<8x6xf32>
    %317 = tpu.matmul %314, %315, %cst_150 {dimension_numbers = #tpu.dot_dimension_numbers<[1], [1], [0], [0], [0, 0, 1, 0], [], []>} : vector<8x8xf32>, vector<6x8xf32>, vector<8x6xf32> -> vector<8x6xf32>
    %cst_151 = arith.constant 0.353553385 : f32
    %318 = vector.broadcast %cst_151 : f32 to vector<8x6xf32>
    %319 = arith.mulf %317, %318 : vector<8x6xf32>
    %cst_152 = arith.constant dense<0xFF800000> : vector<8xf32>
    %320 = vector.multi_reduction <maximumf>, %319, %cst_152 [1] : vector<8x6xf32> to vector<8xf32>
    %321 = vector.shape_cast %320 : vector<8xf32> to vector<8x1xf32>
    %322 = vector.broadcast %321 : vector<8x1xf32> to vector<8x6xf32>
    %323 = arith.subf %319, %322 : vector<8x6xf32>
    %324 = math.exp %323 : vector<8x6xf32>
    %cst_153 = arith.constant dense<0.000000e+00> : vector<8xf32>
    %325 = vector.multi_reduction <add>, %324, %cst_153 [1] : vector<8x6xf32> to vector<8xf32>
    %326 = vector.shape_cast %325 : vector<8xf32> to vector<8x1xf32>
    %327 = tpu.reciprocal %326 {approx = true} : vector<8x1xf32> -> vector<8x1xf32>
    %328 = vector.broadcast %327 : vector<8x1xf32> to vector<8x6xf32>
    %329 = arith.mulf %324, %328 : vector<8x6xf32>
    %cst_154 = arith.constant dense<0.000000e+00> : vector<8x8xf32>
    %330 = tpu.matmul %329, %316, %cst_154 {dimension_numbers = #tpu.dot_dimension_numbers<[1], [0], [0], [1], [0, 0, 1, 1], [], []>} : vector<8x6xf32>, vector<6x8xf32>, vector<8x8xf32> -> vector<8x8xf32>
    %331 = vector.extract_strided_slice %257 {offsets = [16, 0], sizes = [8, 32], strides = [1, 1]} : vector<32x32xf32> to vector<8x32xf32>
    %cst_155 = arith.constant dense<0.000000e+00> : vector<8x32xf32>
    %332 = tpu.matmul %330, %331, %cst_155 {dimension_numbers = #tpu.dot_dimension_numbers<[1], [0], [0], [1], [0, 0, 1, 1], [], []>} : vector<8x8xf32>, vector<8x32xf32>, vector<8x32xf32> -> vector<8x32xf32>
    %333 = arith.addf %313, %332 : vector<8x32xf32>
    %334 = vector.extract_strided_slice %268 {offsets = [0, 24], sizes = [8, 8], strides = [1, 1]} : vector<8x32xf32> to vector<8x8xf32>
    %335 = vector.extract_strided_slice %271 {offsets = [0, 24], sizes = [6, 8], strides = [1, 1]} : vector<6x32xf32> to vector<6x8xf32>
    %336 = vector.extract_strided_slice %274 {offsets = [0, 24], sizes = [6, 8], strides = [1, 1]} : vector<6x32xf32> to vector<6x8xf32>
    %cst_156 = arith.constant dense<0.000000e+00> : vector<8x6xf32>
    %337 = tpu.matmul %334, %335, %cst_156 {dimension_numbers = #tpu.dot_dimension_numbers<[1], [1], [0], [0], [0, 0, 1, 0], [], []>} : vector<8x8xf32>, vector<6x8xf32>, vector<8x6xf32> -> vector<8x6xf32>
    %cst_157 = arith.constant 0.353553385 : f32
    %338 = vector.broadcast %cst_157 : f32 to vector<8x6xf32>
    %339 = arith.mulf %337, %338 : vector<8x6xf32>
    %cst_158 = arith.constant dense<0xFF800000> : vector<8xf32>
    %340 = vector.multi_reduction <maximumf>, %339, %cst_158 [1] : vector<8x6xf32> to vector<8xf32>
    %341 = vector.shape_cast %340 : vector<8xf32> to vector<8x1xf32>
    %342 = vector.broadcast %341 : vector<8x1xf32> to vector<8x6xf32>
    %343 = arith.subf %339, %342 : vector<8x6xf32>
    %344 = math.exp %343 : vector<8x6xf32>
    %cst_159 = arith.constant dense<0.000000e+00> : vector<8xf32>
    %345 = vector.multi_reduction <add>, %344, %cst_159 [1] : vector<8x6xf32> to vector<8xf32>
    %346 = vector.shape_cast %345 : vector<8xf32> to vector<8x1xf32>
    %347 = tpu.reciprocal %346 {approx = true} : vector<8x1xf32> -> vector<8x1xf32>
    %348 = vector.broadcast %347 : vector<8x1xf32> to vector<8x6xf32>
    %349 = arith.mulf %344, %348 : vector<8x6xf32>
    %cst_160 = arith.constant dense<0.000000e+00> : vector<8x8xf32>
    %350 = tpu.matmul %349, %336, %cst_160 {dimension_numbers = #tpu.dot_dimension_numbers<[1], [0], [0], [1], [0, 0, 1, 1], [], []>} : vector<8x6xf32>, vector<6x8xf32>, vector<8x8xf32> -> vector<8x8xf32>
    %351 = vector.extract_strided_slice %257 {offsets = [24, 0], sizes = [8, 32], strides = [1, 1]} : vector<32x32xf32> to vector<8x32xf32>
    %cst_161 = arith.constant dense<0.000000e+00> : vector<8x32xf32>
    %352 = tpu.matmul %350, %351, %cst_161 {dimension_numbers = #tpu.dot_dimension_numbers<[1], [0], [0], [1], [0, 0, 1, 1], [], []>} : vector<8x8xf32>, vector<8x32xf32>, vector<8x32xf32> -> vector<8x32xf32>
    %353 = arith.addf %333, %352 : vector<8x32xf32>
    %354 = vector.extract_strided_slice %259 {offsets = [0, 0], sizes = [32, 64], strides = [1, 1]} : vector<64x64xf32> to vector<32x64xf32>
    %cst_162 = arith.constant dense<0.000000e+00> : vector<8x64xf32>
    %355 = tpu.matmul %142, %354, %cst_162 {dimension_numbers = #tpu.dot_dimension_numbers<[1], [0], [0], [1], [0, 0, 1, 1], [], []>} : vector<8x32xf32>, vector<32x64xf32>, vector<8x64xf32> -> vector<8x64xf32>
    %356 = vector.extract_strided_slice %259 {offsets = [32, 0], sizes = [32, 64], strides = [1, 1]} : vector<64x64xf32> to vector<32x64xf32>
    %cst_163 = arith.constant dense<0.000000e+00> : vector<8x64xf32>
    %357 = tpu.matmul %353, %356, %cst_163 {dimension_numbers = #tpu.dot_dimension_numbers<[1], [0], [0], [1], [0, 0, 1, 1], [], []>} : vector<8x32xf32>, vector<32x64xf32>, vector<8x64xf32> -> vector<8x64xf32>
    %358 = arith.addf %355, %357 : vector<8x64xf32>
    %359 = vector.broadcast %261 : vector<1x64xf32> to vector<8x64xf32>
    %360 = arith.addf %358, %359 : vector<8x64xf32>
    %cst_164 = arith.constant 0.000000e+00 : f32
    %361 = vector.broadcast %cst_164 : f32 to vector<8x64xf32>
    %362 = arith.maximumf %360, %361 : vector<8x64xf32>
    %cst_165 = arith.constant dense<0.000000e+00> : vector<8x32xf32>
    %363 = tpu.matmul %362, %263, %cst_165 {dimension_numbers = #tpu.dot_dimension_numbers<[1], [0], [0], [1], [0, 0, 1, 1], [], []>} : vector<8x64xf32>, vector<64x32xf32>, vector<8x32xf32> -> vector<8x32xf32>
    %364 = vector.broadcast %265 : vector<1x32xf32> to vector<8x32xf32>
    %365 = arith.addf %363, %364 : vector<8x32xf32>
    %366 = arith.addf %142, %365 : vector<8x32xf32>
    %cst_166 = arith.constant dense<0.000000e+00> : vector<6x32xf32>
    %367 = tpu.matmul %243, %245, %cst_166 {dimension_numbers = #tpu.dot_dimension_numbers<[1], [0], [0], [1], [0, 0, 1, 1], [], []>} : vector<6x32xf32>, vector<32x32xf32>, vector<6x32xf32> -> vector<6x32xf32>
    %368 = vector.broadcast %247 : vector<1x32xf32> to vector<6x32xf32>
    %369 = arith.addf %367, %368 : vector<6x32xf32>
    %cst_167 = arith.constant dense<0.000000e+00> : vector<8x32xf32>
    %370 = tpu.matmul %142, %249, %cst_167 {dimension_numbers = #tpu.dot_dimension_numbers<[1], [0], [0], [1], [0, 0, 1, 1], [], []>} : vector<8x32xf32>, vector<32x32xf32>, vector<8x32xf32> -> vector<8x32xf32>
    %371 = vector.broadcast %251 : vector<1x32xf32> to vector<8x32xf32>
    %372 = arith.addf %370, %371 : vector<8x32xf32>
    %cst_168 = arith.constant dense<0.000000e+00> : vector<8x32xf32>
    %373 = tpu.matmul %142, %253, %cst_168 {dimension_numbers = #tpu.dot_dimension_numbers<[1], [0], [0], [1], [0, 0, 1, 1], [], []>} : vector<8x32xf32>, vector<32x32xf32>, vector<8x32xf32> -> vector<8x32xf32>
    %374 = vector.broadcast %255 : vector<1x32xf32> to vector<8x32xf32>
    %375 = arith.addf %373, %374 : vector<8x32xf32>
    %376 = vector.extract_strided_slice %369 {offsets = [0, 0], sizes = [6, 8], strides = [1, 1]} : vector<6x32xf32> to vector<6x8xf32>
    %377 = vector.extract_strided_slice %372 {offsets = [0, 0], sizes = [8, 8], strides = [1, 1]} : vector<8x32xf32> to vector<8x8xf32>
    %378 = vector.extract_strided_slice %375 {offsets = [0, 0], sizes = [8, 8], strides = [1, 1]} : vector<8x32xf32> to vector<8x8xf32>
    %cst_169 = arith.constant dense<0.000000e+00> : vector<6x8xf32>
    %379 = tpu.matmul %376, %377, %cst_169 {dimension_numbers = #tpu.dot_dimension_numbers<[1], [1], [0], [0], [0, 0, 1, 0], [], []>} : vector<6x8xf32>, vector<8x8xf32>, vector<6x8xf32> -> vector<6x8xf32>
    %cst_170 = arith.constant 0.353553385 : f32
    %380 = vector.broadcast %cst_170 : f32 to vector<6x8xf32>
    %381 = arith.mulf %379, %380 : vector<6x8xf32>
    %cst_171 = arith.constant dense<0xFF800000> : vector<6xf32>
    %382 = vector.multi_reduction <maximumf>, %381, %cst_171 [1] : vector<6x8xf32> to vector<6xf32>
    %383 = vector.shape_cast %382 : vector<6xf32> to vector<6x1xf32>
    %384 = vector.broadcast %383 : vector<6x1xf32> to vector<6x8xf32>
    %385 = arith.subf %381, %384 : vector<6x8xf32>
    %386 = math.exp %385 : vector<6x8xf32>
    %cst_172 = arith.constant dense<0.000000e+00> : vector<6xf32>
    %387 = vector.multi_reduction <add>, %386, %cst_172 [1] : vector<6x8xf32> to vector<6xf32>
    %388 = vector.shape_cast %387 : vector<6xf32> to vector<6x1xf32>
    %389 = tpu.reciprocal %388 {approx = true} : vector<6x1xf32> -> vector<6x1xf32>
    %390 = vector.broadcast %389 : vector<6x1xf32> to vector<6x8xf32>
    %391 = arith.mulf %386, %390 : vector<6x8xf32>
    %cst_173 = arith.constant dense<0.000000e+00> : vector<6x8xf32>
    %392 = tpu.matmul %391, %378, %cst_173 {dimension_numbers = #tpu.dot_dimension_numbers<[1], [0], [0], [1], [0, 0, 1, 1], [], []>} : vector<6x8xf32>, vector<8x8xf32>, vector<6x8xf32> -> vector<6x8xf32>
    %393 = vector.extract_strided_slice %257 {offsets = [0, 0], sizes = [8, 32], strides = [1, 1]} : vector<32x32xf32> to vector<8x32xf32>
    %cst_174 = arith.constant dense<0.000000e+00> : vector<6x32xf32>
    %394 = tpu.matmul %392, %393, %cst_174 {dimension_numbers = #tpu.dot_dimension_numbers<[1], [0], [0], [1], [0, 0, 1, 1], [], []>} : vector<6x8xf32>, vector<8x32xf32>, vector<6x32xf32> -> vector<6x32xf32>
    %395 = vector.extract_strided_slice %369 {offsets = [0, 8], sizes = [6, 8], strides = [1, 1]} : vector<6x32xf32> to vector<6x8xf32>
    %396 = vector.extract_strided_slice %372 {offsets = [0, 8], sizes = [8, 8], strides = [1, 1]} : vector<8x32xf32> to vector<8x8xf32>
    %397 = vector.extract_strided_slice %375 {offsets = [0, 8], sizes = [8, 8], strides = [1, 1]} : vector<8x32xf32> to vector<8x8xf32>
    %cst_175 = arith.constant dense<0.000000e+00> : vector<6x8xf32>
    %398 = tpu.matmul %395, %396, %cst_175 {dimension_numbers = #tpu.dot_dimension_numbers<[1], [1], [0], [0], [0, 0, 1, 0], [], []>} : vector<6x8xf32>, vector<8x8xf32>, vector<6x8xf32> -> vector<6x8xf32>
    %cst_176 = arith.constant 0.353553385 : f32
    %399 = vector.broadcast %cst_176 : f32 to vector<6x8xf32>
    %400 = arith.mulf %398, %399 : vector<6x8xf32>
    %cst_177 = arith.constant dense<0xFF800000> : vector<6xf32>
    %401 = vector.multi_reduction <maximumf>, %400, %cst_177 [1] : vector<6x8xf32> to vector<6xf32>
    %402 = vector.shape_cast %401 : vector<6xf32> to vector<6x1xf32>
    %403 = vector.broadcast %402 : vector<6x1xf32> to vector<6x8xf32>
    %404 = arith.subf %400, %403 : vector<6x8xf32>
    %405 = math.exp %404 : vector<6x8xf32>
    %cst_178 = arith.constant dense<0.000000e+00> : vector<6xf32>
    %406 = vector.multi_reduction <add>, %405, %cst_178 [1] : vector<6x8xf32> to vector<6xf32>
    %407 = vector.shape_cast %406 : vector<6xf32> to vector<6x1xf32>
    %408 = tpu.reciprocal %407 {approx = true} : vector<6x1xf32> -> vector<6x1xf32>
    %409 = vector.broadcast %408 : vector<6x1xf32> to vector<6x8xf32>
    %410 = arith.mulf %405, %409 : vector<6x8xf32>
    %cst_179 = arith.constant dense<0.000000e+00> : vector<6x8xf32>
    %411 = tpu.matmul %410, %397, %cst_179 {dimension_numbers = #tpu.dot_dimension_numbers<[1], [0], [0], [1], [0, 0, 1, 1], [], []>} : vector<6x8xf32>, vector<8x8xf32>, vector<6x8xf32> -> vector<6x8xf32>
    %412 = vector.extract_strided_slice %257 {offsets = [8, 0], sizes = [8, 32], strides = [1, 1]} : vector<32x32xf32> to vector<8x32xf32>
    %cst_180 = arith.constant dense<0.000000e+00> : vector<6x32xf32>
    %413 = tpu.matmul %411, %412, %cst_180 {dimension_numbers = #tpu.dot_dimension_numbers<[1], [0], [0], [1], [0, 0, 1, 1], [], []>} : vector<6x8xf32>, vector<8x32xf32>, vector<6x32xf32> -> vector<6x32xf32>
    %414 = arith.addf %394, %413 : vector<6x32xf32>
    %415 = vector.extract_strided_slice %369 {offsets = [0, 16], sizes = [6, 8], strides = [1, 1]} : vector<6x32xf32> to vector<6x8xf32>
    %416 = vector.extract_strided_slice %372 {offsets = [0, 16], sizes = [8, 8], strides = [1, 1]} : vector<8x32xf32> to vector<8x8xf32>
    %417 = vector.extract_strided_slice %375 {offsets = [0, 16], sizes = [8, 8], strides = [1, 1]} : vector<8x32xf32> to vector<8x8xf32>
    %cst_181 = arith.constant dense<0.000000e+00> : vector<6x8xf32>
    %418 = tpu.matmul %415, %416, %cst_181 {dimension_numbers = #tpu.dot_dimension_numbers<[1], [1], [0], [0], [0, 0, 1, 0], [], []>} : vector<6x8xf32>, vector<8x8xf32>, vector<6x8xf32> -> vector<6x8xf32>
    %cst_182 = arith.constant 0.353553385 : f32
    %419 = vector.broadcast %cst_182 : f32 to vector<6x8xf32>
    %420 = arith.mulf %418, %419 : vector<6x8xf32>
    %cst_183 = arith.constant dense<0xFF800000> : vector<6xf32>
    %421 = vector.multi_reduction <maximumf>, %420, %cst_183 [1] : vector<6x8xf32> to vector<6xf32>
    %422 = vector.shape_cast %421 : vector<6xf32> to vector<6x1xf32>
    %423 = vector.broadcast %422 : vector<6x1xf32> to vector<6x8xf32>
    %424 = arith.subf %420, %423 : vector<6x8xf32>
    %425 = math.exp %424 : vector<6x8xf32>
    %cst_184 = arith.constant dense<0.000000e+00> : vector<6xf32>
    %426 = vector.multi_reduction <add>, %425, %cst_184 [1] : vector<6x8xf32> to vector<6xf32>
    %427 = vector.shape_cast %426 : vector<6xf32> to vector<6x1xf32>
    %428 = tpu.reciprocal %427 {approx = true} : vector<6x1xf32> -> vector<6x1xf32>
    %429 = vector.broadcast %428 : vector<6x1xf32> to vector<6x8xf32>
    %430 = arith.mulf %425, %429 : vector<6x8xf32>
    %cst_185 = arith.constant dense<0.000000e+00> : vector<6x8xf32>
    %431 = tpu.matmul %430, %417, %cst_185 {dimension_numbers = #tpu.dot_dimension_numbers<[1], [0], [0], [1], [0, 0, 1, 1], [], []>} : vector<6x8xf32>, vector<8x8xf32>, vector<6x8xf32> -> vector<6x8xf32>
    %432 = vector.extract_strided_slice %257 {offsets = [16, 0], sizes = [8, 32], strides = [1, 1]} : vector<32x32xf32> to vector<8x32xf32>
    %cst_186 = arith.constant dense<0.000000e+00> : vector<6x32xf32>
    %433 = tpu.matmul %431, %432, %cst_186 {dimension_numbers = #tpu.dot_dimension_numbers<[1], [0], [0], [1], [0, 0, 1, 1], [], []>} : vector<6x8xf32>, vector<8x32xf32>, vector<6x32xf32> -> vector<6x32xf32>
    %434 = arith.addf %414, %433 : vector<6x32xf32>
    %435 = vector.extract_strided_slice %369 {offsets = [0, 24], sizes = [6, 8], strides = [1, 1]} : vector<6x32xf32> to vector<6x8xf32>
    %436 = vector.extract_strided_slice %372 {offsets = [0, 24], sizes = [8, 8], strides = [1, 1]} : vector<8x32xf32> to vector<8x8xf32>
    %437 = vector.extract_strided_slice %375 {offsets = [0, 24], sizes = [8, 8], strides = [1, 1]} : vector<8x32xf32> to vector<8x8xf32>
    %cst_187 = arith.constant dense<0.000000e+00> : vector<6x8xf32>
    %438 = tpu.matmul %435, %436, %cst_187 {dimension_numbers = #tpu.dot_dimension_numbers<[1], [1], [0], [0], [0, 0, 1, 0], [], []>} : vector<6x8xf32>, vector<8x8xf32>, vector<6x8xf32> -> vector<6x8xf32>
    %cst_188 = arith.constant 0.353553385 : f32
    %439 = vector.broadcast %cst_188 : f32 to vector<6x8xf32>
    %440 = arith.mulf %438, %439 : vector<6x8xf32>
    %cst_189 = arith.constant dense<0xFF800000> : vector<6xf32>
    %441 = vector.multi_reduction <maximumf>, %440, %cst_189 [1] : vector<6x8xf32> to vector<6xf32>
    %442 = vector.shape_cast %441 : vector<6xf32> to vector<6x1xf32>
    %443 = vector.broadcast %442 : vector<6x1xf32> to vector<6x8xf32>
    %444 = arith.subf %440, %443 : vector<6x8xf32>
    %445 = math.exp %444 : vector<6x8xf32>
    %cst_190 = arith.constant dense<0.000000e+00> : vector<6xf32>
    %446 = vector.multi_reduction <add>, %445, %cst_190 [1] : vector<6x8xf32> to vector<6xf32>
    %447 = vector.shape_cast %446 : vector<6xf32> to vector<6x1xf32>
    %448 = tpu.reciprocal %447 {approx = true} : vector<6x1xf32> -> vector<6x1xf32>
    %449 = vector.broadcast %448 : vector<6x1xf32> to vector<6x8xf32>
    %450 = arith.mulf %445, %449 : vector<6x8xf32>
    %cst_191 = arith.constant dense<0.000000e+00> : vector<6x8xf32>
    %451 = tpu.matmul %450, %437, %cst_191 {dimension_numbers = #tpu.dot_dimension_numbers<[1], [0], [0], [1], [0, 0, 1, 1], [], []>} : vector<6x8xf32>, vector<8x8xf32>, vector<6x8xf32> -> vector<6x8xf32>
    %452 = vector.extract_strided_slice %257 {offsets = [24, 0], sizes = [8, 32], strides = [1, 1]} : vector<32x32xf32> to vector<8x32xf32>
    %cst_192 = arith.constant dense<0.000000e+00> : vector<6x32xf32>
    %453 = tpu.matmul %451, %452, %cst_192 {dimension_numbers = #tpu.dot_dimension_numbers<[1], [0], [0], [1], [0, 0, 1, 1], [], []>} : vector<6x8xf32>, vector<8x32xf32>, vector<6x32xf32> -> vector<6x32xf32>
    %454 = arith.addf %434, %453 : vector<6x32xf32>
    %455 = vector.extract_strided_slice %259 {offsets = [0, 0], sizes = [32, 64], strides = [1, 1]} : vector<64x64xf32> to vector<32x64xf32>
    %cst_193 = arith.constant dense<0.000000e+00> : vector<6x64xf32>
    %456 = tpu.matmul %243, %455, %cst_193 {dimension_numbers = #tpu.dot_dimension_numbers<[1], [0], [0], [1], [0, 0, 1, 1], [], []>} : vector<6x32xf32>, vector<32x64xf32>, vector<6x64xf32> -> vector<6x64xf32>
    %457 = vector.extract_strided_slice %259 {offsets = [32, 0], sizes = [32, 64], strides = [1, 1]} : vector<64x64xf32> to vector<32x64xf32>
    %cst_194 = arith.constant dense<0.000000e+00> : vector<6x64xf32>
    %458 = tpu.matmul %454, %457, %cst_194 {dimension_numbers = #tpu.dot_dimension_numbers<[1], [0], [0], [1], [0, 0, 1, 1], [], []>} : vector<6x32xf32>, vector<32x64xf32>, vector<6x64xf32> -> vector<6x64xf32>
    %459 = arith.addf %456, %458 : vector<6x64xf32>
    %460 = vector.broadcast %261 : vector<1x64xf32> to vector<6x64xf32>
    %461 = arith.addf %459, %460 : vector<6x64xf32>
    %cst_195 = arith.constant 0.000000e+00 : f32
    %462 = vector.broadcast %cst_195 : f32 to vector<6x64xf32>
    %463 = arith.maximumf %461, %462 : vector<6x64xf32>
    %cst_196 = arith.constant dense<0.000000e+00> : vector<6x32xf32>
    %464 = tpu.matmul %463, %263, %cst_196 {dimension_numbers = #tpu.dot_dimension_numbers<[1], [0], [0], [1], [0, 0, 1, 1], [], []>} : vector<6x64xf32>, vector<64x32xf32>, vector<6x32xf32> -> vector<6x32xf32>
    %465 = vector.broadcast %265 : vector<1x32xf32> to vector<6x32xf32>
    %466 = arith.addf %464, %465 : vector<6x32xf32>
    %467 = arith.addf %243, %466 : vector<6x32xf32>
    %c2 = arith.constant 2 : index
    %c0_197 = arith.constant 0 : index
    %c0_198 = arith.constant 0 : index
    %468 = vector.load %arg3[%c2, %c0_197, %c0_198] : memref<4x32x32xf32, #tpu.memory_space<vmem>>, vector<1x32x32xf32>
    %469 = vector.shape_cast %468 : vector<1x32x32xf32> to vector<32x32xf32>
    %c2_199 = arith.constant 2 : index
    %c0_200 = arith.constant 0 : index
    %c0_201 = arith.constant 0 : index
    %470 = vector.load %arg4[%c2_199, %c0_200, %c0_201] : memref<4x1x32xf32, #tpu.memory_space<vmem>>, vector<1x1x32xf32>
    %471 = vector.shape_cast %470 : vector<1x1x32xf32> to vector<1x32xf32>
    %c2_202 = arith.constant 2 : index
    %c0_203 = arith.constant 0 : index
    %c0_204 = arith.constant 0 : index
    %472 = vector.load %arg5[%c2_202, %c0_203, %c0_204] : memref<4x32x32xf32, #tpu.memory_space<vmem>>, vector<1x32x32xf32>
    %473 = vector.shape_cast %472 : vector<1x32x32xf32> to vector<32x32xf32>
    %c2_205 = arith.constant 2 : index
    %c0_206 = arith.constant 0 : index
    %c0_207 = arith.constant 0 : index
    %474 = vector.load %arg6[%c2_205, %c0_206, %c0_207] : memref<4x1x32xf32, #tpu.memory_space<vmem>>, vector<1x1x32xf32>
    %475 = vector.shape_cast %474 : vector<1x1x32xf32> to vector<1x32xf32>
    %c2_208 = arith.constant 2 : index
    %c0_209 = arith.constant 0 : index
    %c0_210 = arith.constant 0 : index
    %476 = vector.load %arg7[%c2_208, %c0_209, %c0_210] : memref<4x32x32xf32, #tpu.memory_space<vmem>>, vector<1x32x32xf32>
    %477 = vector.shape_cast %476 : vector<1x32x32xf32> to vector<32x32xf32>
    %c2_211 = arith.constant 2 : index
    %c0_212 = arith.constant 0 : index
    %c0_213 = arith.constant 0 : index
    %478 = vector.load %arg8[%c2_211, %c0_212, %c0_213] : memref<4x1x32xf32, #tpu.memory_space<vmem>>, vector<1x1x32xf32>
    %479 = vector.shape_cast %478 : vector<1x1x32xf32> to vector<1x32xf32>
    %c2_214 = arith.constant 2 : index
    %c0_215 = arith.constant 0 : index
    %c0_216 = arith.constant 0 : index
    %480 = vector.load %arg9[%c2_214, %c0_215, %c0_216] : memref<4x32x32xf32, #tpu.memory_space<vmem>>, vector<1x32x32xf32>
    %481 = vector.shape_cast %480 : vector<1x32x32xf32> to vector<32x32xf32>
    %c2_217 = arith.constant 2 : index
    %c0_218 = arith.constant 0 : index
    %c0_219 = arith.constant 0 : index
    %482 = vector.load %arg10[%c2_217, %c0_218, %c0_219] : memref<4x64x64xf32, #tpu.memory_space<vmem>>, vector<1x64x64xf32>
    %483 = vector.shape_cast %482 : vector<1x64x64xf32> to vector<64x64xf32>
    %c2_220 = arith.constant 2 : index
    %c0_221 = arith.constant 0 : index
    %c0_222 = arith.constant 0 : index
    %484 = vector.load %arg11[%c2_220, %c0_221, %c0_222] : memref<4x1x64xf32, #tpu.memory_space<vmem>>, vector<1x1x64xf32>
    %485 = vector.shape_cast %484 : vector<1x1x64xf32> to vector<1x64xf32>
    %c2_223 = arith.constant 2 : index
    %c0_224 = arith.constant 0 : index
    %c0_225 = arith.constant 0 : index
    %486 = vector.load %arg12[%c2_223, %c0_224, %c0_225] : memref<4x64x32xf32, #tpu.memory_space<vmem>>, vector<1x64x32xf32>
    %487 = vector.shape_cast %486 : vector<1x64x32xf32> to vector<64x32xf32>
    %c2_226 = arith.constant 2 : index
    %c0_227 = arith.constant 0 : index
    %c0_228 = arith.constant 0 : index
    %488 = vector.load %arg13[%c2_226, %c0_227, %c0_228] : memref<4x1x32xf32, #tpu.memory_space<vmem>>, vector<1x1x32xf32>
    %489 = vector.shape_cast %488 : vector<1x1x32xf32> to vector<1x32xf32>
    %cst_229 = arith.constant dense<0.000000e+00> : vector<8x32xf32>
    %490 = tpu.matmul %366, %469, %cst_229 {dimension_numbers = #tpu.dot_dimension_numbers<[1], [0], [0], [1], [0, 0, 1, 1], [], []>} : vector<8x32xf32>, vector<32x32xf32>, vector<8x32xf32> -> vector<8x32xf32>
    %491 = vector.broadcast %471 : vector<1x32xf32> to vector<8x32xf32>
    %492 = arith.addf %490, %491 : vector<8x32xf32>
    %cst_230 = arith.constant dense<0.000000e+00> : vector<8x32xf32>
    %493 = tpu.matmul %366, %473, %cst_230 {dimension_numbers = #tpu.dot_dimension_numbers<[1], [0], [0], [1], [0, 0, 1, 1], [], []>} : vector<8x32xf32>, vector<32x32xf32>, vector<8x32xf32> -> vector<8x32xf32>
    %494 = vector.broadcast %475 : vector<1x32xf32> to vector<8x32xf32>
    %495 = arith.addf %493, %494 : vector<8x32xf32>
    %cst_231 = arith.constant dense<0.000000e+00> : vector<8x32xf32>
    %496 = tpu.matmul %366, %477, %cst_231 {dimension_numbers = #tpu.dot_dimension_numbers<[1], [0], [0], [1], [0, 0, 1, 1], [], []>} : vector<8x32xf32>, vector<32x32xf32>, vector<8x32xf32> -> vector<8x32xf32>
    %497 = vector.broadcast %479 : vector<1x32xf32> to vector<8x32xf32>
    %498 = arith.addf %496, %497 : vector<8x32xf32>
    %499 = vector.extract_strided_slice %492 {offsets = [0, 0], sizes = [8, 8], strides = [1, 1]} : vector<8x32xf32> to vector<8x8xf32>
    %500 = vector.extract_strided_slice %495 {offsets = [0, 0], sizes = [8, 8], strides = [1, 1]} : vector<8x32xf32> to vector<8x8xf32>
    %501 = vector.extract_strided_slice %498 {offsets = [0, 0], sizes = [8, 8], strides = [1, 1]} : vector<8x32xf32> to vector<8x8xf32>
    %cst_232 = arith.constant dense<0.000000e+00> : vector<8x8xf32>
    %502 = tpu.matmul %499, %500, %cst_232 {dimension_numbers = #tpu.dot_dimension_numbers<[1], [1], [0], [0], [0, 0, 1, 0], [], []>} : vector<8x8xf32>, vector<8x8xf32>, vector<8x8xf32> -> vector<8x8xf32>
    %cst_233 = arith.constant 0.353553385 : f32
    %503 = vector.broadcast %cst_233 : f32 to vector<8x8xf32>
    %504 = arith.mulf %502, %503 : vector<8x8xf32>
    %cst_234 = arith.constant dense<0xFF800000> : vector<8xf32>
    %505 = vector.multi_reduction <maximumf>, %504, %cst_234 [1] : vector<8x8xf32> to vector<8xf32>
    %506 = vector.shape_cast %505 : vector<8xf32> to vector<8x1xf32>
    %507 = vector.broadcast %506 : vector<8x1xf32> to vector<8x8xf32>
    %508 = arith.subf %504, %507 : vector<8x8xf32>
    %509 = math.exp %508 : vector<8x8xf32>
    %cst_235 = arith.constant dense<0.000000e+00> : vector<8xf32>
    %510 = vector.multi_reduction <add>, %509, %cst_235 [1] : vector<8x8xf32> to vector<8xf32>
    %511 = vector.shape_cast %510 : vector<8xf32> to vector<8x1xf32>
    %512 = tpu.reciprocal %511 {approx = true} : vector<8x1xf32> -> vector<8x1xf32>
    %513 = vector.broadcast %512 : vector<8x1xf32> to vector<8x8xf32>
    %514 = arith.mulf %509, %513 : vector<8x8xf32>
    %cst_236 = arith.constant dense<0.000000e+00> : vector<8x8xf32>
    %515 = tpu.matmul %514, %501, %cst_236 {dimension_numbers = #tpu.dot_dimension_numbers<[1], [0], [0], [1], [0, 0, 1, 1], [], []>} : vector<8x8xf32>, vector<8x8xf32>, vector<8x8xf32> -> vector<8x8xf32>
    %516 = vector.extract_strided_slice %481 {offsets = [0, 0], sizes = [8, 32], strides = [1, 1]} : vector<32x32xf32> to vector<8x32xf32>
    %cst_237 = arith.constant dense<0.000000e+00> : vector<8x32xf32>
    %517 = tpu.matmul %515, %516, %cst_237 {dimension_numbers = #tpu.dot_dimension_numbers<[1], [0], [0], [1], [0, 0, 1, 1], [], []>} : vector<8x8xf32>, vector<8x32xf32>, vector<8x32xf32> -> vector<8x32xf32>
    %518 = vector.extract_strided_slice %492 {offsets = [0, 8], sizes = [8, 8], strides = [1, 1]} : vector<8x32xf32> to vector<8x8xf32>
    %519 = vector.extract_strided_slice %495 {offsets = [0, 8], sizes = [8, 8], strides = [1, 1]} : vector<8x32xf32> to vector<8x8xf32>
    %520 = vector.extract_strided_slice %498 {offsets = [0, 8], sizes = [8, 8], strides = [1, 1]} : vector<8x32xf32> to vector<8x8xf32>
    %cst_238 = arith.constant dense<0.000000e+00> : vector<8x8xf32>
    %521 = tpu.matmul %518, %519, %cst_238 {dimension_numbers = #tpu.dot_dimension_numbers<[1], [1], [0], [0], [0, 0, 1, 0], [], []>} : vector<8x8xf32>, vector<8x8xf32>, vector<8x8xf32> -> vector<8x8xf32>
    %cst_239 = arith.constant 0.353553385 : f32
    %522 = vector.broadcast %cst_239 : f32 to vector<8x8xf32>
    %523 = arith.mulf %521, %522 : vector<8x8xf32>
    %cst_240 = arith.constant dense<0xFF800000> : vector<8xf32>
    %524 = vector.multi_reduction <maximumf>, %523, %cst_240 [1] : vector<8x8xf32> to vector<8xf32>
    %525 = vector.shape_cast %524 : vector<8xf32> to vector<8x1xf32>
    %526 = vector.broadcast %525 : vector<8x1xf32> to vector<8x8xf32>
    %527 = arith.subf %523, %526 : vector<8x8xf32>
    %528 = math.exp %527 : vector<8x8xf32>
    %cst_241 = arith.constant dense<0.000000e+00> : vector<8xf32>
    %529 = vector.multi_reduction <add>, %528, %cst_241 [1] : vector<8x8xf32> to vector<8xf32>
    %530 = vector.shape_cast %529 : vector<8xf32> to vector<8x1xf32>
    %531 = tpu.reciprocal %530 {approx = true} : vector<8x1xf32> -> vector<8x1xf32>
    %532 = vector.broadcast %531 : vector<8x1xf32> to vector<8x8xf32>
    %533 = arith.mulf %528, %532 : vector<8x8xf32>
    %cst_242 = arith.constant dense<0.000000e+00> : vector<8x8xf32>
    %534 = tpu.matmul %533, %520, %cst_242 {dimension_numbers = #tpu.dot_dimension_numbers<[1], [0], [0], [1], [0, 0, 1, 1], [], []>} : vector<8x8xf32>, vector<8x8xf32>, vector<8x8xf32> -> vector<8x8xf32>
    %535 = vector.extract_strided_slice %481 {offsets = [8, 0], sizes = [8, 32], strides = [1, 1]} : vector<32x32xf32> to vector<8x32xf32>
    %cst_243 = arith.constant dense<0.000000e+00> : vector<8x32xf32>
    %536 = tpu.matmul %534, %535, %cst_243 {dimension_numbers = #tpu.dot_dimension_numbers<[1], [0], [0], [1], [0, 0, 1, 1], [], []>} : vector<8x8xf32>, vector<8x32xf32>, vector<8x32xf32> -> vector<8x32xf32>
    %537 = arith.addf %517, %536 : vector<8x32xf32>
    %538 = vector.extract_strided_slice %492 {offsets = [0, 16], sizes = [8, 8], strides = [1, 1]} : vector<8x32xf32> to vector<8x8xf32>
    %539 = vector.extract_strided_slice %495 {offsets = [0, 16], sizes = [8, 8], strides = [1, 1]} : vector<8x32xf32> to vector<8x8xf32>
    %540 = vector.extract_strided_slice %498 {offsets = [0, 16], sizes = [8, 8], strides = [1, 1]} : vector<8x32xf32> to vector<8x8xf32>
    %cst_244 = arith.constant dense<0.000000e+00> : vector<8x8xf32>
    %541 = tpu.matmul %538, %539, %cst_244 {dimension_numbers = #tpu.dot_dimension_numbers<[1], [1], [0], [0], [0, 0, 1, 0], [], []>} : vector<8x8xf32>, vector<8x8xf32>, vector<8x8xf32> -> vector<8x8xf32>
    %cst_245 = arith.constant 0.353553385 : f32
    %542 = vector.broadcast %cst_245 : f32 to vector<8x8xf32>
    %543 = arith.mulf %541, %542 : vector<8x8xf32>
    %cst_246 = arith.constant dense<0xFF800000> : vector<8xf32>
    %544 = vector.multi_reduction <maximumf>, %543, %cst_246 [1] : vector<8x8xf32> to vector<8xf32>
    %545 = vector.shape_cast %544 : vector<8xf32> to vector<8x1xf32>
    %546 = vector.broadcast %545 : vector<8x1xf32> to vector<8x8xf32>
    %547 = arith.subf %543, %546 : vector<8x8xf32>
    %548 = math.exp %547 : vector<8x8xf32>
    %cst_247 = arith.constant dense<0.000000e+00> : vector<8xf32>
    %549 = vector.multi_reduction <add>, %548, %cst_247 [1] : vector<8x8xf32> to vector<8xf32>
    %550 = vector.shape_cast %549 : vector<8xf32> to vector<8x1xf32>
    %551 = tpu.reciprocal %550 {approx = true} : vector<8x1xf32> -> vector<8x1xf32>
    %552 = vector.broadcast %551 : vector<8x1xf32> to vector<8x8xf32>
    %553 = arith.mulf %548, %552 : vector<8x8xf32>
    %cst_248 = arith.constant dense<0.000000e+00> : vector<8x8xf32>
    %554 = tpu.matmul %553, %540, %cst_248 {dimension_numbers = #tpu.dot_dimension_numbers<[1], [0], [0], [1], [0, 0, 1, 1], [], []>} : vector<8x8xf32>, vector<8x8xf32>, vector<8x8xf32> -> vector<8x8xf32>
    %555 = vector.extract_strided_slice %481 {offsets = [16, 0], sizes = [8, 32], strides = [1, 1]} : vector<32x32xf32> to vector<8x32xf32>
    %cst_249 = arith.constant dense<0.000000e+00> : vector<8x32xf32>
    %556 = tpu.matmul %554, %555, %cst_249 {dimension_numbers = #tpu.dot_dimension_numbers<[1], [0], [0], [1], [0, 0, 1, 1], [], []>} : vector<8x8xf32>, vector<8x32xf32>, vector<8x32xf32> -> vector<8x32xf32>
    %557 = arith.addf %537, %556 : vector<8x32xf32>
    %558 = vector.extract_strided_slice %492 {offsets = [0, 24], sizes = [8, 8], strides = [1, 1]} : vector<8x32xf32> to vector<8x8xf32>
    %559 = vector.extract_strided_slice %495 {offsets = [0, 24], sizes = [8, 8], strides = [1, 1]} : vector<8x32xf32> to vector<8x8xf32>
    %560 = vector.extract_strided_slice %498 {offsets = [0, 24], sizes = [8, 8], strides = [1, 1]} : vector<8x32xf32> to vector<8x8xf32>
    %cst_250 = arith.constant dense<0.000000e+00> : vector<8x8xf32>
    %561 = tpu.matmul %558, %559, %cst_250 {dimension_numbers = #tpu.dot_dimension_numbers<[1], [1], [0], [0], [0, 0, 1, 0], [], []>} : vector<8x8xf32>, vector<8x8xf32>, vector<8x8xf32> -> vector<8x8xf32>
    %cst_251 = arith.constant 0.353553385 : f32
    %562 = vector.broadcast %cst_251 : f32 to vector<8x8xf32>
    %563 = arith.mulf %561, %562 : vector<8x8xf32>
    %cst_252 = arith.constant dense<0xFF800000> : vector<8xf32>
    %564 = vector.multi_reduction <maximumf>, %563, %cst_252 [1] : vector<8x8xf32> to vector<8xf32>
    %565 = vector.shape_cast %564 : vector<8xf32> to vector<8x1xf32>
    %566 = vector.broadcast %565 : vector<8x1xf32> to vector<8x8xf32>
    %567 = arith.subf %563, %566 : vector<8x8xf32>
    %568 = math.exp %567 : vector<8x8xf32>
    %cst_253 = arith.constant dense<0.000000e+00> : vector<8xf32>
    %569 = vector.multi_reduction <add>, %568, %cst_253 [1] : vector<8x8xf32> to vector<8xf32>
    %570 = vector.shape_cast %569 : vector<8xf32> to vector<8x1xf32>
    %571 = tpu.reciprocal %570 {approx = true} : vector<8x1xf32> -> vector<8x1xf32>
    %572 = vector.broadcast %571 : vector<8x1xf32> to vector<8x8xf32>
    %573 = arith.mulf %568, %572 : vector<8x8xf32>
    %cst_254 = arith.constant dense<0.000000e+00> : vector<8x8xf32>
    %574 = tpu.matmul %573, %560, %cst_254 {dimension_numbers = #tpu.dot_dimension_numbers<[1], [0], [0], [1], [0, 0, 1, 1], [], []>} : vector<8x8xf32>, vector<8x8xf32>, vector<8x8xf32> -> vector<8x8xf32>
    %575 = vector.extract_strided_slice %481 {offsets = [24, 0], sizes = [8, 32], strides = [1, 1]} : vector<32x32xf32> to vector<8x32xf32>
    %cst_255 = arith.constant dense<0.000000e+00> : vector<8x32xf32>
    %576 = tpu.matmul %574, %575, %cst_255 {dimension_numbers = #tpu.dot_dimension_numbers<[1], [0], [0], [1], [0, 0, 1, 1], [], []>} : vector<8x8xf32>, vector<8x32xf32>, vector<8x32xf32> -> vector<8x32xf32>
    %577 = arith.addf %557, %576 : vector<8x32xf32>
    %578 = vector.extract_strided_slice %483 {offsets = [0, 0], sizes = [32, 64], strides = [1, 1]} : vector<64x64xf32> to vector<32x64xf32>
    %cst_256 = arith.constant dense<0.000000e+00> : vector<8x64xf32>
    %579 = tpu.matmul %366, %578, %cst_256 {dimension_numbers = #tpu.dot_dimension_numbers<[1], [0], [0], [1], [0, 0, 1, 1], [], []>} : vector<8x32xf32>, vector<32x64xf32>, vector<8x64xf32> -> vector<8x64xf32>
    %580 = vector.extract_strided_slice %483 {offsets = [32, 0], sizes = [32, 64], strides = [1, 1]} : vector<64x64xf32> to vector<32x64xf32>
    %cst_257 = arith.constant dense<0.000000e+00> : vector<8x64xf32>
    %581 = tpu.matmul %577, %580, %cst_257 {dimension_numbers = #tpu.dot_dimension_numbers<[1], [0], [0], [1], [0, 0, 1, 1], [], []>} : vector<8x32xf32>, vector<32x64xf32>, vector<8x64xf32> -> vector<8x64xf32>
    %582 = arith.addf %579, %581 : vector<8x64xf32>
    %583 = vector.broadcast %485 : vector<1x64xf32> to vector<8x64xf32>
    %584 = arith.addf %582, %583 : vector<8x64xf32>
    %cst_258 = arith.constant 0.000000e+00 : f32
    %585 = vector.broadcast %cst_258 : f32 to vector<8x64xf32>
    %586 = arith.maximumf %584, %585 : vector<8x64xf32>
    %cst_259 = arith.constant dense<0.000000e+00> : vector<8x32xf32>
    %587 = tpu.matmul %586, %487, %cst_259 {dimension_numbers = #tpu.dot_dimension_numbers<[1], [0], [0], [1], [0, 0, 1, 1], [], []>} : vector<8x64xf32>, vector<64x32xf32>, vector<8x32xf32> -> vector<8x32xf32>
    %588 = vector.broadcast %489 : vector<1x32xf32> to vector<8x32xf32>
    %589 = arith.addf %587, %588 : vector<8x32xf32>
    %590 = arith.addf %366, %589 : vector<8x32xf32>
    %cst_260 = arith.constant dense<0.000000e+00> : vector<6x32xf32>
    %591 = tpu.matmul %467, %469, %cst_260 {dimension_numbers = #tpu.dot_dimension_numbers<[1], [0], [0], [1], [0, 0, 1, 1], [], []>} : vector<6x32xf32>, vector<32x32xf32>, vector<6x32xf32> -> vector<6x32xf32>
    %592 = vector.broadcast %471 : vector<1x32xf32> to vector<6x32xf32>
    %593 = arith.addf %591, %592 : vector<6x32xf32>
    %cst_261 = arith.constant dense<0.000000e+00> : vector<6x32xf32>
    %594 = tpu.matmul %467, %473, %cst_261 {dimension_numbers = #tpu.dot_dimension_numbers<[1], [0], [0], [1], [0, 0, 1, 1], [], []>} : vector<6x32xf32>, vector<32x32xf32>, vector<6x32xf32> -> vector<6x32xf32>
    %595 = vector.broadcast %475 : vector<1x32xf32> to vector<6x32xf32>
    %596 = arith.addf %594, %595 : vector<6x32xf32>
    %cst_262 = arith.constant dense<0.000000e+00> : vector<6x32xf32>
    %597 = tpu.matmul %467, %477, %cst_262 {dimension_numbers = #tpu.dot_dimension_numbers<[1], [0], [0], [1], [0, 0, 1, 1], [], []>} : vector<6x32xf32>, vector<32x32xf32>, vector<6x32xf32> -> vector<6x32xf32>
    %598 = vector.broadcast %479 : vector<1x32xf32> to vector<6x32xf32>
    %599 = arith.addf %597, %598 : vector<6x32xf32>
    %600 = vector.extract_strided_slice %593 {offsets = [0, 0], sizes = [6, 8], strides = [1, 1]} : vector<6x32xf32> to vector<6x8xf32>
    %601 = vector.extract_strided_slice %596 {offsets = [0, 0], sizes = [6, 8], strides = [1, 1]} : vector<6x32xf32> to vector<6x8xf32>
    %602 = vector.extract_strided_slice %599 {offsets = [0, 0], sizes = [6, 8], strides = [1, 1]} : vector<6x32xf32> to vector<6x8xf32>
    %cst_263 = arith.constant dense<0.000000e+00> : vector<6x6xf32>
    %603 = tpu.matmul %600, %601, %cst_263 {dimension_numbers = #tpu.dot_dimension_numbers<[1], [1], [0], [0], [0, 0, 1, 0], [], []>} : vector<6x8xf32>, vector<6x8xf32>, vector<6x6xf32> -> vector<6x6xf32>
    %cst_264 = arith.constant 0.353553385 : f32
    %604 = vector.broadcast %cst_264 : f32 to vector<6x6xf32>
    %605 = arith.mulf %603, %604 : vector<6x6xf32>
    %cst_265 = arith.constant dense<0xFF800000> : vector<6xf32>
    %606 = vector.multi_reduction <maximumf>, %605, %cst_265 [1] : vector<6x6xf32> to vector<6xf32>
    %607 = vector.shape_cast %606 : vector<6xf32> to vector<6x1xf32>
    %608 = vector.broadcast %607 : vector<6x1xf32> to vector<6x6xf32>
    %609 = arith.subf %605, %608 : vector<6x6xf32>
    %610 = math.exp %609 : vector<6x6xf32>
    %cst_266 = arith.constant dense<0.000000e+00> : vector<6xf32>
    %611 = vector.multi_reduction <add>, %610, %cst_266 [1] : vector<6x6xf32> to vector<6xf32>
    %612 = vector.shape_cast %611 : vector<6xf32> to vector<6x1xf32>
    %613 = tpu.reciprocal %612 {approx = true} : vector<6x1xf32> -> vector<6x1xf32>
    %614 = vector.broadcast %613 : vector<6x1xf32> to vector<6x6xf32>
    %615 = arith.mulf %610, %614 : vector<6x6xf32>
    %cst_267 = arith.constant dense<0.000000e+00> : vector<6x8xf32>
    %616 = tpu.matmul %615, %602, %cst_267 {dimension_numbers = #tpu.dot_dimension_numbers<[1], [0], [0], [1], [0, 0, 1, 1], [], []>} : vector<6x6xf32>, vector<6x8xf32>, vector<6x8xf32> -> vector<6x8xf32>
    %617 = vector.extract_strided_slice %481 {offsets = [0, 0], sizes = [8, 32], strides = [1, 1]} : vector<32x32xf32> to vector<8x32xf32>
    %cst_268 = arith.constant dense<0.000000e+00> : vector<6x32xf32>
    %618 = tpu.matmul %616, %617, %cst_268 {dimension_numbers = #tpu.dot_dimension_numbers<[1], [0], [0], [1], [0, 0, 1, 1], [], []>} : vector<6x8xf32>, vector<8x32xf32>, vector<6x32xf32> -> vector<6x32xf32>
    %619 = vector.extract_strided_slice %593 {offsets = [0, 8], sizes = [6, 8], strides = [1, 1]} : vector<6x32xf32> to vector<6x8xf32>
    %620 = vector.extract_strided_slice %596 {offsets = [0, 8], sizes = [6, 8], strides = [1, 1]} : vector<6x32xf32> to vector<6x8xf32>
    %621 = vector.extract_strided_slice %599 {offsets = [0, 8], sizes = [6, 8], strides = [1, 1]} : vector<6x32xf32> to vector<6x8xf32>
    %cst_269 = arith.constant dense<0.000000e+00> : vector<6x6xf32>
    %622 = tpu.matmul %619, %620, %cst_269 {dimension_numbers = #tpu.dot_dimension_numbers<[1], [1], [0], [0], [0, 0, 1, 0], [], []>} : vector<6x8xf32>, vector<6x8xf32>, vector<6x6xf32> -> vector<6x6xf32>
    %cst_270 = arith.constant 0.353553385 : f32
    %623 = vector.broadcast %cst_270 : f32 to vector<6x6xf32>
    %624 = arith.mulf %622, %623 : vector<6x6xf32>
    %cst_271 = arith.constant dense<0xFF800000> : vector<6xf32>
    %625 = vector.multi_reduction <maximumf>, %624, %cst_271 [1] : vector<6x6xf32> to vector<6xf32>
    %626 = vector.shape_cast %625 : vector<6xf32> to vector<6x1xf32>
    %627 = vector.broadcast %626 : vector<6x1xf32> to vector<6x6xf32>
    %628 = arith.subf %624, %627 : vector<6x6xf32>
    %629 = math.exp %628 : vector<6x6xf32>
    %cst_272 = arith.constant dense<0.000000e+00> : vector<6xf32>
    %630 = vector.multi_reduction <add>, %629, %cst_272 [1] : vector<6x6xf32> to vector<6xf32>
    %631 = vector.shape_cast %630 : vector<6xf32> to vector<6x1xf32>
    %632 = tpu.reciprocal %631 {approx = true} : vector<6x1xf32> -> vector<6x1xf32>
    %633 = vector.broadcast %632 : vector<6x1xf32> to vector<6x6xf32>
    %634 = arith.mulf %629, %633 : vector<6x6xf32>
    %cst_273 = arith.constant dense<0.000000e+00> : vector<6x8xf32>
    %635 = tpu.matmul %634, %621, %cst_273 {dimension_numbers = #tpu.dot_dimension_numbers<[1], [0], [0], [1], [0, 0, 1, 1], [], []>} : vector<6x6xf32>, vector<6x8xf32>, vector<6x8xf32> -> vector<6x8xf32>
    %636 = vector.extract_strided_slice %481 {offsets = [8, 0], sizes = [8, 32], strides = [1, 1]} : vector<32x32xf32> to vector<8x32xf32>
    %cst_274 = arith.constant dense<0.000000e+00> : vector<6x32xf32>
    %637 = tpu.matmul %635, %636, %cst_274 {dimension_numbers = #tpu.dot_dimension_numbers<[1], [0], [0], [1], [0, 0, 1, 1], [], []>} : vector<6x8xf32>, vector<8x32xf32>, vector<6x32xf32> -> vector<6x32xf32>
    %638 = arith.addf %618, %637 : vector<6x32xf32>
    %639 = vector.extract_strided_slice %593 {offsets = [0, 16], sizes = [6, 8], strides = [1, 1]} : vector<6x32xf32> to vector<6x8xf32>
    %640 = vector.extract_strided_slice %596 {offsets = [0, 16], sizes = [6, 8], strides = [1, 1]} : vector<6x32xf32> to vector<6x8xf32>
    %641 = vector.extract_strided_slice %599 {offsets = [0, 16], sizes = [6, 8], strides = [1, 1]} : vector<6x32xf32> to vector<6x8xf32>
    %cst_275 = arith.constant dense<0.000000e+00> : vector<6x6xf32>
    %642 = tpu.matmul %639, %640, %cst_275 {dimension_numbers = #tpu.dot_dimension_numbers<[1], [1], [0], [0], [0, 0, 1, 0], [], []>} : vector<6x8xf32>, vector<6x8xf32>, vector<6x6xf32> -> vector<6x6xf32>
    %cst_276 = arith.constant 0.353553385 : f32
    %643 = vector.broadcast %cst_276 : f32 to vector<6x6xf32>
    %644 = arith.mulf %642, %643 : vector<6x6xf32>
    %cst_277 = arith.constant dense<0xFF800000> : vector<6xf32>
    %645 = vector.multi_reduction <maximumf>, %644, %cst_277 [1] : vector<6x6xf32> to vector<6xf32>
    %646 = vector.shape_cast %645 : vector<6xf32> to vector<6x1xf32>
    %647 = vector.broadcast %646 : vector<6x1xf32> to vector<6x6xf32>
    %648 = arith.subf %644, %647 : vector<6x6xf32>
    %649 = math.exp %648 : vector<6x6xf32>
    %cst_278 = arith.constant dense<0.000000e+00> : vector<6xf32>
    %650 = vector.multi_reduction <add>, %649, %cst_278 [1] : vector<6x6xf32> to vector<6xf32>
    %651 = vector.shape_cast %650 : vector<6xf32> to vector<6x1xf32>
    %652 = tpu.reciprocal %651 {approx = true} : vector<6x1xf32> -> vector<6x1xf32>
    %653 = vector.broadcast %652 : vector<6x1xf32> to vector<6x6xf32>
    %654 = arith.mulf %649, %653 : vector<6x6xf32>
    %cst_279 = arith.constant dense<0.000000e+00> : vector<6x8xf32>
    %655 = tpu.matmul %654, %641, %cst_279 {dimension_numbers = #tpu.dot_dimension_numbers<[1], [0], [0], [1], [0, 0, 1, 1], [], []>} : vector<6x6xf32>, vector<6x8xf32>, vector<6x8xf32> -> vector<6x8xf32>
    %656 = vector.extract_strided_slice %481 {offsets = [16, 0], sizes = [8, 32], strides = [1, 1]} : vector<32x32xf32> to vector<8x32xf32>
    %cst_280 = arith.constant dense<0.000000e+00> : vector<6x32xf32>
    %657 = tpu.matmul %655, %656, %cst_280 {dimension_numbers = #tpu.dot_dimension_numbers<[1], [0], [0], [1], [0, 0, 1, 1], [], []>} : vector<6x8xf32>, vector<8x32xf32>, vector<6x32xf32> -> vector<6x32xf32>
    %658 = arith.addf %638, %657 : vector<6x32xf32>
    %659 = vector.extract_strided_slice %593 {offsets = [0, 24], sizes = [6, 8], strides = [1, 1]} : vector<6x32xf32> to vector<6x8xf32>
    %660 = vector.extract_strided_slice %596 {offsets = [0, 24], sizes = [6, 8], strides = [1, 1]} : vector<6x32xf32> to vector<6x8xf32>
    %661 = vector.extract_strided_slice %599 {offsets = [0, 24], sizes = [6, 8], strides = [1, 1]} : vector<6x32xf32> to vector<6x8xf32>
    %cst_281 = arith.constant dense<0.000000e+00> : vector<6x6xf32>
    %662 = tpu.matmul %659, %660, %cst_281 {dimension_numbers = #tpu.dot_dimension_numbers<[1], [1], [0], [0], [0, 0, 1, 0], [], []>} : vector<6x8xf32>, vector<6x8xf32>, vector<6x6xf32> -> vector<6x6xf32>
    %cst_282 = arith.constant 0.353553385 : f32
    %663 = vector.broadcast %cst_282 : f32 to vector<6x6xf32>
    %664 = arith.mulf %662, %663 : vector<6x6xf32>
    %cst_283 = arith.constant dense<0xFF800000> : vector<6xf32>
    %665 = vector.multi_reduction <maximumf>, %664, %cst_283 [1] : vector<6x6xf32> to vector<6xf32>
    %666 = vector.shape_cast %665 : vector<6xf32> to vector<6x1xf32>
    %667 = vector.broadcast %666 : vector<6x1xf32> to vector<6x6xf32>
    %668 = arith.subf %664, %667 : vector<6x6xf32>
    %669 = math.exp %668 : vector<6x6xf32>
    %cst_284 = arith.constant dense<0.000000e+00> : vector<6xf32>
    %670 = vector.multi_reduction <add>, %669, %cst_284 [1] : vector<6x6xf32> to vector<6xf32>
    %671 = vector.shape_cast %670 : vector<6xf32> to vector<6x1xf32>
    %672 = tpu.reciprocal %671 {approx = true} : vector<6x1xf32> -> vector<6x1xf32>
    %673 = vector.broadcast %672 : vector<6x1xf32> to vector<6x6xf32>
    %674 = arith.mulf %669, %673 : vector<6x6xf32>
    %cst_285 = arith.constant dense<0.000000e+00> : vector<6x8xf32>
    %675 = tpu.matmul %674, %661, %cst_285 {dimension_numbers = #tpu.dot_dimension_numbers<[1], [0], [0], [1], [0, 0, 1, 1], [], []>} : vector<6x6xf32>, vector<6x8xf32>, vector<6x8xf32> -> vector<6x8xf32>
    %676 = vector.extract_strided_slice %481 {offsets = [24, 0], sizes = [8, 32], strides = [1, 1]} : vector<32x32xf32> to vector<8x32xf32>
    %cst_286 = arith.constant dense<0.000000e+00> : vector<6x32xf32>
    %677 = tpu.matmul %675, %676, %cst_286 {dimension_numbers = #tpu.dot_dimension_numbers<[1], [0], [0], [1], [0, 0, 1, 1], [], []>} : vector<6x8xf32>, vector<8x32xf32>, vector<6x32xf32> -> vector<6x32xf32>
    %678 = arith.addf %658, %677 : vector<6x32xf32>
    %679 = vector.extract_strided_slice %483 {offsets = [0, 0], sizes = [32, 64], strides = [1, 1]} : vector<64x64xf32> to vector<32x64xf32>
    %cst_287 = arith.constant dense<0.000000e+00> : vector<6x64xf32>
    %680 = tpu.matmul %467, %679, %cst_287 {dimension_numbers = #tpu.dot_dimension_numbers<[1], [0], [0], [1], [0, 0, 1, 1], [], []>} : vector<6x32xf32>, vector<32x64xf32>, vector<6x64xf32> -> vector<6x64xf32>
    %681 = vector.extract_strided_slice %483 {offsets = [32, 0], sizes = [32, 64], strides = [1, 1]} : vector<64x64xf32> to vector<32x64xf32>
    %cst_288 = arith.constant dense<0.000000e+00> : vector<6x64xf32>
    %682 = tpu.matmul %678, %681, %cst_288 {dimension_numbers = #tpu.dot_dimension_numbers<[1], [0], [0], [1], [0, 0, 1, 1], [], []>} : vector<6x32xf32>, vector<32x64xf32>, vector<6x64xf32> -> vector<6x64xf32>
    %683 = arith.addf %680, %682 : vector<6x64xf32>
    %684 = vector.broadcast %485 : vector<1x64xf32> to vector<6x64xf32>
    %685 = arith.addf %683, %684 : vector<6x64xf32>
    %cst_289 = arith.constant 0.000000e+00 : f32
    %686 = vector.broadcast %cst_289 : f32 to vector<6x64xf32>
    %687 = arith.maximumf %685, %686 : vector<6x64xf32>
    %cst_290 = arith.constant dense<0.000000e+00> : vector<6x32xf32>
    %688 = tpu.matmul %687, %487, %cst_290 {dimension_numbers = #tpu.dot_dimension_numbers<[1], [0], [0], [1], [0, 0, 1, 1], [], []>} : vector<6x64xf32>, vector<64x32xf32>, vector<6x32xf32> -> vector<6x32xf32>
    %689 = vector.broadcast %489 : vector<1x32xf32> to vector<6x32xf32>
    %690 = arith.addf %688, %689 : vector<6x32xf32>
    %691 = arith.addf %467, %690 : vector<6x32xf32>
    %c3 = arith.constant 3 : index
    %c0_291 = arith.constant 0 : index
    %c0_292 = arith.constant 0 : index
    %692 = vector.load %arg3[%c3, %c0_291, %c0_292] : memref<4x32x32xf32, #tpu.memory_space<vmem>>, vector<1x32x32xf32>
    %693 = vector.shape_cast %692 : vector<1x32x32xf32> to vector<32x32xf32>
    %c3_293 = arith.constant 3 : index
    %c0_294 = arith.constant 0 : index
    %c0_295 = arith.constant 0 : index
    %694 = vector.load %arg4[%c3_293, %c0_294, %c0_295] : memref<4x1x32xf32, #tpu.memory_space<vmem>>, vector<1x1x32xf32>
    %695 = vector.shape_cast %694 : vector<1x1x32xf32> to vector<1x32xf32>
    %c3_296 = arith.constant 3 : index
    %c0_297 = arith.constant 0 : index
    %c0_298 = arith.constant 0 : index
    %696 = vector.load %arg5[%c3_296, %c0_297, %c0_298] : memref<4x32x32xf32, #tpu.memory_space<vmem>>, vector<1x32x32xf32>
    %697 = vector.shape_cast %696 : vector<1x32x32xf32> to vector<32x32xf32>
    %c3_299 = arith.constant 3 : index
    %c0_300 = arith.constant 0 : index
    %c0_301 = arith.constant 0 : index
    %698 = vector.load %arg6[%c3_299, %c0_300, %c0_301] : memref<4x1x32xf32, #tpu.memory_space<vmem>>, vector<1x1x32xf32>
    %699 = vector.shape_cast %698 : vector<1x1x32xf32> to vector<1x32xf32>
    %c3_302 = arith.constant 3 : index
    %c0_303 = arith.constant 0 : index
    %c0_304 = arith.constant 0 : index
    %700 = vector.load %arg7[%c3_302, %c0_303, %c0_304] : memref<4x32x32xf32, #tpu.memory_space<vmem>>, vector<1x32x32xf32>
    %701 = vector.shape_cast %700 : vector<1x32x32xf32> to vector<32x32xf32>
    %c3_305 = arith.constant 3 : index
    %c0_306 = arith.constant 0 : index
    %c0_307 = arith.constant 0 : index
    %702 = vector.load %arg8[%c3_305, %c0_306, %c0_307] : memref<4x1x32xf32, #tpu.memory_space<vmem>>, vector<1x1x32xf32>
    %703 = vector.shape_cast %702 : vector<1x1x32xf32> to vector<1x32xf32>
    %c3_308 = arith.constant 3 : index
    %c0_309 = arith.constant 0 : index
    %c0_310 = arith.constant 0 : index
    %704 = vector.load %arg9[%c3_308, %c0_309, %c0_310] : memref<4x32x32xf32, #tpu.memory_space<vmem>>, vector<1x32x32xf32>
    %705 = vector.shape_cast %704 : vector<1x32x32xf32> to vector<32x32xf32>
    %c3_311 = arith.constant 3 : index
    %c0_312 = arith.constant 0 : index
    %c0_313 = arith.constant 0 : index
    %706 = vector.load %arg10[%c3_311, %c0_312, %c0_313] : memref<4x64x64xf32, #tpu.memory_space<vmem>>, vector<1x64x64xf32>
    %707 = vector.shape_cast %706 : vector<1x64x64xf32> to vector<64x64xf32>
    %c3_314 = arith.constant 3 : index
    %c0_315 = arith.constant 0 : index
    %c0_316 = arith.constant 0 : index
    %708 = vector.load %arg11[%c3_314, %c0_315, %c0_316] : memref<4x1x64xf32, #tpu.memory_space<vmem>>, vector<1x1x64xf32>
    %709 = vector.shape_cast %708 : vector<1x1x64xf32> to vector<1x64xf32>
    %c3_317 = arith.constant 3 : index
    %c0_318 = arith.constant 0 : index
    %c0_319 = arith.constant 0 : index
    %710 = vector.load %arg12[%c3_317, %c0_318, %c0_319] : memref<4x64x32xf32, #tpu.memory_space<vmem>>, vector<1x64x32xf32>
    %711 = vector.shape_cast %710 : vector<1x64x32xf32> to vector<64x32xf32>
    %c3_320 = arith.constant 3 : index
    %c0_321 = arith.constant 0 : index
    %c0_322 = arith.constant 0 : index
    %712 = vector.load %arg13[%c3_320, %c0_321, %c0_322] : memref<4x1x32xf32, #tpu.memory_space<vmem>>, vector<1x1x32xf32>
    %713 = vector.shape_cast %712 : vector<1x1x32xf32> to vector<1x32xf32>
    %cst_323 = arith.constant dense<0.000000e+00> : vector<8x32xf32>
    %714 = tpu.matmul %590, %693, %cst_323 {dimension_numbers = #tpu.dot_dimension_numbers<[1], [0], [0], [1], [0, 0, 1, 1], [], []>} : vector<8x32xf32>, vector<32x32xf32>, vector<8x32xf32> -> vector<8x32xf32>
    %715 = vector.broadcast %695 : vector<1x32xf32> to vector<8x32xf32>
    %716 = arith.addf %714, %715 : vector<8x32xf32>
    %cst_324 = arith.constant dense<0.000000e+00> : vector<6x32xf32>
    %717 = tpu.matmul %691, %697, %cst_324 {dimension_numbers = #tpu.dot_dimension_numbers<[1], [0], [0], [1], [0, 0, 1, 1], [], []>} : vector<6x32xf32>, vector<32x32xf32>, vector<6x32xf32> -> vector<6x32xf32>
    %718 = vector.broadcast %699 : vector<1x32xf32> to vector<6x32xf32>
    %719 = arith.addf %717, %718 : vector<6x32xf32>
    %cst_325 = arith.constant dense<0.000000e+00> : vector<6x32xf32>
    %720 = tpu.matmul %691, %701, %cst_325 {dimension_numbers = #tpu.dot_dimension_numbers<[1], [0], [0], [1], [0, 0, 1, 1], [], []>} : vector<6x32xf32>, vector<32x32xf32>, vector<6x32xf32> -> vector<6x32xf32>
    %721 = vector.broadcast %703 : vector<1x32xf32> to vector<6x32xf32>
    %722 = arith.addf %720, %721 : vector<6x32xf32>
    %723 = vector.extract_strided_slice %716 {offsets = [0, 0], sizes = [8, 8], strides = [1, 1]} : vector<8x32xf32> to vector<8x8xf32>
    %724 = vector.extract_strided_slice %719 {offsets = [0, 0], sizes = [6, 8], strides = [1, 1]} : vector<6x32xf32> to vector<6x8xf32>
    %725 = vector.extract_strided_slice %722 {offsets = [0, 0], sizes = [6, 8], strides = [1, 1]} : vector<6x32xf32> to vector<6x8xf32>
    %cst_326 = arith.constant dense<0.000000e+00> : vector<8x6xf32>
    %726 = tpu.matmul %723, %724, %cst_326 {dimension_numbers = #tpu.dot_dimension_numbers<[1], [1], [0], [0], [0, 0, 1, 0], [], []>} : vector<8x8xf32>, vector<6x8xf32>, vector<8x6xf32> -> vector<8x6xf32>
    %cst_327 = arith.constant 0.353553385 : f32
    %727 = vector.broadcast %cst_327 : f32 to vector<8x6xf32>
    %728 = arith.mulf %726, %727 : vector<8x6xf32>
    %cst_328 = arith.constant dense<0xFF800000> : vector<8xf32>
    %729 = vector.multi_reduction <maximumf>, %728, %cst_328 [1] : vector<8x6xf32> to vector<8xf32>
    %730 = vector.shape_cast %729 : vector<8xf32> to vector<8x1xf32>
    %731 = vector.broadcast %730 : vector<8x1xf32> to vector<8x6xf32>
    %732 = arith.subf %728, %731 : vector<8x6xf32>
    %733 = math.exp %732 : vector<8x6xf32>
    %cst_329 = arith.constant dense<0.000000e+00> : vector<8xf32>
    %734 = vector.multi_reduction <add>, %733, %cst_329 [1] : vector<8x6xf32> to vector<8xf32>
    %735 = vector.shape_cast %734 : vector<8xf32> to vector<8x1xf32>
    %736 = tpu.reciprocal %735 {approx = true} : vector<8x1xf32> -> vector<8x1xf32>
    %737 = vector.broadcast %736 : vector<8x1xf32> to vector<8x6xf32>
    %738 = arith.mulf %733, %737 : vector<8x6xf32>
    %cst_330 = arith.constant dense<0.000000e+00> : vector<8x8xf32>
    %739 = tpu.matmul %738, %725, %cst_330 {dimension_numbers = #tpu.dot_dimension_numbers<[1], [0], [0], [1], [0, 0, 1, 1], [], []>} : vector<8x6xf32>, vector<6x8xf32>, vector<8x8xf32> -> vector<8x8xf32>
    %740 = vector.extract_strided_slice %705 {offsets = [0, 0], sizes = [8, 32], strides = [1, 1]} : vector<32x32xf32> to vector<8x32xf32>
    %cst_331 = arith.constant dense<0.000000e+00> : vector<8x32xf32>
    %741 = tpu.matmul %739, %740, %cst_331 {dimension_numbers = #tpu.dot_dimension_numbers<[1], [0], [0], [1], [0, 0, 1, 1], [], []>} : vector<8x8xf32>, vector<8x32xf32>, vector<8x32xf32> -> vector<8x32xf32>
    %742 = vector.extract_strided_slice %716 {offsets = [0, 8], sizes = [8, 8], strides = [1, 1]} : vector<8x32xf32> to vector<8x8xf32>
    %743 = vector.extract_strided_slice %719 {offsets = [0, 8], sizes = [6, 8], strides = [1, 1]} : vector<6x32xf32> to vector<6x8xf32>
    %744 = vector.extract_strided_slice %722 {offsets = [0, 8], sizes = [6, 8], strides = [1, 1]} : vector<6x32xf32> to vector<6x8xf32>
    %cst_332 = arith.constant dense<0.000000e+00> : vector<8x6xf32>
    %745 = tpu.matmul %742, %743, %cst_332 {dimension_numbers = #tpu.dot_dimension_numbers<[1], [1], [0], [0], [0, 0, 1, 0], [], []>} : vector<8x8xf32>, vector<6x8xf32>, vector<8x6xf32> -> vector<8x6xf32>
    %cst_333 = arith.constant 0.353553385 : f32
    %746 = vector.broadcast %cst_333 : f32 to vector<8x6xf32>
    %747 = arith.mulf %745, %746 : vector<8x6xf32>
    %cst_334 = arith.constant dense<0xFF800000> : vector<8xf32>
    %748 = vector.multi_reduction <maximumf>, %747, %cst_334 [1] : vector<8x6xf32> to vector<8xf32>
    %749 = vector.shape_cast %748 : vector<8xf32> to vector<8x1xf32>
    %750 = vector.broadcast %749 : vector<8x1xf32> to vector<8x6xf32>
    %751 = arith.subf %747, %750 : vector<8x6xf32>
    %752 = math.exp %751 : vector<8x6xf32>
    %cst_335 = arith.constant dense<0.000000e+00> : vector<8xf32>
    %753 = vector.multi_reduction <add>, %752, %cst_335 [1] : vector<8x6xf32> to vector<8xf32>
    %754 = vector.shape_cast %753 : vector<8xf32> to vector<8x1xf32>
    %755 = tpu.reciprocal %754 {approx = true} : vector<8x1xf32> -> vector<8x1xf32>
    %756 = vector.broadcast %755 : vector<8x1xf32> to vector<8x6xf32>
    %757 = arith.mulf %752, %756 : vector<8x6xf32>
    %cst_336 = arith.constant dense<0.000000e+00> : vector<8x8xf32>
    %758 = tpu.matmul %757, %744, %cst_336 {dimension_numbers = #tpu.dot_dimension_numbers<[1], [0], [0], [1], [0, 0, 1, 1], [], []>} : vector<8x6xf32>, vector<6x8xf32>, vector<8x8xf32> -> vector<8x8xf32>
    %759 = vector.extract_strided_slice %705 {offsets = [8, 0], sizes = [8, 32], strides = [1, 1]} : vector<32x32xf32> to vector<8x32xf32>
    %cst_337 = arith.constant dense<0.000000e+00> : vector<8x32xf32>
    %760 = tpu.matmul %758, %759, %cst_337 {dimension_numbers = #tpu.dot_dimension_numbers<[1], [0], [0], [1], [0, 0, 1, 1], [], []>} : vector<8x8xf32>, vector<8x32xf32>, vector<8x32xf32> -> vector<8x32xf32>
    %761 = arith.addf %741, %760 : vector<8x32xf32>
    %762 = vector.extract_strided_slice %716 {offsets = [0, 16], sizes = [8, 8], strides = [1, 1]} : vector<8x32xf32> to vector<8x8xf32>
    %763 = vector.extract_strided_slice %719 {offsets = [0, 16], sizes = [6, 8], strides = [1, 1]} : vector<6x32xf32> to vector<6x8xf32>
    %764 = vector.extract_strided_slice %722 {offsets = [0, 16], sizes = [6, 8], strides = [1, 1]} : vector<6x32xf32> to vector<6x8xf32>
    %cst_338 = arith.constant dense<0.000000e+00> : vector<8x6xf32>
    %765 = tpu.matmul %762, %763, %cst_338 {dimension_numbers = #tpu.dot_dimension_numbers<[1], [1], [0], [0], [0, 0, 1, 0], [], []>} : vector<8x8xf32>, vector<6x8xf32>, vector<8x6xf32> -> vector<8x6xf32>
    %cst_339 = arith.constant 0.353553385 : f32
    %766 = vector.broadcast %cst_339 : f32 to vector<8x6xf32>
    %767 = arith.mulf %765, %766 : vector<8x6xf32>
    %cst_340 = arith.constant dense<0xFF800000> : vector<8xf32>
    %768 = vector.multi_reduction <maximumf>, %767, %cst_340 [1] : vector<8x6xf32> to vector<8xf32>
    %769 = vector.shape_cast %768 : vector<8xf32> to vector<8x1xf32>
    %770 = vector.broadcast %769 : vector<8x1xf32> to vector<8x6xf32>
    %771 = arith.subf %767, %770 : vector<8x6xf32>
    %772 = math.exp %771 : vector<8x6xf32>
    %cst_341 = arith.constant dense<0.000000e+00> : vector<8xf32>
    %773 = vector.multi_reduction <add>, %772, %cst_341 [1] : vector<8x6xf32> to vector<8xf32>
    %774 = vector.shape_cast %773 : vector<8xf32> to vector<8x1xf32>
    %775 = tpu.reciprocal %774 {approx = true} : vector<8x1xf32> -> vector<8x1xf32>
    %776 = vector.broadcast %775 : vector<8x1xf32> to vector<8x6xf32>
    %777 = arith.mulf %772, %776 : vector<8x6xf32>
    %cst_342 = arith.constant dense<0.000000e+00> : vector<8x8xf32>
    %778 = tpu.matmul %777, %764, %cst_342 {dimension_numbers = #tpu.dot_dimension_numbers<[1], [0], [0], [1], [0, 0, 1, 1], [], []>} : vector<8x6xf32>, vector<6x8xf32>, vector<8x8xf32> -> vector<8x8xf32>
    %779 = vector.extract_strided_slice %705 {offsets = [16, 0], sizes = [8, 32], strides = [1, 1]} : vector<32x32xf32> to vector<8x32xf32>
    %cst_343 = arith.constant dense<0.000000e+00> : vector<8x32xf32>
    %780 = tpu.matmul %778, %779, %cst_343 {dimension_numbers = #tpu.dot_dimension_numbers<[1], [0], [0], [1], [0, 0, 1, 1], [], []>} : vector<8x8xf32>, vector<8x32xf32>, vector<8x32xf32> -> vector<8x32xf32>
    %781 = arith.addf %761, %780 : vector<8x32xf32>
    %782 = vector.extract_strided_slice %716 {offsets = [0, 24], sizes = [8, 8], strides = [1, 1]} : vector<8x32xf32> to vector<8x8xf32>
    %783 = vector.extract_strided_slice %719 {offsets = [0, 24], sizes = [6, 8], strides = [1, 1]} : vector<6x32xf32> to vector<6x8xf32>
    %784 = vector.extract_strided_slice %722 {offsets = [0, 24], sizes = [6, 8], strides = [1, 1]} : vector<6x32xf32> to vector<6x8xf32>
    %cst_344 = arith.constant dense<0.000000e+00> : vector<8x6xf32>
    %785 = tpu.matmul %782, %783, %cst_344 {dimension_numbers = #tpu.dot_dimension_numbers<[1], [1], [0], [0], [0, 0, 1, 0], [], []>} : vector<8x8xf32>, vector<6x8xf32>, vector<8x6xf32> -> vector<8x6xf32>
    %cst_345 = arith.constant 0.353553385 : f32
    %786 = vector.broadcast %cst_345 : f32 to vector<8x6xf32>
    %787 = arith.mulf %785, %786 : vector<8x6xf32>
    %cst_346 = arith.constant dense<0xFF800000> : vector<8xf32>
    %788 = vector.multi_reduction <maximumf>, %787, %cst_346 [1] : vector<8x6xf32> to vector<8xf32>
    %789 = vector.shape_cast %788 : vector<8xf32> to vector<8x1xf32>
    %790 = vector.broadcast %789 : vector<8x1xf32> to vector<8x6xf32>
    %791 = arith.subf %787, %790 : vector<8x6xf32>
    %792 = math.exp %791 : vector<8x6xf32>
    %cst_347 = arith.constant dense<0.000000e+00> : vector<8xf32>
    %793 = vector.multi_reduction <add>, %792, %cst_347 [1] : vector<8x6xf32> to vector<8xf32>
    %794 = vector.shape_cast %793 : vector<8xf32> to vector<8x1xf32>
    %795 = tpu.reciprocal %794 {approx = true} : vector<8x1xf32> -> vector<8x1xf32>
    %796 = vector.broadcast %795 : vector<8x1xf32> to vector<8x6xf32>
    %797 = arith.mulf %792, %796 : vector<8x6xf32>
    %cst_348 = arith.constant dense<0.000000e+00> : vector<8x8xf32>
    %798 = tpu.matmul %797, %784, %cst_348 {dimension_numbers = #tpu.dot_dimension_numbers<[1], [0], [0], [1], [0, 0, 1, 1], [], []>} : vector<8x6xf32>, vector<6x8xf32>, vector<8x8xf32> -> vector<8x8xf32>
    %799 = vector.extract_strided_slice %705 {offsets = [24, 0], sizes = [8, 32], strides = [1, 1]} : vector<32x32xf32> to vector<8x32xf32>
    %cst_349 = arith.constant dense<0.000000e+00> : vector<8x32xf32>
    %800 = tpu.matmul %798, %799, %cst_349 {dimension_numbers = #tpu.dot_dimension_numbers<[1], [0], [0], [1], [0, 0, 1, 1], [], []>} : vector<8x8xf32>, vector<8x32xf32>, vector<8x32xf32> -> vector<8x32xf32>
    %801 = arith.addf %781, %800 : vector<8x32xf32>
    %802 = vector.extract_strided_slice %707 {offsets = [0, 0], sizes = [32, 64], strides = [1, 1]} : vector<64x64xf32> to vector<32x64xf32>
    %cst_350 = arith.constant dense<0.000000e+00> : vector<8x64xf32>
    %803 = tpu.matmul %590, %802, %cst_350 {dimension_numbers = #tpu.dot_dimension_numbers<[1], [0], [0], [1], [0, 0, 1, 1], [], []>} : vector<8x32xf32>, vector<32x64xf32>, vector<8x64xf32> -> vector<8x64xf32>
    %804 = vector.extract_strided_slice %707 {offsets = [32, 0], sizes = [32, 64], strides = [1, 1]} : vector<64x64xf32> to vector<32x64xf32>
    %cst_351 = arith.constant dense<0.000000e+00> : vector<8x64xf32>
    %805 = tpu.matmul %801, %804, %cst_351 {dimension_numbers = #tpu.dot_dimension_numbers<[1], [0], [0], [1], [0, 0, 1, 1], [], []>} : vector<8x32xf32>, vector<32x64xf32>, vector<8x64xf32> -> vector<8x64xf32>
    %806 = arith.addf %803, %805 : vector<8x64xf32>
    %807 = vector.broadcast %709 : vector<1x64xf32> to vector<8x64xf32>
    %808 = arith.addf %806, %807 : vector<8x64xf32>
    %cst_352 = arith.constant 0.000000e+00 : f32
    %809 = vector.broadcast %cst_352 : f32 to vector<8x64xf32>
    %810 = arith.maximumf %808, %809 : vector<8x64xf32>
    %cst_353 = arith.constant dense<0.000000e+00> : vector<8x32xf32>
    %811 = tpu.matmul %810, %711, %cst_353 {dimension_numbers = #tpu.dot_dimension_numbers<[1], [0], [0], [1], [0, 0, 1, 1], [], []>} : vector<8x64xf32>, vector<64x32xf32>, vector<8x32xf32> -> vector<8x32xf32>
    %812 = vector.broadcast %713 : vector<1x32xf32> to vector<8x32xf32>
    %813 = arith.addf %811, %812 : vector<8x32xf32>
    %814 = arith.addf %590, %813 : vector<8x32xf32>
    %cst_354 = arith.constant dense<0.000000e+00> : vector<6x32xf32>
    %815 = tpu.matmul %691, %693, %cst_354 {dimension_numbers = #tpu.dot_dimension_numbers<[1], [0], [0], [1], [0, 0, 1, 1], [], []>} : vector<6x32xf32>, vector<32x32xf32>, vector<6x32xf32> -> vector<6x32xf32>
    %816 = vector.broadcast %695 : vector<1x32xf32> to vector<6x32xf32>
    %817 = arith.addf %815, %816 : vector<6x32xf32>
    %cst_355 = arith.constant dense<0.000000e+00> : vector<8x32xf32>
    %818 = tpu.matmul %590, %697, %cst_355 {dimension_numbers = #tpu.dot_dimension_numbers<[1], [0], [0], [1], [0, 0, 1, 1], [], []>} : vector<8x32xf32>, vector<32x32xf32>, vector<8x32xf32> -> vector<8x32xf32>
    %819 = vector.broadcast %699 : vector<1x32xf32> to vector<8x32xf32>
    %820 = arith.addf %818, %819 : vector<8x32xf32>
    %cst_356 = arith.constant dense<0.000000e+00> : vector<8x32xf32>
    %821 = tpu.matmul %590, %701, %cst_356 {dimension_numbers = #tpu.dot_dimension_numbers<[1], [0], [0], [1], [0, 0, 1, 1], [], []>} : vector<8x32xf32>, vector<32x32xf32>, vector<8x32xf32> -> vector<8x32xf32>
    %822 = vector.broadcast %703 : vector<1x32xf32> to vector<8x32xf32>
    %823 = arith.addf %821, %822 : vector<8x32xf32>
    %824 = vector.extract_strided_slice %817 {offsets = [0, 0], sizes = [6, 8], strides = [1, 1]} : vector<6x32xf32> to vector<6x8xf32>
    %825 = vector.extract_strided_slice %820 {offsets = [0, 0], sizes = [8, 8], strides = [1, 1]} : vector<8x32xf32> to vector<8x8xf32>
    %826 = vector.extract_strided_slice %823 {offsets = [0, 0], sizes = [8, 8], strides = [1, 1]} : vector<8x32xf32> to vector<8x8xf32>
    %cst_357 = arith.constant dense<0.000000e+00> : vector<6x8xf32>
    %827 = tpu.matmul %824, %825, %cst_357 {dimension_numbers = #tpu.dot_dimension_numbers<[1], [1], [0], [0], [0, 0, 1, 0], [], []>} : vector<6x8xf32>, vector<8x8xf32>, vector<6x8xf32> -> vector<6x8xf32>
    %cst_358 = arith.constant 0.353553385 : f32
    %828 = vector.broadcast %cst_358 : f32 to vector<6x8xf32>
    %829 = arith.mulf %827, %828 : vector<6x8xf32>
    %cst_359 = arith.constant dense<0xFF800000> : vector<6xf32>
    %830 = vector.multi_reduction <maximumf>, %829, %cst_359 [1] : vector<6x8xf32> to vector<6xf32>
    %831 = vector.shape_cast %830 : vector<6xf32> to vector<6x1xf32>
    %832 = vector.broadcast %831 : vector<6x1xf32> to vector<6x8xf32>
    %833 = arith.subf %829, %832 : vector<6x8xf32>
    %834 = math.exp %833 : vector<6x8xf32>
    %cst_360 = arith.constant dense<0.000000e+00> : vector<6xf32>
    %835 = vector.multi_reduction <add>, %834, %cst_360 [1] : vector<6x8xf32> to vector<6xf32>
    %836 = vector.shape_cast %835 : vector<6xf32> to vector<6x1xf32>
    %837 = tpu.reciprocal %836 {approx = true} : vector<6x1xf32> -> vector<6x1xf32>
    %838 = vector.broadcast %837 : vector<6x1xf32> to vector<6x8xf32>
    %839 = arith.mulf %834, %838 : vector<6x8xf32>
    %cst_361 = arith.constant dense<0.000000e+00> : vector<6x8xf32>
    %840 = tpu.matmul %839, %826, %cst_361 {dimension_numbers = #tpu.dot_dimension_numbers<[1], [0], [0], [1], [0, 0, 1, 1], [], []>} : vector<6x8xf32>, vector<8x8xf32>, vector<6x8xf32> -> vector<6x8xf32>
    %841 = vector.extract_strided_slice %705 {offsets = [0, 0], sizes = [8, 32], strides = [1, 1]} : vector<32x32xf32> to vector<8x32xf32>
    %cst_362 = arith.constant dense<0.000000e+00> : vector<6x32xf32>
    %842 = tpu.matmul %840, %841, %cst_362 {dimension_numbers = #tpu.dot_dimension_numbers<[1], [0], [0], [1], [0, 0, 1, 1], [], []>} : vector<6x8xf32>, vector<8x32xf32>, vector<6x32xf32> -> vector<6x32xf32>
    %843 = vector.extract_strided_slice %817 {offsets = [0, 8], sizes = [6, 8], strides = [1, 1]} : vector<6x32xf32> to vector<6x8xf32>
    %844 = vector.extract_strided_slice %820 {offsets = [0, 8], sizes = [8, 8], strides = [1, 1]} : vector<8x32xf32> to vector<8x8xf32>
    %845 = vector.extract_strided_slice %823 {offsets = [0, 8], sizes = [8, 8], strides = [1, 1]} : vector<8x32xf32> to vector<8x8xf32>
    %cst_363 = arith.constant dense<0.000000e+00> : vector<6x8xf32>
    %846 = tpu.matmul %843, %844, %cst_363 {dimension_numbers = #tpu.dot_dimension_numbers<[1], [1], [0], [0], [0, 0, 1, 0], [], []>} : vector<6x8xf32>, vector<8x8xf32>, vector<6x8xf32> -> vector<6x8xf32>
    %cst_364 = arith.constant 0.353553385 : f32
    %847 = vector.broadcast %cst_364 : f32 to vector<6x8xf32>
    %848 = arith.mulf %846, %847 : vector<6x8xf32>
    %cst_365 = arith.constant dense<0xFF800000> : vector<6xf32>
    %849 = vector.multi_reduction <maximumf>, %848, %cst_365 [1] : vector<6x8xf32> to vector<6xf32>
    %850 = vector.shape_cast %849 : vector<6xf32> to vector<6x1xf32>
    %851 = vector.broadcast %850 : vector<6x1xf32> to vector<6x8xf32>
    %852 = arith.subf %848, %851 : vector<6x8xf32>
    %853 = math.exp %852 : vector<6x8xf32>
    %cst_366 = arith.constant dense<0.000000e+00> : vector<6xf32>
    %854 = vector.multi_reduction <add>, %853, %cst_366 [1] : vector<6x8xf32> to vector<6xf32>
    %855 = vector.shape_cast %854 : vector<6xf32> to vector<6x1xf32>
    %856 = tpu.reciprocal %855 {approx = true} : vector<6x1xf32> -> vector<6x1xf32>
    %857 = vector.broadcast %856 : vector<6x1xf32> to vector<6x8xf32>
    %858 = arith.mulf %853, %857 : vector<6x8xf32>
    %cst_367 = arith.constant dense<0.000000e+00> : vector<6x8xf32>
    %859 = tpu.matmul %858, %845, %cst_367 {dimension_numbers = #tpu.dot_dimension_numbers<[1], [0], [0], [1], [0, 0, 1, 1], [], []>} : vector<6x8xf32>, vector<8x8xf32>, vector<6x8xf32> -> vector<6x8xf32>
    %860 = vector.extract_strided_slice %705 {offsets = [8, 0], sizes = [8, 32], strides = [1, 1]} : vector<32x32xf32> to vector<8x32xf32>
    %cst_368 = arith.constant dense<0.000000e+00> : vector<6x32xf32>
    %861 = tpu.matmul %859, %860, %cst_368 {dimension_numbers = #tpu.dot_dimension_numbers<[1], [0], [0], [1], [0, 0, 1, 1], [], []>} : vector<6x8xf32>, vector<8x32xf32>, vector<6x32xf32> -> vector<6x32xf32>
    %862 = arith.addf %842, %861 : vector<6x32xf32>
    %863 = vector.extract_strided_slice %817 {offsets = [0, 16], sizes = [6, 8], strides = [1, 1]} : vector<6x32xf32> to vector<6x8xf32>
    %864 = vector.extract_strided_slice %820 {offsets = [0, 16], sizes = [8, 8], strides = [1, 1]} : vector<8x32xf32> to vector<8x8xf32>
    %865 = vector.extract_strided_slice %823 {offsets = [0, 16], sizes = [8, 8], strides = [1, 1]} : vector<8x32xf32> to vector<8x8xf32>
    %cst_369 = arith.constant dense<0.000000e+00> : vector<6x8xf32>
    %866 = tpu.matmul %863, %864, %cst_369 {dimension_numbers = #tpu.dot_dimension_numbers<[1], [1], [0], [0], [0, 0, 1, 0], [], []>} : vector<6x8xf32>, vector<8x8xf32>, vector<6x8xf32> -> vector<6x8xf32>
    %cst_370 = arith.constant 0.353553385 : f32
    %867 = vector.broadcast %cst_370 : f32 to vector<6x8xf32>
    %868 = arith.mulf %866, %867 : vector<6x8xf32>
    %cst_371 = arith.constant dense<0xFF800000> : vector<6xf32>
    %869 = vector.multi_reduction <maximumf>, %868, %cst_371 [1] : vector<6x8xf32> to vector<6xf32>
    %870 = vector.shape_cast %869 : vector<6xf32> to vector<6x1xf32>
    %871 = vector.broadcast %870 : vector<6x1xf32> to vector<6x8xf32>
    %872 = arith.subf %868, %871 : vector<6x8xf32>
    %873 = math.exp %872 : vector<6x8xf32>
    %cst_372 = arith.constant dense<0.000000e+00> : vector<6xf32>
    %874 = vector.multi_reduction <add>, %873, %cst_372 [1] : vector<6x8xf32> to vector<6xf32>
    %875 = vector.shape_cast %874 : vector<6xf32> to vector<6x1xf32>
    %876 = tpu.reciprocal %875 {approx = true} : vector<6x1xf32> -> vector<6x1xf32>
    %877 = vector.broadcast %876 : vector<6x1xf32> to vector<6x8xf32>
    %878 = arith.mulf %873, %877 : vector<6x8xf32>
    %cst_373 = arith.constant dense<0.000000e+00> : vector<6x8xf32>
    %879 = tpu.matmul %878, %865, %cst_373 {dimension_numbers = #tpu.dot_dimension_numbers<[1], [0], [0], [1], [0, 0, 1, 1], [], []>} : vector<6x8xf32>, vector<8x8xf32>, vector<6x8xf32> -> vector<6x8xf32>
    %880 = vector.extract_strided_slice %705 {offsets = [16, 0], sizes = [8, 32], strides = [1, 1]} : vector<32x32xf32> to vector<8x32xf32>
    %cst_374 = arith.constant dense<0.000000e+00> : vector<6x32xf32>
    %881 = tpu.matmul %879, %880, %cst_374 {dimension_numbers = #tpu.dot_dimension_numbers<[1], [0], [0], [1], [0, 0, 1, 1], [], []>} : vector<6x8xf32>, vector<8x32xf32>, vector<6x32xf32> -> vector<6x32xf32>
    %882 = arith.addf %862, %881 : vector<6x32xf32>
    %883 = vector.extract_strided_slice %817 {offsets = [0, 24], sizes = [6, 8], strides = [1, 1]} : vector<6x32xf32> to vector<6x8xf32>
    %884 = vector.extract_strided_slice %820 {offsets = [0, 24], sizes = [8, 8], strides = [1, 1]} : vector<8x32xf32> to vector<8x8xf32>
    %885 = vector.extract_strided_slice %823 {offsets = [0, 24], sizes = [8, 8], strides = [1, 1]} : vector<8x32xf32> to vector<8x8xf32>
    %cst_375 = arith.constant dense<0.000000e+00> : vector<6x8xf32>
    %886 = tpu.matmul %883, %884, %cst_375 {dimension_numbers = #tpu.dot_dimension_numbers<[1], [1], [0], [0], [0, 0, 1, 0], [], []>} : vector<6x8xf32>, vector<8x8xf32>, vector<6x8xf32> -> vector<6x8xf32>
    %cst_376 = arith.constant 0.353553385 : f32
    %887 = vector.broadcast %cst_376 : f32 to vector<6x8xf32>
    %888 = arith.mulf %886, %887 : vector<6x8xf32>
    %cst_377 = arith.constant dense<0xFF800000> : vector<6xf32>
    %889 = vector.multi_reduction <maximumf>, %888, %cst_377 [1] : vector<6x8xf32> to vector<6xf32>
    %890 = vector.shape_cast %889 : vector<6xf32> to vector<6x1xf32>
    %891 = vector.broadcast %890 : vector<6x1xf32> to vector<6x8xf32>
    %892 = arith.subf %888, %891 : vector<6x8xf32>
    %893 = math.exp %892 : vector<6x8xf32>
    %cst_378 = arith.constant dense<0.000000e+00> : vector<6xf32>
    %894 = vector.multi_reduction <add>, %893, %cst_378 [1] : vector<6x8xf32> to vector<6xf32>
    %895 = vector.shape_cast %894 : vector<6xf32> to vector<6x1xf32>
    %896 = tpu.reciprocal %895 {approx = true} : vector<6x1xf32> -> vector<6x1xf32>
    %897 = vector.broadcast %896 : vector<6x1xf32> to vector<6x8xf32>
    %898 = arith.mulf %893, %897 : vector<6x8xf32>
    %cst_379 = arith.constant dense<0.000000e+00> : vector<6x8xf32>
    %899 = tpu.matmul %898, %885, %cst_379 {dimension_numbers = #tpu.dot_dimension_numbers<[1], [0], [0], [1], [0, 0, 1, 1], [], []>} : vector<6x8xf32>, vector<8x8xf32>, vector<6x8xf32> -> vector<6x8xf32>
    %900 = vector.extract_strided_slice %705 {offsets = [24, 0], sizes = [8, 32], strides = [1, 1]} : vector<32x32xf32> to vector<8x32xf32>
    %cst_380 = arith.constant dense<0.000000e+00> : vector<6x32xf32>
    %901 = tpu.matmul %899, %900, %cst_380 {dimension_numbers = #tpu.dot_dimension_numbers<[1], [0], [0], [1], [0, 0, 1, 1], [], []>} : vector<6x8xf32>, vector<8x32xf32>, vector<6x32xf32> -> vector<6x32xf32>
    %902 = arith.addf %882, %901 : vector<6x32xf32>
    %903 = vector.extract_strided_slice %707 {offsets = [0, 0], sizes = [32, 64], strides = [1, 1]} : vector<64x64xf32> to vector<32x64xf32>
    %cst_381 = arith.constant dense<0.000000e+00> : vector<6x64xf32>
    %904 = tpu.matmul %691, %903, %cst_381 {dimension_numbers = #tpu.dot_dimension_numbers<[1], [0], [0], [1], [0, 0, 1, 1], [], []>} : vector<6x32xf32>, vector<32x64xf32>, vector<6x64xf32> -> vector<6x64xf32>
    %905 = vector.extract_strided_slice %707 {offsets = [32, 0], sizes = [32, 64], strides = [1, 1]} : vector<64x64xf32> to vector<32x64xf32>
    %cst_382 = arith.constant dense<0.000000e+00> : vector<6x64xf32>
    %906 = tpu.matmul %902, %905, %cst_382 {dimension_numbers = #tpu.dot_dimension_numbers<[1], [0], [0], [1], [0, 0, 1, 1], [], []>} : vector<6x32xf32>, vector<32x64xf32>, vector<6x64xf32> -> vector<6x64xf32>
    %907 = arith.addf %904, %906 : vector<6x64xf32>
    %908 = vector.broadcast %709 : vector<1x64xf32> to vector<6x64xf32>
    %909 = arith.addf %907, %908 : vector<6x64xf32>
    %cst_383 = arith.constant 0.000000e+00 : f32
    %910 = vector.broadcast %cst_383 : f32 to vector<6x64xf32>
    %911 = arith.maximumf %909, %910 : vector<6x64xf32>
    %cst_384 = arith.constant dense<0.000000e+00> : vector<6x32xf32>
    %912 = tpu.matmul %911, %711, %cst_384 {dimension_numbers = #tpu.dot_dimension_numbers<[1], [0], [0], [1], [0, 0, 1, 1], [], []>} : vector<6x64xf32>, vector<64x32xf32>, vector<6x32xf32> -> vector<6x32xf32>
    %913 = vector.broadcast %713 : vector<1x32xf32> to vector<6x32xf32>
    %914 = arith.addf %912, %913 : vector<6x32xf32>
    %915 = arith.addf %691, %914 : vector<6x32xf32>
    %c0_385 = arith.constant 0 : index
    %c0_386 = arith.constant 0 : index
    %916 = vector.load %arg14[%c0_385, %c0_386] : memref<32x32xf32, #tpu.memory_space<vmem>>, vector<32x32xf32>
    %cst_387 = arith.constant dense<0.000000e+00> : vector<8x32xf32>
    %917 = tpu.matmul %814, %916, %cst_387 {dimension_numbers = #tpu.dot_dimension_numbers<[1], [0], [0], [1], [0, 0, 1, 1], [], []>} : vector<8x32xf32>, vector<32x32xf32>, vector<8x32xf32> -> vector<8x32xf32>
    %c0_388 = arith.constant 0 : index
    %c0_389 = arith.constant 0 : index
    %918 = vector.load %arg15[%c0_388, %c0_389] : memref<1x32xf32, #tpu.memory_space<vmem>>, vector<1x32xf32>
    %919 = vector.broadcast %918 : vector<1x32xf32> to vector<8x32xf32>
    %920 = arith.addf %917, %919 : vector<8x32xf32>
    %c0_390 = arith.constant 0 : index
    %c0_391 = arith.constant 0 : index
    %921 = vector.load %arg14[%c0_390, %c0_391] : memref<32x32xf32, #tpu.memory_space<vmem>>, vector<32x32xf32>
    %cst_392 = arith.constant dense<0.000000e+00> : vector<6x32xf32>
    %922 = tpu.matmul %915, %921, %cst_392 {dimension_numbers = #tpu.dot_dimension_numbers<[1], [0], [0], [1], [0, 0, 1, 1], [], []>} : vector<6x32xf32>, vector<32x32xf32>, vector<6x32xf32> -> vector<6x32xf32>
    %c0_393 = arith.constant 0 : index
    %c0_394 = arith.constant 0 : index
    %923 = vector.load %arg15[%c0_393, %c0_394] : memref<1x32xf32, #tpu.memory_space<vmem>>, vector<1x32xf32>
    %924 = vector.broadcast %923 : vector<1x32xf32> to vector<6x32xf32>
    %925 = arith.addf %922, %924 : vector<6x32xf32>
    %cst_395 = arith.constant dense<0.000000e+00> : vector<8x6xf32>
    %926 = tpu.matmul %920, %925, %cst_395 {dimension_numbers = #tpu.dot_dimension_numbers<[1], [1], [0], [0], [0, 0, 1, 0], [], []>} : vector<8x32xf32>, vector<6x32xf32>, vector<8x6xf32> -> vector<8x6xf32>
    %cst_396 = arith.constant 0.176776692 : f32
    %927 = vector.broadcast %cst_396 : f32 to vector<8x6xf32>
    %928 = arith.mulf %926, %927 : vector<8x6xf32>
    %c0_397 = arith.constant 0 : index
    %c0_398 = arith.constant 0 : index
    %929 = memref.load %arg16[%c0_397, %c0_398] : memref<1x1xf32, #tpu.memory_space<smem>>
    %930 = vector.broadcast %929 : f32 to vector<9x7xf32>
    %c0_399 = arith.constant 0 : index
    %c0_400 = arith.constant 0 : index
    %c0_401 = arith.constant 0 : index
    %931 = vector.load %arg21[%c0_399, %c0_400, %c0_401] : memref<1x9x7xf32, #tpu.memory_space<vmem>>, vector<1x9x7xf32>
    %932 = vector.shape_cast %931 : vector<1x9x7xf32> to vector<9x7xf32>
    %933 = vector.shape_cast %930 : vector<9x7xf32> to vector<1x9x7xf32>
    tpu.vector_store %arg21[%c0_399, %c0_400, %c0_401], %933 {strides = array<i32>} : memref<1x9x7xf32, #tpu.memory_space<vmem>>, vector<1x9x7xf32>,
    %c0_402 = arith.constant 0 : index
    %c0_403 = arith.constant 0 : index
    %c0_404 = arith.constant 0 : index
    %934 = vector.load %arg21[%c0_402, %c0_403, %c0_404] : memref<1x9x7xf32, #tpu.memory_space<vmem>>, vector<1x8x6xf32>
    %935 = vector.shape_cast %934 : vector<1x8x6xf32> to vector<8x6xf32>
    %936 = vector.shape_cast %928 : vector<8x6xf32> to vector<1x8x6xf32>
    tpu.vector_store %arg21[%c0_402, %c0_403, %c0_404], %936 {strides = array<i32>} : memref<1x9x7xf32, #tpu.memory_space<vmem>>, vector<1x8x6xf32>,
    %c0_405 = arith.constant 0 : index
    %c0_406 = arith.constant 0 : index
    %c0_407 = arith.constant 0 : index
    %937 = vector.load %arg21[%c0_405, %c0_406, %c0_407] : memref<1x9x7xf32, #tpu.memory_space<vmem>>, vector<1x9x7xf32>
    %938 = vector.shape_cast %937 : vector<1x9x7xf32> to vector<9x7xf32>
    %939 = tpu.iota {dimensions = array<i32: 0>} : vector<9x1xi32>
    %c8_i32 = arith.constant 8 : i32
    %940 = vector.broadcast %c8_i32 : i32 to vector<9x1xi32>
    %941 = arith.cmpi slt, %939, %940 : vector<9x1xi32>
    %cst_408 = arith.constant -2.6390574 : f32
    %cst_409 = arith.constant -0.847297847 : f32
    %942 = vector.broadcast %cst_408 : f32 to vector<9x1xf32>
    %943 = vector.broadcast %cst_409 : f32 to vector<9x1xf32>
    %944 = arith.select %941, %942, %943 : vector<9x1xi1>, vector<9x1xf32>
    %945 = tpu.iota {dimensions = array<i32: 1>} : vector<1x7xi32>
    %c6_i32 = arith.constant 6 : i32
    %946 = vector.broadcast %c6_i32 : i32 to vector<1x7xi32>
    %947 = arith.cmpi slt, %945, %946 : vector<1x7xi32>
    %cst_410 = arith.constant -2.6390574 : f32
    %cst_411 = arith.constant -0.559615791 : f32
    %948 = vector.broadcast %cst_410 : f32 to vector<1x7xf32>
    %949 = vector.broadcast %cst_411 : f32 to vector<1x7xf32>
    %950 = arith.select %947, %948, %949 : vector<1x7xi1>, vector<1x7xf32>
    %cst_412 = arith.constant 0.000000e+00 : f32
    %951 = vector.broadcast %cst_412 : f32 to vector<1x7xf32>
    %952 = vector.broadcast %951 : vector<1x7xf32> to vector<9x7xf32>
    %953 = arith.addf %938, %952 : vector<9x7xf32>
    %cst_413 = arith.constant dense<0xFF800000> : vector<9xf32>
    %954 = vector.multi_reduction <maximumf>, %953, %cst_413 [1] : vector<9x7xf32> to vector<9xf32>
    %955 = vector.shape_cast %954 : vector<9xf32> to vector<9x1xf32>
    %956 = vector.broadcast %955 : vector<9x1xf32> to vector<9x7xf32>
    %957 = arith.subf %953, %956 : vector<9x7xf32>
    %958 = math.exp %957 : vector<9x7xf32>
    %cst_414 = arith.constant dense<0.000000e+00> : vector<9xf32>
    %959 = vector.multi_reduction <add>, %958, %cst_414 [1] : vector<9x7xf32> to vector<9xf32>
    %960 = vector.shape_cast %959 : vector<9xf32> to vector<9x1xf32>
    %961 = math.log %960 : vector<9x1xf32>
    %962 = arith.addf %955, %961 : vector<9x1xf32>
    %963 = arith.subf %944, %962 : vector<9x1xf32>
    %964 = vector.broadcast %963 : vector<9x1xf32> to vector<9x7xf32>
    %965 = arith.addf %938, %964 : vector<9x7xf32>
    %cst_415 = arith.constant dense<0xFF800000> : vector<7xf32>
    %966 = vector.multi_reduction <maximumf>, %965, %cst_415 [0] : vector<9x7xf32> to vector<7xf32>
    %967 = vector.shape_cast %966 : vector<7xf32> to vector<1x7xf32>
    %968 = vector.broadcast %967 : vector<1x7xf32> to vector<9x7xf32>
    %969 = arith.subf %965, %968 : vector<9x7xf32>
    %970 = math.exp %969 : vector<9x7xf32>
    %cst_416 = arith.constant dense<0.000000e+00> : vector<7xf32>
    %971 = vector.multi_reduction <add>, %970, %cst_416 [0] : vector<9x7xf32> to vector<7xf32>
    %972 = vector.shape_cast %971 : vector<7xf32> to vector<1x7xf32>
    %973 = math.log %972 : vector<1x7xf32>
    %974 = arith.addf %967, %973 : vector<1x7xf32>
    %975 = arith.subf %950, %974 : vector<1x7xf32>
    %976 = vector.broadcast %975 : vector<1x7xf32> to vector<9x7xf32>
    %977 = arith.addf %938, %976 : vector<9x7xf32>
    %cst_417 = arith.constant dense<0xFF800000> : vector<9xf32>
    %978 = vector.multi_reduction <maximumf>, %977, %cst_417 [1] : vector<9x7xf32> to vector<9xf32>
    %979 = vector.shape_cast %978 : vector<9xf32> to vector<9x1xf32>
    %980 = vector.broadcast %979 : vector<9x1xf32> to vector<9x7xf32>
    %981 = arith.subf %977, %980 : vector<9x7xf32>
    %982 = math.exp %981 : vector<9x7xf32>
    %cst_418 = arith.constant dense<0.000000e+00> : vector<9xf32>
    %983 = vector.multi_reduction <add>, %982, %cst_418 [1] : vector<9x7xf32> to vector<9xf32>
    %984 = vector.shape_cast %983 : vector<9xf32> to vector<9x1xf32>
    %985 = math.log %984 : vector<9x1xf32>
    %986 = arith.addf %979, %985 : vector<9x1xf32>
    %987 = arith.subf %944, %986 : vector<9x1xf32>
    %988 = vector.broadcast %987 : vector<9x1xf32> to vector<9x7xf32>
    %989 = arith.addf %938, %988 : vector<9x7xf32>
    %cst_419 = arith.constant dense<0xFF800000> : vector<7xf32>
    %990 = vector.multi_reduction <maximumf>, %989, %cst_419 [0] : vector<9x7xf32> to vector<7xf32>
    %991 = vector.shape_cast %990 : vector<7xf32> to vector<1x7xf32>
    %992 = vector.broadcast %991 : vector<1x7xf32> to vector<9x7xf32>
    %993 = arith.subf %989, %992 : vector<9x7xf32>
    %994 = math.exp %993 : vector<9x7xf32>
    %cst_420 = arith.constant dense<0.000000e+00> : vector<7xf32>
    %995 = vector.multi_reduction <add>, %994, %cst_420 [0] : vector<9x7xf32> to vector<7xf32>
    %996 = vector.shape_cast %995 : vector<7xf32> to vector<1x7xf32>
    %997 = math.log %996 : vector<1x7xf32>
    %998 = arith.addf %991, %997 : vector<1x7xf32>
    %999 = arith.subf %950, %998 : vector<1x7xf32>
    %1000 = vector.broadcast %999 : vector<1x7xf32> to vector<9x7xf32>
    %1001 = arith.addf %938, %1000 : vector<9x7xf32>
    %cst_421 = arith.constant dense<0xFF800000> : vector<9xf32>
    %1002 = vector.multi_reduction <maximumf>, %1001, %cst_421 [1] : vector<9x7xf32> to vector<9xf32>
    %1003 = vector.shape_cast %1002 : vector<9xf32> to vector<9x1xf32>
    %1004 = vector.broadcast %1003 : vector<9x1xf32> to vector<9x7xf32>
    %1005 = arith.subf %1001, %1004 : vector<9x7xf32>
    %1006 = math.exp %1005 : vector<9x7xf32>
    %cst_422 = arith.constant dense<0.000000e+00> : vector<9xf32>
    %1007 = vector.multi_reduction <add>, %1006, %cst_422 [1] : vector<9x7xf32> to vector<9xf32>
    %1008 = vector.shape_cast %1007 : vector<9xf32> to vector<9x1xf32>
    %1009 = math.log %1008 : vector<9x1xf32>
    %1010 = arith.addf %1003, %1009 : vector<9x1xf32>
    %1011 = arith.subf %944, %1010 : vector<9x1xf32>
    %1012 = vector.broadcast %1011 : vector<9x1xf32> to vector<9x7xf32>
    %1013 = arith.addf %938, %1012 : vector<9x7xf32>
    %cst_423 = arith.constant dense<0xFF800000> : vector<7xf32>
    %1014 = vector.multi_reduction <maximumf>, %1013, %cst_423 [0] : vector<9x7xf32> to vector<7xf32>
    %1015 = vector.shape_cast %1014 : vector<7xf32> to vector<1x7xf32>
    %1016 = vector.broadcast %1015 : vector<1x7xf32> to vector<9x7xf32>
    %1017 = arith.subf %1013, %1016 : vector<9x7xf32>
    %1018 = math.exp %1017 : vector<9x7xf32>
    %cst_424 = arith.constant dense<0.000000e+00> : vector<7xf32>
    %1019 = vector.multi_reduction <add>, %1018, %cst_424 [0] : vector<9x7xf32> to vector<7xf32>
    %1020 = vector.shape_cast %1019 : vector<7xf32> to vector<1x7xf32>
    %1021 = math.log %1020 : vector<1x7xf32>
    %1022 = arith.addf %1015, %1021 : vector<1x7xf32>
    %1023 = arith.subf %950, %1022 : vector<1x7xf32>
    %1024 = vector.broadcast %1023 : vector<1x7xf32> to vector<9x7xf32>
    %1025 = arith.addf %938, %1024 : vector<9x7xf32>
    %cst_425 = arith.constant dense<0xFF800000> : vector<9xf32>
    %1026 = vector.multi_reduction <maximumf>, %1025, %cst_425 [1] : vector<9x7xf32> to vector<9xf32>
    %1027 = vector.shape_cast %1026 : vector<9xf32> to vector<9x1xf32>
    %1028 = vector.broadcast %1027 : vector<9x1xf32> to vector<9x7xf32>
    %1029 = arith.subf %1025, %1028 : vector<9x7xf32>
    %1030 = math.exp %1029 : vector<9x7xf32>
    %cst_426 = arith.constant dense<0.000000e+00> : vector<9xf32>
    %1031 = vector.multi_reduction <add>, %1030, %cst_426 [1] : vector<9x7xf32> to vector<9xf32>
    %1032 = vector.shape_cast %1031 : vector<9xf32> to vector<9x1xf32>
    %1033 = math.log %1032 : vector<9x1xf32>
    %1034 = arith.addf %1027, %1033 : vector<9x1xf32>
    %1035 = arith.subf %944, %1034 : vector<9x1xf32>
    %1036 = vector.broadcast %1035 : vector<9x1xf32> to vector<9x7xf32>
    %1037 = arith.addf %938, %1036 : vector<9x7xf32>
    %cst_427 = arith.constant dense<0xFF800000> : vector<7xf32>
    %1038 = vector.multi_reduction <maximumf>, %1037, %cst_427 [0] : vector<9x7xf32> to vector<7xf32>
    %1039 = vector.shape_cast %1038 : vector<7xf32> to vector<1x7xf32>
    %1040 = vector.broadcast %1039 : vector<1x7xf32> to vector<9x7xf32>
    %1041 = arith.subf %1037, %1040 : vector<9x7xf32>
    %1042 = math.exp %1041 : vector<9x7xf32>
    %cst_428 = arith.constant dense<0.000000e+00> : vector<7xf32>
    %1043 = vector.multi_reduction <add>, %1042, %cst_428 [0] : vector<9x7xf32> to vector<7xf32>
    %1044 = vector.shape_cast %1043 : vector<7xf32> to vector<1x7xf32>
    %1045 = math.log %1044 : vector<1x7xf32>
    %1046 = arith.addf %1039, %1045 : vector<1x7xf32>
    %1047 = arith.subf %950, %1046 : vector<1x7xf32>
    %1048 = vector.broadcast %1047 : vector<1x7xf32> to vector<9x7xf32>
    %1049 = arith.addf %938, %1048 : vector<9x7xf32>
    %cst_429 = arith.constant dense<0xFF800000> : vector<9xf32>
    %1050 = vector.multi_reduction <maximumf>, %1049, %cst_429 [1] : vector<9x7xf32> to vector<9xf32>
    %1051 = vector.shape_cast %1050 : vector<9xf32> to vector<9x1xf32>
    %1052 = vector.broadcast %1051 : vector<9x1xf32> to vector<9x7xf32>
    %1053 = arith.subf %1049, %1052 : vector<9x7xf32>
    %1054 = math.exp %1053 : vector<9x7xf32>
    %cst_430 = arith.constant dense<0.000000e+00> : vector<9xf32>
    %1055 = vector.multi_reduction <add>, %1054, %cst_430 [1] : vector<9x7xf32> to vector<9xf32>
    %1056 = vector.shape_cast %1055 : vector<9xf32> to vector<9x1xf32>
    %1057 = math.log %1056 : vector<9x1xf32>
    %1058 = arith.addf %1051, %1057 : vector<9x1xf32>
    %1059 = arith.subf %944, %1058 : vector<9x1xf32>
    %1060 = vector.broadcast %1059 : vector<9x1xf32> to vector<9x7xf32>
    %1061 = arith.addf %938, %1060 : vector<9x7xf32>
    %cst_431 = arith.constant dense<0xFF800000> : vector<7xf32>
    %1062 = vector.multi_reduction <maximumf>, %1061, %cst_431 [0] : vector<9x7xf32> to vector<7xf32>
    %1063 = vector.shape_cast %1062 : vector<7xf32> to vector<1x7xf32>
    %1064 = vector.broadcast %1063 : vector<1x7xf32> to vector<9x7xf32>
    %1065 = arith.subf %1061, %1064 : vector<9x7xf32>
    %1066 = math.exp %1065 : vector<9x7xf32>
    %cst_432 = arith.constant dense<0.000000e+00> : vector<7xf32>
    %1067 = vector.multi_reduction <add>, %1066, %cst_432 [0] : vector<9x7xf32> to vector<7xf32>
    %1068 = vector.shape_cast %1067 : vector<7xf32> to vector<1x7xf32>
    %1069 = math.log %1068 : vector<1x7xf32>
    %1070 = arith.addf %1063, %1069 : vector<1x7xf32>
    %1071 = arith.subf %950, %1070 : vector<1x7xf32>
    %1072 = vector.broadcast %1071 : vector<1x7xf32> to vector<9x7xf32>
    %1073 = arith.addf %938, %1072 : vector<9x7xf32>
    %cst_433 = arith.constant dense<0xFF800000> : vector<9xf32>
    %1074 = vector.multi_reduction <maximumf>, %1073, %cst_433 [1] : vector<9x7xf32> to vector<9xf32>
    %1075 = vector.shape_cast %1074 : vector<9xf32> to vector<9x1xf32>
    %1076 = vector.broadcast %1075 : vector<9x1xf32> to vector<9x7xf32>
    %1077 = arith.subf %1073, %1076 : vector<9x7xf32>
    %1078 = math.exp %1077 : vector<9x7xf32>
    %cst_434 = arith.constant dense<0.000000e+00> : vector<9xf32>
    %1079 = vector.multi_reduction <add>, %1078, %cst_434 [1] : vector<9x7xf32> to vector<9xf32>
    %1080 = vector.shape_cast %1079 : vector<9xf32> to vector<9x1xf32>
    %1081 = math.log %1080 : vector<9x1xf32>
    %1082 = arith.addf %1075, %1081 : vector<9x1xf32>
    %1083 = arith.subf %944, %1082 : vector<9x1xf32>
    %1084 = vector.broadcast %1083 : vector<9x1xf32> to vector<9x7xf32>
    %1085 = arith.addf %938, %1084 : vector<9x7xf32>
    %cst_435 = arith.constant dense<0xFF800000> : vector<7xf32>
    %1086 = vector.multi_reduction <maximumf>, %1085, %cst_435 [0] : vector<9x7xf32> to vector<7xf32>
    %1087 = vector.shape_cast %1086 : vector<7xf32> to vector<1x7xf32>
    %1088 = vector.broadcast %1087 : vector<1x7xf32> to vector<9x7xf32>
    %1089 = arith.subf %1085, %1088 : vector<9x7xf32>
    %1090 = math.exp %1089 : vector<9x7xf32>
    %cst_436 = arith.constant dense<0.000000e+00> : vector<7xf32>
    %1091 = vector.multi_reduction <add>, %1090, %cst_436 [0] : vector<9x7xf32> to vector<7xf32>
    %1092 = vector.shape_cast %1091 : vector<7xf32> to vector<1x7xf32>
    %1093 = math.log %1092 : vector<1x7xf32>
    %1094 = arith.addf %1087, %1093 : vector<1x7xf32>
    %1095 = arith.subf %950, %1094 : vector<1x7xf32>
    %1096 = vector.broadcast %1095 : vector<1x7xf32> to vector<9x7xf32>
    %1097 = arith.addf %938, %1096 : vector<9x7xf32>
    %cst_437 = arith.constant dense<0xFF800000> : vector<9xf32>
    %1098 = vector.multi_reduction <maximumf>, %1097, %cst_437 [1] : vector<9x7xf32> to vector<9xf32>
    %1099 = vector.shape_cast %1098 : vector<9xf32> to vector<9x1xf32>
    %1100 = vector.broadcast %1099 : vector<9x1xf32> to vector<9x7xf32>
    %1101 = arith.subf %1097, %1100 : vector<9x7xf32>
    %1102 = math.exp %1101 : vector<9x7xf32>
    %cst_438 = arith.constant dense<0.000000e+00> : vector<9xf32>
    %1103 = vector.multi_reduction <add>, %1102, %cst_438 [1] : vector<9x7xf32> to vector<9xf32>
    %1104 = vector.shape_cast %1103 : vector<9xf32> to vector<9x1xf32>
    %1105 = math.log %1104 : vector<9x1xf32>
    %1106 = arith.addf %1099, %1105 : vector<9x1xf32>
    %1107 = arith.subf %944, %1106 : vector<9x1xf32>
    %1108 = vector.broadcast %1107 : vector<9x1xf32> to vector<9x7xf32>
    %1109 = arith.addf %938, %1108 : vector<9x7xf32>
    %cst_439 = arith.constant dense<0xFF800000> : vector<7xf32>
    %1110 = vector.multi_reduction <maximumf>, %1109, %cst_439 [0] : vector<9x7xf32> to vector<7xf32>
    %1111 = vector.shape_cast %1110 : vector<7xf32> to vector<1x7xf32>
    %1112 = vector.broadcast %1111 : vector<1x7xf32> to vector<9x7xf32>
    %1113 = arith.subf %1109, %1112 : vector<9x7xf32>
    %1114 = math.exp %1113 : vector<9x7xf32>
    %cst_440 = arith.constant dense<0.000000e+00> : vector<7xf32>
    %1115 = vector.multi_reduction <add>, %1114, %cst_440 [0] : vector<9x7xf32> to vector<7xf32>
    %1116 = vector.shape_cast %1115 : vector<7xf32> to vector<1x7xf32>
    %1117 = math.log %1116 : vector<1x7xf32>
    %1118 = arith.addf %1111, %1117 : vector<1x7xf32>
    %1119 = arith.subf %950, %1118 : vector<1x7xf32>
    %1120 = vector.broadcast %1119 : vector<1x7xf32> to vector<9x7xf32>
    %1121 = arith.addf %938, %1120 : vector<9x7xf32>
    %cst_441 = arith.constant dense<0xFF800000> : vector<9xf32>
    %1122 = vector.multi_reduction <maximumf>, %1121, %cst_441 [1] : vector<9x7xf32> to vector<9xf32>
    %1123 = vector.shape_cast %1122 : vector<9xf32> to vector<9x1xf32>
    %1124 = vector.broadcast %1123 : vector<9x1xf32> to vector<9x7xf32>
    %1125 = arith.subf %1121, %1124 : vector<9x7xf32>
    %1126 = math.exp %1125 : vector<9x7xf32>
    %cst_442 = arith.constant dense<0.000000e+00> : vector<9xf32>
    %1127 = vector.multi_reduction <add>, %1126, %cst_442 [1] : vector<9x7xf32> to vector<9xf32>
    %1128 = vector.shape_cast %1127 : vector<9xf32> to vector<9x1xf32>
    %1129 = math.log %1128 : vector<9x1xf32>
    %1130 = arith.addf %1123, %1129 : vector<9x1xf32>
    %1131 = arith.subf %944, %1130 : vector<9x1xf32>
    %1132 = vector.broadcast %1131 : vector<9x1xf32> to vector<9x7xf32>
    %1133 = arith.addf %938, %1132 : vector<9x7xf32>
    %cst_443 = arith.constant dense<0xFF800000> : vector<7xf32>
    %1134 = vector.multi_reduction <maximumf>, %1133, %cst_443 [0] : vector<9x7xf32> to vector<7xf32>
    %1135 = vector.shape_cast %1134 : vector<7xf32> to vector<1x7xf32>
    %1136 = vector.broadcast %1135 : vector<1x7xf32> to vector<9x7xf32>
    %1137 = arith.subf %1133, %1136 : vector<9x7xf32>
    %1138 = math.exp %1137 : vector<9x7xf32>
    %cst_444 = arith.constant dense<0.000000e+00> : vector<7xf32>
    %1139 = vector.multi_reduction <add>, %1138, %cst_444 [0] : vector<9x7xf32> to vector<7xf32>
    %1140 = vector.shape_cast %1139 : vector<7xf32> to vector<1x7xf32>
    %1141 = math.log %1140 : vector<1x7xf32>
    %1142 = arith.addf %1135, %1141 : vector<1x7xf32>
    %1143 = arith.subf %950, %1142 : vector<1x7xf32>
    %1144 = vector.broadcast %1143 : vector<1x7xf32> to vector<9x7xf32>
    %1145 = arith.addf %938, %1144 : vector<9x7xf32>
    %cst_445 = arith.constant dense<0xFF800000> : vector<9xf32>
    %1146 = vector.multi_reduction <maximumf>, %1145, %cst_445 [1] : vector<9x7xf32> to vector<9xf32>
    %1147 = vector.shape_cast %1146 : vector<9xf32> to vector<9x1xf32>
    %1148 = vector.broadcast %1147 : vector<9x1xf32> to vector<9x7xf32>
    %1149 = arith.subf %1145, %1148 : vector<9x7xf32>
    %1150 = math.exp %1149 : vector<9x7xf32>
    %cst_446 = arith.constant dense<0.000000e+00> : vector<9xf32>
    %1151 = vector.multi_reduction <add>, %1150, %cst_446 [1] : vector<9x7xf32> to vector<9xf32>
    %1152 = vector.shape_cast %1151 : vector<9xf32> to vector<9x1xf32>
    %1153 = math.log %1152 : vector<9x1xf32>
    %1154 = arith.addf %1147, %1153 : vector<9x1xf32>
    %1155 = arith.subf %944, %1154 : vector<9x1xf32>
    %1156 = vector.broadcast %1155 : vector<9x1xf32> to vector<9x7xf32>
    %1157 = arith.addf %938, %1156 : vector<9x7xf32>
    %cst_447 = arith.constant dense<0xFF800000> : vector<7xf32>
    %1158 = vector.multi_reduction <maximumf>, %1157, %cst_447 [0] : vector<9x7xf32> to vector<7xf32>
    %1159 = vector.shape_cast %1158 : vector<7xf32> to vector<1x7xf32>
    %1160 = vector.broadcast %1159 : vector<1x7xf32> to vector<9x7xf32>
    %1161 = arith.subf %1157, %1160 : vector<9x7xf32>
    %1162 = math.exp %1161 : vector<9x7xf32>
    %cst_448 = arith.constant dense<0.000000e+00> : vector<7xf32>
    %1163 = vector.multi_reduction <add>, %1162, %cst_448 [0] : vector<9x7xf32> to vector<7xf32>
    %1164 = vector.shape_cast %1163 : vector<7xf32> to vector<1x7xf32>
    %1165 = math.log %1164 : vector<1x7xf32>
    %1166 = arith.addf %1159, %1165 : vector<1x7xf32>
    %1167 = arith.subf %950, %1166 : vector<1x7xf32>
    %1168 = vector.broadcast %1167 : vector<1x7xf32> to vector<9x7xf32>
    %1169 = arith.addf %938, %1168 : vector<9x7xf32>
    %cst_449 = arith.constant dense<0xFF800000> : vector<9xf32>
    %1170 = vector.multi_reduction <maximumf>, %1169, %cst_449 [1] : vector<9x7xf32> to vector<9xf32>
    %1171 = vector.shape_cast %1170 : vector<9xf32> to vector<9x1xf32>
    %1172 = vector.broadcast %1171 : vector<9x1xf32> to vector<9x7xf32>
    %1173 = arith.subf %1169, %1172 : vector<9x7xf32>
    %1174 = math.exp %1173 : vector<9x7xf32>
    %cst_450 = arith.constant dense<0.000000e+00> : vector<9xf32>
    %1175 = vector.multi_reduction <add>, %1174, %cst_450 [1] : vector<9x7xf32> to vector<9xf32>
    %1176 = vector.shape_cast %1175 : vector<9xf32> to vector<9x1xf32>
    %1177 = math.log %1176 : vector<9x1xf32>
    %1178 = arith.addf %1171, %1177 : vector<9x1xf32>
    %1179 = arith.subf %944, %1178 : vector<9x1xf32>
    %1180 = vector.broadcast %1179 : vector<9x1xf32> to vector<9x7xf32>
    %1181 = arith.addf %938, %1180 : vector<9x7xf32>
    %cst_451 = arith.constant dense<0xFF800000> : vector<7xf32>
    %1182 = vector.multi_reduction <maximumf>, %1181, %cst_451 [0] : vector<9x7xf32> to vector<7xf32>
    %1183 = vector.shape_cast %1182 : vector<7xf32> to vector<1x7xf32>
    %1184 = vector.broadcast %1183 : vector<1x7xf32> to vector<9x7xf32>
    %1185 = arith.subf %1181, %1184 : vector<9x7xf32>
    %1186 = math.exp %1185 : vector<9x7xf32>
    %cst_452 = arith.constant dense<0.000000e+00> : vector<7xf32>
    %1187 = vector.multi_reduction <add>, %1186, %cst_452 [0] : vector<9x7xf32> to vector<7xf32>
    %1188 = vector.shape_cast %1187 : vector<7xf32> to vector<1x7xf32>
    %1189 = math.log %1188 : vector<1x7xf32>
    %1190 = arith.addf %1183, %1189 : vector<1x7xf32>
    %1191 = arith.subf %950, %1190 : vector<1x7xf32>
    %1192 = vector.broadcast %1179 : vector<9x1xf32> to vector<9x7xf32>
    %1193 = arith.addf %938, %1192 : vector<9x7xf32>
    %1194 = vector.broadcast %1191 : vector<1x7xf32> to vector<9x7xf32>
    %1195 = arith.addf %1193, %1194 : vector<9x7xf32>
    %cst_453 = arith.constant -2.6390574 : f32
    %1196 = vector.broadcast %cst_453 : f32 to vector<9x7xf32>
    %1197 = arith.subf %1195, %1196 : vector<9x7xf32>
    %c0_454 = arith.constant 0 : index
    %c0_455 = arith.constant 0 : index
    %c0_456 = arith.constant 0 : index
    %1198 = vector.load %arg21[%c0_454, %c0_455, %c0_456] : memref<1x9x7xf32, #tpu.memory_space<vmem>>, vector<1x9x7xf32>
    %1199 = vector.shape_cast %1198 : vector<1x9x7xf32> to vector<9x7xf32>
    %1200 = vector.shape_cast %1197 : vector<9x7xf32> to vector<1x9x7xf32>
    tpu.vector_store %arg21[%c0_454, %c0_455, %c0_456], %1200 {strides = array<i32>} : memref<1x9x7xf32, #tpu.memory_space<vmem>>, vector<1x9x7xf32>,
    %c0_457 = arith.constant 0 : index
    %c0_458 = arith.constant 0 : index
    %1201 = vector.load %arg17[%c0_457, %c0_458] : memref<32x16xf32, #tpu.memory_space<vmem>>, vector<32x16xf32>
    %cst_459 = arith.constant dense<0.000000e+00> : vector<6x16xf32>
    %1202 = tpu.matmul %19, %1201, %cst_459 {dimension_numbers = #tpu.dot_dimension_numbers<[1], [0], [0], [1], [0, 0, 1, 1], [], []>} : vector<6x32xf32>, vector<32x16xf32>, vector<6x16xf32> -> vector<6x16xf32>
    %c0_460 = arith.constant 0 : index
    %c0_461 = arith.constant 0 : index
    %1203 = vector.load %arg18[%c0_460, %c0_461] : memref<1x16xf32, #tpu.memory_space<vmem>>, vector<1x16xf32>
    %1204 = vector.broadcast %1203 : vector<1x16xf32> to vector<6x16xf32>
    %1205 = arith.addf %1202, %1204 : vector<6x16xf32>
    %cst_462 = arith.constant 0.000000e+00 : f32
    %1206 = vector.broadcast %cst_462 : f32 to vector<6x16xf32>
    %1207 = arith.maximumf %1205, %1206 : vector<6x16xf32>
    %c0_463 = arith.constant 0 : index
    %c0_464 = arith.constant 0 : index
    %1208 = vector.load %arg19[%c0_463, %c0_464] : memref<16x2xf32, #tpu.memory_space<vmem>>, vector<16x2xf32>
    %cst_465 = arith.constant dense<0.000000e+00> : vector<6x2xf32>
    %1209 = tpu.matmul %1207, %1208, %cst_465 {dimension_numbers = #tpu.dot_dimension_numbers<[1], [0], [0], [1], [0, 0, 1, 1], [], []>} : vector<6x16xf32>, vector<16x2xf32>, vector<6x2xf32> -> vector<6x2xf32>
    %c0_466 = arith.constant 0 : index
    %c0_467 = arith.constant 0 : index
    %1210 = vector.load %arg20[%c0_466, %c0_467] : memref<1x2xf32, #tpu.memory_space<vmem>>, vector<1x2xf32>
    %1211 = vector.broadcast %1210 : vector<1x2xf32> to vector<6x2xf32>
    %1212 = arith.addf %1209, %1211 : vector<6x2xf32>
    %c0_468 = arith.constant 0 : index
    %c0_469 = arith.constant 0 : index
    %c0_470 = arith.constant 0 : index
    %1213 = vector.load %arg22[%c0_468, %c0_469, %c0_470] : memref<1x6x2xf32, #tpu.memory_space<vmem>>, vector<1x6x2xf32>
    %1214 = vector.shape_cast %1213 : vector<1x6x2xf32> to vector<6x2xf32>
    %1215 = vector.shape_cast %1212 : vector<6x2xf32> to vector<1x6x2xf32>
    tpu.vector_store %arg22[%c0_468, %c0_469, %c0_470], %1215 {strides = array<i32>} : memref<1x6x2xf32, #tpu.memory_space<vmem>>, vector<1x6x2xf32>,
    return
  }
  func.func @transform_0(%arg0: i32) -> (i32, i32, i32) {
    %c0_i32 = arith.constant 0 : i32
    %c0_i32_0 = arith.constant 0 : i32
    %c0_i32_1 = arith.constant 0 : i32
    return %arg0, %c0_i32, %c0_i32_0 : i32, i32, i32
  }
  func.func @transform_1(%arg0: i32) -> (i32, i32, i32) {
    %c0_i32 = arith.constant 0 : i32
    %c0_i32_0 = arith.constant 0 : i32
    %c0_i32_1 = arith.constant 0 : i32
    return %arg0, %c0_i32, %c0_i32_0 : i32, i32, i32
  }
  func.func @transform_2(%arg0: i32) -> (i32, i32, i32) {
    %c0_i32 = arith.constant 0 : i32
    %c0_i32_0 = arith.constant 0 : i32
    %c0_i32_1 = arith.constant 0 : i32
    %c0_i32_2 = arith.constant 0 : i32
    return %c0_i32, %c0_i32_0, %c0_i32_1 : i32, i32, i32
  }
  func.func @transform_3(%arg0: i32) -> (i32, i32, i32) {
    %c0_i32 = arith.constant 0 : i32
    %c0_i32_0 = arith.constant 0 : i32
    %c0_i32_1 = arith.constant 0 : i32
    %c0_i32_2 = arith.constant 0 : i32
    return %c0_i32, %c0_i32_0, %c0_i32_1 : i32, i32, i32
  }
  func.func @transform_4(%arg0: i32) -> (i32, i32, i32) {
    %c0_i32 = arith.constant 0 : i32
    %c0_i32_0 = arith.constant 0 : i32
    %c0_i32_1 = arith.constant 0 : i32
    %c0_i32_2 = arith.constant 0 : i32
    return %c0_i32, %c0_i32_0, %c0_i32_1 : i32, i32, i32
  }
  func.func @transform_5(%arg0: i32) -> (i32, i32, i32) {
    %c0_i32 = arith.constant 0 : i32
    %c0_i32_0 = arith.constant 0 : i32
    %c0_i32_1 = arith.constant 0 : i32
    %c0_i32_2 = arith.constant 0 : i32
    return %c0_i32, %c0_i32_0, %c0_i32_1 : i32, i32, i32
  }
  func.func @transform_6(%arg0: i32) -> (i32, i32, i32) {
    %c0_i32 = arith.constant 0 : i32
    %c0_i32_0 = arith.constant 0 : i32
    %c0_i32_1 = arith.constant 0 : i32
    %c0_i32_2 = arith.constant 0 : i32
    return %c0_i32, %c0_i32_0, %c0_i32_1 : i32, i32, i32
  }
  func.func @transform_7(%arg0: i32) -> (i32, i32, i32) {
    %c0_i32 = arith.constant 0 : i32
    %c0_i32_0 = arith.constant 0 : i32
    %c0_i32_1 = arith.constant 0 : i32
    %c0_i32_2 = arith.constant 0 : i32
    return %c0_i32, %c0_i32_0, %c0_i32_1 : i32, i32, i32
  }
  func.func @transform_8(%arg0: i32) -> (i32, i32, i32) {
    %c0_i32 = arith.constant 0 : i32
    %c0_i32_0 = arith.constant 0 : i32
    %c0_i32_1 = arith.constant 0 : i32
    %c0_i32_2 = arith.constant 0 : i32
    return %c0_i32, %c0_i32_0, %c0_i32_1 : i32, i32, i32
  }
  func.func @transform_9(%arg0: i32) -> (i32, i32, i32) {
    %c0_i32 = arith.constant 0 : i32
    %c0_i32_0 = arith.constant 0 : i32
    %c0_i32_1 = arith.constant 0 : i32
    %c0_i32_2 = arith.constant 0 : i32
    return %c0_i32, %c0_i32_0, %c0_i32_1 : i32, i32, i32
  }
  func.func @transform_10(%arg0: i32) -> (i32, i32, i32) {
    %c0_i32 = arith.constant 0 : i32
    %c0_i32_0 = arith.constant 0 : i32
    %c0_i32_1 = arith.constant 0 : i32
    %c0_i32_2 = arith.constant 0 : i32
    return %c0_i32, %c0_i32_0, %c0_i32_1 : i32, i32, i32
  }
  func.func @transform_11(%arg0: i32) -> (i32, i32, i32) {
    %c0_i32 = arith.constant 0 : i32
    %c0_i32_0 = arith.constant 0 : i32
    %c0_i32_1 = arith.constant 0 : i32
    %c0_i32_2 = arith.constant 0 : i32
    return %c0_i32, %c0_i32_0, %c0_i32_1 : i32, i32, i32
  }
  func.func @transform_12(%arg0: i32) -> (i32, i32, i32) {
    %c0_i32 = arith.constant 0 : i32
    %c0_i32_0 = arith.constant 0 : i32
    %c0_i32_1 = arith.constant 0 : i32
    %c0_i32_2 = arith.constant 0 : i32
    return %c0_i32, %c0_i32_0, %c0_i32_1 : i32, i32, i32
  }
  func.func @transform_13(%arg0: i32) -> (i32, i32) {
    %c0_i32 = arith.constant 0 : i32
    %c0_i32_0 = arith.constant 0 : i32
    %c0_i32_1 = arith.constant 0 : i32
    return %c0_i32, %c0_i32_0 : i32, i32
  }
  func.func @transform_14(%arg0: i32) -> (i32, i32) {
    %c0_i32 = arith.constant 0 : i32
    %c0_i32_0 = arith.constant 0 : i32
    %c0_i32_1 = arith.constant 0 : i32
    return %c0_i32, %c0_i32_0 : i32, i32
  }
  func.func @transform_15(%arg0: i32) -> (i32, i32) {
    %c0_i32 = arith.constant 0 : i32
    %c0_i32_0 = arith.constant 0 : i32
    %c0_i32_1 = arith.constant 0 : i32
    return %c0_i32, %c0_i32_0 : i32, i32
  }
  func.func @transform_16(%arg0: i32) -> (i32, i32) {
    %c0_i32 = arith.constant 0 : i32
    %c0_i32_0 = arith.constant 0 : i32
    %c0_i32_1 = arith.constant 0 : i32
    return %c0_i32, %c0_i32_0 : i32, i32
  }
  func.func @transform_17(%arg0: i32) -> (i32, i32) {
    %c0_i32 = arith.constant 0 : i32
    %c0_i32_0 = arith.constant 0 : i32
    %c0_i32_1 = arith.constant 0 : i32
    return %c0_i32, %c0_i32_0 : i32, i32
  }
  func.func @transform_18(%arg0: i32) -> (i32, i32) {
    %c0_i32 = arith.constant 0 : i32
    %c0_i32_0 = arith.constant 0 : i32
    %c0_i32_1 = arith.constant 0 : i32
    return %c0_i32, %c0_i32_0 : i32, i32
  }
  func.func @transform_19(%arg0: i32) -> (i32, i32) {
    %c0_i32 = arith.constant 0 : i32
    %c0_i32_0 = arith.constant 0 : i32
    %c0_i32_1 = arith.constant 0 : i32
    return %c0_i32, %c0_i32_0 : i32, i32
  }
  func.func @transform_20(%arg0: i32) -> (i32, i32, i32) {
    %c0_i32 = arith.constant 0 : i32
    %c0_i32_0 = arith.constant 0 : i32
    %c0_i32_1 = arith.constant 0 : i32
    return %arg0, %c0_i32, %c0_i32_0 : i32, i32, i32
  }
  func.func @transform_21(%arg0: i32) -> (i32, i32, i32) {
    %c0_i32 = arith.constant 0 : i32
    %c0_i32_0 = arith.constant 0 : i32
    %c0_i32_1 = arith.constant 0 : i32
    return %arg0, %c0_i32, %c0_i32_0 : i32, i32, i32
  }
}

</mosaic_0001>

<bundles_post_ra>
// kernel: superglue_match_forward.1
= control target key start
LH: loop header
LB: loop body
LE: loop exit
PB: predicated region body
PF: predicated region fallthrough
CT: control target
= control target key end

     0   :  { %s18543_s0 = inlined_call_operand.vmem [shape: f32[2,8,32], index: 0, kind: input, shape index: {}]   ;;  %s18544_s1 = inlined_call_operand.vmem [shape: f32[2,6,32], index: 1, kind: input, shape index: {}]   ;;  %s18545_s2 = inlined_call_operand.hbm [shape: f32[4,32,32], index: 2, kind: input, shape index: {}]   ;;  %s18546_s3 = inlined_call_operand.hbm [shape: f32[4,1,32], index: 3, kind: input, shape index: {}]   ;;  %s18547_s4 = inlined_call_operand.hbm [shape: f32[4,32,32], index: 4, kind: input, shape index: {}]   ;;  %s18548_s5 = inlined_call_operand.hbm [shape: f32[4,1,32], index: 5, kind: input, shape index: {}]   ;;  %s18549_s6 = inlined_call_operand.hbm [shape: f32[4,32,32], index: 6, kind: input, shape index: {}]   ;;  %s18550_s7 = inlined_call_operand.hbm [shape: f32[4,1,32], index: 7, kind: input, shape index: {}]   ;;  %s18551_s8 = inlined_call_operand.hbm [shape: f32[4,32,32], index: 8, kind: input, shape index: {}]   ;;  %s18552_s9 = inlined_call_operand.hbm [shape: f32[4,64,64], index: 9, kind: input, shape index: {}]   ;;  %s18553_s10 = inlined_call_operand.hbm [shape: f32[4,1,64], index: 10, kind: input, shape index: {}]   ;;  %s18554_s11 = inlined_call_operand.hbm [shape: f32[4,64,32], index: 11, kind: input, shape index: {}]   ;;  %s18555_s12 = inlined_call_operand.vmem [shape: f32[4,1,32], index: 12, kind: input, shape index: {}]   ;;  %s18556_s13 = inlined_call_operand.hbm [shape: f32[32,32], index: 13, kind: input, shape index: {}]   ;;  %s18557_s14 = inlined_call_operand.hbm [shape: f32[1,32], index: 14, kind: input, shape index: {}]   ;;  %s18558_s15 = inlined_call_operand.<no memory space> [shape: f32[1,1], index: 15, kind: input, shape index: {}]   ;;  %s18559_s16 = inlined_call_operand.vmem [shape: f32[32,16], index: 16, kind: input, shape index: {}]   ;;  %s18560_s17 = inlined_call_operand.hbm [shape: f32[1,16], index: 17, kind: input, shape index: {}]   ;;  %s18561_s18 = inlined_call_operand.vmem [shape: f32[16,2], index: 18, kind: input, shape index: {}]   ;;  %s18562_s19 = inlined_call_operand.vmem [shape: f32[1,2], index: 19, kind: input, shape index: {}]   ;;  %s18563_s20 = inlined_call_operand.vmem [shape: f32[2,9,7], index: 20, kind: output, shape index: {0}]   ;;  %s18564_s21 = inlined_call_operand.vmem [shape: f32[2,6,2], index: 21, kind: output, shape index: {1}]  }
   0x1   :  { %18570 = sst [smem:[#allocation30_spill]] %s18543_s0 }
   0x2   :  { %18571 = sst [smem:[#allocation31_spill]] %s18544_s1 }
   0x3   :  { %18572 = sst [smem:[#allocation32_spill]] %s18545_s2 }
   0x4   :  { %18573 = sst [smem:[#allocation33_spill]] %s18546_s3 }
   0x5   :  { %18574 = sst [smem:[#allocation34_spill]] %s18547_s4 }
   0x6   :  { %18575 = sst [smem:[#allocation35_spill]] %s18548_s5 }
   0x7   :  { %27 = sst [smem:[#allocation2]] %s18558_s15 }
   0x8   :  { %28 = vsyncpa [#allocation4], 0 }
   0x9   :  { %29 = vsyncpa [#allocation6], 0 }
   0xa   :  { %30 = vsyncpa [#allocation9], 0 }
   0xb   :  { %31 = vsyncpa [#allocation12], 0 }
   0xc   :  { %32 = vsyncpa [#allocation15], 0 }
   0xd   :  { %33 = vsyncpa [#allocation18], 0 }
   0xe   :  { %34 = vsyncpa [#allocation21], 0  ;;  %s16349_s26 = smov 0  }
   0xf LB: > { %s16213_s27 = smov [#allocation5]   ;;  %s16355_s15 = sadd.s32 4294967295, %s16211_s26   ;;  %s16211_s26 = sphi %s16349_s26, %s40_s26  }
  0x10   : > { %s552_s3 = sshll.u32 %s16213_s27, 4  ;;  %p13548_p0 = scmp.ge.s32.totalorder %s16211_s26, 1  ;;  %s553_s3 = int_to_ptr.vmem [resolvable:$true] %s552_s3 }
  0x11   : > { %p527_p1 = scmp.lt.s32.totalorder %s16211_s26, 3  ;;  %p18567_p2 = scmp.eq.s32.totalorder %s16355_s15, 0 }
  0x12   : > { %s16214_s29 = smov [#allocation8]   ;;  %s16215_s30 = smov [#allocation11]  }
  0x13   : > { %p16360_p3 = pnand %p13548_p0, %p527_p1  ;;  %s578_s0 = sshll.u32 %s16214_s29, 4  ;;  %s16366_s0 = int_to_ptr.vmem [resolvable:$true] %s578_s0 }
  0x14   : > { %s604_s5 = sshll.u32 %s16215_s30, 4  ;;  %s15850_s23 = scalar_lea.vmem %s553_s3, 64  ;;  %s16374_s5 = int_to_ptr.vmem [resolvable:$true] %s604_s5 }
  0x15   : > { %s18576_s28 = scalar_select %p16360_p3, 1, 0 }
  0x16   : > { %p15464_p4 = pneg %p16360_p3  ;;  %p15851_p7 = scmp.ne.s32.totalorder %s553_s3, %s15850_s23 }
  0x17   : > { %p15858_p10 = scmp.lt.s32.totalorder %s553_s3, %s553_s3  ;;  %p15859_p11 = scmp.lt.s32.totalorder %s15850_s23, %s15850_s23 }
  0x18   : > { %p16370_p5 = pnand %p18567_p2, %p15464_p4 }
  0x19   : > { %p15860_p12 = por %p15859_p11, %p15858_p10 }
  0x1a   : > { %p16378_p6 = pneg %p16370_p5 }
  0x1c   : > { %p15853_p8 = pnand %p15851_p7, %p16378_p6 }
  0x1e   : > { %p15854_p9 = pneg %p15853_p8 }
  0x20   : > { %p15861_p13 = pnand %p15860_p12, %p15854_p9 }
  0x22   : > { %15864 = shalt.err (!%p15861_p13)
}
  0x23   : > { %s18565_s1 = smov 16   ;;  %s18566_s24 = smov 1  }
  0x24   : > { %s18579_s27 = sld [smem:[#allocation33_spill]]  ;;  %s15876_s29 = scalar_lea.vmem %s16366_s0, 64 }
  0x25   : > { %p15877_p0 = scmp.ne.s32.totalorder %s16366_s0, %s15876_s29  ;;  %p15884_p7 = scmp.lt.s32.totalorder %s16366_s0, %s16366_s0 }
  0x26   : > { %p15885_p8 = scmp.lt.s32.totalorder %s15876_s29, %s15876_s29 }
  0x27   : > { %p15879_p1 = pnand %p15877_p0, %p16378_p6 }
  0x28   : > { %p15886_p9 = por %p15885_p8, %p15884_p7 }
  0x29   : > { %p15880_p4 = pneg %p15879_p1 }
  0x2a   : > { %15470 = dma.hbm_to_vmem [thread:$0]  (!%p16370_p5), %s18579_s27, 64, %s553_s3, [#allocation6], %s18565_s1, %s18565_s1, %s18566_s24  }
  0x2b   : > { %p15887_p10 = pnand %p15886_p9, %p15880_p4 }
  0x2d   : > { %15890 = shalt.err (!%p15887_p10)
}
  0x2e   : > { %s18580_s3 = sld [smem:[#allocation35_spill]]  ;;  %s15902_s2 = scalar_lea.vmem %s16374_s5, 64 }
  0x2f   : > { %p15903_p11 = scmp.ne.s32.totalorder %s16374_s5, %s15902_s2  ;;  %p15910_p0 = scmp.lt.s32.totalorder %s16374_s5, %s16374_s5 }
  0x30   : > { %p15911_p1 = scmp.lt.s32.totalorder %s15902_s2, %s15902_s2 }
  0x31   : > { %p15905_p12 = pnand %p15903_p11, %p16378_p6 }
  0x32   : > { %p15912_p4 = por %p15911_p1, %p15910_p0 }
  0x33   : > { %p15906_p13 = pneg %p15905_p12 }
  0x34   : > { %15476 = dma.hbm_to_vmem [thread:$0]  (!%p16370_p5), %s18580_s3, 64, %s16366_s0, [#allocation9], %s18565_s1, %s18565_s1, %s18566_s24  }
  0x35   : > { %p15913_p7 = pnand %p15912_p4, %p15906_p13 }
  0x37   : > { %15916 = shalt.err (!%p15913_p7)
}
  0x38   : > { %15482 = dma.hbm_to_vmem [thread:$0]  (!%p16370_p5), %s18550_s7, 64, %s16374_s5, [#allocation12], %s18565_s1, %s18565_s1, %s18566_s24  }
  0x39   : > { %s16218_s0 = smov [#allocation14]   ;;  %s16219_s30 = smov [#allocation17]  }
  0x3a   : > { %s630_s29 = sshll.u32 %s16218_s0, 4  ;;  %s656_s23 = sshll.u32 %s16219_s30, 4  ;;  %s631_s29 = int_to_ptr.vmem [resolvable:$true] %s630_s29  ;;  %s657_s23 = int_to_ptr.vmem [resolvable:$true] %s656_s23 }
  0x3b   : > { %s15928_s3 = scalar_lea.vmem %s631_s29, 4096  ;;  %p15936_p11 = scmp.lt.s32.totalorder %s631_s29, %s631_s29 }
  0x3c   : > { %p15929_p8 = scmp.ne.s32.totalorder %s631_s29, %s15928_s3  ;;  %p15937_p12 = scmp.lt.s32.totalorder %s15928_s3, %s15928_s3 }
  0x3e   : > { %p15931_p9 = pnand %p15929_p8, %p16378_p6  ;;  %p15938_p13 = por %p15937_p12, %p15936_p11 }
  0x40   : > { %p15932_p10 = pneg %p15931_p9 }
  0x42   : > { %p15939_p0 = pnand %p15938_p13, %p15932_p10 }
  0x44   : > { %15942 = shalt.err (!%p15939_p0)
}
  0x45   : > { %s18569_s2 = smov 128   ;;  %s16221_s5 = smov 8  }
  0x46   : > { %15488 = dma.hbm_to_vmem [thread:$0]  (!%p16370_p5), %s18552_s9, 4096, %s631_s29, [#allocation15], %s18569_s2, %s18569_s2, %s16221_s5  }
  0x47   : > { %s15954_s0 = scalar_lea.vmem %s657_s23, 4096  ;;  %p15962_p8 = scmp.lt.s32.totalorder %s657_s23, %s657_s23 }
  0x48   : > { %p15955_p1 = scmp.ne.s32.totalorder %s657_s23, %s15954_s0  ;;  %p15963_p9 = scmp.lt.s32.totalorder %s15954_s0, %s15954_s0 }
  0x4a   : > { %p15957_p4 = pnand %p15955_p1, %p16378_p6  ;;  %p15964_p10 = por %p15963_p9, %p15962_p8 }
  0x4c   : > { %p15958_p7 = pneg %p15957_p4 }
  0x4e   : > { %p15965_p11 = pnand %p15964_p10, %p15958_p7 }
  0x50   : > { %15968 = shalt.err (!%p15965_p11)
}
  0x51   : > { %15494 = dma.hbm_to_vmem [thread:$0]  (!%p16370_p5), %s18554_s11, 4096, %s657_s23, [#allocation18], %s18569_s2, %s18569_s2, %s16221_s5  }
  0x52   : > { %s16222_s29 = smov [#allocation20]   ;;  %s16223_s27 = smov [#allocation3]  }
  0x53   : > { %s686_s25 = sshll.u32 %s16222_s29, 4  ;;  %s539_s1 = sshll.u32 %s16223_s27, 4  ;;  %s687_s25 = int_to_ptr.vmem [resolvable:$true] %s686_s25  ;;  %s540_s1 = int_to_ptr.vmem [resolvable:$true] %s539_s1 }
  0x54   : > { %s15980_s0 = scalar_lea.vmem %s687_s25, 16  ;;  %s15987_s24 = scalar_lea.vmem %s687_s25, 32 }
  0x55   : > { %p15981_p12 = scmp.ne.s32.totalorder %s687_s25, %s15980_s0  ;;  %p15988_p1 = scmp.lt.s32.totalorder %s687_s25, %s687_s25 }
  0x56   : > { %p15989_p4 = scmp.lt.s32.totalorder %s15987_s24, %s15980_s0 }
  0x57   : > { %p15983_p13 = pnand %p15981_p12, %p16378_p6 }
  0x58   : > { %p15990_p7 = por %p15989_p4, %p15988_p1 }
  0x59   : > { %p15984_p0 = pneg %p15983_p13 }
  0x5b   : > { %p15991_p8 = pnand %p15990_p7, %p15984_p0 }
  0x5d   : > { %15994 = shalt.err (!%p15991_p8)
}
  0x5e   : > { %15500 = dma.hbm_to_vmem [thread:$0]  (!%p16370_p5), %s18557_s14, 16, %s687_s25, [#allocation21]  }
  0x5f   : > { %s16006_s3 = scalar_lea.vmem %s540_s1, 2048  ;;  %p16014_p12 = scmp.lt.s32.totalorder %s540_s1, %s540_s1 }
  0x60   : > { %p16007_p9 = scmp.ne.s32.totalorder %s540_s1, %s16006_s3  ;;  %p16015_p13 = scmp.lt.s32.totalorder %s16006_s3, %s16006_s3 }
  0x62   : > { %p16009_p10 = pnand %p16007_p9, %p16378_p6  ;;  %p16016_p2 = por %p16015_p13, %p16014_p12 }
  0x64   : > { %p16010_p11 = pneg %p16009_p10 }
  0x66   : > { %p16017_p3 = pnand %p16016_p2, %p16010_p11 }
  0x68   : > { %16020 = shalt.err (!%p16017_p3)
}
  0x69   : > { %s18581_s27 = sld [smem:[#allocation32_spill]]  ;;  %s16224_s25 = smov [#allocation7]  }
  0x6a   : > { %s565_s0 = sshll.u32 %s16224_s25, 4  ;;  %s16225_s23 = smov [#allocation10]   ;;  %s566_s0 = int_to_ptr.vmem [resolvable:$true] %s565_s0 }
  0x6b   : > { %s591_s30 = sshll.u32 %s16225_s23, 4  ;;  %s16032_s3 = scalar_lea.vmem %s566_s0, 2048  ;;  %s592_s30 = int_to_ptr.vmem [resolvable:$true] %s591_s30 }
  0x6c   : > { %p16033_p0 = scmp.ne.s32.totalorder %s566_s0, %s16032_s3  ;;  %p16040_p1 = scmp.lt.s32.totalorder %s566_s0, %s566_s0 }
  0x6d   : > { %p16041_p4 = scmp.lt.s32.totalorder %s16032_s3, %s16032_s3 }
  0x6e   : > { %p16035_p2 = pnand %p16033_p0, %p16378_p6 }
  0x6f   : > { %15467 = dma.hbm_to_vmem [thread:$0]  (!%p16370_p5), %s18581_s27, 2048, %s540_s1, [#allocation4], %s18569_s2, %s18569_s2, %s16221_s5  }
  0x70   : > { %p16036_p3 = pneg %p16035_p2  ;;  %p16042_p7 = por %p16041_p4, %p16040_p1 }
  0x72   : > { %p16043_p8 = pnand %p16042_p7, %p16036_p3 }
  0x74   : > { %16046 = shalt.err (!%p16043_p8)
}
  0x75   : > { %s18582_s29 = sld [smem:[#allocation34_spill]]  ;;  %s16058_s27 = scalar_lea.vmem %s592_s30, 2048 }
  0x76   : > { %p16059_p9 = scmp.ne.s32.totalorder %s592_s30, %s16058_s27  ;;  %p16066_p12 = scmp.lt.s32.totalorder %s592_s30, %s592_s30 }
  0x77   : > { %p16067_p13 = scmp.lt.s32.totalorder %s16058_s27, %s16058_s27 }
  0x78   : > { %p16061_p10 = pnand %p16059_p9, %p16378_p6 }
  0x79   : > { %p16068_p0 = por %p16067_p13, %p16066_p12 }
  0x7a   : > { %p16062_p11 = pneg %p16061_p10 }
  0x7b   : > { %15473 = dma.hbm_to_vmem [thread:$0]  (!%p16370_p5), %s18582_s29, 2048, %s566_s0, [#allocation6], %s18569_s2, %s18569_s2, %s16221_s5  }
  0x7c   : > { %p16069_p2 = pnand %p16068_p0, %p16062_p11 }
  0x7e   : > { %16072 = shalt.err (!%p16069_p2)
}
  0x7f   : > { %15479 = dma.hbm_to_vmem [thread:$0]  (!%p16370_p5), %s18549_s6, 2048, %s592_s30, [#allocation9], %s18569_s2, %s18569_s2, %s16221_s5  }
  0x80   : > { %s16226_s0 = smov [#allocation13]   ;;  %s16227_s1 = smov [#allocation16]  }
  0x81   : > { %s617_s3 = sshll.u32 %s16226_s0, 4  ;;  %s643_s24 = sshll.u32 %s16227_s1, 4  ;;  %s618_s3 = int_to_ptr.vmem [resolvable:$true] %s617_s3  ;;  %s644_s24 = int_to_ptr.vmem [resolvable:$true] %s643_s24 }
  0x82   : > { %s16084_s29 = scalar_lea.vmem %s618_s3, 2048  ;;  %p16092_p7 = scmp.lt.s32.totalorder %s618_s3, %s618_s3 }
  0x83   : > { %p16085_p3 = scmp.ne.s32.totalorder %s618_s3, %s16084_s29  ;;  %p16093_p8 = scmp.lt.s32.totalorder %s16084_s29, %s16084_s29 }
  0x85   : > { %p16087_p1 = pnand %p16085_p3, %p16378_p6  ;;  %p16094_p9 = por %p16093_p8, %p16092_p7 }
  0x87   : > { %p16088_p4 = pneg %p16087_p1 }
  0x89   : > { %p16095_p10 = pnand %p16094_p9, %p16088_p4 }
  0x8b   : > { %16098 = shalt.err (!%p16095_p10)
}
  0x8c   : > { %15485 = dma.hbm_to_vmem [thread:$0]  (!%p16370_p5), %s18551_s8, 2048, %s618_s3, [#allocation12], %s18569_s2, %s18569_s2, %s16221_s5  }
  0x8d   : > { %s16110_s25 = scalar_lea.vmem %s644_s24, 64  ;;  %p16118_p0 = scmp.lt.s32.totalorder %s644_s24, %s644_s24 }
  0x8e   : > { %p16111_p11 = scmp.ne.s32.totalorder %s644_s24, %s16110_s25  ;;  %p16119_p2 = scmp.lt.s32.totalorder %s16110_s25, %s16110_s25 }
  0x90   : > { %p16113_p12 = pnand %p16111_p11, %p16378_p6  ;;  %p16120_p3 = por %p16119_p2, %p16118_p0 }
  0x92   : > { %p16114_p13 = pneg %p16113_p12 }
  0x94   : > { %p16121_p1 = pnand %p16120_p3, %p16114_p13 }
  0x96   : > { %16124 = shalt.err (!%p16121_p1)
}
  0x97   : > { %s18583_s23 = smov 1   ;;  %s18584_s0 = smov 16  }
  0x98   : > { %15491 = dma.hbm_to_vmem [thread:$0]  (!%p16370_p5), %s18553_s10, 64, %s644_s24, [#allocation15], %s18584_s0, %s18584_s0, %s18583_s23  }
  0x99   : > { %s16228_s3 = smov [#allocation19]   ;;  %s16229_s27 = smov [#allocation22]  }
  0x9a   : > { %s672_s30 = sshll.u32 %s16228_s3, 4  ;;  %s703_s2 = sshll.u32 %s16229_s27, 4  ;;  %s673_s30 = int_to_ptr.vmem [resolvable:$true] %s672_s30  ;;  %s704_s2 = int_to_ptr.vmem [resolvable:$true] %s703_s2 }
  0x9b   : > { %s16136_s25 = scalar_lea.vmem %s673_s30, 512  ;;  %p16144_p9 = scmp.lt.s32.totalorder %s673_s30, %s673_s30 }
  0x9c   : > { %p16137_p4 = scmp.ne.s32.totalorder %s673_s30, %s16136_s25  ;;  %p16145_p10 = scmp.lt.s32.totalorder %s16136_s25, %s16136_s25 }
  0x9e   : > { %p16139_p7 = pnand %p16137_p4, %p16378_p6  ;;  %p16146_p11 = por %p16145_p10, %p16144_p9 }
  0xa0   : > { %p16140_p8 = pneg %p16139_p7 }
  0xa2   : > { %p16147_p12 = pnand %p16146_p11, %p16140_p8 }
  0xa4   : > { %16150 = shalt.err (!%p16147_p12)
}
  0xa5   : > { %s18585_s24 = smov 128   ;;  %s16162_s1 = scalar_lea.vmem %s704_s2, 16 }
  0xa6   : > { %15497 = dma.hbm_to_vmem [thread:$0]  (!%p16370_p5), %s18556_s13, 512, %s673_s30, [#allocation18], %s18585_s24, %s18585_s24, %s16221_s5  }
  0xa7   : > { %p16163_p13 = scmp.ne.s32.totalorder %s704_s2, %s16162_s1  ;;  %s16169_s29 = scalar_lea.vmem %s704_s2, 32 }
  0xa8   : > { %p16170_p3 = scmp.lt.s32.totalorder %s704_s2, %s704_s2  ;;  %p16171_p1 = scmp.lt.s32.totalorder %s16169_s29, %s16162_s1 }
  0xa9   : > { %p16165_p0 = pnand %p16163_p13, %p16378_p6 }
  0xaa   : > { %p16172_p4 = por %p16171_p1, %p16170_p3 }
  0xab   : > { %p16166_p2 = pneg %p16165_p0 }
  0xad   : > { %p16173_p7 = pnand %p16172_p4, %p16166_p2 }
  0xaf   : > { %16176 = shalt.err (!%p16173_p7)
}
  0xb0   : > { %15503 = dma.hbm_to_vmem [thread:$0]  (!%p16370_p5), %s18560_s17, 16, %s704_s2, [#allocation21]  }
  0xb1   : > { %p18586_p8 = scmp.ne.s32.totalorder %s18576_s28, 0 }
  0xb2   : > { %p18587_p9 = scmp.eq.s32.totalorder (!%p18586_p8), %s16355_s15, 0 }
  0xb3   : > { %736 = sbr.rel (%p18586_p8) target bundleno = 24766 (0x60be), region = 100 }
  0xb8   : > { %16182 = dma.done.wait (%p18587_p9), [#allocation4], 2048   ;;  %p18588_p6 = pmov %p18587_p9 }
  0xba   : > { %16184 = vsyncadd (%p18588_p6), [#allocation4], 4294965248  ;;  %p18589_p10 = pmov %p18588_p6 }
  0xbb   : > { %p18590_p11 = pmov %p18588_p6 }
  0xbc   : > { %16186 = dma.done.wait (%p18589_p10), [#allocation6], 2112  }
  0xbd   : > { %16188 = vsyncadd (%p18590_p11), [#allocation6], 4294965184  ;;  %p18591_p12 = pmov %p18588_p6 }
  0xbe   : > { %p18592_p5 = pmov %p18588_p6 }
  0xbf   : > { %16190 = dma.done.wait (%p18591_p12), [#allocation9], 2112  }
  0xc0   : > { %16192 = vsyncadd (%p18592_p5), [#allocation9], 4294965184  ;;  %p18593_p13 = pmov %p18592_p5 }
  0xc1   : > { %p18594_p0 = pmov %p18592_p5 }
  0xc2   : > { %16194 = dma.done.wait (%p18593_p13), [#allocation12], 2112  }
  0xc3   : > { %16196 = vsyncadd (%p18594_p0), [#allocation12], 4294965184  ;;  %p18595_p2 = pmov %p18594_p0 }
  0xc4   : > { %p18596_p3 = pmov %p18594_p0 }
  0xc5   : > { %16198 = dma.done.wait (%p18595_p2), [#allocation15], 4160  }
  0xc6   : > { %16200 = vsyncadd (%p18596_p3), [#allocation15], 4294963136  ;;  %p18597_p1 = pmov %p18594_p0 }
  0xc7   : > { %p18598_p4 = pmov %p18594_p0 }
  0xc8   : > { %16202 = dma.done.wait (%p18597_p1), [#allocation18], 4608  }
  0xc9   : > { %16204 = vsyncadd (%p18598_p4), [#allocation18], 4294962688  ;;  %p18599_p7 = pmov %p18594_p0 }
  0xca   : > { %p18600_p8 = pmov %p18594_p0 }
  0xcb   : > { %16206 = dma.done.wait (%p18599_p7), [#allocation21], 32  }
  0xcc   : > { %16208 = vsyncadd (%p18600_p8), [#allocation21], 4294967264  ;;  %p851_p9 = scmp.lt.s32.totalorder %s16355_s15, 1  ;;  %s16547_s28 = sld [smem:[#allocation2]]  ;;  %vm12553_vm0 = vcmask 49152   ;;  %vm870_vm1 = vcmask 261120  }
  0xcd   : > { %s18601_s30 = sld [smem:[#allocation30_spill]]  ;;  %v16567_v4 = vld [vmem:[#allocation3 + $0x18] sm:$0xff]  ;;  %v16230_v6 = vmov 0.0   ;;  %v16573_v7 = vld [vmem:[#allocation3 + $0x10] sm:$0xff]  ;;  %v16581_v9 = vld [vmem:[#allocation3 + $0x8] sm:$0xff]  ;;  %vm16231_vm2 = vmmov 0  }
  0xce   : > { %s18604_s15 = smov (!%p851_p9, %s16355_s15), 1  ;;  %v16569_v5 = vld [vmem:[#allocation7 + $0x18] sm:$0xff]  ;;  %14295 = vmatprep.subr.mxu0 %v16230_v6  ;;  %14306 = vmatprep.subr.mxu1 %v16230_v6  ;;  %v16575_v8 = vld [vmem:[#allocation7 + $0x10] sm:$0xff]  ;;  %v16583_v10 = vld [vmem:[#allocation7 + $0x8] sm:$0xff]  ;;  %vm1168_vm5 = vcmask 64512   ;;  %s16233_s1 = smov 112  }
  0xcf   : > { %s16550_s4 = sshll.u32 %s18604_s15, 3  ;;  %s13810_s22 = sshll.u32 %s18604_s15, 4  ;;  %14296 = vmatpush3.msra.mxu0 %v16567_v4  ;;  %14307 = vmatpush3.msra.mxu1 %v16569_v5  ;;  %v16589_v11 = vld [vmem:[#allocation3] sm:$0xff]  ;;  %v16613_v23 = vld [vmem:[#allocation10 + $0x10] sm:$0xff]  ;;  %v16619_v24 = vld [vmem:[#allocation10 + $0x8] sm:$0xff]  ;;  %vm886_vm6 = vcmask 259072  }
  0xd0   : > { %s16559_s0 = scalar_lea.vmem %s18563_s20, %s13810_s22  ;;  %14297 = vmatprep.subr.mxu0 %v16230_v6  ;;  %14308 = vmatprep.subr.mxu1 %v16230_v6  ;;  %v16593_v12 = vld [vmem:[#allocation7] sm:$0xff]  ;;  %v16635_v26 = vld [vmem:[#allocation5] ss:$0 sm:$0xff]  ;;  %s16232_s15 = smov 120   ;;  %v16681_v61 = vld [vmem:[#allocation13 + $0x8] sm:$0xff]  ;;  %vm2280_vm9 = vcmask 523264  }
  0xd1   : > { %14298 = vmatpush3.msra.mxu0 %v16573_v7  ;;  %14309 = vmatpush3.msra.mxu1 %v16575_v8  ;;  %v16607_v22 = vld [vmem:[#allocation10 + $0x18] sm:$0xff]  ;;  %v16625_v25 = vld [vmem:[#allocation10] sm:$0xff]  ;;  %s16234_s29 = smov 104   ;;  %s18602_s22 = sld [smem:[#allocation31_spill]]  ;;  %vm2645_vm10 = vcmask 46080   ;;  %vm2661_vm11 = vcmask 1045504  }
  0xd2   : > { %v12550_v1 = vstv %s16547_s28  ;;  %14299 = vmatprep.subr.mxu0 %v16230_v6  ;;  %14310 = vmatprep.subr.mxu1 %v16230_v6  ;;  %v16637_v27 = vld [vmem:[#allocation8] ss:$0 sm:$0xff]  ;;  %v16654_v34 = vld [vmem:[#allocation11] ss:$0 sm:$0xff]  ;;  %vm2657_vm12 = vcmask 48128   ;;  %vm5508_vm13 = vcmask 62464   ;;  %s867_s5 = scalar_lea.vmem %s18564_s21, %s16550_s4 }
  0xd3   : > { %s854_s25 = scalar_lea.vmem %s18601_s30, %s16550_s4  ;;  %12554 = vst.msk [vmem:[%s16559_s0 + $0x8] sm:$0x1] %vm12553_vm0, %v12550_v1  ;;  %14300 = vmatpush3.msra.mxu0 %v16581_v9  ;;  %14311 = vmatpush3.msra.mxu1 %v16583_v10  ;;  %vm13246_vm14 = vcmask 130048   ;;  %vm12551_vm15 = vcmask 56320  }
  0xd4   : > { %v868_v0 = vld [vmem:[%s854_s25] sm:$0xff]  ;;  %14301 = vmatprep.subr.mxu0 %v16230_v6  ;;  %14312 = vmatprep.subr.mxu1 %v16230_v6  ;;  %12552 = vst.msk [vmem:[%s16559_s0] sm:$0xff] %vm12551_vm15, %v12550_v1 }
  0xd5   : > { %v869_v2 = vmul.f32 %v868_v0, %v868_v0  ;;  %14302 = vmatpush3.msra.mxu0 %v16589_v11  ;;  %14303 = vmatprep.mubr.msk.f32.mxu0 %vm16231_vm2, %v16230_v6 }
  0xd6   : > { %14313 = vmatpush3.msra.mxu1 %v16593_v12  ;;  %14314 = vmatprep.mubr.msk.f32.mxu1 %vm16231_vm2, %v16230_v6 }
  0xd7   : > { %v871_v3 = vsel %vm870_vm1, %v869_v2, 0.0  ;;  %14317 = vmatprep.subr.mxu0 %v16230_v6  ;;  %14328 = vmatprep.subr.mxu1 %v16230_v6  ;;  %s858_s2 = scalar_lea.vmem %s18602_s22, %s16550_s4 }
  0xd8   : > { %872 = vadd.xlane.f32.xlu0 %v871_v3  ;;  %v16686_v3 = vld [vmem:[#allocation13] sm:$0xff] }
 0x161   : > { %v873_v13 = vpop.xlane.xlu0 %872 }
 0x162   : > { %15561 = vrsqrt.f32 %v873_v13  ;;  %vm876_vm3 = vcmp.eq.f32.partialorder %v873_v13, inf  ;;  %v879_v16 = vand.u32 2147483648, %v873_v13  ;;  %vm878_vm4 = vcmp.eq.f32.partialorder %v873_v13, 0.0 }
 0x16f   : > { %v15562_v14 = vpop.eup %15561 }
 0x170   : > { %v875_v15 = vmul.f32 %v15562_v14, %v873_v13 }
 0x172   : > { %v877_v17 = vsel %vm876_vm3, %v873_v13, %v875_v15 }
 0x173   : > { %v880_v18 = vsel %vm878_vm4, %v879_v16, %v877_v17 }
 0x174   : > { %v881_v19 = vmax.f32 %v880_v18, 1e-12 }
 0x176   : > { %15563 = vrcp.f32 %v881_v19 }
 0x183   : > { %v15564_v20 = vpop.eup %15563 }
 0x184   : > { %v16605_v21 = vmul.f32 %v15564_v20, %v868_v0 }
 0x186   : > { %14304 = vmatmul.mubr.msk.f32.vlgmr.msra.gmra.mxu0 %vm870_vm1, %v16605_v21  ;;  %14315 = vmatmul.mubr.msk.f32.vlgmr.msra.gmra.mxu1 %vm870_vm1, %v16605_v21 }
 0x187   : > { %14318 = vmatpush3.msra.mxu0 %v16607_v22  ;;  %14325 = vmatprep.mubr.msk.f32.mxu0 %vm16231_vm2, %v16230_v6 }
 0x188   : > { %14319 = vmatprep.subr.mxu0 %v16230_v6  ;;  %14330 = vmatprep.mubr.msk.f32.mxu1 %vm16231_vm2, %v16230_v6 }
 0x189   : > { %14320 = vmatpush3.msra.mxu0 %v16613_v23 }
 0x18a   : > { %14321 = vmatprep.subr.mxu0 %v16230_v6 }
 0x18b   : > { %14322 = vmatpush3.msra.mxu0 %v16619_v24 }
 0x18c   : > { %14323 = vmatprep.subr.mxu0 %v16230_v6 }
 0x18d   : > { %14324 = vmatpush3.msra.mxu0 %v16625_v25 }
 0x18e   : > { %14326 = vmatmul.mubr.msk.f32.vlgmr.msra.gmra.mxu0 %vm870_vm1, %v16605_v21  ;;  %14338 = vmatprep.subr.mxu0 %v16230_v6 }
 0x18f   : > { %14340 = vmatprep.mubr.msk.f32.mxu0 %vm16231_vm2, %v16230_v6 }
 0x246   : > { %v1012_v28 = vpop.f32.mrf.mxu0  ;;  %v1088_v29 = vpop.f32.mrf.mxu1 }
 0x247   : > { %v16640_v30 = vadd.f32 %v16635_v26, %v1012_v28  ;;  %v16643_v31 = vadd.f32 %v16637_v27, %v1088_v29 }
 0x248   : > { %v14305_v32 = vpop.f32.mrf.mxu0  ;;  %v14316_v33 = vpop.f32.mrf.mxu1 }
 0x249   : > { %1332 = vrot.lane.b32.xlu0 %v16643_v31, %s16232_s15  ;;  %14329 = vmatpush3.xpose.msk.msra.mxu1 %vm1168_vm5, %v16643_v31 }
 0x24a   : > { %1330 = vrot.lane.b32.xlu1 %v16640_v30, %s16232_s15  ;;  %14333 = vmatprep.subr.mxu1 %v16230_v6 }
 0x24c   : > { %14331 = vmatmul.mubr.msk.f32.vlgmr.msra.gmra.mxu1 %vm1168_vm5, %v16640_v30 }
 0x24d   : > { %14335 = vmatprep.mubr.msk.f32.mxu1 %vm16231_vm2, %v16230_v6 }
 0x24e   : > { %v1164_v35 = vpop.f32.mrf.mxu0 }
 0x24f   : > { %v16659_v36 = vadd.f32 %v16654_v34, %v1164_v35 }
 0x250   : > { %v14327_v37 = vpop.f32.mrf.mxu0 }
 0x251   : > { %14334 = vmatpush3.msra.mxu1 %v16659_v36 }
 0x252   : > { %14343 = vmatprep.subr.mxu1 %v16230_v6 }
 0x2bb   : > { %v1333_v38 = vpop.permute.xlu0 %1332 }
 0x2bc   : > { %14339 = vmatpush3.xpose.msk.msra.mxu0 %vm1168_vm5, %v1333_v38  ;;  %v1331_v39 = vpop.permute.xlu1 %1330 }
 0x2bd   : > { %14348 = vmatprep.subr.mxu0 %v16230_v6 }
 0x2bf   : > { %14341 = vmatmul.mubr.msk.f32.vlgmr.msra.gmra.mxu0 %vm1168_vm5, %v1331_v39 }
 0x2c0   : > { %14350 = vmatprep.mubr.msk.f32.mxu0 %vm16231_vm2, %v16230_v6  ;;  %14349 = vmatpush3.msra.mxu0 %v16681_v61 }
 0x2c1   : > { %14358 = vmatprep.subr.mxu0 %v16230_v6 }
 0x30c   : > { %v1241_v40 = vpop.f32.mrf.mxu1 }
 0x30d   : > { %v1245_v41 = vmul.f32 0.35355338, %v1241_v40 }
 0x30e   : > { %v14332_v42 = vpop.f32.mrf.mxu1 }
 0x30f   : > { %v1246_v43 = vsel %vm1168_vm5, %v1245_v41, -inf }
 0x310   : > { %1247 = vmax.xlane.f32.xlu1 %v1246_v43 }
 0x37f   : > { %v1404_v44 = vpop.f32.mrf.mxu0 }
 0x380   : > { %v1408_v45 = vmul.f32 0.35355338, %v1404_v44 }
 0x381   : > { %v14342_v46 = vpop.f32.mrf.mxu0 }
 0x382   : > { %v1409_v47 = vsel %vm1168_vm5, %v1408_v45, -inf }
 0x383   : > { %1410 = vmax.xlane.f32.xlu0 %v1409_v47 }
 0x399   : > { %v1248_v48 = vpop.xlane.xlu1 %1247  ;;  %1645 = vrot.lane.b32.xlu0 %v16643_v31, %s16233_s1 }
 0x39a   : > { %v1249_v49 = vsub.f32 %v1245_v41, %v1248_v48 }
 0x39c   : > { %v1250_v50 = vmul.f32 1.442695, %v1249_v49 }
 0x39e   : > { %15565 = vpow2.f32 %v1250_v50 }
 0x3ab   : > { %v15566_v51 = vpop.eup %15565 }
 0x3ac   : > { %v1252_v52 = vsel %vm1168_vm5, %v15566_v51, 0.0 }
 0x3ad   : > { %1253 = vadd.xlane.f32.xlu1 %v1252_v52 }
 0x40c   : > { %v1411_v53 = vpop.xlane.xlu0 %1410 }
 0x40d   : > { %v1412_v54 = vsub.f32 %v1408_v45, %v1411_v53 }
 0x40f   : > { %v1413_v55 = vmul.f32 1.442695, %v1412_v54 }
 0x410   : > { %v1646_v16 = vpop.permute.xlu0 %1645 }
 0x411   : > { %15567 = vpow2.f32 %v1413_v55 }
 0x41e   : > { %v15568_v56 = vpop.eup %15567 }
 0x41f   : > { %v1415_v57 = vsel %vm1168_vm5, %v15568_v56, 0.0 }
 0x420   : > { %1416 = vadd.xlane.f32.xlu1 %v1415_v57 }
 0x431   : > { %1421 = vrot.lane.b32.xlu1 %v16659_v36, %s16232_s15 }
 0x435   : > { %1643 = vrot.lane.b32.xlu1 %v16640_v30, %s16233_s1 }
 0x436   : > { %v1254_v58 = vpop.xlane.xlu1 %1253 }
 0x437   : > { %15569 = vrcp.f32 %v1254_v58 }
 0x444   : > { %v15570_v59 = vpop.eup %15569 }
 0x445   : > { %v1256_v60 = vmul.f32 %v15570_v59, %v15566_v51 }
 0x447   : > { %14336 = vmatmul.mubr.msk.f32.vlgmr.msra.gmra.mxu1 %vm1168_vm5, %v1256_v60 }
 0x448   : > { %14345 = vmatprep.mubr.msk.f32.mxu1 %vm16231_vm2, %v16230_v6 }
 0x4a9   : > { %v1417_v62 = vpop.xlane.xlu1 %1416 }
 0x4aa   : > { %15571 = vrcp.f32 %v1417_v62  ;;  %v884_v62 = vld [vmem:[%s858_s2] sm:$0x3f] }
 0x4ad   : > { %v1422_v63 = vpop.permute.xlu1 %1421 }
 0x4ae   : > { %14344 = vmatpush3.msra.mxu1 %v1422_v63  ;;  %v885_v63 = vmul.f32 %v884_v62, %v884_v62 }
 0x4af   : > { %14353 = vmatprep.subr.mxu1 %v16230_v6 }
 0x4b1   : > { %v1644_v18 = vpop.permute.xlu1 %1643 }
 0x4b7   : > { %v15572_v0 = vpop.eup %15571 }
 0x4b8   : > { %v1419_v2 = vmul.f32 %v15572_v0, %v15568_v56 }
 0x4ba   : > { %14346 = vmatmul.mubr.msk.f32.vlgmr.msra.gmra.mxu1 %vm1168_vm5, %v1419_v2 }
 0x4bb   : > { %14354 = vmatpush3.msra.mxu1 %v16686_v3  ;;  %14355 = vmatprep.mubr.msk.f32.mxu1 %vm16231_vm2, %v16230_v6 }
 0x4bc   : > { %14363 = vmatprep.subr.mxu1 %v16230_v6 }
 0x507   : > { %v1326_v13 = vpop.f32.mrf.mxu1 }
 0x508   : > { %14356 = vmatmul.mubr.msk.f32.vlgmr.msra.gmra.mxu1 %vm1168_vm5, %v1326_v13  ;;  %v887_v13 = vsel %vm886_vm6, %v885_v63, 0.0 }
 0x509   : > { %v14337_v14 = vpop.f32.mrf.mxu1  ;;  %14365 = vmatprep.mubr.msk.f32.mxu1 %vm16231_vm2, %v16230_v6 }
 0x50a   : > { %v16739_v14 = vld [vmem:[#allocation13 + $0x18] sm:$0xff] }
 0x57a   : > { %v1493_v15 = vpop.f32.mrf.mxu1 }
 0x57b   : > { %14351 = vmatmul.mubr.msk.f32.vlgmr.msra.gmra.mxu0 %vm1168_vm5, %v1493_v15 }
 0x57c   : > { %14359 = vmatpush3.xpose.msk.msra.mxu0 %vm1168_vm5, %v1646_v16  ;;  %v14347_v17 = vpop.f32.mrf.mxu1  ;;  %14360 = vmatprep.mubr.msk.f32.mxu0 %vm16231_vm2, %v16230_v6 }
 0x57d   : > { %14368 = vmatprep.subr.mxu0 %v16230_v6 }
 0x57f   : > { %14361 = vmatmul.mubr.msk.f32.vlgmr.msra.gmra.mxu0 %vm1168_vm5, %v1644_v18  ;;  %v16746_v18 = vld [vmem:[#allocation14 + $0x38] sm:$0xff] }
 0x580   : > { %14370 = vmatprep.mubr.msk.f32.mxu0 %vm16231_vm2, %v16230_v6 }
 0x5c8   : > { %v1639_v19 = vpop.f32.mrf.mxu1 }
 0x5ca   : > { %v14357_v20 = vpop.f32.mrf.mxu1 }
 0x63b   : > { %v1566_v28 = vpop.f32.mrf.mxu0 }
 0x63c   : > { %v1640_v60 = vadd.f32 %v1639_v19, %v1566_v28  ;;  %v16748_v19 = vld [vmem:[#allocation14 + $0x30] sm:$0xff] }
 0x63d   : > { %v14352_v29 = vpop.f32.mrf.mxu0 }
 0x63f   : > { %v1717_v32 = vpop.f32.mrf.mxu0 }
 0x640   : > { %v1721_v33 = vmul.f32 0.35355338, %v1717_v32 }
 0x641   : > { %v14362_v35 = vpop.f32.mrf.mxu0 }
 0x642   : > { %v1722_v37 = vsel %vm1168_vm5, %v1721_v33, -inf }
 0x643   : > { %1723 = vmax.xlane.f32.xlu1 %v1722_v37 }
 0x654   : > { %1733 = vrot.lane.b32.xlu1 %v16659_v36, %s16233_s1 }
 0x658   : > { %1883 = vrot.lane.b32.xlu1 %v16640_v30, %s16234_s29 }
 0x6cc   : > { %v1724_v38 = vpop.xlane.xlu1 %1723 }
 0x6cd   : > { %v1725_v39 = vsub.f32 %v1721_v33, %v1724_v38  ;;  %v16754_v38 = vld [vmem:[#allocation14 + $0x18] sm:$0xff] }
 0x6cf   : > { %v1726_v40 = vmul.f32 1.442695, %v1725_v39 }
 0x6d0   : > { %v1734_v41 = vpop.permute.xlu1 %1733 }
 0x6d1   : > { %15573 = vpow2.f32 %v1726_v40  ;;  %14364 = vmatpush3.msra.mxu1 %v1734_v41  ;;  %v16757_v40 = vld [vmem:[#allocation14 + $0x10] sm:$0xff] }
 0x6d2   : > { %14373 = vmatprep.subr.mxu1 %v16230_v6 }
 0x6d4   : > { %v1884_v47 = vpop.permute.xlu1 %1883 }
 0x6de   : > { %v15574_v42 = vpop.eup %15573 }
 0x6df   : > { %v1728_v43 = vsel %vm1168_vm5, %v15574_v42, 0.0 }
 0x6e0   : > { %1729 = vadd.xlane.f32.xlu0 %v1728_v43  ;;  %v16767_v43 = vld [vmem:[#allocation14] sm:$0xff] }
 0x6f6   : > { %1885 = vrot.lane.b32.xlu0 %v16643_v31, %s16234_s29  ;;  %v16721_v31 = vld [vmem:[#allocation13 + $0x10] sm:$0xff] }
 0x6f7   : > { %14369 = vmatpush3.msra.mxu0 %v16721_v31 }
 0x6f8   : > { %14378 = vmatprep.subr.mxu0 %v16230_v6 }
 0x769   : > { %v1730_v44 = vpop.xlane.xlu0 %1729 }
 0x76a   : > { %15575 = vrcp.f32 %v1730_v44 }
 0x76d   : > { %v1886_v30 = vpop.permute.xlu0 %1885 }
 0x777   : > { %v15576_v45 = vpop.eup %15575 }
 0x778   : > { %v1732_v46 = vmul.f32 %v15576_v45, %v15574_v42  ;;  %v16763_v42 = vld [vmem:[#allocation14 + $0x8] sm:$0xff] }
 0x77a   : > { %14366 = vmatmul.mubr.msk.f32.vlgmr.msra.gmra.mxu1 %vm1168_vm5, %v1732_v46  ;;  %v16819_v46 = vld [vmem:[#allocation17 + $0x30] sm:$0xff] }
 0x77b   : > { %14374 = vmatpush3.xpose.msk.msra.mxu1 %vm1168_vm5, %v1886_v30  ;;  %14375 = vmatprep.mubr.msk.f32.mxu1 %vm16231_vm2, %v16230_v6  ;;  %v16821_v30 = vld [vmem:[#allocation17 + $0x28] sm:$0xff] }
 0x77c   : > { %14383 = vmatprep.subr.mxu1 %v16230_v6 }
 0x77e   : > { %14376 = vmatmul.mubr.msk.f32.vlgmr.msra.gmra.mxu1 %vm1168_vm5, %v1884_v47  ;;  %v16825_v47 = vld [vmem:[#allocation17 + $0x20] sm:$0xff] }
 0x77f   : > { %14385 = vmatprep.mubr.msk.f32.mxu1 %vm16231_vm2, %v16230_v6  ;;  %14384 = vmatpush3.msra.mxu1 %v16739_v14 }
 0x780   : > { %14399 = vmatprep.subr.mxu1 %v16230_v6 }
 0x83a   : > { %v1805_v48 = vpop.f32.mrf.mxu1 }
 0x83b   : > { %14371 = vmatmul.mubr.msk.f32.vlgmr.msra.gmra.mxu0 %vm1168_vm5, %v1805_v48 }
 0x83c   : > { %v14367_v49 = vpop.f32.mrf.mxu1  ;;  %14380 = vmatprep.mubr.msk.f32.mxu0 %vm16231_vm2, %v16230_v6 }
 0x83e   : > { %v1957_v50 = vpop.f32.mrf.mxu1 }
 0x83f   : > { %v1961_v51 = vmul.f32 0.35355338, %v1957_v50  ;;  %v16832_v50 = vld [vmem:[#allocation17 + $0x18] sm:$0xff] }
 0x840   : > { %v14377_v52 = vpop.f32.mrf.mxu1 }
 0x841   : > { %v1962_v53 = vsel %vm1168_vm5, %v1961_v51, -inf }
 0x842   : > { %1963 = vmax.xlane.f32.xlu1 %v1962_v53 }
 0x853   : > { %1973 = vrot.lane.b32.xlu1 %v16659_v36, %s16234_s29 }
 0x8cb   : > { %v1964_v54 = vpop.xlane.xlu1 %1963 }
 0x8cc   : > { %v1965_v55 = vsub.f32 %v1961_v51, %v1964_v54  ;;  %v16852_v54 = vld [vmem:[#allocation17 + $0x10] sm:$0xff] }
 0x8ce   : > { %v1966_v56 = vmul.f32 1.442695, %v1965_v55  ;;  %v16860_v55 = vld [vmem:[#allocation17] sm:$0xff] }
 0x8cf   : > { %v1974_v57 = vpop.permute.xlu1 %1973 }
 0x8d0   : > { %15577 = vpow2.f32 %v1966_v56  ;;  %14379 = vmatpush3.msra.mxu0 %v1974_v57  ;;  %v16864_v56 = vld [vmem:[#allocation16] ss:$0 sm:$0xff] }
 0x8d1   : > { %14388 = vmatprep.subr.mxu0 %v16230_v6 }
 0x8dd   : > { %v15578_v58 = vpop.eup %15577 }
 0x8de   : > { %v1968_v59 = vsel %vm1168_vm5, %v15578_v58, 0.0 }
 0x8df   : > { %1969 = vadd.xlane.f32.xlu0 %v1968_v59 }
 0x8e3   : > { %888 = vadd.xlane.f32.xlu0 %v887_v13 }
 0x8fb   : > { %v1878_v36 = vpop.f32.mrf.mxu0 }
 0x8fc   : > { %v16737_v0 = vadd.f32 %v1878_v36, %v1640_v60 }
 0x8fd   : > { %v14372_v2 = vpop.f32.mrf.mxu0 }
 0x968   : > { %v1970_v15 = vpop.xlane.xlu0 %1969 }
 0x969   : > { %15579 = vrcp.f32 %v1970_v15 }
 0x96c   : > { %v889_v20 = vpop.xlane.xlu0 %888 }
 0x96d   : > { %15581 = vrsqrt.f32 %v889_v20  ;;  %vm892_vm7 = vcmp.eq.f32.partialorder %v889_v20, inf  ;;  %v895_v32 = vand.u32 2147483648, %v889_v20  ;;  %vm894_vm8 = vcmp.eq.f32.partialorder %v889_v20, 0.0 }
 0x976   : > { %v15580_v16 = vpop.eup %15579 }
 0x977   : > { %v1972_v17 = vmul.f32 %v15580_v16, %v15578_v58 }
 0x979   : > { %14381 = vmatmul.mubr.msk.f32.vlgmr.msra.gmra.mxu0 %vm1168_vm5, %v1972_v17 }
 0x97a   : > { %14396 = vmatprep.mubr.msk.f32.mxu0 %vm16231_vm2, %v16230_v6  ;;  %14389 = vmatpush3.msra.mxu0 %v16746_v18  ;;  %v15582_v28 = vpop.eup %15581 }
 0x97b   : > { %14390 = vmatprep.subr.mxu0 %v16230_v6  ;;  %v891_v29 = vmul.f32 %v15582_v28, %v889_v20 }
 0x97c   : > { %14391 = vmatpush3.msra.mxu0 %v16748_v19 }
 0x97d   : > { %14392 = vmatprep.subr.mxu0 %v16230_v6  ;;  %v893_v33 = vsel %vm892_vm7, %v889_v20, %v891_v29 }
 0x97e   : > { %v896_v35 = vsel %vm894_vm8, %v895_v32, %v893_v33 }
 0x97f   : > { %v897_v37 = vmax.f32 %v896_v35, 1e-12 }
 0x981   : > { %15583 = vrcp.f32 %v897_v37 }
 0x98e   : > { %v15584_v44 = vpop.eup %15583 }
 0x98f   : > { %v16781_v45 = vmul.f32 %v15584_v44, %v884_v62 }
 0xa39   : > { %v2045_v39 = vpop.f32.mrf.mxu0 }
 0xa3a   : > { %14386 = vmatmul.mubr.msk.f32.vlgmr.msra.gmra.mxu1 %vm1168_vm5, %v2045_v39 }
 0xa3b   : > { %14400 = vmatpush3.msra.mxu1 %v16754_v38  ;;  %v14382_v41 = vpop.f32.mrf.mxu0  ;;  %14407 = vmatprep.mubr.msk.f32.mxu1 %vm16231_vm2, %v16230_v6 }
 0xa3c   : > { %14401 = vmatprep.subr.mxu1 %v16230_v6 }
 0xa3d   : > { %14402 = vmatpush3.msra.mxu1 %v16757_v40 }
 0xa3e   : > { %14403 = vmatprep.subr.mxu1 %v16230_v6 }
 0xa3f   : > { %14404 = vmatpush3.msra.mxu1 %v16763_v42 }
 0xa40   : > { %14405 = vmatprep.subr.mxu1 %v16230_v6 }
 0xa41   : > { %14406 = vmatpush3.msra.mxu1 %v16767_v43 }
 0xa42   : > { %14408 = vmatmul.mubr.msk.f32.vlgmr.msra.gmra.mxu1 %vm870_vm1, %v16605_v21  ;;  %14429 = vmatprep.subr.mxu1 %v16230_v6 }
 0xa43   : > { %14430 = vmatpush3.msra.mxu1 %v16567_v4  ;;  %14437 = vmatprep.mubr.msk.f32.mxu1 %vm16231_vm2, %v16230_v6  ;;  %v16803_v4 = vld [vmem:[#allocation14 + $0x28] sm:$0xff] }
 0xa44   : > { %14431 = vmatprep.subr.mxu1 %v16230_v6  ;;  %14393 = vmatpush3.msra.mxu0 %v16803_v4 }
 0xa45   : > { %14432 = vmatpush3.msra.mxu1 %v16573_v7  ;;  %14394 = vmatprep.subr.mxu0 %v16230_v6 }
 0xa46   : > { %14433 = vmatprep.subr.mxu1 %v16230_v6 }
 0xa47   : > { %14434 = vmatpush3.msra.mxu1 %v16581_v9  ;;  %v16812_v9 = vld [vmem:[#allocation17 + $0x38] sm:$0xff] }
 0xa48   : > { %14435 = vmatprep.subr.mxu1 %v16230_v6 }
 0xa49   : > { %14436 = vmatpush3.msra.mxu1 %v16589_v11 }
 0xa4a   : > { %14440 = vmatprep.subr.mxu1 %v16230_v6  ;;  %14438 = vmatmul.mubr.msk.f32.vlgmr.msra.gmra.mxu1 %vm870_vm1, %v16781_v45 }
 0xa4b   : > { %14441 = vmatpush3.msra.mxu1 %v16569_v5  ;;  %14448 = vmatprep.mubr.msk.f32.mxu1 %vm16231_vm2, %v16230_v6  ;;  %v16807_v5 = vld [vmem:[#allocation14 + $0x20] sm:$0xff] }
 0xa4c   : > { %14442 = vmatprep.subr.mxu1 %v16230_v6  ;;  %14395 = vmatpush3.msra.mxu0 %v16807_v5 }
 0xa4d   : > { %14443 = vmatpush3.msra.mxu1 %v16575_v8  ;;  %14410 = vmatprep.subr.mxu0 %v16230_v6 }
 0xa4e   : > { %14444 = vmatprep.subr.mxu1 %v16230_v6 }
 0xa4f   : > { %14445 = vmatpush3.msra.mxu1 %v16583_v10 }
 0xa50   : > { %14446 = vmatprep.subr.mxu1 %v16230_v6 }
 0xa51   : > { %14447 = vmatpush3.msra.mxu1 %v16593_v12 }
 0xa52   : > { %14449 = vmatmul.mubr.msk.f32.vlgmr.msra.gmra.mxu1 %vm870_vm1, %v16781_v45  ;;  %14462 = vmatprep.subr.mxu1 %v16230_v6 }
 0xa53   : > { %14464 = vmatprep.mubr.msk.f32.mxu1 %vm16231_vm2, %v16230_v6 }
 0xafa   : > { %v2118_v7 = vpop.f32.mrf.mxu1 }
 0xafb   : > { %v2122_v8 = vadd.f32 %v2118_v7, %v16737_v0 }
 0xafc   : > { %v14387_v10 = vpop.f32.mrf.mxu1 }
 0xafd   : > { %14397 = vmatmul.mubr.msk.f32.vlgmr.msra.gmra.mxu0 %vm870_vm1, %v2122_v8 }
 0xafe   : > { %14411 = vmatpush3.msra.mxu0 %v16812_v9  ;;  %14426 = vmatprep.mubr.msk.f32.mxu0 %vm16231_vm2, %v16230_v6 }
 0xaff   : > { %14412 = vmatprep.subr.mxu0 %v16230_v6 }
 0xb00   : > { %14413 = vmatpush3.msra.mxu0 %v16819_v46 }
 0xb01   : > { %14414 = vmatprep.subr.mxu0 %v16230_v6 }
 0xb02   : > { %v2262_v11 = vpop.f32.mrf.mxu1  ;;  %14415 = vmatpush3.msra.mxu0 %v16821_v30 }
 0xb03   : > { %14416 = vmatprep.subr.mxu0 %v16230_v6 }
 0xb04   : > { %v14409_v12 = vpop.f32.mrf.mxu1  ;;  %14417 = vmatpush3.msra.mxu0 %v16825_v47 }
 0xb05   : > { %14418 = vmatprep.subr.mxu0 %v16230_v6 }
 0xb06   : > { %14419 = vmatpush3.msra.mxu0 %v16832_v50 }
 0xb07   : > { %14420 = vmatprep.subr.mxu0 %v16230_v6 }
 0xb08   : > { %14421 = vmatpush3.msra.mxu0 %v16852_v54 }
 0xb09   : > { %14422 = vmatprep.subr.mxu0 %v16230_v6 }
 0xb0a   : > { %v2424_v48 = vpop.f32.mrf.mxu1 }
 0xb0b   : > { %v16829_v49 = vadd.f32 %v16635_v26, %v2424_v48 }
 0xb0c   : > { %v14439_v51 = vpop.f32.mrf.mxu1 }
 0xb0d   : > { %2735 = vrot.lane.b32.xlu1 %v16829_v49, %s16232_s15 }
 0xb12   : > { %v2494_v52 = vpop.f32.mrf.mxu1 }
 0xb13   : > { %v16841_v26 = vadd.f32 %v16637_v27, %v2494_v52  ;;  %v16856_v27 = vld [vmem:[#allocation17 + $0x8] sm:$0xff] }
 0xb14   : > { %v14450_v53 = vpop.f32.mrf.mxu1  ;;  %14423 = vmatpush3.msra.mxu0 %v16856_v27 }
 0xb15   : > { %14463 = vmatpush3.xpose.msk.msra.mxu1 %vm1168_vm5, %v16841_v26  ;;  %2737 = vrot.lane.b32.xlu0 %v16841_v26, %s16232_s15 }
 0xb16   : > { %14467 = vmatprep.subr.mxu1 %v16230_v6  ;;  %14424 = vmatprep.subr.mxu0 %v16230_v6 }
 0xb17   : > { %14425 = vmatpush3.msra.mxu0 %v16860_v55 }
 0xb18   : > { %14465 = vmatmul.mubr.msk.f32.vlgmr.msra.gmra.mxu1 %vm1168_vm5, %v16829_v49  ;;  %14451 = vmatprep.subr.mxu0 %v16230_v6 }
 0xb19   : > { %14469 = vmatprep.mubr.msk.f32.mxu1 %vm16231_vm2, %v16230_v6 }
 0xb87   : > { %v2738_v36 = vpop.permute.xlu0 %2737 }
 0xbbd   : > { %v2192_v57 = vpop.f32.mrf.mxu0 }
 0xbbe   : > { %v2263_v58 = vadd.f32 %v2262_v11, %v2192_v57 }
 0xbbf   : > { %v14398_v59 = vpop.f32.mrf.mxu0 }
 0xbc0   : > { %v2272_v60 = vadd.f32 %v16864_v56, %v2263_v58 }
 0xbc2   : > { %v2273_v62 = vmax.f32 %v2272_v60, 0.0 }
 0xbc4   : > { %14427 = vmatmul.mubr.msk.f32.vlgmr.msra.gmra.mxu0 %vm2280_vm9, %v2273_v62 }
 0xbc5   : > { %14452 = vmatpush3.msra.mxu0 %v16607_v22  ;;  %14459 = vmatprep.mubr.msk.f32.mxu0 %vm16231_vm2, %v16230_v6  ;;  %v2736_v22 = vpop.permute.xlu1 %2735 }
 0xbc6   : > { %14453 = vmatprep.subr.mxu0 %v16230_v6 }
 0xbc7   : > { %14454 = vmatpush3.msra.mxu0 %v16613_v23 }
 0xbc8   : > { %14455 = vmatprep.subr.mxu0 %v16230_v6 }
 0xbc9   : > { %14456 = vmatpush3.msra.mxu0 %v16619_v24 }
 0xbca   : > { %14457 = vmatprep.subr.mxu0 %v16230_v6 }
 0xbcb   : > { %14458 = vmatpush3.msra.mxu0 %v16625_v25 }
 0xbcc   : > { %14460 = vmatmul.mubr.msk.f32.vlgmr.msra.gmra.mxu0 %vm870_vm1, %v16781_v45  ;;  %14472 = vmatprep.subr.mxu0 %v16230_v6 }
 0xbcd   : > { %14473 = vmatpush3.xpose.msk.msra.mxu0 %vm1168_vm5, %v2738_v36  ;;  %14474 = vmatprep.mubr.msk.f32.mxu0 %vm16231_vm2, %v16230_v6 }
 0xbce   : > { %14482 = vmatprep.subr.mxu0 %v16230_v6 }
 0xbd0   : > { %14475 = vmatmul.mubr.msk.f32.vlgmr.msra.gmra.mxu0 %vm1168_vm5, %v2736_v22 }
 0xbd1   : > { %14483 = vmatpush3.msra.mxu0 %v16681_v61  ;;  %14484 = vmatprep.mubr.msk.f32.mxu0 %vm16231_vm2, %v16230_v6 }
 0xbd2   : > { %14492 = vmatprep.subr.mxu0 %v16230_v6 }
 0xbd8   : > { %v2640_v23 = vpop.f32.mrf.mxu1 }
 0xbd9   : > { %v2644_v24 = vmul.f32 0.35355338, %v2640_v23 }
 0xbda   : > { %v14466_v25 = vpop.f32.mrf.mxu1 }
 0xbdb   : > { %v2646_v63 = vsel %vm2645_vm10, %v2644_v24, -inf }
 0xbdc   : > { %2647 = vmax.xlane.f32.xlu1 %v2646_v63 }
 0xc65   : > { %v2648_v0 = vpop.xlane.xlu1 %2647 }
 0xc66   : > { %v2649_v2 = vsub.f32 %v2644_v24, %v2648_v0 }
 0xc68   : > { %v2650_v13 = vmul.f32 1.442695, %v2649_v2 }
 0xc6a   : > { %15585 = vpow2.f32 %v2650_v13 }
 0xc77   : > { %v15586_v15 = vpop.eup %15585 }
 0xc78   : > { %v2652_v16 = vsel %vm2645_vm10, %v15586_v15, 0.0 }
 0xc79   : > { %2653 = vadd.xlane.f32.xlu1 %v2652_v16 }
 0xc84   : > { %v16891_v61 = vpop.f32.mrf.mxu0 }
 0xc86   : > { %v14428_v17 = vpop.f32.mrf.mxu0 }
 0xc8c   : > { %v2564_v20 = vpop.f32.mrf.mxu0 }
 0xc8d   : > { %v16894_v28 = vadd.f32 %v16654_v34, %v2564_v20 }
 0xc8e   : > { %v14461_v29 = vpop.f32.mrf.mxu0 }
 0xc8f   : > { %2825 = vrot.lane.b32.xlu1 %v16894_v28, %s16232_s15  ;;  %14468 = vmatpush3.msk.msra.mxu1 %vm2661_vm11, %v16894_v28 }
 0xc90   : > { %v2809_v32 = vpop.f32.mrf.mxu0  ;;  %14477 = vmatprep.subr.mxu1 %v16230_v6 }
 0xc91   : > { %v2813_v33 = vmul.f32 0.35355338, %v2809_v32 }
 0xc92   : > { %v14476_v35 = vpop.f32.mrf.mxu0 }
 0xc93   : > { %3048 = vrot.lane.b32.xlu1 %v16829_v49, %s16233_s1  ;;  %v2814_v37 = vsel %vm2645_vm10, %v2813_v33, -inf }
 0xc94   : > { %2815 = vmax.xlane.f32.xlu0 %v2814_v37 }
 0xd02   : > { %v2654_v34 = vpop.xlane.xlu1 %2653 }
 0xd03   : > { %15587 = vrcp.f32 %v2654_v34 }
 0xd06   : > { %v2826_v44 = vpop.permute.xlu1 %2825 }
 0xd10   : > { %v15588_v39 = vpop.eup %15587 }
 0xd11   : > { %v2656_v41 = vmul.f32 %v15588_v39, %v15586_v15 }
 0xd13   : > { %14470 = vmatmul.mubr.msk.f32.vlgmr.msra.gmra.mxu1 %vm2657_vm12, %v2656_v41 }
 0xd14   : > { %14478 = vmatpush3.msk.msra.mxu1 %vm2661_vm11, %v2826_v44  ;;  %14479 = vmatprep.mubr.msk.f32.mxu1 %vm16231_vm2, %v16230_v6 }
 0xd15   : > { %14487 = vmatprep.subr.mxu1 %v16230_v6 }
 0xd1d   : > { %v2816_v7 = vpop.xlane.xlu0 %2815 }
 0xd1e   : > { %v2817_v8 = vsub.f32 %v2813_v33, %v2816_v7 }
 0xd20   : > { %v2818_v10 = vmul.f32 1.442695, %v2817_v8 }
 0xd22   : > { %15589 = vpow2.f32 %v2818_v10 }
 0xd2f   : > { %v15590_v11 = vpop.eup %15589 }
 0xd30   : > { %v2820_v12 = vsel %vm2645_vm10, %v15590_v11, 0.0 }
 0xd31   : > { %2821 = vadd.xlane.f32.xlu0 %v2820_v12 }
 0xd47   : > { %3050 = vrot.lane.b32.xlu0 %v16841_v26, %s16233_s1 }
 0xdba   : > { %v2822_v48 = vpop.xlane.xlu0 %2821 }
 0xdbb   : > { %15591 = vrcp.f32 %v2822_v48 }
 0xdbe   : > { %v3051_v59 = vpop.permute.xlu0 %3050 }
 0xdc8   : > { %v15592_v51 = vpop.eup %15591 }
 0xdc9   : > { %v2824_v52 = vmul.f32 %v15592_v51, %v15590_v11 }
 0xdcb   : > { %14480 = vmatmul.mubr.msk.f32.vlgmr.msra.gmra.mxu1 %vm2657_vm12, %v2824_v52 }
 0xdcc   : > { %14488 = vmatpush3.msra.mxu1 %v16686_v3  ;;  %14489 = vmatprep.mubr.msk.f32.mxu1 %vm16231_vm2, %v16230_v6  ;;  %v3049_v3 = vpop.permute.xlu1 %3048 }
 0xdcd   : > { %14497 = vmatprep.subr.mxu1 %v16230_v6 }
 0xdd3   : > { %v2731_v53 = vpop.f32.mrf.mxu1 }
 0xdd4   : > { %14490 = vmatmul.mubr.msk.f32.vlgmr.msra.gmra.mxu1 %vm1168_vm5, %v2731_v53 }
 0xdd5   : > { %v14471_v57 = vpop.f32.mrf.mxu1  ;;  %14499 = vmatprep.mubr.msk.f32.mxu1 %vm16231_vm2, %v16230_v6 }
 0xe8b   : > { %v2898_v58 = vpop.f32.mrf.mxu1 }
 0xe8c   : > { %14485 = vmatmul.mubr.msk.f32.vlgmr.msra.gmra.mxu0 %vm1168_vm5, %v2898_v58 }
 0xe8d   : > { %14493 = vmatpush3.xpose.msk.msra.mxu0 %vm1168_vm5, %v3051_v59  ;;  %v14481_v60 = vpop.f32.mrf.mxu1  ;;  %14494 = vmatprep.mubr.msk.f32.mxu0 %vm16231_vm2, %v16230_v6 }
 0xe8e   : > { %14502 = vmatprep.subr.mxu0 %v16230_v6 }
 0xe90   : > { %14495 = vmatmul.mubr.msk.f32.vlgmr.msra.gmra.mxu0 %vm1168_vm5, %v3049_v3 }
 0xe91   : > { %14503 = vmatpush3.msra.mxu0 %v16721_v31  ;;  %14504 = vmatprep.mubr.msk.f32.mxu0 %vm16231_vm2, %v16230_v6 }
 0xe92   : > { %14512 = vmatprep.subr.mxu0 %v16230_v6 }
 0xe94   : > { %v3044_v62 = vpop.f32.mrf.mxu1 }
 0xe96   : > { %v14491_v36 = vpop.f32.mrf.mxu1 }
 0xf4c   : > { %v2971_v22 = vpop.f32.mrf.mxu0 }
 0xf4d   : > { %v3045_v12 = vadd.f32 %v3044_v62, %v2971_v22 }
 0xf4e   : > { %v14486_v23 = vpop.f32.mrf.mxu0 }
 0xf4f   : > { %v17046_v23 = vld [vmem:[#allocation10 + $0x38] sm:$0xff] }
 0xf50   : > { %v3122_v24 = vpop.f32.mrf.mxu0 }
 0xf51   : > { %v3126_v25 = vmul.f32 0.35355338, %v3122_v24  ;;  %v17055_v24 = vld [vmem:[#allocation10 + $0x30] sm:$0xff] }
 0xf52   : > { %v14496_v63 = vpop.f32.mrf.mxu0 }
 0xf53   : > { %v3127_v0 = vsel %vm2645_vm10, %v3126_v25, -inf  ;;  %v17067_v63 = vld [vmem:[#allocation7 + $0x20] sm:$0xff] }
 0xf54   : > { %3128 = vmax.xlane.f32.xlu1 %v3127_v0  ;;  %v17069_v0 = vld [vmem:[#allocation10 + $0x20] sm:$0xff] }
 0xf65   : > { %3291 = vrot.lane.b32.xlu1 %v16841_v26, %s16234_s29 }
 0xf69   : > { %3289 = vrot.lane.b32.xlu1 %v16829_v49, %s16234_s29 }
 0xfdd   : > { %v3129_v31 = vpop.xlane.xlu1 %3128 }
 0xfde   : > { %v3130_v2 = vsub.f32 %v3126_v25, %v3129_v31  ;;  %v17063_v25 = vld [vmem:[#allocation10 + $0x28] sm:$0xff] }
 0xfe0   : > { %v3131_v13 = vmul.f32 1.442695, %v3130_v2 }
 0xfe1   : > { %v3292_v49 = vpop.permute.xlu1 %3291 }
 0xfe2   : > { %15593 = vpow2.f32 %v3131_v13 }
 0xfe5   : > { %v3290_v32 = vpop.permute.xlu1 %3289 }
 0xfef   : > { %v15594_v15 = vpop.eup %15593 }
 0xff0   : > { %v3133_v16 = vsel %vm2645_vm10, %v15594_v15, 0.0 }
 0xff1   : > { %3134 = vadd.xlane.f32.xlu0 %v3133_v16  ;;  %v17089_v16 = vld [vmem:[#allocation8 + $0x1] ss:$0 sm:$0xff] }
0x1007   : > { %3138 = vrot.lane.b32.xlu0 %v16894_v28, %s16233_s1 }
0x107a   : > { %v3135_v17 = vpop.xlane.xlu0 %3134 }
0x107b   : > { %15595 = vrcp.f32 %v3135_v17 }
0x107e   : > { %v3139_v20 = vpop.permute.xlu0 %3138 }
0x107f   : > { %14498 = vmatpush3.msk.msra.mxu1 %vm2661_vm11, %v3139_v20 }
0x1080   : > { %14507 = vmatprep.subr.mxu1 %v16230_v6 }
0x1088   : > { %v15596_v26 = vpop.eup %15595 }
0x1089   : > { %v3137_v29 = vmul.f32 %v15596_v26, %v15594_v15 }
0x108b   : > { %14500 = vmatmul.mubr.msk.f32.vlgmr.msra.gmra.mxu1 %vm2657_vm12, %v3137_v29 }
0x108c   : > { %14508 = vmatpush3.xpose.msk.msra.mxu1 %vm1168_vm5, %v3292_v49  ;;  %14509 = vmatprep.mubr.msk.f32.mxu1 %vm16231_vm2, %v16230_v6  ;;  %v17094_v49 = vld [vmem:[#allocation11 + $0x1] ss:$0 sm:$0xff] }
0x108d   : > { %14517 = vmatprep.subr.mxu1 %v16230_v6 }
0x108f   : > { %14510 = vmatmul.mubr.msk.f32.vlgmr.msra.gmra.mxu1 %vm1168_vm5, %v3290_v32 }
0x1090   : > { %14518 = vmatpush3.msra.mxu1 %v16739_v14  ;;  %14519 = vmatprep.mubr.msk.f32.mxu1 %vm16231_vm2, %v16230_v6 }
0x1091   : > { %14533 = vmatprep.subr.mxu1 %v16230_v6 }
0x114b   : > { %v3211_v33 = vpop.f32.mrf.mxu1 }
0x114c   : > { %14505 = vmatmul.mubr.msk.f32.vlgmr.msra.gmra.mxu0 %vm1168_vm5, %v3211_v33 }
0x114d   : > { %v14501_v35 = vpop.f32.mrf.mxu1  ;;  %14514 = vmatprep.mubr.msk.f32.mxu0 %vm16231_vm2, %v16230_v6 }
0x114f   : > { %v3363_v37 = vpop.f32.mrf.mxu1 }
0x1150   : > { %v3367_v34 = vmul.f32 0.35355338, %v3363_v37 }
0x1151   : > { %v14511_v39 = vpop.f32.mrf.mxu1 }
0x1152   : > { %v3368_v41 = vsel %vm2645_vm10, %v3367_v34, -inf }
0x1153   : > { %3369 = vmax.xlane.f32.xlu0 %v3368_v41 }
0x1169   : > { %3379 = vrot.lane.b32.xlu0 %v16894_v28, %s16234_s29 }
0x11dc   : > { %v3370_v14 = vpop.xlane.xlu0 %3369 }
0x11dd   : > { %v3371_v44 = vsub.f32 %v3367_v34, %v3370_v14 }
0x11df   : > { %v3372_v7 = vmul.f32 1.442695, %v3371_v44 }
0x11e0   : > { %v3380_v8 = vpop.permute.xlu0 %3379 }
0x11e1   : > { %15597 = vpow2.f32 %v3372_v7  ;;  %14513 = vmatpush3.msk.msra.mxu0 %vm2661_vm11, %v3380_v8 }
0x11e2   : > { %14522 = vmatprep.subr.mxu0 %v16230_v6 }
0x11ee   : > { %v15598_v10 = vpop.eup %15597 }
0x11ef   : > { %v3374_v11 = vsel %vm2645_vm10, %v15598_v10, 0.0 }
0x11f0   : > { %3375 = vadd.xlane.f32.xlu1 %v3374_v11 }
0x120c   : > { %v3284_v48 = vpop.f32.mrf.mxu0 }
0x120d   : > { %v3288_v51 = vadd.f32 %v3284_v48, %v3045_v12 }
0x120e   : > { %v14506_v52 = vpop.f32.mrf.mxu0 }
0x1279   : > { %v3376_v53 = vpop.xlane.xlu1 %3375 }
0x127a   : > { %15599 = vrcp.f32 %v3376_v53 }
0x1287   : > { %v15600_v28 = vpop.eup %15599 }
0x1288   : > { %v3378_v57 = vmul.f32 %v15600_v28, %v15598_v10 }
0x128a   : > { %14515 = vmatmul.mubr.msk.f32.vlgmr.msra.gmra.mxu0 %vm2657_vm12, %v3378_v57 }
0x128b   : > { %14523 = vmatpush3.msra.mxu0 %v16746_v18  ;;  %14530 = vmatprep.mubr.msk.f32.mxu0 %vm16231_vm2, %v16230_v6 }
0x128c   : > { %14524 = vmatprep.subr.mxu0 %v16230_v6 }
0x128d   : > { %14525 = vmatpush3.msra.mxu0 %v16748_v19  ;;  %v16979_v19 = vld [vmem:[#allocation3 + $0x38] sm:$0xff] }
0x128e   : > { %14526 = vmatprep.subr.mxu0 %v16230_v6 }
0x128f   : > { %14527 = vmatpush3.msra.mxu0 %v16803_v4  ;;  %v16998_v4 = vld [vmem:[#allocation3 + $0x28] sm:$0xff] }
0x1290   : > { %14528 = vmatprep.subr.mxu0 %v16230_v6 }
0x1291   : > { %14529 = vmatpush3.msra.mxu0 %v16807_v5 }
0x1292   : > { %14544 = vmatprep.subr.mxu0 %v16230_v6 }
0x134a   : > { %v3452_v58 = vpop.f32.mrf.mxu0 }
0x134b   : > { %14520 = vmatmul.mubr.msk.f32.vlgmr.msra.gmra.mxu1 %vm1168_vm5, %v3452_v58 }
0x134c   : > { %14534 = vmatpush3.msra.mxu1 %v16754_v38  ;;  %v14516_v18 = vpop.f32.mrf.mxu0  ;;  %14541 = vmatprep.mubr.msk.f32.mxu1 %vm16231_vm2, %v16230_v6  ;;  %v16984_v38 = vld [vmem:[%s18555_s12] ss:$0 sm:$0xff] }
0x134d   : > { %14535 = vmatprep.subr.mxu1 %v16230_v6 }
0x134e   : > { %14536 = vmatpush3.msra.mxu1 %v16757_v40  ;;  %v16990_v40 = vld [vmem:[#allocation3 + $0x30] sm:$0xff] }
0x134f   : > { %14537 = vmatprep.subr.mxu1 %v16230_v6 }
0x1350   : > { %14538 = vmatpush3.msra.mxu1 %v16763_v42  ;;  %v2351_v42 = vadd.f32 %v16984_v38, %v16891_v61 }
0x1351   : > { %14539 = vmatprep.subr.mxu1 %v16230_v6 }
0x1352   : > { %14540 = vmatpush3.msra.mxu1 %v16767_v43  ;;  %v17002_v43 = vld [vmem:[#allocation3 + $0x20] sm:$0xff]  ;;  %v17006_v5 = vadd.f32 %v2351_v42, %v16605_v21 }
0x1353   : > { %14542 = vmatmul.mubr.msk.f32.vlgmr.msra.gmra.mxu1 %vm870_vm1, %v16781_v45  ;;  %14563 = vmatprep.subr.mxu1 %v16230_v6 }
0x1354   : > { %14564 = vmatpush3.msra.mxu1 %v16979_v19  ;;  %14571 = vmatprep.mubr.msk.f32.mxu1 %vm16231_vm2, %v16230_v6 }
0x1355   : > { %14565 = vmatprep.subr.mxu1 %v16230_v6 }
0x1356   : > { %14566 = vmatpush3.msra.mxu1 %v16990_v40 }
0x1357   : > { %14567 = vmatprep.subr.mxu1 %v16230_v6 }
0x1358   : > { %14568 = vmatpush3.msra.mxu1 %v16998_v4 }
0x1359   : > { %14569 = vmatprep.subr.mxu1 %v16230_v6 }
0x135a   : > { %14570 = vmatpush3.msra.mxu1 %v17002_v43 }
0x135b   : > { %14572 = vmatmul.mubr.msk.f32.vlgmr.msra.gmra.mxu1 %vm870_vm1, %v17006_v5  ;;  %14574 = vmatprep.subr.mxu1 %v16230_v6 }
0x135c   : > { %14582 = vmatprep.mubr.msk.f32.mxu1 %vm16231_vm2, %v16230_v6 }
0x140b   : > { %v3525_v61 = vpop.f32.mrf.mxu1 }
0x140c   : > { %v3529_v59 = vadd.f32 %v3525_v61, %v3288_v51 }
0x140d   : > { %v14521_v60 = vpop.f32.mrf.mxu1 }
0x140e   : > { %14531 = vmatmul.mubr.msk.f32.vlgmr.msra.gmra.mxu0 %vm870_vm1, %v3529_v59  ;;  %v17131_v60 = vld [vmem:[#allocation13 + $0x28] sm:$0xff] }
0x140f   : > { %14545 = vmatpush3.msra.mxu0 %v16812_v9  ;;  %14560 = vmatprep.mubr.msk.f32.mxu0 %vm16231_vm2, %v16230_v6  ;;  %v17028_v9 = vld [vmem:[#allocation5 + $0x1] ss:$0 sm:$0xff] }
0x1410   : > { %14546 = vmatprep.subr.mxu0 %v16230_v6 }
0x1411   : > { %14547 = vmatpush3.msra.mxu0 %v16819_v46 }
0x1412   : > { %14548 = vmatprep.subr.mxu0 %v16230_v6 }
0x1413   : > { %v3669_v21 = vpop.f32.mrf.mxu1  ;;  %14549 = vmatpush3.msra.mxu0 %v16821_v30 }
0x1414   : > { %14550 = vmatprep.subr.mxu0 %v16230_v6 }
0x1415   : > { %v14543_v3 = vpop.f32.mrf.mxu1  ;;  %14551 = vmatpush3.msra.mxu0 %v16825_v47 }
0x1416   : > { %14552 = vmatprep.subr.mxu0 %v16230_v6 }
0x1417   : > { %14553 = vmatpush3.msra.mxu0 %v16832_v50  ;;  %v17041_v50 = vld [vmem:[#allocation7 + $0x38] sm:$0xff] }
0x1418   : > { %14554 = vmatprep.subr.mxu0 %v16230_v6  ;;  %14575 = vmatpush3.msra.mxu1 %v17041_v50 }
0x1419   : > { %14555 = vmatpush3.msra.mxu0 %v16852_v54  ;;  %14576 = vmatprep.subr.mxu1 %v16230_v6 }
0x141a   : > { %14556 = vmatprep.subr.mxu0 %v16230_v6 }
0x141b   : > { %v3872_v46 = vpop.f32.mrf.mxu1  ;;  %14557 = vmatpush3.msra.mxu0 %v16856_v27 }
0x141c   : > { %v17034_v30 = vadd.f32 %v17028_v9, %v3872_v46  ;;  %14558 = vmatprep.subr.mxu0 %v16230_v6 }
0x141d   : > { %v14573_v47 = vpop.f32.mrf.mxu1  ;;  %14559 = vmatpush3.msra.mxu0 %v16860_v55  ;;  %v17053_v55 = vld [vmem:[#allocation7 + $0x30] sm:$0xff] }
0x141e   : > { %4195 = vrot.lane.b32.xlu0 %v17034_v30, %s16232_s15  ;;  %14585 = vmatprep.subr.mxu0 %v16230_v6  ;;  %v17135_v47 = vld [vmem:[#allocation13 + $0x20] sm:$0xff] }
0x141f   : > { %14577 = vmatpush3.msra.mxu1 %v17053_v55 }
0x1420   : > { %14578 = vmatprep.subr.mxu1 %v16230_v6 }
0x1490   : > { %v4196_v37 = vpop.permute.xlu0 %4195 }
0x14ce   : > { %v3599_v54 = vpop.f32.mrf.mxu0 }
0x14cf   : > { %v3670_v27 = vadd.f32 %v3669_v21, %v3599_v54 }
0x14d0   : > { %v14532_v62 = vpop.f32.mrf.mxu0 }
0x14d1   : > { %v3673_v36 = vadd.f32 %v16864_v56, %v3670_v27  ;;  %v17061_v56 = vld [vmem:[#allocation7 + $0x28] sm:$0xff] }
0x14d2   : > { %14579 = vmatpush3.msra.mxu1 %v17061_v56 }
0x14d3   : > { %v3674_v22 = vmax.f32 %v3673_v36, 0.0  ;;  %14580 = vmatprep.subr.mxu1 %v16230_v6 }
0x14d4   : > { %14581 = vmatpush3.msra.mxu1 %v17067_v63 }
0x14d5   : > { %14561 = vmatmul.mubr.msk.f32.vlgmr.msra.gmra.mxu0 %vm2280_vm9, %v3674_v22  ;;  %14596 = vmatprep.subr.mxu1 %v16230_v6 }
0x14d6   : > { %14586 = vmatpush3.msra.mxu0 %v17046_v23  ;;  %14593 = vmatprep.mubr.msk.f32.mxu0 %vm16231_vm2, %v16230_v6 }
0x14d7   : > { %14587 = vmatprep.subr.mxu0 %v16230_v6 }
0x14d8   : > { %14588 = vmatpush3.msra.mxu0 %v17055_v24 }
0x14d9   : > { %14589 = vmatprep.subr.mxu0 %v16230_v6 }
0x14da   : > { %14590 = vmatpush3.msra.mxu0 %v17063_v25 }
0x14db   : > { %14591 = vmatprep.subr.mxu0 %v16230_v6 }
0x14dc   : > { %14592 = vmatpush3.msra.mxu0 %v17069_v0 }
0x14dd   : > { %14606 = vmatprep.subr.mxu0 %v16230_v6 }
0x1595   : > { %v3744_v31 = vpop.f32.mrf.mxu0 }
0x1596   : > { %v3745_v2 = vadd.f32 %v16984_v38, %v3744_v31 }
0x1597   : > { %v14562_v13 = vpop.f32.mrf.mxu0 }
0x1598   : > { %v17079_v15 = vadd.f32 %v3745_v2, %v16781_v45 }
0x159a   : > { %14583 = vmatmul.mubr.msk.f32.vlgmr.msra.gmra.mxu1 %vm870_vm1, %v17079_v15  ;;  %14594 = vmatmul.mubr.msk.f32.vlgmr.msra.gmra.mxu0 %vm870_vm1, %v17079_v15 }
0x159b   : > { %14598 = vmatprep.mubr.msk.f32.mxu1 %vm16231_vm2, %v16230_v6  ;;  %14608 = vmatprep.mubr.msk.f32.mxu0 %vm16231_vm2, %v16230_v6 }
0x165a   : > { %v3951_v17 = vpop.f32.mrf.mxu1  ;;  %v4027_v20 = vpop.f32.mrf.mxu0 }
0x165b   : > { %v17092_v26 = vadd.f32 %v17089_v16, %v3951_v17  ;;  %v17102_v33 = vadd.f32 %v17094_v49, %v4027_v20 }
0x165c   : > { %v14584_v29 = vpop.f32.mrf.mxu1  ;;  %v14595_v32 = vpop.f32.mrf.mxu0 }
0x165d   : > { %4197 = vrot.lane.b32.xlu1 %v17092_v26, %s16232_s15  ;;  %14597 = vmatpush3.xpose.msk.msra.mxu1 %vm1168_vm5, %v17092_v26 }
0x165e   : > { %14601 = vmatprep.subr.mxu1 %v16230_v6 }
0x1660   : > { %14599 = vmatmul.mubr.msk.f32.vlgmr.msra.gmra.mxu1 %vm1168_vm5, %v17034_v30 }
0x1661   : > { %14602 = vmatpush3.msk.msra.mxu1 %vm2661_vm11, %v17102_v33  ;;  %14603 = vmatprep.mubr.msk.f32.mxu1 %vm16231_vm2, %v16230_v6 }
0x1662   : > { %14611 = vmatprep.subr.mxu1 %v16230_v6 }
0x16cf   : > { %v4198_v35 = vpop.permute.xlu1 %4197 }
0x16d0   : > { %14607 = vmatpush3.xpose.msk.msra.mxu0 %vm1168_vm5, %v4198_v35 }
0x16d1   : > { %14616 = vmatprep.subr.mxu0 %v16230_v6 }
0x16d3   : > { %14609 = vmatmul.mubr.msk.f32.vlgmr.msra.gmra.mxu0 %vm1168_vm5, %v4196_v37 }
0x16d4   : > { %14618 = vmatprep.mubr.msk.f32.mxu0 %vm16231_vm2, %v16230_v6  ;;  %14617 = vmatpush3.msra.mxu0 %v17131_v60 }
0x16d5   : > { %14626 = vmatprep.subr.mxu0 %v16230_v6 }
0x1720   : > { %v4103_v34 = vpop.f32.mrf.mxu1 }
0x1721   : > { %v4107_v39 = vmul.f32 0.35355338, %v4103_v34 }
0x1722   : > { %v14600_v41 = vpop.f32.mrf.mxu1 }
0x1723   : > { %v4108_v14 = vsel %vm2657_vm12, %v4107_v39, -inf }
0x1724   : > { %4109 = vmax.xlane.f32.xlu1 %v4108_v14 }
0x1793   : > { %v4269_v44 = vpop.f32.mrf.mxu0 }
0x1794   : > { %v4273_v7 = vmul.f32 0.35355338, %v4269_v44 }
0x1795   : > { %v14610_v8 = vpop.f32.mrf.mxu0 }
0x1796   : > { %v4274_v10 = vsel %vm2657_vm12, %v4273_v7, -inf }
0x1797   : > { %4275 = vmax.xlane.f32.xlu0 %v4274_v10 }
0x17ad   : > { %v4110_v11 = vpop.xlane.xlu1 %4109 }
0x17ae   : > { %v4111_v12 = vsub.f32 %v4107_v39, %v4110_v11 }
0x17b0   : > { %v4112_v48 = vmul.f32 1.442695, %v4111_v12 }
0x17b2   : > { %15601 = vpow2.f32 %v4112_v48 }
0x17bf   : > { %v15602_v51 = vpop.eup %15601 }
0x17c0   : > { %v4114_v52 = vsel %vm2657_vm12, %v15602_v51, 0.0 }
0x17c1   : > { %4115 = vadd.xlane.f32.xlu0 %v4114_v52 }
0x17d7   : > { %4285 = vrot.lane.b32.xlu0 %v17102_v33, %s16232_s15 }
0x1820   : > { %v4276_v53 = vpop.xlane.xlu0 %4275 }
0x1821   : > { %v4277_v28 = vsub.f32 %v4273_v7, %v4276_v53 }
0x1823   : > { %v4278_v57 = vmul.f32 1.442695, %v4277_v28 }
0x1825   : > { %15603 = vpow2.f32 %v4278_v57 }
0x1832   : > { %v15604_v58 = vpop.eup %15603 }
0x1833   : > { %v4280_v18 = vsel %vm2657_vm12, %v15604_v58, 0.0 }
0x1834   : > { %4281 = vadd.xlane.f32.xlu1 %v4280_v18 }
0x1845   : > { %4510 = vrot.lane.b32.xlu1 %v17092_v26, %s16233_s1 }
0x1849   : > { %4508 = vrot.lane.b32.xlu1 %v17034_v30, %s16233_s1 }
0x184a   : > { %v4116_v38 = vpop.xlane.xlu0 %4115 }
0x184b   : > { %15605 = vrcp.f32 %v4116_v38 }
0x184e   : > { %v4286_v59 = vpop.permute.xlu0 %4285 }
0x1858   : > { %v15606_v42 = vpop.eup %15605 }
0x1859   : > { %v4118_v61 = vmul.f32 %v15606_v42, %v15602_v51 }
0x185b   : > { %14604 = vmatmul.mubr.msk.f32.vlgmr.msra.gmra.mxu1 %vm2657_vm12, %v4118_v61 }
0x185c   : > { %14612 = vmatpush3.msk.msra.mxu1 %vm2661_vm11, %v4286_v59  ;;  %14613 = vmatprep.mubr.msk.f32.mxu1 %vm16231_vm2, %v16230_v6  ;;  %v17182_v59 = vld [vmem:[#allocation13 + $0x38] sm:$0xff] }
0x185d   : > { %14621 = vmatprep.subr.mxu1 %v16230_v6 }
0x18bd   : > { %v4282_v21 = vpop.xlane.xlu1 %4281 }
0x18be   : > { %15607 = vrcp.f32 %v4282_v21 }
0x18c1   : > { %v4511_v62 = vpop.permute.xlu1 %4510 }
0x18c5   : > { %v4509_v31 = vpop.permute.xlu1 %4508 }
0x18cb   : > { %v15608_v3 = vpop.eup %15607 }
0x18cc   : > { %v4284_v46 = vmul.f32 %v15608_v3, %v15604_v58 }
0x18ce   : > { %14614 = vmatmul.mubr.msk.f32.vlgmr.msra.gmra.mxu1 %vm2657_vm12, %v4284_v46 }
0x18cf   : > { %14622 = vmatpush3.msra.mxu1 %v17135_v47  ;;  %14623 = vmatprep.mubr.msk.f32.mxu1 %vm16231_vm2, %v16230_v6 }
0x18d0   : > { %14631 = vmatprep.subr.mxu1 %v16230_v6 }
0x191b   : > { %v4191_v54 = vpop.f32.mrf.mxu1 }
0x191c   : > { %14624 = vmatmul.mubr.msk.f32.vlgmr.msra.gmra.mxu1 %vm1168_vm5, %v4191_v54 }
0x191d   : > { %v14605_v27 = vpop.f32.mrf.mxu1  ;;  %14633 = vmatprep.mubr.msk.f32.mxu1 %vm16231_vm2, %v16230_v6 }
0x198e   : > { %v4358_v36 = vpop.f32.mrf.mxu1 }
0x198f   : > { %14619 = vmatmul.mubr.msk.f32.vlgmr.msra.gmra.mxu0 %vm1168_vm5, %v4358_v36 }
0x1990   : > { %14627 = vmatpush3.xpose.msk.msra.mxu0 %vm1168_vm5, %v4511_v62  ;;  %v14615_v22 = vpop.f32.mrf.mxu1  ;;  %14628 = vmatprep.mubr.msk.f32.mxu0 %vm16231_vm2, %v16230_v6 }
0x1991   : > { %14636 = vmatprep.subr.mxu0 %v16230_v6 }
0x1993   : > { %14629 = vmatmul.mubr.msk.f32.vlgmr.msra.gmra.mxu0 %vm1168_vm5, %v4509_v31  ;;  %v17193_v31 = vld [vmem:[#allocation14 + $0x70] sm:$0xff] }
0x1994   : > { %14638 = vmatprep.mubr.msk.f32.mxu0 %vm16231_vm2, %v16230_v6 }
0x19dc   : > { %v4504_v2 = vpop.f32.mrf.mxu1 }
0x19de   : > { %v14625_v13 = vpop.f32.mrf.mxu1 }
0x1a4f   : > { %v4431_v17 = vpop.f32.mrf.mxu0 }
0x1a50   : > { %v4505_v21 = vadd.f32 %v4504_v2, %v4431_v17  ;;  %v17199_v2 = vld [vmem:[#allocation14 + $0x58] sm:$0xff]  ;;  %v17202_v17 = vld [vmem:[#allocation14 + $0x50] sm:$0xff] }
0x1a51   : > { %v14620_v20 = vpop.f32.mrf.mxu0 }
0x1a53   : > { %v4582_v29 = vpop.f32.mrf.mxu0 }
0x1a54   : > { %v4586_v32 = vmul.f32 0.35355338, %v4582_v29  ;;  %v17208_v29 = vld [vmem:[#allocation14 + $0x48] sm:$0xff] }
0x1a55   : > { %v14630_v35 = vpop.f32.mrf.mxu0 }
0x1a56   : > { %v4587_v37 = vsel %vm2657_vm12, %v4586_v32, -inf  ;;  %v17257_v35 = vld [vmem:[#allocation17 + $0x78] sm:$0xff] }
0x1a57   : > { %4588 = vmax.xlane.f32.xlu0 %v4587_v37  ;;  %v17259_v37 = vld [vmem:[#allocation17 + $0x70] sm:$0xff] }
0x1a6d   : > { %4598 = vrot.lane.b32.xlu0 %v17102_v33, %s16233_s1 }
0x1a71   : > { %4749 = vrot.lane.b32.xlu0 %v17034_v30, %s16234_s29 }
0x1ae0   : > { %v4589_v34 = vpop.xlane.xlu0 %4588 }
0x1ae1   : > { %v4590_v39 = vsub.f32 %v4586_v32, %v4589_v34  ;;  %v17212_v32 = vld [vmem:[#allocation14 + $0x40] sm:$0xff] }
0x1ae3   : > { %v4591_v41 = vmul.f32 1.442695, %v4590_v39  ;;  %v17263_v39 = vld [vmem:[#allocation17 + $0x68] sm:$0xff] }
0x1ae4   : > { %v4599_v14 = vpop.permute.xlu0 %4598 }
0x1ae5   : > { %15609 = vpow2.f32 %v4591_v41  ;;  %14632 = vmatpush3.msk.msra.mxu1 %vm2661_vm11, %v4599_v14  ;;  %v17267_v41 = vld [vmem:[#allocation17 + $0x60] sm:$0xff]  ;;  %v17271_v14 = vld [vmem:[#allocation17 + $0x58] sm:$0xff] }
0x1ae6   : > { %14641 = vmatprep.subr.mxu1 %v16230_v6 }
0x1ae8   : > { %v4750_v12 = vpop.permute.xlu0 %4749 }
0x1af2   : > { %v15610_v44 = vpop.eup %15609 }
0x1af3   : > { %v4593_v7 = vsel %vm2657_vm12, %v15610_v44, 0.0 }
0x1af4   : > { %4594 = vadd.xlane.f32.xlu1 %v4593_v7 }
0x1b05   : > { %4751 = vrot.lane.b32.xlu1 %v17092_v26, %s16234_s29  ;;  %v17171_v26 = vld [vmem:[#allocation13 + $0x30] sm:$0xff] }
0x1b06   : > { %14637 = vmatpush3.msra.mxu0 %v17171_v26 }
0x1b07   : > { %14646 = vmatprep.subr.mxu0 %v16230_v6 }
0x1b7d   : > { %v4595_v8 = vpop.xlane.xlu1 %4594 }
0x1b7e   : > { %15611 = vrcp.f32 %v4595_v8 }
0x1b81   : > { %v4752_v11 = vpop.permute.xlu1 %4751 }
0x1b8b   : > { %v15612_v10 = vpop.eup %15611 }
0x1b8c   : > { %v4597_v30 = vmul.f32 %v15612_v10, %v15610_v44 }
0x1b8e   : > { %14634 = vmatmul.mubr.msk.f32.vlgmr.msra.gmra.mxu1 %vm2657_vm12, %v4597_v30  ;;  %v17302_v30 = vld [vmem:[#allocation17 + $0x40] sm:$0xff] }
0x1b8f   : > { %14642 = vmatpush3.xpose.msk.msra.mxu1 %vm1168_vm5, %v4752_v11  ;;  %14643 = vmatprep.mubr.msk.f32.mxu1 %vm16231_vm2, %v16230_v6  ;;  %v17306_v11 = vld [vmem:[#allocation16 + $0x1] ss:$0 sm:$0xff] }
0x1b90   : > { %14651 = vmatprep.subr.mxu1 %v16230_v6 }
0x1b92   : > { %14644 = vmatmul.mubr.msk.f32.vlgmr.msra.gmra.mxu1 %vm1168_vm5, %v4750_v12 }
0x1b93   : > { %14653 = vmatprep.mubr.msk.f32.mxu1 %vm16231_vm2, %v16230_v6  ;;  %14652 = vmatpush3.msra.mxu1 %v17182_v59 }
0x1b94   : > { %14667 = vmatprep.subr.mxu1 %v16230_v6 }
0x1c4e   : > { %v4671_v48 = vpop.f32.mrf.mxu1 }
0x1c4f   : > { %14639 = vmatmul.mubr.msk.f32.vlgmr.msra.gmra.mxu0 %vm1168_vm5, %v4671_v48 }
0x1c50   : > { %v14635_v51 = vpop.f32.mrf.mxu1  ;;  %14648 = vmatprep.mubr.msk.f32.mxu0 %vm16231_vm2, %v16230_v6 }
0x1c52   : > { %v4823_v52 = vpop.f32.mrf.mxu1 }
0x1c53   : > { %v4827_v53 = vmul.f32 0.35355338, %v4823_v52 }
0x1c54   : > { %v14645_v28 = vpop.f32.mrf.mxu1 }
0x1c55   : > { %v4828_v57 = vsel %vm2657_vm12, %v4827_v53, -inf }
0x1c56   : > { %4829 = vmax.xlane.f32.xlu1 %v4828_v57 }
0x1cdf   : > { %v4830_v58 = vpop.xlane.xlu1 %4829 }
0x1ce0   : > { %v4831_v18 = vsub.f32 %v4827_v53, %v4830_v58 }
0x1ce2   : > { %v4832_v38 = vmul.f32 1.442695, %v4831_v18 }
0x1ce4   : > { %15613 = vpow2.f32 %v4832_v38 }
0x1cf1   : > { %v15614_v42 = vpop.eup %15613 }
0x1cf2   : > { %v4834_v61 = vsel %vm2657_vm12, %v15614_v42, 0.0 }
0x1cf3   : > { %4835 = vadd.xlane.f32.xlu0 %v4834_v61 }
0x1d09   : > { %4839 = vrot.lane.b32.xlu0 %v17102_v33, %s16234_s29  ;;  %v17191_v33 = vld [vmem:[#allocation14 + $0x78] sm:$0xff] }
0x1d0f   : > { %v4744_v3 = vpop.f32.mrf.mxu0 }
0x1d10   : > { %v4748_v46 = vadd.f32 %v4744_v3, %v4505_v21 }
0x1d11   : > { %v14640_v54 = vpop.f32.mrf.mxu0 }
0x1d7c   : > { %v4836_v27 = vpop.xlane.xlu0 %4835 }
0x1d7d   : > { %15615 = vrcp.f32 %v4836_v27 }
0x1d80   : > { %v4840_v62 = vpop.permute.xlu0 %4839 }
0x1d81   : > { %14647 = vmatpush3.msk.msra.mxu0 %vm2661_vm11, %v4840_v62 }
0x1d82   : > { %14656 = vmatprep.subr.mxu0 %v16230_v6 }
0x1d8a   : > { %v15616_v36 = vpop.eup %15615 }
0x1d8b   : > { %v4838_v22 = vmul.f32 %v15616_v36, %v15614_v42 }
0x1d8d   : > { %14649 = vmatmul.mubr.msk.f32.vlgmr.msra.gmra.mxu0 %vm2657_vm12, %v4838_v22 }
0x1d8e   : > { %14664 = vmatprep.mubr.msk.f32.mxu0 %vm16231_vm2, %v16230_v6  ;;  %14657 = vmatpush3.msra.mxu0 %v17191_v33 }
0x1d8f   : > { %14658 = vmatprep.subr.mxu0 %v16230_v6 }
0x1d90   : > { %14659 = vmatpush3.msra.mxu0 %v17193_v31 }
0x1d91   : > { %14660 = vmatprep.subr.mxu0 %v16230_v6 }
0x1e4d   : > { %v4912_v13 = vpop.f32.mrf.mxu0 }
0x1e4e   : > { %14654 = vmatmul.mubr.msk.f32.vlgmr.msra.gmra.mxu1 %vm1168_vm5, %v4912_v13 }
0x1e4f   : > { %14668 = vmatpush3.msra.mxu1 %v17199_v2  ;;  %v14650_v20 = vpop.f32.mrf.mxu0  ;;  %14675 = vmatprep.mubr.msk.f32.mxu1 %vm16231_vm2, %v16230_v6 }
0x1e50   : > { %14669 = vmatprep.subr.mxu1 %v16230_v6 }
0x1e51   : > { %14670 = vmatpush3.msra.mxu1 %v17202_v17 }
0x1e52   : > { %14671 = vmatprep.subr.mxu1 %v16230_v6 }
0x1e53   : > { %14672 = vmatpush3.msra.mxu1 %v17208_v29 }
0x1e54   : > { %14673 = vmatprep.subr.mxu1 %v16230_v6 }
0x1e55   : > { %14674 = vmatpush3.msra.mxu1 %v17212_v32 }
0x1e56   : > { %14676 = vmatmul.mubr.msk.f32.vlgmr.msra.gmra.mxu1 %vm870_vm1, %v17006_v5  ;;  %14697 = vmatprep.subr.mxu1 %v16230_v6 }
0x1e57   : > { %14698 = vmatpush3.msra.mxu1 %v16979_v19  ;;  %14705 = vmatprep.mubr.msk.f32.mxu1 %vm16231_vm2, %v16230_v6  ;;  %v17246_v19 = vld [vmem:[#allocation14 + $0x68] sm:$0xff] }
0x1e58   : > { %14699 = vmatprep.subr.mxu1 %v16230_v6  ;;  %14661 = vmatpush3.msra.mxu0 %v17246_v19 }
0x1e59   : > { %14700 = vmatpush3.msra.mxu1 %v16990_v40  ;;  %14662 = vmatprep.subr.mxu0 %v16230_v6  ;;  %v17250_v40 = vld [vmem:[#allocation14 + $0x60] sm:$0xff] }
0x1e5a   : > { %14701 = vmatprep.subr.mxu1 %v16230_v6  ;;  %14663 = vmatpush3.msra.mxu0 %v17250_v40 }
0x1e5b   : > { %14702 = vmatpush3.msra.mxu1 %v16998_v4  ;;  %14678 = vmatprep.subr.mxu0 %v16230_v6 }
0x1e5c   : > { %14703 = vmatprep.subr.mxu1 %v16230_v6 }
0x1e5d   : > { %14704 = vmatpush3.msra.mxu1 %v17002_v43 }
0x1e5e   : > { %14706 = vmatmul.mubr.msk.f32.vlgmr.msra.gmra.mxu1 %vm870_vm1, %v17079_v15  ;;  %14708 = vmatprep.subr.mxu1 %v16230_v6 }
0x1e5f   : > { %14709 = vmatpush3.msra.mxu1 %v17041_v50  ;;  %14716 = vmatprep.mubr.msk.f32.mxu1 %vm16231_vm2, %v16230_v6 }
0x1e60   : > { %14710 = vmatprep.subr.mxu1 %v16230_v6 }
0x1e61   : > { %14711 = vmatpush3.msra.mxu1 %v17053_v55 }
0x1e62   : > { %14712 = vmatprep.subr.mxu1 %v16230_v6 }
0x1e63   : > { %14713 = vmatpush3.msra.mxu1 %v17061_v56 }
0x1e64   : > { %14714 = vmatprep.subr.mxu1 %v16230_v6 }
0x1e65   : > { %14715 = vmatpush3.msra.mxu1 %v17067_v63 }
0x1e66   : > { %14717 = vmatmul.mubr.msk.f32.vlgmr.msra.gmra.mxu1 %vm870_vm1, %v17006_v5  ;;  %14730 = vmatprep.subr.mxu1 %v16230_v6 }
0x1e67   : > { %14732 = vmatprep.mubr.msk.f32.mxu1 %vm16231_vm2, %v16230_v6 }
0x1f0e   : > { %v4985_v4 = vpop.f32.mrf.mxu1 }
0x1f0f   : > { %v4989_v43 = vadd.f32 %v4985_v4, %v4748_v46 }
0x1f10   : > { %v14655_v50 = vpop.f32.mrf.mxu1 }
0x1f11   : > { %14665 = vmatmul.mubr.msk.f32.vlgmr.msra.gmra.mxu0 %vm870_vm1, %v4989_v43 }
0x1f12   : > { %14694 = vmatprep.mubr.msk.f32.mxu0 %vm16231_vm2, %v16230_v6  ;;  %14679 = vmatpush3.msra.mxu0 %v17257_v35 }
0x1f13   : > { %14680 = vmatprep.subr.mxu0 %v16230_v6 }
0x1f14   : > { %14681 = vmatpush3.msra.mxu0 %v17259_v37 }
0x1f15   : > { %14682 = vmatprep.subr.mxu0 %v16230_v6 }
0x1f16   : > { %v5129_v55 = vpop.f32.mrf.mxu1  ;;  %14683 = vmatpush3.msra.mxu0 %v17263_v39 }
0x1f17   : > { %14684 = vmatprep.subr.mxu0 %v16230_v6 }
0x1f18   : > { %v14677_v56 = vpop.f32.mrf.mxu1  ;;  %14685 = vmatpush3.msra.mxu0 %v17267_v41 }
0x1f19   : > { %14686 = vmatprep.subr.mxu0 %v16230_v6 }
0x1f1a   : > { %14687 = vmatpush3.msra.mxu0 %v17271_v14 }
0x1f1b   : > { %14688 = vmatprep.subr.mxu0 %v16230_v6 }
0x1f1e   : > { %v5287_v63 = vpop.f32.mrf.mxu1 }
0x1f1f   : > { %v17284_v10 = vadd.f32 %v17028_v9, %v5287_v63  ;;  %v17298_v9 = vld [vmem:[#allocation17 + $0x48] sm:$0xff] }
0x1f20   : > { %v14707_v34 = vpop.f32.mrf.mxu1 }
0x1f26   : > { %v5357_v44 = vpop.f32.mrf.mxu1 }
0x1f27   : > { %v17275_v7 = vadd.f32 %v17089_v16, %v5357_v44  ;;  %v17294_v16 = vld [vmem:[#allocation17 + $0x50] sm:$0xff] }
0x1f28   : > { %v14718_v8 = vpop.f32.mrf.mxu1  ;;  %14689 = vmatpush3.msra.mxu0 %v17294_v16 }
0x1f29   : > { %5595 = vrot.lane.b32.xlu1 %v17275_v7, %s16232_s15  ;;  %14731 = vmatpush3.xpose.msk.msra.mxu1 %vm1168_vm5, %v17275_v7 }
0x1f2a   : > { %14735 = vmatprep.subr.mxu1 %v16230_v6  ;;  %14690 = vmatprep.subr.mxu0 %v16230_v6 }
0x1f2b   : > { %14691 = vmatpush3.msra.mxu0 %v17298_v9 }
0x1f2c   : > { %14733 = vmatmul.mubr.msk.f32.vlgmr.msra.gmra.mxu1 %vm1168_vm5, %v17284_v10  ;;  %14692 = vmatprep.subr.mxu0 %v16230_v6 }
0x1f2d   : > { %5593 = vrot.lane.b32.xlu1 %v17284_v10, %s16232_s15  ;;  %14737 = vmatprep.mubr.msk.f32.mxu1 %vm16231_vm2, %v16230_v6 }
0x1f2e   : > { %14693 = vmatpush3.msra.mxu0 %v17302_v30 }
0x1f2f   : > { %14719 = vmatprep.subr.mxu0 %v16230_v6 }
0x1f9b   : > { %v5596_v28 = vpop.permute.xlu1 %5595 }
0x1fd1   : > { %v5059_v12 = vpop.f32.mrf.mxu0 }
0x1fd2   : > { %v5130_v48 = vadd.f32 %v5129_v55, %v5059_v12 }
0x1fd3   : > { %v14666_v51 = vpop.f32.mrf.mxu0 }
0x1fd4   : > { %v5139_v52 = vadd.f32 %v17306_v11, %v5130_v48 }
0x1fd6   : > { %v5140_v53 = vmax.f32 %v5139_v52, 0.0 }
0x1fd8   : > { %14695 = vmatmul.mubr.msk.f32.vlgmr.msra.gmra.mxu0 %vm2280_vm9, %v5140_v53 }
0x1fd9   : > { %14720 = vmatpush3.msra.mxu0 %v17046_v23  ;;  %14727 = vmatprep.mubr.msk.f32.mxu0 %vm16231_vm2, %v16230_v6  ;;  %v5594_v23 = vpop.permute.xlu1 %5593 }
0x1fda   : > { %14721 = vmatprep.subr.mxu0 %v16230_v6 }
0x1fdb   : > { %14722 = vmatpush3.msra.mxu0 %v17055_v24 }
0x1fdc   : > { %14723 = vmatprep.subr.mxu0 %v16230_v6 }
0x1fdd   : > { %14724 = vmatpush3.msra.mxu0 %v17063_v25 }
0x1fde   : > { %14725 = vmatprep.subr.mxu0 %v16230_v6 }
0x1fdf   : > { %14726 = vmatpush3.msra.mxu0 %v17069_v0 }
0x1fe0   : > { %14728 = vmatmul.mubr.msk.f32.vlgmr.msra.gmra.mxu0 %vm870_vm1, %v17006_v5  ;;  %14740 = vmatprep.subr.mxu0 %v16230_v6 }
0x1fe1   : > { %14741 = vmatpush3.xpose.msk.msra.mxu0 %vm1168_vm5, %v5596_v28  ;;  %14742 = vmatprep.mubr.msk.f32.mxu0 %vm16231_vm2, %v16230_v6 }
0x1fe2   : > { %14750 = vmatprep.subr.mxu0 %v16230_v6 }
0x1fe4   : > { %14743 = vmatmul.mubr.msk.f32.vlgmr.msra.gmra.mxu0 %vm1168_vm5, %v5594_v23 }
0x1fe5   : > { %14751 = vmatpush3.msra.mxu0 %v17131_v60  ;;  %14752 = vmatprep.mubr.msk.f32.mxu0 %vm16231_vm2, %v16230_v6 }
0x1fe6   : > { %14760 = vmatprep.subr.mxu0 %v16230_v6 }
0x1fec   : > { %v5503_v24 = vpop.f32.mrf.mxu1 }
0x1fed   : > { %v5507_v25 = vmul.f32 0.35355338, %v5503_v24 }
0x1fee   : > { %v14734_v0 = vpop.f32.mrf.mxu1 }
0x1fef   : > { %v5509_v57 = vsel %vm5508_vm13, %v5507_v25, -inf }
0x1ff0   : > { %5510 = vmax.xlane.f32.xlu0 %v5509_v57 }
0x2079   : > { %v5511_v58 = vpop.xlane.xlu0 %5510 }
0x207a   : > { %v5512_v18 = vsub.f32 %v5507_v25, %v5511_v58 }
0x207c   : > { %v5513_v38 = vmul.f32 1.442695, %v5512_v18 }
0x207e   : > { %15617 = vpow2.f32 %v5513_v38 }
0x208b   : > { %v15618_v42 = vpop.eup %15617 }
0x208c   : > { %v5515_v61 = vsel %vm5508_vm13, %v15618_v42, 0.0 }
0x208d   : > { %5516 = vadd.xlane.f32.xlu0 %v5515_v61 }
0x2098   : > { %v17333_v60 = vpop.f32.mrf.mxu0 }
0x209a   : > { %v14696_v21 = vpop.f32.mrf.mxu0 }
0x20a0   : > { %v5427_v3 = vpop.f32.mrf.mxu0 }
0x20a1   : > { %v17336_v46 = vadd.f32 %v17094_v49, %v5427_v3 }
0x20a2   : > { %v14729_v54 = vpop.f32.mrf.mxu0 }
0x20a3   : > { %14736 = vmatpush3.msra.mxu1 %v17336_v46 }
0x20a4   : > { %v5667_v27 = vpop.f32.mrf.mxu0  ;;  %14745 = vmatprep.subr.mxu1 %v16230_v6 }
0x20a5   : > { %v5671_v62 = vmul.f32 0.35355338, %v5667_v27 }
0x20a6   : > { %v14744_v36 = vpop.f32.mrf.mxu0 }
0x20a7   : > { %v5672_v22 = vsel %vm5508_vm13, %v5671_v62, -inf }
0x20a8   : > { %5673 = vmax.xlane.f32.xlu1 %v5672_v22 }
0x20b9   : > { %5684 = vrot.lane.b32.xlu1 %v17336_v46, %s16232_s15 }
0x20bd   : > { %5906 = vrot.lane.b32.xlu1 %v17284_v10, %s16233_s1 }
0x2116   : > { %v5517_v13 = vpop.xlane.xlu0 %5516 }
0x2117   : > { %15619 = vrcp.f32 %v5517_v13 }
0x2124   : > { %v15620_v49 = vpop.eup %15619 }
0x2125   : > { %v5519_v20 = vmul.f32 %v15620_v49, %v15618_v42 }
0x2127   : > { %14738 = vmatmul.mubr.msk.f32.vlgmr.msra.gmra.mxu1 %vm1168_vm5, %v5519_v20 }
0x2128   : > { %14747 = vmatprep.mubr.msk.f32.mxu1 %vm16231_vm2, %v16230_v6 }
0x2131   : > { %v5674_v4 = vpop.xlane.xlu1 %5673 }
0x2132   : > { %v5675_v43 = vsub.f32 %v5671_v62, %v5674_v4 }
0x2134   : > { %v5676_v50 = vmul.f32 1.442695, %v5675_v43 }
0x2135   : > { %v5685_v55 = vpop.permute.xlu1 %5684 }
0x2136   : > { %15621 = vpow2.f32 %v5676_v50  ;;  %14746 = vmatpush3.msra.mxu1 %v5685_v55 }
0x2137   : > { %14755 = vmatprep.subr.mxu1 %v16230_v6 }
0x2143   : > { %v15622_v56 = vpop.eup %15621 }
0x2144   : > { %v5678_v63 = vsel %vm5508_vm13, %v15622_v56, 0.0 }
0x2145   : > { %5679 = vadd.xlane.f32.xlu0 %v5678_v63 }
0x215b   : > { %5908 = vrot.lane.b32.xlu0 %v17275_v7, %s16233_s1 }
0x21ce   : > { %v5680_v34 = vpop.xlane.xlu0 %5679 }
0x21cf   : > { %15623 = vrcp.f32 %v5680_v34 }
0x21d2   : > { %v5909_v52 = vpop.permute.xlu0 %5908 }
0x21dc   : > { %v15624_v44 = vpop.eup %15623 }
0x21dd   : > { %v5682_v8 = vmul.f32 %v15624_v44, %v15622_v56 }
0x21df   : > { %14748 = vmatmul.mubr.msk.f32.vlgmr.msra.gmra.mxu1 %vm1168_vm5, %v5682_v8 }
0x21e0   : > { %14756 = vmatpush3.msra.mxu1 %v17135_v47  ;;  %14757 = vmatprep.mubr.msk.f32.mxu1 %vm16231_vm2, %v16230_v6  ;;  %v5907_v47 = vpop.permute.xlu1 %5906 }
0x21e1   : > { %14765 = vmatprep.subr.mxu1 %v16230_v6 }
0x21e7   : > { %v5589_v12 = vpop.f32.mrf.mxu1 }
0x21e8   : > { %14758 = vmatmul.mubr.msk.f32.vlgmr.msra.gmra.mxu1 %vm1168_vm5, %v5589_v12 }
0x21e9   : > { %v14739_v48 = vpop.f32.mrf.mxu1  ;;  %14767 = vmatprep.mubr.msk.f32.mxu1 %vm16231_vm2, %v16230_v6 }
0x229f   : > { %v5756_v51 = vpop.f32.mrf.mxu1 }
0x22a0   : > { %14753 = vmatmul.mubr.msk.f32.vlgmr.msra.gmra.mxu0 %vm1168_vm5, %v5756_v51 }
0x22a1   : > { %14761 = vmatpush3.xpose.msk.msra.mxu0 %vm1168_vm5, %v5909_v52  ;;  %v14749_v53 = vpop.f32.mrf.mxu1  ;;  %14762 = vmatprep.mubr.msk.f32.mxu0 %vm16231_vm2, %v16230_v6 }
0x22a2   : > { %14770 = vmatprep.subr.mxu0 %v16230_v6  ;;  %v17447_v53 = vld [vmem:[#allocation7 + $0x58] sm:$0xff] }
0x22a4   : > { %14763 = vmatmul.mubr.msk.f32.vlgmr.msra.gmra.mxu0 %vm1168_vm5, %v5907_v47  ;;  %v17463_v47 = vld [vmem:[#allocation7 + $0x40] sm:$0xff] }
0x22a5   : > { %14771 = vmatpush3.msra.mxu0 %v17171_v26  ;;  %14772 = vmatprep.mubr.msk.f32.mxu0 %vm16231_vm2, %v16230_v6 }
0x22a6   : > { %14780 = vmatprep.subr.mxu0 %v16230_v6 }
0x22a8   : > { %v5902_v28 = vpop.f32.mrf.mxu1 }
0x22aa   : > { %v14759_v23 = vpop.f32.mrf.mxu1 }
0x2360   : > { %v5829_v24 = vpop.f32.mrf.mxu0 }
0x2361   : > { %v5903_v34 = vadd.f32 %v5902_v28, %v5829_v24 }
0x2362   : > { %v14754_v25 = vpop.f32.mrf.mxu0 }
0x2364   : > { %v5980_v0 = vpop.f32.mrf.mxu0 }
0x2365   : > { %v5984_v57 = vmul.f32 0.35355338, %v5980_v0 }
0x2366   : > { %v14764_v58 = vpop.f32.mrf.mxu0 }
0x2367   : > { %v5985_v18 = vsel %vm5508_vm13, %v5984_v57, -inf }
0x2368   : > { %5986 = vmax.xlane.f32.xlu1 %v5985_v18 }
0x2379   : > { %6148 = vrot.lane.b32.xlu1 %v17275_v7, %s16234_s29 }
0x237d   : > { %6146 = vrot.lane.b32.xlu1 %v17284_v10, %s16234_s29 }
0x23f1   : > { %v5987_v26 = vpop.xlane.xlu1 %5986 }
0x23f2   : > { %v5988_v38 = vsub.f32 %v5984_v57, %v5987_v26 }
0x23f4   : > { %v5989_v42 = vmul.f32 1.442695, %v5988_v38 }
0x23f5   : > { %v6149_v27 = vpop.permute.xlu1 %6148 }
0x23f6   : > { %15625 = vpow2.f32 %v5989_v42  ;;  %v17514_v42 = vld [vmem:[#allocation10 + $0x58] sm:$0xff] }
0x23f9   : > { %v6147_v62 = vpop.permute.xlu1 %6146 }
0x2403   : > { %v15626_v61 = vpop.eup %15625 }
0x2404   : > { %v5991_v21 = vsel %vm5508_vm13, %v15626_v61, 0.0 }
0x2405   : > { %5992 = vadd.xlane.f32.xlu0 %v5991_v21  ;;  %v17523_v21 = vld [vmem:[#allocation10 + $0x48] sm:$0xff] }
0x241b   : > { %5996 = vrot.lane.b32.xlu0 %v17336_v46, %s16233_s1 }
0x248e   : > { %v5993_v3 = vpop.xlane.xlu0 %5992 }
0x248f   : > { %15627 = vrcp.f32 %v5993_v3 }
0x2492   : > { %v5997_v54 = vpop.permute.xlu0 %5996 }
0x2493   : > { %14766 = vmatpush3.msra.mxu1 %v5997_v54 }
0x2494   : > { %14775 = vmatprep.subr.mxu1 %v16230_v6 }
0x249c   : > { %v15628_v7 = vpop.eup %15627 }
0x249d   : > { %v5995_v10 = vmul.f32 %v15628_v7, %v15626_v61  ;;  %v17517_v61 = vld [vmem:[#allocation10 + $0x50] sm:$0xff] }
0x249f   : > { %14768 = vmatmul.mubr.msk.f32.vlgmr.msra.gmra.mxu1 %vm1168_vm5, %v5995_v10 }
0x24a0   : > { %14776 = vmatpush3.xpose.msk.msra.mxu1 %vm1168_vm5, %v6149_v27  ;;  %14777 = vmatprep.mubr.msk.f32.mxu1 %vm16231_vm2, %v16230_v6 }
0x24a1   : > { %14785 = vmatprep.subr.mxu1 %v16230_v6 }
0x24a3   : > { %14778 = vmatmul.mubr.msk.f32.vlgmr.msra.gmra.mxu1 %vm1168_vm5, %v6147_v62 }
0x24a4   : > { %14786 = vmatpush3.msra.mxu1 %v17182_v59  ;;  %14787 = vmatprep.mubr.msk.f32.mxu1 %vm16231_vm2, %v16230_v6 }
0x24a5   : > { %14801 = vmatprep.subr.mxu1 %v16230_v6 }
0x255f   : > { %v6068_v36 = vpop.f32.mrf.mxu1 }
0x2560   : > { %14773 = vmatmul.mubr.msk.f32.vlgmr.msra.gmra.mxu0 %vm1168_vm5, %v6068_v36 }
0x2561   : > { %v14769_v22 = vpop.f32.mrf.mxu1  ;;  %14782 = vmatprep.mubr.msk.f32.mxu0 %vm16231_vm2, %v16230_v6 }
0x2563   : > { %v6220_v13 = vpop.f32.mrf.mxu1 }
0x2564   : > { %v6224_v49 = vmul.f32 0.35355338, %v6220_v13 }
0x2565   : > { %v14779_v20 = vpop.f32.mrf.mxu1 }
0x2566   : > { %v6225_v4 = vsel %vm5508_vm13, %v6224_v49, -inf }
0x2567   : > { %6226 = vmax.xlane.f32.xlu0 %v6225_v4  ;;  %v17545_v4 = vld [vmem:[#allocation11 + $0x2] ss:$0 sm:$0xff] }
0x257d   : > { %6236 = vrot.lane.b32.xlu0 %v17336_v46, %s16234_s29 }
0x25f0   : > { %v6227_v59 = vpop.xlane.xlu0 %6226 }
0x25f1   : > { %v6228_v43 = vsub.f32 %v6224_v49, %v6227_v59 }
0x25f3   : > { %v6229_v50 = vmul.f32 1.442695, %v6228_v43 }
0x25f4   : > { %v6237_v55 = vpop.permute.xlu0 %6236 }
0x25f5   : > { %15629 = vpow2.f32 %v6229_v50  ;;  %14781 = vmatpush3.msra.mxu0 %v6237_v55 }
0x25f6   : > { %14790 = vmatprep.subr.mxu0 %v16230_v6 }
0x2602   : > { %v15630_v56 = vpop.eup %15629 }
0x2603   : > { %v6231_v63 = vsel %vm5508_vm13, %v15630_v56, 0.0 }
0x2604   : > { %6232 = vadd.xlane.f32.xlu1 %v6231_v63 }
0x2620   : > { %v6141_v44 = vpop.f32.mrf.mxu0 }
0x2621   : > { %v6145_v8 = vadd.f32 %v6141_v44, %v5903_v34 }
0x2622   : > { %v14774_v12 = vpop.f32.mrf.mxu0 }
0x268d   : > { %v6233_v48 = vpop.xlane.xlu1 %6232 }
0x268e   : > { %15631 = vrcp.f32 %v6233_v48 }
0x269b   : > { %v15632_v51 = vpop.eup %15631 }
0x269c   : > { %v6235_v46 = vmul.f32 %v15632_v51, %v15630_v56 }
0x269e   : > { %14783 = vmatmul.mubr.msk.f32.vlgmr.msra.gmra.mxu0 %vm1168_vm5, %v6235_v46 }
0x269f   : > { %14791 = vmatpush3.msra.mxu0 %v17191_v33  ;;  %14798 = vmatprep.mubr.msk.f32.mxu0 %vm16231_vm2, %v16230_v6 }
0x26a0   : > { %14792 = vmatprep.subr.mxu0 %v16230_v6 }
0x26a1   : > { %14793 = vmatpush3.msra.mxu0 %v17193_v31  ;;  %v17417_v31 = vld [vmem:[#allocation3 + $0x58] sm:$0xff] }
0x26a2   : > { %14794 = vmatprep.subr.mxu0 %v16230_v6 }
0x26a3   : > { %14795 = vmatpush3.msra.mxu0 %v17246_v19  ;;  %v17436_v19 = vld [vmem:[#allocation3 + $0x48] sm:$0xff] }
0x26a4   : > { %14796 = vmatprep.subr.mxu0 %v16230_v6 }
0x26a5   : > { %14797 = vmatpush3.msra.mxu0 %v17250_v40 }
0x26a6   : > { %14812 = vmatprep.subr.mxu0 %v16230_v6 }
0x275e   : > { %v6308_v52 = vpop.f32.mrf.mxu0 }
0x275f   : > { %14788 = vmatmul.mubr.msk.f32.vlgmr.msra.gmra.mxu1 %vm1168_vm5, %v6308_v52 }
0x2760   : > { %14802 = vmatpush3.msra.mxu1 %v17199_v2  ;;  %v14784_v33 = vpop.f32.mrf.mxu0  ;;  %14809 = vmatprep.mubr.msk.f32.mxu1 %vm16231_vm2, %v16230_v6  ;;  %v17422_v2 = vld [vmem:[%s18555_s12 + $0x1] ss:$0 sm:$0xff] }
0x2761   : > { %14803 = vmatprep.subr.mxu1 %v16230_v6 }
0x2762   : > { %14804 = vmatpush3.msra.mxu1 %v17202_v17  ;;  %v17428_v17 = vld [vmem:[#allocation3 + $0x50] sm:$0xff] }
0x2763   : > { %14805 = vmatprep.subr.mxu1 %v16230_v6 }
0x2764   : > { %14806 = vmatpush3.msra.mxu1 %v17208_v29  ;;  %v5217_v29 = vadd.f32 %v17422_v2, %v17333_v60  ;;  %v17453_v60 = vld [vmem:[#allocation7 + $0x50] sm:$0xff] }
0x2765   : > { %14807 = vmatprep.subr.mxu1 %v16230_v6 }
0x2766   : > { %14808 = vmatpush3.msra.mxu1 %v17212_v32  ;;  %v17440_v32 = vld [vmem:[#allocation3 + $0x40] sm:$0xff]  ;;  %v17444_v40 = vadd.f32 %v5217_v29, %v17006_v5  ;;  %v17459_v5 = vld [vmem:[#allocation7 + $0x48] sm:$0xff] }
0x2767   : > { %14810 = vmatmul.mubr.msk.f32.vlgmr.msra.gmra.mxu1 %vm870_vm1, %v17079_v15  ;;  %14831 = vmatprep.subr.mxu1 %v16230_v6 }
0x2768   : > { %14832 = vmatpush3.msra.mxu1 %v17417_v31  ;;  %14839 = vmatprep.mubr.msk.f32.mxu1 %vm16231_vm2, %v16230_v6 }
0x2769   : > { %14833 = vmatprep.subr.mxu1 %v16230_v6 }
0x276a   : > { %14834 = vmatpush3.msra.mxu1 %v17428_v17 }
0x276b   : > { %14835 = vmatprep.subr.mxu1 %v16230_v6 }
0x276c   : > { %14836 = vmatpush3.msra.mxu1 %v17436_v19 }
0x276d   : > { %14837 = vmatprep.subr.mxu1 %v16230_v6 }
0x276e   : > { %14838 = vmatpush3.msra.mxu1 %v17440_v32 }
0x276f   : > { %14840 = vmatmul.mubr.msk.f32.vlgmr.msra.gmra.mxu1 %vm870_vm1, %v17444_v40  ;;  %14842 = vmatprep.subr.mxu1 %v16230_v6 }
0x2770   : > { %14843 = vmatpush3.msra.mxu1 %v17447_v53  ;;  %14850 = vmatprep.mubr.msk.f32.mxu1 %vm16231_vm2, %v16230_v6 }
0x2771   : > { %14844 = vmatprep.subr.mxu1 %v16230_v6 }
0x2772   : > { %14845 = vmatpush3.msra.mxu1 %v17453_v60 }
0x2773   : > { %14846 = vmatprep.subr.mxu1 %v16230_v6 }
0x2774   : > { %14847 = vmatpush3.msra.mxu1 %v17459_v5 }
0x2775   : > { %14848 = vmatprep.subr.mxu1 %v16230_v6 }
0x2776   : > { %14849 = vmatpush3.msra.mxu1 %v17463_v47 }
0x2777   : > { %14851 = vmatmul.mubr.msk.f32.vlgmr.msra.gmra.mxu1 %vm870_vm1, %v17444_v40  ;;  %14864 = vmatprep.subr.mxu1 %v16230_v6 }
0x2778   : > { %14866 = vmatprep.mubr.msk.f32.mxu1 %vm16231_vm2, %v16230_v6 }
0x281f   : > { %v6381_v28 = vpop.f32.mrf.mxu1 }
0x2820   : > { %v6385_v23 = vadd.f32 %v6381_v28, %v6145_v8 }
0x2821   : > { %v14789_v24 = vpop.f32.mrf.mxu1 }
0x2822   : > { %14799 = vmatmul.mubr.msk.f32.vlgmr.msra.gmra.mxu0 %vm870_vm1, %v6385_v23  ;;  %v17565_v24 = vld [vmem:[#allocation13 + $0x48] sm:$0xff] }
0x2823   : > { %14813 = vmatpush3.msra.mxu0 %v17257_v35  ;;  %14828 = vmatprep.mubr.msk.f32.mxu0 %vm16231_vm2, %v16230_v6  ;;  %v17486_v35 = vld [vmem:[#allocation5 + $0x2] ss:$0 sm:$0xff] }
0x2824   : > { %14814 = vmatprep.subr.mxu0 %v16230_v6 }
0x2825   : > { %14815 = vmatpush3.msra.mxu0 %v17259_v37 }
0x2826   : > { %14816 = vmatprep.subr.mxu0 %v16230_v6 }
0x2827   : > { %v6525_v25 = vpop.f32.mrf.mxu1  ;;  %14817 = vmatpush3.msra.mxu0 %v17263_v39 }
0x2828   : > { %14818 = vmatprep.subr.mxu0 %v16230_v6 }
0x2829   : > { %v14811_v0 = vpop.f32.mrf.mxu1  ;;  %14819 = vmatpush3.msra.mxu0 %v17267_v41 }
0x282a   : > { %14820 = vmatprep.subr.mxu0 %v16230_v6 }
0x282b   : > { %14821 = vmatpush3.msra.mxu0 %v17271_v14  ;;  %v17499_v14 = vld [vmem:[#allocation8 + $0x2] ss:$0 sm:$0xff] }
0x282c   : > { %14822 = vmatprep.subr.mxu0 %v16230_v6 }
0x282d   : > { %14823 = vmatpush3.msra.mxu0 %v17294_v16 }
0x282e   : > { %14824 = vmatprep.subr.mxu0 %v16230_v6 }
0x282f   : > { %v6728_v37 = vpop.f32.mrf.mxu1  ;;  %14825 = vmatpush3.msra.mxu0 %v17298_v9 }
0x2830   : > { %v17492_v39 = vadd.f32 %v17486_v35, %v6728_v37  ;;  %14826 = vmatprep.subr.mxu0 %v16230_v6 }
0x2831   : > { %v14841_v41 = vpop.f32.mrf.mxu1  ;;  %14827 = vmatpush3.msra.mxu0 %v17302_v30 }
0x2832   : > { %7045 = vrot.lane.b32.xlu0 %v17492_v39, %s16232_s15  ;;  %14853 = vmatprep.subr.mxu0 %v16230_v6  ;;  %v17569_v41 = vld [vmem:[#allocation13 + $0x40] sm:$0xff] }
0x2837   : > { %v6804_v16 = vpop.f32.mrf.mxu1 }
0x2838   : > { %v17502_v57 = vadd.f32 %v17499_v14, %v6804_v16 }
0x2839   : > { %v14852_v9 = vpop.f32.mrf.mxu1 }
0x283a   : > { %7047 = vrot.lane.b32.xlu1 %v17502_v57, %s16232_s15  ;;  %14865 = vmatpush3.xpose.msk.msra.mxu1 %vm1168_vm5, %v17502_v57 }
0x283b   : > { %14869 = vmatprep.subr.mxu1 %v16230_v6 }
0x283d   : > { %14867 = vmatmul.mubr.msk.f32.vlgmr.msra.gmra.mxu1 %vm1168_vm5, %v17492_v39 }
0x283e   : > { %14871 = vmatprep.mubr.msk.f32.mxu1 %vm16231_vm2, %v16230_v6 }
0x28a4   : > { %v7046_v54 = vpop.permute.xlu0 %7045 }
0x28ac   : > { %v7048_v3 = vpop.permute.xlu1 %7047 }
0x28e2   : > { %v6455_v30 = vpop.f32.mrf.mxu0 }
0x28e3   : > { %v6526_v58 = vadd.f32 %v6525_v25, %v6455_v30 }
0x28e4   : > { %v14800_v18 = vpop.f32.mrf.mxu0 }
0x28e5   : > { %v6529_v26 = vadd.f32 %v17306_v11, %v6526_v58  ;;  %v17527_v11 = vld [vmem:[#allocation10 + $0x40] sm:$0xff] }
0x28e7   : > { %v6530_v38 = vmax.f32 %v6529_v26, 0.0 }
0x28e9   : > { %14829 = vmatmul.mubr.msk.f32.vlgmr.msra.gmra.mxu0 %vm2280_vm9, %v6530_v38 }
0x28ea   : > { %14854 = vmatpush3.msra.mxu0 %v17514_v42  ;;  %14861 = vmatprep.mubr.msk.f32.mxu0 %vm16231_vm2, %v16230_v6 }
0x28eb   : > { %14855 = vmatprep.subr.mxu0 %v16230_v6 }
0x28ec   : > { %14856 = vmatpush3.msra.mxu0 %v17517_v61 }
0x28ed   : > { %14857 = vmatprep.subr.mxu0 %v16230_v6 }
0x28ee   : > { %14858 = vmatpush3.msra.mxu0 %v17523_v21 }
0x28ef   : > { %14859 = vmatprep.subr.mxu0 %v16230_v6 }
0x28f0   : > { %14860 = vmatpush3.msra.mxu0 %v17527_v11 }
0x28f1   : > { %14862 = vmatmul.mubr.msk.f32.vlgmr.msra.gmra.mxu0 %vm870_vm1, %v17444_v40  ;;  %14874 = vmatprep.subr.mxu0 %v16230_v6 }
0x28f2   : > { %14875 = vmatpush3.xpose.msk.msra.mxu0 %vm1168_vm5, %v7048_v3  ;;  %14876 = vmatprep.mubr.msk.f32.mxu0 %vm16231_vm2, %v16230_v6 }
0x28f3   : > { %14884 = vmatprep.subr.mxu0 %v16230_v6 }
0x28f5   : > { %14877 = vmatmul.mubr.msk.f32.vlgmr.msra.gmra.mxu0 %vm1168_vm5, %v7046_v54 }
0x28f6   : > { %14886 = vmatprep.mubr.msk.f32.mxu0 %vm16231_vm2, %v16230_v6  ;;  %14885 = vmatpush3.msra.mxu0 %v17565_v24 }
0x28f7   : > { %14894 = vmatprep.subr.mxu0 %v16230_v6 }
0x28fd   : > { %v6956_v7 = vpop.f32.mrf.mxu1 }
0x28fe   : > { %v6960_v27 = vmul.f32 0.35355338, %v6956_v7 }
0x28ff   : > { %v14868_v10 = vpop.f32.mrf.mxu1 }
0x2900   : > { %v6961_v62 = vsel %vm1168_vm5, %v6960_v27, -inf }
0x2901   : > { %6962 = vmax.xlane.f32.xlu1 %v6961_v62 }
0x298a   : > { %v6963_v36 = vpop.xlane.xlu1 %6962 }
0x298b   : > { %v6964_v22 = vsub.f32 %v6960_v27, %v6963_v36 }
0x298d   : > { %v6965_v13 = vmul.f32 1.442695, %v6964_v22 }
0x298f   : > { %15633 = vpow2.f32 %v6965_v13 }
0x299c   : > { %v15634_v44 = vpop.eup %15633 }
0x299d   : > { %v6967_v8 = vsel %vm1168_vm5, %v15634_v44, 0.0 }
0x29a9   : > { %v17543_v49 = vpop.f32.mrf.mxu0 }
0x29ab   : > { %v14830_v20 = vpop.f32.mrf.mxu0 }
0x29b1   : > { %v6880_v59 = vpop.f32.mrf.mxu0 }
0x29b2   : > { %v17548_v43 = vadd.f32 %v17545_v4, %v6880_v59 }
0x29b3   : > { %v14863_v50 = vpop.f32.mrf.mxu0 }
0x29b4   : > { %14870 = vmatpush3.msra.mxu1 %v17548_v43 }
0x29b5   : > { %v7119_v55 = vpop.f32.mrf.mxu0  ;;  %14879 = vmatprep.subr.mxu1 %v16230_v6 }
0x29b6   : > { %v7123_v56 = vmul.f32 0.35355338, %v7119_v55 }
0x29b7   : > { %v14878_v63 = vpop.f32.mrf.mxu0 }
0x29b8   : > { %v7124_v34 = vsel %vm1168_vm5, %v7123_v56, -inf }
0x29b9   : > { %7125 = vmax.xlane.f32.xlu0 %v7124_v34 }
0x29bd   : > { %6968 = vadd.xlane.f32.xlu0 %v6967_v8 }
0x29d3   : > { %7136 = vrot.lane.b32.xlu0 %v17548_v43, %s16232_s15 }
0x2a42   : > { %v7126_v12 = vpop.xlane.xlu0 %7125 }
0x2a43   : > { %v7127_v48 = vsub.f32 %v7123_v56, %v7126_v12 }
0x2a45   : > { %v7128_v51 = vmul.f32 1.442695, %v7127_v48 }
0x2a46   : > { %v6969_v46 = vpop.xlane.xlu0 %6968 }
0x2a47   : > { %15635 = vpow2.f32 %v7128_v51 }
0x2a48   : > { %15637 = vrcp.f32 %v6969_v46 }
0x2a4a   : > { %v7137_v23 = vpop.permute.xlu0 %7136 }
0x2a54   : > { %v15636_v52 = vpop.eup %15635 }
0x2a55   : > { %v15638_v33 = vpop.eup %15637  ;;  %v7130_v29 = vsel %vm1168_vm5, %v15636_v52, 0.0 }
0x2a56   : > { %7131 = vadd.xlane.f32.xlu1 %v7130_v29  ;;  %v6971_v28 = vmul.f32 %v15638_v33, %v15634_v44 }
0x2a58   : > { %14872 = vmatmul.mubr.msk.f32.vlgmr.msra.gmra.mxu1 %vm1168_vm5, %v6971_v28 }
0x2a59   : > { %14880 = vmatpush3.msra.mxu1 %v7137_v23  ;;  %14881 = vmatprep.mubr.msk.f32.mxu1 %vm16231_vm2, %v16230_v6 }
0x2a5a   : > { %14889 = vmatprep.subr.mxu1 %v16230_v6 }
0x2a67   : > { %7360 = vrot.lane.b32.xlu1 %v17502_v57, %s16233_s1 }
0x2a6b   : > { %7358 = vrot.lane.b32.xlu1 %v17492_v39, %s16233_s1 }
0x2adf   : > { %v7132_v25 = vpop.xlane.xlu1 %7131 }
0x2ae0   : > { %15639 = vrcp.f32 %v7132_v25 }
0x2ae3   : > { %v7361_v30 = vpop.permute.xlu1 %7360 }
0x2ae7   : > { %v7359_v26 = vpop.permute.xlu1 %7358 }
0x2aed   : > { %v15640_v0 = vpop.eup %15639 }
0x2aee   : > { %v7134_v37 = vmul.f32 %v15640_v0, %v15636_v52  ;;  %v17615_v0 = vld [vmem:[#allocation13 + $0x58] sm:$0xff] }
0x2af0   : > { %14882 = vmatmul.mubr.msk.f32.vlgmr.msra.gmra.mxu1 %vm1168_vm5, %v7134_v37 }
0x2af1   : > { %14890 = vmatpush3.msra.mxu1 %v17569_v41  ;;  %14891 = vmatprep.mubr.msk.f32.mxu1 %vm16231_vm2, %v16230_v6 }
0x2af2   : > { %14899 = vmatprep.subr.mxu1 %v16230_v6 }
0x2b18   : > { %v7041_v16 = vpop.f32.mrf.mxu1 }
0x2b19   : > { %14892 = vmatmul.mubr.msk.f32.vlgmr.msra.gmra.mxu1 %vm1168_vm5, %v7041_v16 }
0x2b1a   : > { %v14873_v9 = vpop.f32.mrf.mxu1  ;;  %14901 = vmatprep.mubr.msk.f32.mxu1 %vm16231_vm2, %v16230_v6 }
0x2bb0   : > { %v7208_v58 = vpop.f32.mrf.mxu1 }
0x2bb1   : > { %14887 = vmatmul.mubr.msk.f32.vlgmr.msra.gmra.mxu0 %vm1168_vm5, %v7208_v58 }
0x2bb2   : > { %14895 = vmatpush3.xpose.msk.msra.mxu0 %vm1168_vm5, %v7361_v30  ;;  %v14883_v18 = vpop.f32.mrf.mxu1  ;;  %14896 = vmatprep.mubr.msk.f32.mxu0 %vm16231_vm2, %v16230_v6 }
0x2bb3   : > { %14904 = vmatprep.subr.mxu0 %v16230_v6 }
0x2bb5   : > { %14897 = vmatmul.mubr.msk.f32.vlgmr.msra.gmra.mxu0 %vm1168_vm5, %v7359_v26 }
0x2bb6   : > { %14906 = vmatprep.mubr.msk.f32.mxu0 %vm16231_vm2, %v16230_v6 }
0x2bd9   : > { %v7354_v38 = vpop.f32.mrf.mxu1 }
0x2bdb   : > { %v14893_v3 = vpop.f32.mrf.mxu1 }
0x2c71   : > { %v7281_v54 = vpop.f32.mrf.mxu0 }
0x2c72   : > { %v7355_v37 = vadd.f32 %v7354_v38, %v7281_v54  ;;  %v17627_v38 = vld [vmem:[#allocation14 + $0xb0] sm:$0xff]  ;;  %v17633_v54 = vld [vmem:[#allocation14 + $0x98] sm:$0xff] }
0x2c73   : > { %v14888_v7 = vpop.f32.mrf.mxu0 }
0x2c75   : > { %v7432_v27 = vpop.f32.mrf.mxu0 }
0x2c76   : > { %v7436_v10 = vmul.f32 0.35355338, %v7432_v27  ;;  %v17636_v27 = vld [vmem:[#allocation14 + $0x90] sm:$0xff] }
0x2c77   : > { %v14898_v62 = vpop.f32.mrf.mxu0 }
0x2c78   : > { %v7437_v36 = vsel %vm1168_vm5, %v7436_v10, -inf  ;;  %v17642_v62 = vld [vmem:[#allocation14 + $0x88] sm:$0xff] }
0x2c79   : > { %7438 = vmax.xlane.f32.xlu0 %v7437_v36  ;;  %v17646_v36 = vld [vmem:[#allocation14 + $0x80] sm:$0xff] }
0x2c8f   : > { %7448 = vrot.lane.b32.xlu0 %v17548_v43, %s16233_s1 }
0x2c93   : > { %7598 = vrot.lane.b32.xlu0 %v17492_v39, %s16234_s29 }
0x2d02   : > { %v7439_v22 = vpop.xlane.xlu0 %7438 }
0x2d03   : > { %v7440_v13 = vsub.f32 %v7436_v10, %v7439_v22  ;;  %v6601_v22 = vadd.f32 %v17422_v2, %v17543_v49 }
0x2d05   : > { %v7441_v20 = vmul.f32 1.442695, %v7440_v13  ;;  %v17664_v13 = vadd.f32 %v6601_v22, %v17079_v15  ;;  %v17685_v15 = vld [vmem:[#allocation14 + $0xa8] sm:$0xff] }
0x2d06   : > { %v7449_v59 = vpop.permute.xlu0 %7448 }
0x2d07   : > { %15641 = vpow2.f32 %v7441_v20  ;;  %14900 = vmatpush3.msra.mxu1 %v7449_v59  ;;  %v17703_v20 = vld [vmem:[#allocation17 + $0xa8] sm:$0xff]  ;;  %v17707_v59 = vld [vmem:[#allocation17 + $0xa0] sm:$0xff] }
0x2d08   : > { %14909 = vmatprep.subr.mxu1 %v16230_v6 }
0x2d0a   : > { %v7599_v44 = vpop.permute.xlu0 %7598 }
0x2d14   : > { %v15642_v50 = vpop.eup %15641 }
0x2d15   : > { %v7443_v55 = vsel %vm1168_vm5, %v15642_v50, 0.0 }
0x2d16   : > { %7444 = vadd.xlane.f32.xlu1 %v7443_v55 }
0x2d27   : > { %7600 = vrot.lane.b32.xlu1 %v17502_v57, %s16234_s29  ;;  %v17604_v57 = vld [vmem:[#allocation13 + $0x50] sm:$0xff] }
0x2d28   : > { %14905 = vmatpush3.msra.mxu0 %v17604_v57 }
0x2d29   : > { %14914 = vmatprep.subr.mxu0 %v16230_v6 }
0x2d9f   : > { %v7445_v56 = vpop.xlane.xlu1 %7444 }
0x2da0   : > { %15643 = vrcp.f32 %v7445_v56 }
0x2da3   : > { %v7601_v39 = vpop.permute.xlu1 %7600 }
0x2dad   : > { %v15644_v63 = vpop.eup %15643 }
0x2dae   : > { %v7447_v34 = vmul.f32 %v15644_v63, %v15642_v50  ;;  %v17711_v50 = vld [vmem:[#allocation17 + $0x98] sm:$0xff] }
0x2db0   : > { %14902 = vmatmul.mubr.msk.f32.vlgmr.msra.gmra.mxu1 %vm1168_vm5, %v7447_v34 }
0x2db1   : > { %14910 = vmatpush3.xpose.msk.msra.mxu1 %vm1168_vm5, %v7601_v39  ;;  %14911 = vmatprep.mubr.msk.f32.mxu1 %vm16231_vm2, %v16230_v6  ;;  %v17741_v39 = vld [vmem:[#allocation17 + $0x80] sm:$0xff] }
0x2db2   : > { %14919 = vmatprep.subr.mxu1 %v16230_v6 }
0x2db4   : > { %14912 = vmatmul.mubr.msk.f32.vlgmr.msra.gmra.mxu1 %vm1168_vm5, %v7599_v44  ;;  %v17746_v44 = vld [vmem:[#allocation16 + $0x2] ss:$0 sm:$0xff] }
0x2db5   : > { %14921 = vmatprep.mubr.msk.f32.mxu1 %vm16231_vm2, %v16230_v6  ;;  %14920 = vmatpush3.msra.mxu1 %v17615_v0 }
0x2db6   : > { %14935 = vmatprep.subr.mxu1 %v16230_v6 }
0x2e70   : > { %v7520_v8 = vpop.f32.mrf.mxu1 }
0x2e71   : > { %14907 = vmatmul.mubr.msk.f32.vlgmr.msra.gmra.mxu0 %vm1168_vm5, %v7520_v8 }
0x2e72   : > { %v14903_v12 = vpop.f32.mrf.mxu1  ;;  %14916 = vmatprep.mubr.msk.f32.mxu0 %vm16231_vm2, %v16230_v6 }
0x2e74   : > { %v7672_v48 = vpop.f32.mrf.mxu1 }
0x2e75   : > { %v7676_v51 = vmul.f32 0.35355338, %v7672_v48 }
0x2e76   : > { %v14913_v46 = vpop.f32.mrf.mxu1 }
0x2e77   : > { %v7677_v52 = vsel %vm1168_vm5, %v7676_v51, -inf }
0x2e78   : > { %7678 = vmax.xlane.f32.xlu1 %v7677_v52 }
0x2f01   : > { %v7679_v33 = vpop.xlane.xlu1 %7678 }
0x2f02   : > { %v7680_v29 = vsub.f32 %v7676_v51, %v7679_v33 }
0x2f04   : > { %v7681_v28 = vmul.f32 1.442695, %v7680_v29 }
0x2f06   : > { %15645 = vpow2.f32 %v7681_v28 }
0x2f13   : > { %v15646_v23 = vpop.eup %15645 }
0x2f14   : > { %v7683_v25 = vsel %vm1168_vm5, %v15646_v23, 0.0 }
0x2f15   : > { %7684 = vadd.xlane.f32.xlu0 %v7683_v25 }
0x2f2b   : > { %7688 = vrot.lane.b32.xlu0 %v17548_v43, %s16234_s29  ;;  %v17625_v43 = vld [vmem:[#allocation14 + $0xb8] sm:$0xff] }
0x2f31   : > { %v7593_v16 = vpop.f32.mrf.mxu0 }
0x2f32   : > { %v17619_v9 = vadd.f32 %v7593_v16, %v7355_v37 }
0x2f33   : > { %v14908_v30 = vpop.f32.mrf.mxu0 }
0x2f9e   : > { %v7685_v58 = vpop.xlane.xlu0 %7684 }
0x2f9f   : > { %15647 = vrcp.f32 %v7685_v58 }
0x2fa2   : > { %v7689_v18 = vpop.permute.xlu0 %7688 }
0x2fa3   : > { %14915 = vmatpush3.msra.mxu0 %v7689_v18 }
0x2fa4   : > { %14924 = vmatprep.subr.mxu0 %v16230_v6 }
0x2fac   : > { %v15648_v26 = vpop.eup %15647 }
0x2fad   : > { %v7687_v3 = vmul.f32 %v15648_v26, %v15646_v23 }
0x2faf   : > { %14917 = vmatmul.mubr.msk.f32.vlgmr.msra.gmra.mxu0 %vm1168_vm5, %v7687_v3 }
0x2fb0   : > { %14932 = vmatprep.mubr.msk.f32.mxu0 %vm16231_vm2, %v16230_v6  ;;  %14925 = vmatpush3.msra.mxu0 %v17625_v43 }
0x2fb1   : > { %14926 = vmatprep.subr.mxu0 %v16230_v6 }
0x2fb2   : > { %14927 = vmatpush3.msra.mxu0 %v17627_v38 }
0x2fb3   : > { %14928 = vmatprep.subr.mxu0 %v16230_v6 }
0x2fb4   : > { %14929 = vmatpush3.msra.mxu0 %v17685_v15 }
0x2fb5   : > { %14930 = vmatprep.subr.mxu0 %v16230_v6 }
0x306f   : > { %v7760_v7 = vpop.f32.mrf.mxu0 }
0x3070   : > { %14922 = vmatmul.mubr.msk.f32.vlgmr.msra.gmra.mxu1 %vm1168_vm5, %v7760_v7 }
0x3071   : > { %14936 = vmatpush3.msra.mxu1 %v17633_v54  ;;  %v14918_v10 = vpop.f32.mrf.mxu0  ;;  %14943 = vmatprep.mubr.msk.f32.mxu1 %vm16231_vm2, %v16230_v6 }
0x3072   : > { %14937 = vmatprep.subr.mxu1 %v16230_v6 }
0x3073   : > { %14938 = vmatpush3.msra.mxu1 %v17636_v27 }
0x3074   : > { %14939 = vmatprep.subr.mxu1 %v16230_v6 }
0x3075   : > { %14940 = vmatpush3.msra.mxu1 %v17642_v62 }
0x3076   : > { %14941 = vmatprep.subr.mxu1 %v16230_v6 }
0x3077   : > { %14942 = vmatpush3.msra.mxu1 %v17646_v36 }
0x3078   : > { %14944 = vmatmul.mubr.msk.f32.vlgmr.msra.gmra.mxu1 %vm870_vm1, %v17444_v40  ;;  %14965 = vmatprep.subr.mxu1 %v16230_v6 }
0x3079   : > { %14966 = vmatpush3.msra.mxu1 %v17417_v31  ;;  %14973 = vmatprep.mubr.msk.f32.mxu1 %vm16231_vm2, %v16230_v6  ;;  %v17688_v31 = vld [vmem:[#allocation14 + $0xa0] sm:$0xff] }
0x307a   : > { %14967 = vmatprep.subr.mxu1 %v16230_v6  ;;  %14931 = vmatpush3.msra.mxu0 %v17688_v31 }
0x307b   : > { %14968 = vmatpush3.msra.mxu1 %v17428_v17  ;;  %14946 = vmatprep.subr.mxu0 %v16230_v6 }
0x307c   : > { %14969 = vmatprep.subr.mxu1 %v16230_v6 }
0x307d   : > { %14970 = vmatpush3.msra.mxu1 %v17436_v19 }
0x307e   : > { %14971 = vmatprep.subr.mxu1 %v16230_v6 }
0x307f   : > { %14972 = vmatpush3.msra.mxu1 %v17440_v32 }
0x3080   : > { %14974 = vmatmul.mubr.msk.f32.vlgmr.msra.gmra.mxu1 %vm870_vm1, %v17664_v13  ;;  %14976 = vmatprep.subr.mxu1 %v16230_v6 }
0x3081   : > { %14977 = vmatpush3.msra.mxu1 %v17447_v53  ;;  %14984 = vmatprep.mubr.msk.f32.mxu1 %vm16231_vm2, %v16230_v6 }
0x3082   : > { %14978 = vmatprep.subr.mxu1 %v16230_v6 }
0x3083   : > { %14979 = vmatpush3.msra.mxu1 %v17453_v60 }
0x3084   : > { %14980 = vmatprep.subr.mxu1 %v16230_v6 }
0x3085   : > { %14981 = vmatpush3.msra.mxu1 %v17459_v5  ;;  %v17697_v5 = vld [vmem:[#allocation17 + $0xb8] sm:$0xff] }
0x3086   : > { %14982 = vmatprep.subr.mxu1 %v16230_v6 }
0x3087   : > { %14983 = vmatpush3.msra.mxu1 %v17463_v47  ;;  %v17699_v47 = vld [vmem:[#allocation17 + $0xb0] sm:$0xff] }
0x3088   : > { %14985 = vmatmul.mubr.msk.f32.vlgmr.msra.gmra.mxu1 %vm870_vm1, %v17664_v13  ;;  %14998 = vmatprep.subr.mxu1 %v16230_v6 }
0x3089   : > { %15000 = vmatprep.mubr.msk.f32.mxu1 %vm16231_vm2, %v16230_v6 }
0x3130   : > { %v7833_v2 = vpop.f32.mrf.mxu1 }
0x3131   : > { %v7837_v17 = vadd.f32 %v7833_v2, %v17619_v9 }
0x3132   : > { %v14923_v19 = vpop.f32.mrf.mxu1 }
0x3133   : > { %14933 = vmatmul.mubr.msk.f32.vlgmr.msra.gmra.mxu0 %vm870_vm1, %v7837_v17 }
0x3134   : > { %14962 = vmatprep.mubr.msk.f32.mxu0 %vm16231_vm2, %v16230_v6  ;;  %14947 = vmatpush3.msra.mxu0 %v17697_v5 }
0x3135   : > { %14948 = vmatprep.subr.mxu0 %v16230_v6 }
0x3136   : > { %14949 = vmatpush3.msra.mxu0 %v17699_v47 }
0x3137   : > { %14950 = vmatprep.subr.mxu0 %v16230_v6 }
0x3138   : > { %v7977_v32 = vpop.f32.mrf.mxu1  ;;  %14951 = vmatpush3.msra.mxu0 %v17703_v20 }
0x3139   : > { %14952 = vmatprep.subr.mxu0 %v16230_v6 }
0x313a   : > { %v14945_v53 = vpop.f32.mrf.mxu1  ;;  %14953 = vmatpush3.msra.mxu0 %v17707_v59 }
0x313b   : > { %14954 = vmatprep.subr.mxu0 %v16230_v6 }
0x313c   : > { %14955 = vmatpush3.msra.mxu0 %v17711_v50 }
0x313d   : > { %14956 = vmatprep.subr.mxu0 %v16230_v6 }
0x3140   : > { %v8138_v60 = vpop.f32.mrf.mxu1 }
0x3141   : > { %v17724_v34 = vadd.f32 %v17486_v35, %v8138_v60  ;;  %v17738_v35 = vld [vmem:[#allocation17 + $0x88] sm:$0xff] }
0x3142   : > { %v14975_v49 = vpop.f32.mrf.mxu1 }
0x3148   : > { %v8208_v55 = vpop.f32.mrf.mxu1 }
0x3149   : > { %v17715_v56 = vadd.f32 %v17499_v14, %v8208_v55  ;;  %v17734_v14 = vld [vmem:[#allocation17 + $0x90] sm:$0xff] }
0x314a   : > { %v14986_v63 = vpop.f32.mrf.mxu1  ;;  %14957 = vmatpush3.msra.mxu0 %v17734_v14 }
0x314b   : > { %8448 = vrot.lane.b32.xlu1 %v17715_v56, %s16232_s15  ;;  %14999 = vmatpush3.xpose.msk.msra.mxu1 %vm1168_vm5, %v17715_v56 }
0x314c   : > { %15003 = vmatprep.subr.mxu1 %v16230_v6  ;;  %14958 = vmatprep.subr.mxu0 %v16230_v6 }
0x314d   : > { %14959 = vmatpush3.msra.mxu0 %v17738_v35 }
0x314e   : > { %15001 = vmatmul.mubr.msk.f32.vlgmr.msra.gmra.mxu1 %vm1168_vm5, %v17724_v34  ;;  %14960 = vmatprep.subr.mxu0 %v16230_v6 }
0x314f   : > { %8446 = vrot.lane.b32.xlu1 %v17724_v34, %s16232_s15  ;;  %15005 = vmatprep.mubr.msk.f32.mxu1 %vm16231_vm2, %v16230_v6 }
0x3150   : > { %14961 = vmatpush3.msra.mxu0 %v17741_v39 }
0x3151   : > { %14987 = vmatprep.subr.mxu0 %v16230_v6 }
0x31bd   : > { %v8449_v52 = vpop.permute.xlu1 %8448 }
0x31f3   : > { %v7907_v8 = vpop.f32.mrf.mxu0 }
0x31f4   : > { %v7978_v12 = vadd.f32 %v7977_v32, %v7907_v8 }
0x31f5   : > { %v14934_v48 = vpop.f32.mrf.mxu0 }
0x31f6   : > { %v7987_v51 = vadd.f32 %v17746_v44, %v7978_v12 }
0x31f8   : > { %v7988_v46 = vmax.f32 %v7987_v51, 0.0 }
0x31fa   : > { %14963 = vmatmul.mubr.msk.f32.vlgmr.msra.gmra.mxu0 %vm2280_vm9, %v7988_v46 }
0x31fb   : > { %14988 = vmatpush3.msra.mxu0 %v17514_v42  ;;  %14995 = vmatprep.mubr.msk.f32.mxu0 %vm16231_vm2, %v16230_v6  ;;  %v8447_v42 = vpop.permute.xlu1 %8446 }
0x31fc   : > { %14989 = vmatprep.subr.mxu0 %v16230_v6 }
0x31fd   : > { %14990 = vmatpush3.msra.mxu0 %v17517_v61 }
0x31fe   : > { %14991 = vmatprep.subr.mxu0 %v16230_v6 }
0x31ff   : > { %14992 = vmatpush3.msra.mxu0 %v17523_v21 }
0x3200   : > { %14993 = vmatprep.subr.mxu0 %v16230_v6 }
0x3201   : > { %14994 = vmatpush3.msra.mxu0 %v17527_v11 }
0x3202   : > { %14996 = vmatmul.mubr.msk.f32.vlgmr.msra.gmra.mxu0 %vm870_vm1, %v17664_v13  ;;  %15008 = vmatprep.subr.mxu0 %v16230_v6 }
0x3203   : > { %15009 = vmatpush3.xpose.msk.msra.mxu0 %vm1168_vm5, %v8449_v52  ;;  %15010 = vmatprep.mubr.msk.f32.mxu0 %vm16231_vm2, %v16230_v6 }
0x3204   : > { %15018 = vmatprep.subr.mxu0 %v16230_v6 }
0x3206   : > { %15011 = vmatmul.mubr.msk.f32.vlgmr.msra.gmra.mxu0 %vm1168_vm5, %v8447_v42 }
0x3207   : > { %15019 = vmatpush3.msra.mxu0 %v17565_v24  ;;  %15020 = vmatprep.mubr.msk.f32.mxu0 %vm16231_vm2, %v16230_v6 }
0x3208   : > { %15028 = vmatprep.subr.mxu0 %v16230_v6 }
0x320e   : > { %v8354_v61 = vpop.f32.mrf.mxu1 }
0x320f   : > { %v8358_v21 = vmul.f32 0.35355338, %v8354_v61 }
0x3210   : > { %v15002_v11 = vpop.f32.mrf.mxu1 }
0x3211   : > { %v8359_v33 = vsel %vm2645_vm10, %v8358_v21, -inf }
0x3212   : > { %8360 = vmax.xlane.f32.xlu0 %v8359_v33 }
0x329b   : > { %v8361_v29 = vpop.xlane.xlu0 %8360 }
0x329c   : > { %v8362_v28 = vsub.f32 %v8358_v21, %v8361_v29 }
0x329e   : > { %v8363_v23 = vmul.f32 1.442695, %v8362_v28 }
0x32a0   : > { %15649 = vpow2.f32 %v8363_v23 }
0x32ad   : > { %v15650_v25 = vpop.eup %15649 }
0x32ae   : > { %v8365_v37 = vsel %vm2645_vm10, %v15650_v25, 0.0 }
0x32af   : > { %8366 = vadd.xlane.f32.xlu0 %v8365_v37 }
0x32ba   : > { %v17773_v24 = vpop.f32.mrf.mxu0 }
0x32bc   : > { %v14964_v16 = vpop.f32.mrf.mxu0 }
0x32c2   : > { %v8278_v9 = vpop.f32.mrf.mxu0 }
0x32c3   : > { %v17776_v30 = vadd.f32 %v17545_v4, %v8278_v9 }
0x32c4   : > { %v14997_v58 = vpop.f32.mrf.mxu0 }
0x32c5   : > { %15004 = vmatpush3.msk.msra.mxu1 %vm2661_vm11, %v17776_v30 }
0x32c6   : > { %v8520_v18 = vpop.f32.mrf.mxu0  ;;  %15013 = vmatprep.subr.mxu1 %v16230_v6 }
0x32c7   : > { %v8524_v26 = vmul.f32 0.35355338, %v8520_v18 }
0x32c8   : > { %v15012_v3 = vpop.f32.mrf.mxu0 }
0x32c9   : > { %v8525_v7 = vsel %vm2645_vm10, %v8524_v26, -inf }
0x32ca   : > { %8526 = vmax.xlane.f32.xlu1 %v8525_v7 }
0x32db   : > { %8536 = vrot.lane.b32.xlu1 %v17776_v30, %s16232_s15 }
0x32df   : > { %8759 = vrot.lane.b32.xlu1 %v17724_v34, %s16233_s1 }
0x3338   : > { %v8367_v4 = vpop.xlane.xlu0 %8366 }
0x3339   : > { %15651 = vrcp.f32 %v8367_v4 }
0x3346   : > { %v15652_v10 = vpop.eup %15651 }
0x3347   : > { %v8369_v22 = vmul.f32 %v15652_v10, %v15650_v25 }
0x3349   : > { %15006 = vmatmul.mubr.msk.f32.vlgmr.msra.gmra.mxu1 %vm2657_vm12, %v8369_v22 }
0x334a   : > { %15015 = vmatprep.mubr.msk.f32.mxu1 %vm16231_vm2, %v16230_v6 }
0x3353   : > { %v8527_v2 = vpop.xlane.xlu1 %8526 }
0x3354   : > { %v8528_v17 = vsub.f32 %v8524_v26, %v8527_v2 }
0x3356   : > { %v8529_v19 = vmul.f32 1.442695, %v8528_v17 }
0x3357   : > { %v8537_v32 = vpop.permute.xlu1 %8536 }
0x3358   : > { %15653 = vpow2.f32 %v8529_v19  ;;  %15014 = vmatpush3.msk.msra.mxu1 %vm2661_vm11, %v8537_v32 }
0x3359   : > { %15023 = vmatprep.subr.mxu1 %v16230_v6 }
0x3365   : > { %v15654_v53 = vpop.eup %15653 }
0x3366   : > { %v8531_v60 = vsel %vm2645_vm10, %v15654_v53, 0.0 }
0x3367   : > { %8532 = vadd.xlane.f32.xlu0 %v8531_v60 }
0x337d   : > { %8761 = vrot.lane.b32.xlu0 %v17715_v56, %s16233_s1 }
0x33f0   : > { %v8533_v49 = vpop.xlane.xlu0 %8532 }
0x33f1   : > { %15655 = vrcp.f32 %v8533_v49 }
0x33f4   : > { %v8762_v51 = vpop.permute.xlu0 %8761 }
0x33fe   : > { %v15656_v55 = vpop.eup %15655 }
0x33ff   : > { %v8535_v63 = vmul.f32 %v15656_v55, %v15654_v53 }
0x3401   : > { %15016 = vmatmul.mubr.msk.f32.vlgmr.msra.gmra.mxu1 %vm2657_vm12, %v8535_v63 }
0x3402   : > { %15024 = vmatpush3.msra.mxu1 %v17569_v41  ;;  %15025 = vmatprep.mubr.msk.f32.mxu1 %vm16231_vm2, %v16230_v6  ;;  %v8760_v41 = vpop.permute.xlu1 %8759 }
0x3403   : > { %15033 = vmatprep.subr.mxu1 %v16230_v6 }
0x3409   : > { %v8442_v8 = vpop.f32.mrf.mxu1 }
0x340a   : > { %15026 = vmatmul.mubr.msk.f32.vlgmr.msra.gmra.mxu1 %vm1168_vm5, %v8442_v8 }
0x340b   : > { %v15007_v12 = vpop.f32.mrf.mxu1  ;;  %15035 = vmatprep.mubr.msk.f32.mxu1 %vm16231_vm2, %v16230_v6 }
0x34c1   : > { %v8609_v48 = vpop.f32.mrf.mxu1 }
0x34c2   : > { %15021 = vmatmul.mubr.msk.f32.vlgmr.msra.gmra.mxu0 %vm1168_vm5, %v8609_v48 }
0x34c3   : > { %15029 = vmatpush3.xpose.msk.msra.mxu0 %vm1168_vm5, %v8762_v51  ;;  %v15017_v46 = vpop.f32.mrf.mxu1  ;;  %15030 = vmatprep.mubr.msk.f32.mxu0 %vm16231_vm2, %v16230_v6 }
0x34c4   : > { %15038 = vmatprep.subr.mxu0 %v16230_v6 }
0x34c6   : > { %15031 = vmatmul.mubr.msk.f32.vlgmr.msra.gmra.mxu0 %vm1168_vm5, %v8760_v41 }
0x34c7   : > { %15039 = vmatpush3.msra.mxu0 %v17604_v57  ;;  %15040 = vmatprep.mubr.msk.f32.mxu0 %vm16231_vm2, %v16230_v6 }
0x34c8   : > { %15048 = vmatprep.subr.mxu0 %v16230_v6 }
0x34ca   : > { %v8755_v52 = vpop.f32.mrf.mxu1 }
0x34cc   : > { %v15027_v42 = vpop.f32.mrf.mxu1 }
0x3582   : > { %v8682_v61 = vpop.f32.mrf.mxu0 }
0x3583   : > { %v8756_v49 = vadd.f32 %v8755_v52, %v8682_v61 }
0x3584   : > { %v15022_v21 = vpop.f32.mrf.mxu0 }
0x3586   : > { %v8833_v11 = vpop.f32.mrf.mxu0 }
0x3587   : > { %v8837_v33 = vmul.f32 0.35355338, %v8833_v11  ;;  %v17928_v11 = vld [vmem:[#allocation10 + $0x78] sm:$0xff] }
0x3588   : > { %v15032_v29 = vpop.f32.mrf.mxu0 }
0x3589   : > { %v8838_v28 = vsel %vm2645_vm10, %v8837_v33, -inf  ;;  %v17945_v29 = vld [vmem:[#allocation10 + $0x68] sm:$0xff] }
0x358a   : > { %8839 = vmax.xlane.f32.xlu1 %v8838_v28  ;;  %v17949_v28 = vld [vmem:[#allocation7 + $0x60] sm:$0xff] }
0x359b   : > { %9002 = vrot.lane.b32.xlu1 %v17715_v56, %s16234_s29 }
0x359f   : > { %9000 = vrot.lane.b32.xlu1 %v17724_v34, %s16234_s29 }
0x3613   : > { %v8840_v57 = vpop.xlane.xlu1 %8839 }
0x3614   : > { %v8841_v23 = vsub.f32 %v8837_v33, %v8840_v57  ;;  %v17937_v33 = vld [vmem:[#allocation10 + $0x70] sm:$0xff]  ;;  %v17951_v57 = vld [vmem:[#allocation10 + $0x60] sm:$0xff] }
0x3616   : > { %v8842_v25 = vmul.f32 1.442695, %v8841_v23 }
0x3617   : > { %v9003_v34 = vpop.permute.xlu1 %9002 }
0x3618   : > { %15657 = vpow2.f32 %v8842_v25 }
0x361b   : > { %v9001_v26 = vpop.permute.xlu1 %9000 }
0x3625   : > { %v15658_v37 = vpop.eup %15657 }
0x3626   : > { %v8844_v16 = vsel %vm2645_vm10, %v15658_v37, 0.0 }
0x3627   : > { %8845 = vadd.xlane.f32.xlu0 %v8844_v16 }
0x363d   : > { %8849 = vrot.lane.b32.xlu0 %v17776_v30, %s16233_s1 }
0x36b0   : > { %v8846_v9 = vpop.xlane.xlu0 %8845 }
0x36b1   : > { %15659 = vrcp.f32 %v8846_v9  ;;  %v17971_v9 = vld [vmem:[#allocation8 + $0x3] ss:$0 sm:$0xff] }
0x36b4   : > { %v8850_v58 = vpop.permute.xlu0 %8849 }
0x36b5   : > { %15034 = vmatpush3.msk.msra.mxu1 %vm2661_vm11, %v8850_v58 }
0x36b6   : > { %15043 = vmatprep.subr.mxu1 %v16230_v6 }
0x36be   : > { %v15660_v56 = vpop.eup %15659 }
0x36bf   : > { %v8848_v18 = vmul.f32 %v15660_v56, %v15658_v37 }
0x36c1   : > { %15036 = vmatmul.mubr.msk.f32.vlgmr.msra.gmra.mxu1 %vm2657_vm12, %v8848_v18 }
0x36c2   : > { %15044 = vmatpush3.xpose.msk.msra.mxu1 %vm1168_vm5, %v9003_v34  ;;  %15045 = vmatprep.mubr.msk.f32.mxu1 %vm16231_vm2, %v16230_v6 }
0x36c3   : > { %15053 = vmatprep.subr.mxu1 %v16230_v6 }
0x36c5   : > { %15046 = vmatmul.mubr.msk.f32.vlgmr.msra.gmra.mxu1 %vm1168_vm5, %v9001_v26 }
0x36c6   : > { %15054 = vmatpush3.msra.mxu1 %v17615_v0  ;;  %15055 = vmatprep.mubr.msk.f32.mxu1 %vm16231_vm2, %v16230_v6 }
0x36c7   : > { %15069 = vmatprep.subr.mxu1 %v16230_v6 }
0x3781   : > { %v8922_v3 = vpop.f32.mrf.mxu1 }
0x3782   : > { %15041 = vmatmul.mubr.msk.f32.vlgmr.msra.gmra.mxu0 %vm1168_vm5, %v8922_v3 }
0x3783   : > { %v15037_v7 = vpop.f32.mrf.mxu1  ;;  %15050 = vmatprep.mubr.msk.f32.mxu0 %vm16231_vm2, %v16230_v6 }
0x3785   : > { %v9074_v4 = vpop.f32.mrf.mxu1 }
0x3786   : > { %v9078_v10 = vmul.f32 0.35355338, %v9074_v4 }
0x3787   : > { %v15047_v22 = vpop.f32.mrf.mxu1 }
0x3788   : > { %v9079_v2 = vsel %vm2645_vm10, %v9078_v10, -inf }
0x3789   : > { %9080 = vmax.xlane.f32.xlu0 %v9079_v2 }
0x379f   : > { %9090 = vrot.lane.b32.xlu0 %v17776_v30, %s16234_s29 }
0x3812   : > { %v9081_v0 = vpop.xlane.xlu0 %9080 }
0x3813   : > { %v9082_v17 = vsub.f32 %v9078_v10, %v9081_v0 }
0x3815   : > { %v9083_v19 = vmul.f32 1.442695, %v9082_v17 }
0x3816   : > { %v9091_v32 = vpop.permute.xlu0 %9090 }
0x3817   : > { %15661 = vpow2.f32 %v9083_v19  ;;  %15049 = vmatpush3.msk.msra.mxu0 %vm2661_vm11, %v9091_v32 }
0x3818   : > { %15058 = vmatprep.subr.mxu0 %v16230_v6 }
0x3824   : > { %v15662_v53 = vpop.eup %15661 }
0x3825   : > { %v9085_v60 = vsel %vm2645_vm10, %v15662_v53, 0.0 }
0x3826   : > { %9086 = vadd.xlane.f32.xlu1 %v9085_v60 }
0x3842   : > { %v8995_v55 = vpop.f32.mrf.mxu0 }
0x3843   : > { %v8999_v63 = vadd.f32 %v8995_v55, %v8756_v49 }
0x3844   : > { %v15042_v8 = vpop.f32.mrf.mxu0 }
0x38af   : > { %v9087_v12 = vpop.xlane.xlu1 %9086 }
0x38b0   : > { %15663 = vrcp.f32 %v9087_v12 }
0x38bd   : > { %v15664_v30 = vpop.eup %15663 }
0x38be   : > { %v9089_v48 = vmul.f32 %v15664_v30, %v15662_v53 }
0x38c0   : > { %15051 = vmatmul.mubr.msk.f32.vlgmr.msra.gmra.mxu0 %vm2657_vm12, %v9089_v48 }
0x38c1   : > { %15059 = vmatpush3.msra.mxu0 %v17625_v43  ;;  %15066 = vmatprep.mubr.msk.f32.mxu0 %vm16231_vm2, %v16230_v6 }
0x38c2   : > { %15060 = vmatprep.subr.mxu0 %v16230_v6 }
0x38c3   : > { %15061 = vmatpush3.msra.mxu0 %v17627_v38  ;;  %v17861_v38 = vld [vmem:[#allocation3 + $0x78] sm:$0xff] }
0x38c4   : > { %15062 = vmatprep.subr.mxu0 %v16230_v6 }
0x38c5   : > { %15063 = vmatpush3.msra.mxu0 %v17685_v15  ;;  %v17880_v15 = vld [vmem:[#allocation3 + $0x68] sm:$0xff] }
0x38c6   : > { %15064 = vmatprep.subr.mxu0 %v16230_v6 }
0x38c7   : > { %15065 = vmatpush3.msra.mxu0 %v17688_v31 }
0x38c8   : > { %15080 = vmatprep.subr.mxu0 %v16230_v6 }
0x3980   : > { %v9163_v51 = vpop.f32.mrf.mxu0 }
0x3981   : > { %15056 = vmatmul.mubr.msk.f32.vlgmr.msra.gmra.mxu1 %vm1168_vm5, %v9163_v51 }
0x3982   : > { %15070 = vmatpush3.msra.mxu1 %v17633_v54  ;;  %v15052_v43 = vpop.f32.mrf.mxu0  ;;  %15077 = vmatprep.mubr.msk.f32.mxu1 %vm16231_vm2, %v16230_v6  ;;  %v17866_v54 = vld [vmem:[%s18555_s12 + $0x2] ss:$0 sm:$0xff] }
0x3983   : > { %15071 = vmatprep.subr.mxu1 %v16230_v6 }
0x3984   : > { %15072 = vmatpush3.msra.mxu1 %v17636_v27  ;;  %v17872_v27 = vld [vmem:[#allocation3 + $0x70] sm:$0xff] }
0x3985   : > { %15073 = vmatprep.subr.mxu1 %v16230_v6 }
0x3986   : > { %15074 = vmatpush3.msra.mxu1 %v17642_v62  ;;  %v8065_v62 = vadd.f32 %v17866_v54, %v17773_v24 }
0x3987   : > { %15075 = vmatprep.subr.mxu1 %v16230_v6 }
0x3988   : > { %15076 = vmatpush3.msra.mxu1 %v17646_v36  ;;  %v17884_v36 = vld [vmem:[#allocation3 + $0x60] sm:$0xff]  ;;  %v17888_v31 = vadd.f32 %v8065_v62, %v17444_v40 }
0x3989   : > { %15078 = vmatmul.mubr.msk.f32.vlgmr.msra.gmra.mxu1 %vm870_vm1, %v17664_v13  ;;  %15099 = vmatprep.subr.mxu1 %v16230_v6 }
0x398a   : > { %15100 = vmatpush3.msra.mxu1 %v17861_v38  ;;  %15107 = vmatprep.mubr.msk.f32.mxu1 %vm16231_vm2, %v16230_v6 }
0x398b   : > { %15101 = vmatprep.subr.mxu1 %v16230_v6 }
0x398c   : > { %15102 = vmatpush3.msra.mxu1 %v17872_v27 }
0x398d   : > { %15103 = vmatprep.subr.mxu1 %v16230_v6 }
0x398e   : > { %15104 = vmatpush3.msra.mxu1 %v17880_v15 }
0x398f   : > { %15105 = vmatprep.subr.mxu1 %v16230_v6 }
0x3990   : > { %15106 = vmatpush3.msra.mxu1 %v17884_v36 }
0x3991   : > { %15108 = vmatmul.mubr.msk.f32.vlgmr.msra.gmra.mxu1 %vm870_vm1, %v17888_v31  ;;  %15110 = vmatprep.subr.mxu1 %v16230_v6 }
0x3992   : > { %15118 = vmatprep.mubr.msk.f32.mxu1 %vm16231_vm2, %v16230_v6 }
0x3a41   : > { %v9236_v24 = vpop.f32.mrf.mxu1 }
0x3a42   : > { %v9240_v46 = vadd.f32 %v9236_v24, %v8999_v63 }
0x3a43   : > { %v15057_v41 = vpop.f32.mrf.mxu1 }
0x3a44   : > { %15067 = vmatmul.mubr.msk.f32.vlgmr.msra.gmra.mxu0 %vm870_vm1, %v9240_v46  ;;  %v18013_v41 = vld [vmem:[#allocation13 + $0x68] sm:$0xff] }
0x3a45   : > { %15081 = vmatpush3.msra.mxu0 %v17697_v5  ;;  %15096 = vmatprep.mubr.msk.f32.mxu0 %vm16231_vm2, %v16230_v6  ;;  %v17910_v5 = vld [vmem:[#allocation5 + $0x3] ss:$0 sm:$0xff] }
0x3a46   : > { %15082 = vmatprep.subr.mxu0 %v16230_v6 }
0x3a47   : > { %15083 = vmatpush3.msra.mxu0 %v17699_v47 }
0x3a48   : > { %15084 = vmatprep.subr.mxu0 %v16230_v6 }
0x3a49   : > { %v9380_v40 = vpop.f32.mrf.mxu1  ;;  %15085 = vmatpush3.msra.mxu0 %v17703_v20 }
0x3a4a   : > { %15086 = vmatprep.subr.mxu0 %v16230_v6 }
0x3a4b   : > { %v15079_v52 = vpop.f32.mrf.mxu1  ;;  %15087 = vmatpush3.msra.mxu0 %v17707_v59 }
0x3a4c   : > { %15088 = vmatprep.subr.mxu0 %v16230_v6 }
0x3a4d   : > { %15089 = vmatpush3.msra.mxu0 %v17711_v50  ;;  %v17923_v50 = vld [vmem:[#allocation7 + $0x78] sm:$0xff] }
0x3a4e   : > { %15090 = vmatprep.subr.mxu0 %v16230_v6  ;;  %15111 = vmatpush3.msra.mxu1 %v17923_v50 }
0x3a4f   : > { %15091 = vmatpush3.msra.mxu0 %v17734_v14  ;;  %15112 = vmatprep.subr.mxu1 %v16230_v6 }
0x3a50   : > { %15092 = vmatprep.subr.mxu0 %v16230_v6 }
0x3a51   : > { %v9583_v47 = vpop.f32.mrf.mxu1  ;;  %15093 = vmatpush3.msra.mxu0 %v17738_v35 }
0x3a52   : > { %v17916_v20 = vadd.f32 %v17910_v5, %v9583_v47  ;;  %15094 = vmatprep.subr.mxu0 %v16230_v6 }
0x3a53   : > { %v15109_v59 = vpop.f32.mrf.mxu1  ;;  %15095 = vmatpush3.msra.mxu0 %v17741_v39  ;;  %v17935_v39 = vld [vmem:[#allocation7 + $0x70] sm:$0xff] }
0x3a54   : > { %9906 = vrot.lane.b32.xlu0 %v17916_v20, %s16232_s15  ;;  %15121 = vmatprep.subr.mxu0 %v16230_v6  ;;  %v18017_v59 = vld [vmem:[#allocation13 + $0x60] sm:$0xff] }
0x3a55   : > { %15113 = vmatpush3.msra.mxu1 %v17935_v39 }
0x3a56   : > { %15114 = vmatprep.subr.mxu1 %v16230_v6 }
0x3ac6   : > { %v9907_v4 = vpop.permute.xlu0 %9906 }
0x3b04   : > { %v9310_v14 = vpop.f32.mrf.mxu0 }
0x3b05   : > { %v9381_v35 = vadd.f32 %v9380_v40, %v9310_v14 }
0x3b06   : > { %v15068_v42 = vpop.f32.mrf.mxu0 }
0x3b07   : > { %v9384_v61 = vadd.f32 %v17746_v44, %v9381_v35  ;;  %v17943_v44 = vld [vmem:[#allocation7 + $0x68] sm:$0xff] }
0x3b08   : > { %15115 = vmatpush3.msra.mxu1 %v17943_v44 }
0x3b09   : > { %v9385_v21 = vmax.f32 %v9384_v61, 0.0  ;;  %15116 = vmatprep.subr.mxu1 %v16230_v6 }
0x3b0a   : > { %15117 = vmatpush3.msra.mxu1 %v17949_v28 }
0x3b0b   : > { %15097 = vmatmul.mubr.msk.f32.vlgmr.msra.gmra.mxu0 %vm2280_vm9, %v9385_v21  ;;  %15132 = vmatprep.subr.mxu1 %v16230_v6 }
0x3b0c   : > { %15122 = vmatpush3.msra.mxu0 %v17928_v11  ;;  %15129 = vmatprep.mubr.msk.f32.mxu0 %vm16231_vm2, %v16230_v6 }
0x3b0d   : > { %15123 = vmatprep.subr.mxu0 %v16230_v6 }
0x3b0e   : > { %15124 = vmatpush3.msra.mxu0 %v17937_v33 }
0x3b0f   : > { %15125 = vmatprep.subr.mxu0 %v16230_v6 }
0x3b10   : > { %15126 = vmatpush3.msra.mxu0 %v17945_v29 }
0x3b11   : > { %15127 = vmatprep.subr.mxu0 %v16230_v6 }
0x3b12   : > { %15128 = vmatpush3.msra.mxu0 %v17951_v57 }
0x3b13   : > { %15142 = vmatprep.subr.mxu0 %v16230_v6 }
0x3bcb   : > { %v9455_v23 = vpop.f32.mrf.mxu0 }
0x3bcc   : > { %v9456_v25 = vadd.f32 %v17866_v54, %v9455_v23 }
0x3bcd   : > { %v15098_v37 = vpop.f32.mrf.mxu0 }
0x3bce   : > { %v17961_v16 = vadd.f32 %v9456_v25, %v17664_v13  ;;  %v17976_v13 = vld [vmem:[#allocation11 + $0x3] ss:$0 sm:$0xff] }
0x3bd0   : > { %15119 = vmatmul.mubr.msk.f32.vlgmr.msra.gmra.mxu1 %vm870_vm1, %v17961_v16  ;;  %15130 = vmatmul.mubr.msk.f32.vlgmr.msra.gmra.mxu0 %vm870_vm1, %v17961_v16 }
0x3bd1   : > { %15134 = vmatprep.mubr.msk.f32.mxu1 %vm16231_vm2, %v16230_v6  ;;  %15144 = vmatprep.mubr.msk.f32.mxu0 %vm16231_vm2, %v16230_v6 }
0x3c90   : > { %v9662_v58 = vpop.f32.mrf.mxu1  ;;  %v9738_v56 = vpop.f32.mrf.mxu0 }
0x3c91   : > { %v17974_v34 = vadd.f32 %v17971_v9, %v9662_v58  ;;  %v17984_v3 = vadd.f32 %v17976_v13, %v9738_v56 }
0x3c92   : > { %v15120_v18 = vpop.f32.mrf.mxu1  ;;  %v15131_v26 = vpop.f32.mrf.mxu0 }
0x3c93   : > { %9908 = vrot.lane.b32.xlu1 %v17974_v34, %s16232_s15  ;;  %15133 = vmatpush3.xpose.msk.msra.mxu1 %vm1168_vm5, %v17974_v34 }
0x3c94   : > { %15137 = vmatprep.subr.mxu1 %v16230_v6 }
0x3c96   : > { %15135 = vmatmul.mubr.msk.f32.vlgmr.msra.gmra.mxu1 %vm1168_vm5, %v17916_v20 }
0x3c97   : > { %15138 = vmatpush3.msk.msra.mxu1 %vm2661_vm11, %v17984_v3  ;;  %15139 = vmatprep.mubr.msk.f32.mxu1 %vm16231_vm2, %v16230_v6 }
0x3c98   : > { %15147 = vmatprep.subr.mxu1 %v16230_v6 }
0x3d05   : > { %v9909_v7 = vpop.permute.xlu1 %9908 }
0x3d06   : > { %15143 = vmatpush3.xpose.msk.msra.mxu0 %vm1168_vm5, %v9909_v7 }
0x3d07   : > { %15152 = vmatprep.subr.mxu0 %v16230_v6 }
0x3d09   : > { %15145 = vmatmul.mubr.msk.f32.vlgmr.msra.gmra.mxu0 %vm1168_vm5, %v9907_v4 }
0x3d0a   : > { %15154 = vmatprep.mubr.msk.f32.mxu0 %vm16231_vm2, %v16230_v6  ;;  %15153 = vmatpush3.msra.mxu0 %v18013_v41 }
0x3d0b   : > { %15162 = vmatprep.subr.mxu0 %v16230_v6 }
0x3d56   : > { %v9814_v10 = vpop.f32.mrf.mxu1 }
0x3d57   : > { %v9818_v22 = vmul.f32 0.35355338, %v9814_v10 }
0x3d58   : > { %v15136_v2 = vpop.f32.mrf.mxu1 }
0x3d59   : > { %v9819_v0 = vsel %vm2657_vm12, %v9818_v22, -inf }
0x3d5a   : > { %9820 = vmax.xlane.f32.xlu1 %v9819_v0 }
0x3dc9   : > { %v9980_v17 = vpop.f32.mrf.mxu0 }
0x3dca   : > { %v9984_v19 = vmul.f32 0.35355338, %v9980_v17 }
0x3dcb   : > { %v15146_v32 = vpop.f32.mrf.mxu0 }
0x3dcc   : > { %v9985_v53 = vsel %vm2657_vm12, %v9984_v19, -inf }
0x3dcd   : > { %9986 = vmax.xlane.f32.xlu0 %v9985_v53 }
0x3de3   : > { %v9821_v60 = vpop.xlane.xlu1 %9820 }
0x3de4   : > { %v9822_v49 = vsub.f32 %v9818_v22, %v9821_v60 }
0x3de6   : > { %v9823_v55 = vmul.f32 1.442695, %v9822_v49 }
0x3de8   : > { %15665 = vpow2.f32 %v9823_v55 }
0x3df5   : > { %v15666_v63 = vpop.eup %15665 }
0x3df6   : > { %v9825_v8 = vsel %vm2657_vm12, %v15666_v63, 0.0 }
0x3df7   : > { %9826 = vadd.xlane.f32.xlu0 %v9825_v8 }
0x3e0d   : > { %9996 = vrot.lane.b32.xlu0 %v17984_v3, %s16232_s15 }
0x3e56   : > { %v9987_v12 = vpop.xlane.xlu0 %9986 }
0x3e57   : > { %v9988_v30 = vsub.f32 %v9984_v19, %v9987_v12 }
0x3e59   : > { %v9989_v48 = vmul.f32 1.442695, %v9988_v30 }
0x3e5b   : > { %15667 = vpow2.f32 %v9989_v48 }
0x3e68   : > { %v15668_v51 = vpop.eup %15667 }
0x3e69   : > { %v9991_v43 = vsel %vm2657_vm12, %v15668_v51, 0.0 }
0x3e6a   : > { %9992 = vadd.xlane.f32.xlu1 %v9991_v43 }
0x3e7b   : > { %10221 = vrot.lane.b32.xlu1 %v17974_v34, %s16233_s1 }
0x3e7f   : > { %10219 = vrot.lane.b32.xlu1 %v17916_v20, %s16233_s1 }
0x3e80   : > { %v9827_v54 = vpop.xlane.xlu0 %9826 }
0x3e81   : > { %15669 = vrcp.f32 %v9827_v54 }
0x3e84   : > { %v9997_v46 = vpop.permute.xlu0 %9996 }
0x3e8e   : > { %v15670_v62 = vpop.eup %15669 }
0x3e8f   : > { %v9829_v24 = vmul.f32 %v15670_v62, %v15666_v63 }
0x3e91   : > { %15140 = vmatmul.mubr.msk.f32.vlgmr.msra.gmra.mxu1 %vm2657_vm12, %v9829_v24 }
0x3e92   : > { %15148 = vmatpush3.msk.msra.mxu1 %vm2661_vm11, %v9997_v46  ;;  %15149 = vmatprep.mubr.msk.f32.mxu1 %vm16231_vm2, %v16230_v6  ;;  %v18064_v46 = vld [vmem:[#allocation13 + $0x78] sm:$0xff] }
0x3e93   : > { %15157 = vmatprep.subr.mxu1 %v16230_v6 }
0x3ef3   : > { %v9993_v40 = vpop.xlane.xlu1 %9992 }
0x3ef4   : > { %15671 = vrcp.f32 %v9993_v40 }
0x3ef7   : > { %v10222_v42 = vpop.permute.xlu1 %10221 }
0x3efb   : > { %v10220_v23 = vpop.permute.xlu1 %10219 }
0x3f01   : > { %v15672_v52 = vpop.eup %15671 }
0x3f02   : > { %v9995_v47 = vmul.f32 %v15672_v52, %v15668_v51 }
0x3f04   : > { %15150 = vmatmul.mubr.msk.f32.vlgmr.msra.gmra.mxu1 %vm2657_vm12, %v9995_v47 }
0x3f05   : > { %15158 = vmatpush3.msra.mxu1 %v18017_v59  ;;  %15159 = vmatprep.mubr.msk.f32.mxu1 %vm16231_vm2, %v16230_v6 }
0x3f06   : > { %15167 = vmatprep.subr.mxu1 %v16230_v6 }
0x3f51   : > { %v9902_v14 = vpop.f32.mrf.mxu1 }
0x3f52   : > { %15160 = vmatmul.mubr.msk.f32.vlgmr.msra.gmra.mxu1 %vm1168_vm5, %v9902_v14 }
0x3f53   : > { %v15141_v35 = vpop.f32.mrf.mxu1  ;;  %15169 = vmatprep.mubr.msk.f32.mxu1 %vm16231_vm2, %v16230_v6 }
0x3fc4   : > { %v10069_v61 = vpop.f32.mrf.mxu1 }
0x3fc5   : > { %15155 = vmatmul.mubr.msk.f32.vlgmr.msra.gmra.mxu0 %vm1168_vm5, %v10069_v61 }
0x3fc6   : > { %15163 = vmatpush3.xpose.msk.msra.mxu0 %vm1168_vm5, %v10222_v42  ;;  %v15151_v21 = vpop.f32.mrf.mxu1  ;;  %15164 = vmatprep.mubr.msk.f32.mxu0 %vm16231_vm2, %v16230_v6 }
0x3fc7   : > { %15172 = vmatprep.subr.mxu0 %v16230_v6 }
0x3fc9   : > { %15165 = vmatmul.mubr.msk.f32.vlgmr.msra.gmra.mxu0 %vm1168_vm5, %v10220_v23  ;;  %v18075_v23 = vld [vmem:[#allocation14 + $0xf0] sm:$0xff] }
0x3fca   : > { %15174 = vmatprep.mubr.msk.f32.mxu0 %vm16231_vm2, %v16230_v6 }
0x4012   : > { %v10215_v25 = vpop.f32.mrf.mxu1 }
0x4014   : > { %v15161_v37 = vpop.f32.mrf.mxu1 }
0x4085   : > { %v10142_v58 = vpop.f32.mrf.mxu0 }
0x4086   : > { %v10216_v40 = vadd.f32 %v10215_v25, %v10142_v58  ;;  %v18081_v25 = vld [vmem:[#allocation14 + $0xd8] sm:$0xff]  ;;  %v18084_v58 = vld [vmem:[#allocation14 + $0xd0] sm:$0xff] }
0x4087   : > { %v15156_v56 = vpop.f32.mrf.mxu0 }
0x4089   : > { %v10293_v18 = vpop.f32.mrf.mxu0 }
0x408a   : > { %v10297_v26 = vmul.f32 0.35355338, %v10293_v18  ;;  %v18090_v18 = vld [vmem:[#allocation14 + $0xc8] sm:$0xff] }
0x408b   : > { %v15166_v7 = vpop.f32.mrf.mxu0 }
0x408c   : > { %v10298_v4 = vsel %vm2657_vm12, %v10297_v26, -inf  ;;  %v18139_v7 = vld [vmem:[#allocation17 + $0xf8] sm:$0xff] }
0x408d   : > { %10299 = vmax.xlane.f32.xlu0 %v10298_v4  ;;  %v18141_v4 = vld [vmem:[#allocation17 + $0xf0] sm:$0xff] }
0x40a3   : > { %10309 = vrot.lane.b32.xlu0 %v17984_v3, %s16233_s1 }
0x40a7   : > { %10460 = vrot.lane.b32.xlu0 %v17916_v20, %s16234_s29 }
0x4116   : > { %v10300_v10 = vpop.xlane.xlu0 %10299 }
0x4117   : > { %v10301_v22 = vsub.f32 %v10297_v26, %v10300_v10  ;;  %v18094_v26 = vld [vmem:[#allocation14 + $0xc0] sm:$0xff] }
0x4119   : > { %v10302_v2 = vmul.f32 1.442695, %v10301_v22  ;;  %v18145_v22 = vld [vmem:[#allocation17 + $0xe8] sm:$0xff] }
0x411a   : > { %v10310_v0 = vpop.permute.xlu0 %10309 }
0x411b   : > { %15673 = vpow2.f32 %v10302_v2  ;;  %15168 = vmatpush3.msk.msra.mxu1 %vm2661_vm11, %v10310_v0  ;;  %v18149_v2 = vld [vmem:[#allocation17 + $0xe0] sm:$0xff]  ;;  %v18153_v0 = vld [vmem:[#allocation17 + $0xd8] sm:$0xff] }
0x411c   : > { %15177 = vmatprep.subr.mxu1 %v16230_v6 }
0x411e   : > { %v10461_v49 = vpop.permute.xlu0 %10460 }
0x4128   : > { %v15674_v17 = vpop.eup %15673 }
0x4129   : > { %v10304_v19 = vsel %vm2657_vm12, %v15674_v17, 0.0 }
0x412a   : > { %10305 = vadd.xlane.f32.xlu1 %v10304_v19 }
0x413b   : > { %10462 = vrot.lane.b32.xlu1 %v17974_v34, %s16234_s29  ;;  %v18053_v34 = vld [vmem:[#allocation13 + $0x70] sm:$0xff] }
0x413c   : > { %15173 = vmatpush3.msra.mxu0 %v18053_v34 }
0x413d   : > { %15182 = vmatprep.subr.mxu0 %v16230_v6 }
0x41b3   : > { %v10306_v32 = vpop.xlane.xlu1 %10305 }
0x41b4   : > { %15675 = vrcp.f32 %v10306_v32 }
0x41b7   : > { %v10463_v60 = vpop.permute.xlu1 %10462 }
0x41c1   : > { %v15676_v53 = vpop.eup %15675 }
0x41c2   : > { %v10308_v20 = vmul.f32 %v15676_v53, %v15674_v17 }
0x41c4   : > { %15170 = vmatmul.mubr.msk.f32.vlgmr.msra.gmra.mxu1 %vm2657_vm12, %v10308_v20  ;;  %v18184_v20 = vld [vmem:[#allocation17 + $0xc0] sm:$0xff] }
0x41c5   : > { %15178 = vmatpush3.xpose.msk.msra.mxu1 %vm1168_vm5, %v10463_v60  ;;  %15179 = vmatprep.mubr.msk.f32.mxu1 %vm16231_vm2, %v16230_v6  ;;  %v18188_v60 = vld [vmem:[#allocation16 + $0x3] ss:$0 sm:$0xff] }
0x41c6   : > { %15187 = vmatprep.subr.mxu1 %v16230_v6 }
0x41c8   : > { %15180 = vmatmul.mubr.msk.f32.vlgmr.msra.gmra.mxu1 %vm1168_vm5, %v10461_v49 }
0x41c9   : > { %15189 = vmatprep.mubr.msk.f32.mxu1 %vm16231_vm2, %v16230_v6  ;;  %15188 = vmatpush3.msra.mxu1 %v18064_v46 }
0x41ca   : > { %15203 = vmatprep.subr.mxu1 %v16230_v6 }
0x4284   : > { %v10382_v55 = vpop.f32.mrf.mxu1 }
0x4285   : > { %15175 = vmatmul.mubr.msk.f32.vlgmr.msra.gmra.mxu0 %vm1168_vm5, %v10382_v55 }
0x4286   : > { %v15171_v63 = vpop.f32.mrf.mxu1  ;;  %15184 = vmatprep.mubr.msk.f32.mxu0 %vm16231_vm2, %v16230_v6 }
0x4288   : > { %v10534_v8 = vpop.f32.mrf.mxu1 }
0x4289   : > { %v10538_v12 = vmul.f32 0.35355338, %v10534_v8 }
0x428a   : > { %v15181_v30 = vpop.f32.mrf.mxu1 }
0x428b   : > { %v10539_v48 = vsel %vm2657_vm12, %v10538_v12, -inf }
0x428c   : > { %10540 = vmax.xlane.f32.xlu1 %v10539_v48 }
0x4315   : > { %v10541_v51 = vpop.xlane.xlu1 %10540 }
0x4316   : > { %v10542_v43 = vsub.f32 %v10538_v12, %v10541_v51 }
0x4318   : > { %v10543_v54 = vmul.f32 1.442695, %v10542_v43 }
0x431a   : > { %15677 = vpow2.f32 %v10543_v54 }
0x4327   : > { %v15678_v62 = vpop.eup %15677 }
0x4328   : > { %v10545_v24 = vsel %vm2657_vm12, %v15678_v62, 0.0 }
0x4329   : > { %10546 = vadd.xlane.f32.xlu0 %v10545_v24 }
0x433f   : > { %10550 = vrot.lane.b32.xlu0 %v17984_v3, %s16234_s29  ;;  %v18073_v3 = vld [vmem:[#allocation14 + $0xf8] sm:$0xff] }
0x4345   : > { %v10455_v52 = vpop.f32.mrf.mxu0 }
0x4346   : > { %v10459_v47 = vadd.f32 %v10455_v52, %v10216_v40 }
0x4347   : > { %v15176_v14 = vpop.f32.mrf.mxu0 }
0x43b2   : > { %v10547_v35 = vpop.xlane.xlu0 %10546 }
0x43b3   : > { %15679 = vrcp.f32 %v10547_v35 }
0x43b6   : > { %v10551_v42 = vpop.permute.xlu0 %10550 }
0x43b7   : > { %15183 = vmatpush3.msk.msra.mxu0 %vm2661_vm11, %v10551_v42 }
0x43b8   : > { %15192 = vmatprep.subr.mxu0 %v16230_v6 }
0x43c0   : > { %v15680_v61 = vpop.eup %15679 }
0x43c1   : > { %v10549_v21 = vmul.f32 %v15680_v61, %v15678_v62 }
0x43c3   : > { %15185 = vmatmul.mubr.msk.f32.vlgmr.msra.gmra.mxu0 %vm2657_vm12, %v10549_v21 }
0x43c4   : > { %15200 = vmatprep.mubr.msk.f32.mxu0 %vm16231_vm2, %v16230_v6  ;;  %15193 = vmatpush3.msra.mxu0 %v18073_v3 }
0x43c5   : > { %15194 = vmatprep.subr.mxu0 %v16230_v6 }
0x43c6   : > { %15195 = vmatpush3.msra.mxu0 %v18075_v23 }
0x43c7   : > { %15196 = vmatprep.subr.mxu0 %v16230_v6 }
0x4483   : > { %v10623_v37 = vpop.f32.mrf.mxu0 }
0x4484   : > { %15190 = vmatmul.mubr.msk.f32.vlgmr.msra.gmra.mxu1 %vm1168_vm5, %v10623_v37 }
0x4485   : > { %15204 = vmatpush3.msra.mxu1 %v18081_v25  ;;  %v15186_v56 = vpop.f32.mrf.mxu0  ;;  %15211 = vmatprep.mubr.msk.f32.mxu1 %vm16231_vm2, %v16230_v6 }
0x4486   : > { %15205 = vmatprep.subr.mxu1 %v16230_v6 }
0x4487   : > { %15206 = vmatpush3.msra.mxu1 %v18084_v58 }
0x4488   : > { %15207 = vmatprep.subr.mxu1 %v16230_v6 }
0x4489   : > { %15208 = vmatpush3.msra.mxu1 %v18090_v18 }
0x448a   : > { %15209 = vmatprep.subr.mxu1 %v16230_v6 }
0x448b   : > { %15210 = vmatpush3.msra.mxu1 %v18094_v26 }
0x448c   : > { %15212 = vmatmul.mubr.msk.f32.vlgmr.msra.gmra.mxu1 %vm870_vm1, %v17888_v31  ;;  %15233 = vmatprep.subr.mxu1 %v16230_v6 }
0x448d   : > { %15234 = vmatpush3.msra.mxu1 %v17861_v38  ;;  %15241 = vmatprep.mubr.msk.f32.mxu1 %vm16231_vm2, %v16230_v6  ;;  %v18128_v38 = vld [vmem:[#allocation14 + $0xe8] sm:$0xff] }
0x448e   : > { %15235 = vmatprep.subr.mxu1 %v16230_v6  ;;  %15197 = vmatpush3.msra.mxu0 %v18128_v38 }
0x448f   : > { %15236 = vmatpush3.msra.mxu1 %v17872_v27  ;;  %15198 = vmatprep.subr.mxu0 %v16230_v6  ;;  %v18132_v27 = vld [vmem:[#allocation14 + $0xe0] sm:$0xff] }
0x4490   : > { %15237 = vmatprep.subr.mxu1 %v16230_v6  ;;  %15199 = vmatpush3.msra.mxu0 %v18132_v27 }
0x4491   : > { %15238 = vmatpush3.msra.mxu1 %v17880_v15  ;;  %15214 = vmatprep.subr.mxu0 %v16230_v6 }
0x4492   : > { %15239 = vmatprep.subr.mxu1 %v16230_v6 }
0x4493   : > { %15240 = vmatpush3.msra.mxu1 %v17884_v36 }
0x4494   : > { %15242 = vmatmul.mubr.msk.f32.vlgmr.msra.gmra.mxu1 %vm870_vm1, %v17961_v16  ;;  %15244 = vmatprep.subr.mxu1 %v16230_v6 }
0x4495   : > { %15245 = vmatpush3.msra.mxu1 %v17923_v50  ;;  %15252 = vmatprep.mubr.msk.f32.mxu1 %vm16231_vm2, %v16230_v6 }
0x4496   : > { %15246 = vmatprep.subr.mxu1 %v16230_v6 }
0x4497   : > { %15247 = vmatpush3.msra.mxu1 %v17935_v39 }
0x4498   : > { %15248 = vmatprep.subr.mxu1 %v16230_v6 }
0x4499   : > { %15249 = vmatpush3.msra.mxu1 %v17943_v44 }
0x449a   : > { %15250 = vmatprep.subr.mxu1 %v16230_v6 }
0x449b   : > { %15251 = vmatpush3.msra.mxu1 %v17949_v28 }
0x449c   : > { %15253 = vmatmul.mubr.msk.f32.vlgmr.msra.gmra.mxu1 %vm870_vm1, %v17888_v31  ;;  %15266 = vmatprep.subr.mxu1 %v16230_v6 }
0x449d   : > { %15268 = vmatprep.mubr.msk.f32.mxu1 %vm16231_vm2, %v16230_v6 }
0x4544   : > { %v10696_v15 = vpop.f32.mrf.mxu1 }
0x4545   : > { %v10700_v36 = vadd.f32 %v10696_v15, %v10459_v47 }
0x4546   : > { %v15191_v50 = vpop.f32.mrf.mxu1 }
0x4547   : > { %15201 = vmatmul.mubr.msk.f32.vlgmr.msra.gmra.mxu0 %vm870_vm1, %v10700_v36 }
0x4548   : > { %15230 = vmatprep.mubr.msk.f32.mxu0 %vm16231_vm2, %v16230_v6  ;;  %15215 = vmatpush3.msra.mxu0 %v18139_v7 }
0x4549   : > { %15216 = vmatprep.subr.mxu0 %v16230_v6 }
0x454a   : > { %15217 = vmatpush3.msra.mxu0 %v18141_v4 }
0x454b   : > { %15218 = vmatprep.subr.mxu0 %v16230_v6 }
0x454c   : > { %v10840_v39 = vpop.f32.mrf.mxu1  ;;  %15219 = vmatpush3.msra.mxu0 %v18145_v22 }
0x454d   : > { %15220 = vmatprep.subr.mxu0 %v16230_v6 }
0x454e   : > { %v15213_v44 = vpop.f32.mrf.mxu1  ;;  %15221 = vmatpush3.msra.mxu0 %v18149_v2 }
0x454f   : > { %15222 = vmatprep.subr.mxu0 %v16230_v6 }
0x4550   : > { %15223 = vmatpush3.msra.mxu0 %v18153_v0 }
0x4551   : > { %15224 = vmatprep.subr.mxu0 %v16230_v6 }
0x4554   : > { %v10998_v28 = vpop.f32.mrf.mxu1 }
0x4555   : > { %v18166_v53 = vadd.f32 %v17910_v5, %v10998_v28  ;;  %v18180_v5 = vld [vmem:[#allocation17 + $0xc8] sm:$0xff] }
0x4556   : > { %v15243_v10 = vpop.f32.mrf.mxu1 }
0x455c   : > { %v11068_v17 = vpop.f32.mrf.mxu1 }
0x455d   : > { %v18157_v19 = vadd.f32 %v17971_v9, %v11068_v17  ;;  %v18176_v9 = vld [vmem:[#allocation17 + $0xd0] sm:$0xff] }
0x455e   : > { %v15254_v32 = vpop.f32.mrf.mxu1  ;;  %15225 = vmatpush3.msra.mxu0 %v18176_v9 }
0x455f   : > { %11305 = vrot.lane.b32.xlu1 %v18157_v19, %s16232_s15  ;;  %15267 = vmatpush3.xpose.msk.msra.mxu1 %vm1168_vm5, %v18157_v19 }
0x4560   : > { %15271 = vmatprep.subr.mxu1 %v16230_v6  ;;  %15226 = vmatprep.subr.mxu0 %v16230_v6 }
0x4561   : > { %15227 = vmatpush3.msra.mxu0 %v18180_v5 }
0x4562   : > { %15269 = vmatmul.mubr.msk.f32.vlgmr.msra.gmra.mxu1 %vm1168_vm5, %v18166_v53  ;;  %15228 = vmatprep.subr.mxu0 %v16230_v6 }
0x4563   : > { %11303 = vrot.lane.b32.xlu1 %v18166_v53, %s16232_s15  ;;  %15273 = vmatprep.mubr.msk.f32.mxu1 %vm16231_vm2, %v16230_v6 }
0x4564   : > { %15229 = vmatpush3.msra.mxu0 %v18184_v20 }
0x4565   : > { %15255 = vmatprep.subr.mxu0 %v16230_v6 }
0x45d1   : > { %v11306_v30 = vpop.permute.xlu1 %11305 }
0x4607   : > { %v10770_v49 = vpop.f32.mrf.mxu0 }
0x4608   : > { %v10841_v55 = vadd.f32 %v10840_v39, %v10770_v49 }
0x4609   : > { %v15202_v63 = vpop.f32.mrf.mxu0 }
0x460a   : > { %v10850_v8 = vadd.f32 %v18188_v60, %v10841_v55 }
0x460c   : > { %v10851_v12 = vmax.f32 %v10850_v8, 0.0 }
0x460e   : > { %15231 = vmatmul.mubr.msk.f32.vlgmr.msra.gmra.mxu0 %vm2280_vm9, %v10851_v12 }
0x460f   : > { %15256 = vmatpush3.msra.mxu0 %v17928_v11  ;;  %15263 = vmatprep.mubr.msk.f32.mxu0 %vm16231_vm2, %v16230_v6  ;;  %v11304_v11 = vpop.permute.xlu1 %11303 }
0x4610   : > { %15257 = vmatprep.subr.mxu0 %v16230_v6 }
0x4611   : > { %15258 = vmatpush3.msra.mxu0 %v17937_v33 }
0x4612   : > { %15259 = vmatprep.subr.mxu0 %v16230_v6 }
0x4613   : > { %15260 = vmatpush3.msra.mxu0 %v17945_v29 }
0x4614   : > { %15261 = vmatprep.subr.mxu0 %v16230_v6 }
0x4615   : > { %15262 = vmatpush3.msra.mxu0 %v17951_v57 }
0x4616   : > { %15264 = vmatmul.mubr.msk.f32.vlgmr.msra.gmra.mxu0 %vm870_vm1, %v17888_v31  ;;  %15276 = vmatprep.subr.mxu0 %v16230_v6 }
0x4617   : > { %15277 = vmatpush3.xpose.msk.msra.mxu0 %vm1168_vm5, %v11306_v30  ;;  %15278 = vmatprep.mubr.msk.f32.mxu0 %vm16231_vm2, %v16230_v6 }
0x4618   : > { %15286 = vmatprep.subr.mxu0 %v16230_v6 }
0x461a   : > { %15279 = vmatmul.mubr.msk.f32.vlgmr.msra.gmra.mxu0 %vm1168_vm5, %v11304_v11 }
0x461b   : > { %15287 = vmatpush3.msra.mxu0 %v18013_v41  ;;  %15288 = vmatprep.mubr.msk.f32.mxu0 %vm16231_vm2, %v16230_v6 }
0x461c   : > { %15296 = vmatprep.subr.mxu0 %v16230_v6 }
0x4622   : > { %v11214_v33 = vpop.f32.mrf.mxu1 }
0x4623   : > { %v11218_v29 = vmul.f32 0.35355338, %v11214_v33 }
0x4624   : > { %v15270_v57 = vpop.f32.mrf.mxu1 }
0x4625   : > { %v11219_v48 = vsel %vm5508_vm13, %v11218_v29, -inf }
0x4626   : > { %11220 = vmax.xlane.f32.xlu0 %v11219_v48 }
0x46af   : > { %v11221_v51 = vpop.xlane.xlu0 %11220 }
0x46b0   : > { %v11222_v43 = vsub.f32 %v11218_v29, %v11221_v51 }
0x46b2   : > { %v11223_v54 = vmul.f32 1.442695, %v11222_v43 }
0x46b4   : > { %15681 = vpow2.f32 %v11223_v54 }
0x46c1   : > { %v15682_v62 = vpop.eup %15681 }
0x46c2   : > { %v11225_v24 = vsel %vm5508_vm13, %v15682_v62, 0.0 }
0x46c3   : > { %11226 = vadd.xlane.f32.xlu0 %v11225_v24 }
0x46ce   : > { %v18215_v41 = vpop.f32.mrf.mxu0 }
0x46d0   : > { %v15232_v40 = vpop.f32.mrf.mxu0 }
0x46d6   : > { %v11138_v52 = vpop.f32.mrf.mxu0 }
0x46d7   : > { %v18218_v47 = vadd.f32 %v17976_v13, %v11138_v52 }
0x46d8   : > { %v15265_v14 = vpop.f32.mrf.mxu0 }
0x46d9   : > { %15272 = vmatpush3.msra.mxu1 %v18218_v47 }
0x46da   : > { %v11377_v35 = vpop.f32.mrf.mxu0  ;;  %15281 = vmatprep.subr.mxu1 %v16230_v6 }
0x46db   : > { %v11381_v42 = vmul.f32 0.35355338, %v11377_v35 }
0x46dc   : > { %v15280_v61 = vpop.f32.mrf.mxu0 }
0x46dd   : > { %v11382_v21 = vsel %vm5508_vm13, %v11381_v42, -inf }
0x46de   : > { %11383 = vmax.xlane.f32.xlu1 %v11382_v21 }
0x46ef   : > { %11394 = vrot.lane.b32.xlu1 %v18218_v47, %s16232_s15 }
0x46f3   : > { %11616 = vrot.lane.b32.xlu1 %v18166_v53, %s16233_s1 }
0x474c   : > { %v11227_v37 = vpop.xlane.xlu0 %11226 }
0x474d   : > { %15683 = vrcp.f32 %v11227_v37 }
0x475a   : > { %v15684_v13 = vpop.eup %15683 }
0x475b   : > { %v11229_v56 = vmul.f32 %v15684_v13, %v15682_v62 }
0x475d   : > { %15274 = vmatmul.mubr.msk.f32.vlgmr.msra.gmra.mxu1 %vm1168_vm5, %v11229_v56 }
0x475e   : > { %15283 = vmatprep.mubr.msk.f32.mxu1 %vm16231_vm2, %v16230_v6 }
0x4767   : > { %v11384_v15 = vpop.xlane.xlu1 %11383 }
0x4768   : > { %v11385_v36 = vsub.f32 %v11381_v42, %v11384_v15 }
0x476a   : > { %v11386_v50 = vmul.f32 1.442695, %v11385_v36 }
0x476b   : > { %v11395_v39 = vpop.permute.xlu1 %11394 }
0x476c   : > { %15685 = vpow2.f32 %v11386_v50  ;;  %15282 = vmatpush3.msra.mxu1 %v11395_v39 }
0x476d   : > { %15291 = vmatprep.subr.mxu1 %v16230_v6 }
0x4779   : > { %v15686_v44 = vpop.eup %15685 }
0x477a   : > { %v11388_v28 = vsel %vm5508_vm13, %v15686_v44, 0.0 }
0x477b   : > { %11389 = vadd.xlane.f32.xlu0 %v11388_v28 }
0x4791   : > { %11618 = vrot.lane.b32.xlu0 %v18157_v19, %s16233_s1 }
0x4804   : > { %v11390_v10 = vpop.xlane.xlu0 %11389 }
0x4805   : > { %15687 = vrcp.f32 %v11390_v10 }
0x4808   : > { %v11619_v8 = vpop.permute.xlu0 %11618 }
0x4812   : > { %v15688_v17 = vpop.eup %15687 }
0x4813   : > { %v11392_v32 = vmul.f32 %v15688_v17, %v15686_v44 }
0x4815   : > { %15284 = vmatmul.mubr.msk.f32.vlgmr.msra.gmra.mxu1 %vm1168_vm5, %v11392_v32 }
0x4816   : > { %15292 = vmatpush3.msra.mxu1 %v18017_v59  ;;  %15293 = vmatprep.mubr.msk.f32.mxu1 %vm16231_vm2, %v16230_v6  ;;  %v11617_v59 = vpop.permute.xlu1 %11616 }
0x4817   : > { %15301 = vmatprep.subr.mxu1 %v16230_v6 }
0x481d   : > { %v11299_v49 = vpop.f32.mrf.mxu1 }
0x481e   : > { %15294 = vmatmul.mubr.msk.f32.vlgmr.msra.gmra.mxu1 %vm1168_vm5, %v11299_v49 }
0x481f   : > { %v15275_v55 = vpop.f32.mrf.mxu1  ;;  %15303 = vmatprep.mubr.msk.f32.mxu1 %vm16231_vm2, %v16230_v6 }
0x48d5   : > { %v11466_v63 = vpop.f32.mrf.mxu1 }
0x48d6   : > { %15289 = vmatmul.mubr.msk.f32.vlgmr.msra.gmra.mxu0 %vm1168_vm5, %v11466_v63 }
0x48d7   : > { %15297 = vmatpush3.xpose.msk.msra.mxu0 %vm1168_vm5, %v11619_v8  ;;  %v15285_v12 = vpop.f32.mrf.mxu1  ;;  %15298 = vmatprep.mubr.msk.f32.mxu0 %vm16231_vm2, %v16230_v6 }
0x48d8   : > { %15306 = vmatprep.subr.mxu0 %v16230_v6 }
0x48da   : > { %15299 = vmatmul.mubr.msk.f32.vlgmr.msra.gmra.mxu0 %vm1168_vm5, %v11617_v59 }
0x48db   : > { %15307 = vmatpush3.msra.mxu0 %v18053_v34  ;;  %15308 = vmatprep.mubr.msk.f32.mxu0 %vm16231_vm2, %v16230_v6 }
0x48dc   : > { %15316 = vmatprep.subr.mxu0 %v16230_v6 }
0x48de   : > { %v11612_v30 = vpop.f32.mrf.mxu1 }
0x48e0   : > { %v15295_v11 = vpop.f32.mrf.mxu1 }
0x4996   : > { %v11539_v33 = vpop.f32.mrf.mxu0 }
0x4997   : > { %v11613_v10 = vadd.f32 %v11612_v30, %v11539_v33 }
0x4998   : > { %v15290_v29 = vpop.f32.mrf.mxu0 }
0x499a   : > { %v11690_v57 = vpop.f32.mrf.mxu0 }
0x499b   : > { %v11694_v48 = vmul.f32 0.35355338, %v11690_v57 }
0x499c   : > { %v15300_v51 = vpop.f32.mrf.mxu0 }
0x499d   : > { %v11695_v43 = vsel %vm5508_vm13, %v11694_v48, -inf  ;;  %v13797_v51 = vld [vmem:[#allocation20] ss:$0 sm:$0xff] }
0x499e   : > { %11696 = vmax.xlane.f32.xlu1 %v11695_v43 }
0x49af   : > { %11858 = vrot.lane.b32.xlu1 %v18157_v19, %s16234_s29 }
0x49b3   : > { %11856 = vrot.lane.b32.xlu1 %v18166_v53, %s16234_s29 }
0x4a27   : > { %v11697_v34 = vpop.xlane.xlu1 %11696 }
0x4a28   : > { %v11698_v54 = vsub.f32 %v11694_v48, %v11697_v34  ;;  %v13155_v48 = vld [vmem:[%s18559_s16] sm:$0xff] }
0x4a2a   : > { %v11699_v62 = vmul.f32 1.442695, %v11698_v54 }
0x4a2b   : > { %v11859_v35 = vpop.permute.xlu1 %11858 }
0x4a2c   : > { %15689 = vpow2.f32 %v11699_v62 }
0x4a2f   : > { %v11857_v42 = vpop.permute.xlu1 %11856 }
0x4a39   : > { %v15690_v24 = vpop.eup %15689 }
0x4a3a   : > { %v11701_v40 = vsel %vm5508_vm13, %v15690_v24, 0.0 }
0x4a3b   : > { %11702 = vadd.xlane.f32.xlu0 %v11701_v40  ;;  %v13804_v40 = vld [vmem:[#allocation22] ss:$0 sm:$0xff] }
0x4a51   : > { %11706 = vrot.lane.b32.xlu0 %v18218_v47, %s16233_s1 }
0x4ac4   : > { %v11703_v52 = vpop.xlane.xlu0 %11702 }
0x4ac5   : > { %15691 = vrcp.f32 %v11703_v52 }
0x4ac8   : > { %v11707_v14 = vpop.permute.xlu0 %11706 }
0x4ac9   : > { %15302 = vmatpush3.msra.mxu1 %v11707_v14 }
0x4aca   : > { %15311 = vmatprep.subr.mxu1 %v16230_v6 }
0x4ad2   : > { %v15692_v19 = vpop.eup %15691 }
0x4ad3   : > { %v11705_v53 = vmul.f32 %v15692_v19, %v15690_v24  ;;  %v13238_v24 = vld [vmem:[%s18561_s18 + $0x8] sm:$0xff] }
0x4ad5   : > { %15304 = vmatmul.mubr.msk.f32.vlgmr.msra.gmra.mxu1 %vm1168_vm5, %v11705_v53 }
0x4ad6   : > { %15312 = vmatpush3.xpose.msk.msra.mxu1 %vm1168_vm5, %v11859_v35  ;;  %15313 = vmatprep.mubr.msk.f32.mxu1 %vm16231_vm2, %v16230_v6 }
0x4ad7   : > { %15321 = vmatprep.subr.mxu1 %v16230_v6 }
0x4ad9   : > { %15314 = vmatmul.mubr.msk.f32.vlgmr.msra.gmra.mxu1 %vm1168_vm5, %v11857_v42 }
0x4ada   : > { %15322 = vmatpush3.msra.mxu1 %v18064_v46  ;;  %15323 = vmatprep.mubr.msk.f32.mxu1 %vm16231_vm2, %v16230_v6 }
0x4adb   : > { %15337 = vmatprep.subr.mxu1 %v16230_v6 }
0x4b95   : > { %v11778_v61 = vpop.f32.mrf.mxu1 }
0x4b96   : > { %15309 = vmatmul.mubr.msk.f32.vlgmr.msra.gmra.mxu0 %vm1168_vm5, %v11778_v61 }
0x4b97   : > { %v15305_v21 = vpop.f32.mrf.mxu1  ;;  %15318 = vmatprep.mubr.msk.f32.mxu0 %vm16231_vm2, %v16230_v6 }
0x4b99   : > { %v11930_v37 = vpop.f32.mrf.mxu1 }
0x4b9a   : > { %v11934_v13 = vmul.f32 0.35355338, %v11930_v37 }
0x4b9b   : > { %v15315_v56 = vpop.f32.mrf.mxu1 }
0x4b9c   : > { %v11935_v15 = vsel %vm5508_vm13, %v11934_v13, -inf  ;;  %v18391_v56 = vld [vmem:[%s16559_s0 + $0x8] sm:$0x1] }
0x4b9d   : > { %11936 = vmax.xlane.f32.xlu0 %v11935_v15 }
0x4bb3   : > { %11946 = vrot.lane.b32.xlu0 %v18218_v47, %s16234_s29 }
0x4c26   : > { %v11937_v46 = vpop.xlane.xlu0 %11936 }
0x4c27   : > { %v11938_v36 = vsub.f32 %v11934_v13, %v11937_v46  ;;  %v12574_v46 = vsel %vm12553_vm0, %v18391_v56, -inf }
0x4c29   : > { %v11939_v50 = vmul.f32 1.442695, %v11938_v36 }
0x4c2a   : > { %v11947_v39 = vpop.permute.xlu0 %11946 }
0x4c2b   : > { %15693 = vpow2.f32 %v11939_v50  ;;  %15317 = vmatpush3.msra.mxu0 %v11947_v39 }
0x4c2c   : > { %15326 = vmatprep.subr.mxu0 %v16230_v6 }
0x4c38   : > { %v15694_v44 = vpop.eup %15693 }
0x4c39   : > { %v11941_v28 = vsel %vm5508_vm13, %v15694_v44, 0.0 }
0x4c3a   : > { %11942 = vadd.xlane.f32.xlu1 %v11941_v28 }
0x4c56   : > { %v11851_v17 = vpop.f32.mrf.mxu0 }
0x4c57   : > { %v11855_v32 = vadd.f32 %v11851_v17, %v11613_v10 }
0x4c58   : > { %v15310_v49 = vpop.f32.mrf.mxu0 }
0x4cc3   : > { %v11943_v55 = vpop.xlane.xlu1 %11942 }
0x4cc4   : > { %15695 = vrcp.f32 %v11943_v55 }
0x4cd1   : > { %v15696_v63 = vpop.eup %15695 }
0x4cd2   : > { %v11945_v47 = vmul.f32 %v15696_v63, %v15694_v44 }
0x4cd4   : > { %15319 = vmatmul.mubr.msk.f32.vlgmr.msra.gmra.mxu0 %vm1168_vm5, %v11945_v47 }
0x4cd5   : > { %15327 = vmatpush3.msra.mxu0 %v18073_v3  ;;  %15334 = vmatprep.mubr.msk.f32.mxu0 %vm16231_vm2, %v16230_v6 }
0x4cd6   : > { %15328 = vmatprep.subr.mxu0 %v16230_v6 }
0x4cd7   : > { %15329 = vmatpush3.msra.mxu0 %v18075_v23  ;;  %v12318_v23 = vld [vmem:[#allocation19 + $0x18] sm:$0xff] }
0x4cd8   : > { %15330 = vmatprep.subr.mxu0 %v16230_v6 }
0x4cd9   : > { %15331 = vmatpush3.msra.mxu0 %v18128_v38  ;;  %v13773_v38 = vld [vmem:[%s18555_s12 + $0x3] ss:$0 sm:$0xff] }
0x4cda   : > { %15332 = vmatprep.subr.mxu0 %v16230_v6 }
0x4cdb   : > { %15333 = vmatpush3.msra.mxu0 %v18132_v27  ;;  %v12315_v27 = vld [vmem:[#allocation19] sm:$0xff] }
0x4cdc   : > { %15348 = vmatprep.subr.mxu0 %v16230_v6 }
0x4d94   : > { %v12018_v8 = vpop.f32.mrf.mxu0 }
0x4d95   : > { %15324 = vmatmul.mubr.msk.f32.vlgmr.msra.gmra.mxu1 %vm1168_vm5, %v12018_v8 }
0x4d96   : > { %15338 = vmatpush3.msra.mxu1 %v18081_v25  ;;  %v15320_v3 = vpop.f32.mrf.mxu0  ;;  %15345 = vmatprep.mubr.msk.f32.mxu1 %vm16231_vm2, %v16230_v6  ;;  %v12317_v25 = vld [vmem:[#allocation19 + $0x10] sm:$0xff] }
0x4d97   : > { %15339 = vmatprep.subr.mxu1 %v16230_v6 }
0x4d98   : > { %15340 = vmatpush3.msra.mxu1 %v18084_v58  ;;  %v10928_v58 = vadd.f32 %v13773_v38, %v18215_v41 }
0x4d99   : > { %15341 = vmatprep.subr.mxu1 %v16230_v6 }
0x4d9a   : > { %15342 = vmatpush3.msra.mxu1 %v18090_v18  ;;  %v12316_v18 = vld [vmem:[#allocation19 + $0x8] sm:$0xff] }
0x4d9b   : > { %15343 = vmatprep.subr.mxu1 %v16230_v6 }
0x4d9c   : > { %15344 = vmatpush3.msra.mxu1 %v18094_v26  ;;  %v10931_v26 = vadd.f32 %v10928_v58, %v17888_v31 }
0x4d9d   : > { %15346 = vmatmul.mubr.msk.f32.vlgmr.msra.gmra.mxu1 %vm870_vm1, %v17961_v16  ;;  %15367 = vmatprep.subr.mxu1 %v16230_v6 }
0x4d9e   : > { %15368 = vmatpush3.msra.mxu1 %v12318_v23  ;;  %15375 = vmatprep.mubr.msk.f32.mxu1 %vm16231_vm2, %v16230_v6 }
0x4d9f   : > { %15369 = vmatprep.subr.mxu1 %v16230_v6 }
0x4da0   : > { %15370 = vmatpush3.msra.mxu1 %v12317_v25 }
0x4da1   : > { %15371 = vmatprep.subr.mxu1 %v16230_v6 }
0x4da2   : > { %15372 = vmatpush3.msra.mxu1 %v12316_v18 }
0x4da3   : > { %15373 = vmatprep.subr.mxu1 %v16230_v6 }
0x4da4   : > { %15374 = vmatpush3.msra.mxu1 %v12315_v27 }
0x4da5   : > { %15376 = vmatmul.mubr.msk.f32.vlgmr.msra.gmra.mxu1 %vm870_vm1, %v10931_v26  ;;  %15378 = vmatprep.subr.mxu1 %v16230_v6 }
0x4da6   : > { %15379 = vmatpush3.msra.mxu1 %v12318_v23  ;;  %15386 = vmatprep.mubr.msk.f32.mxu1 %vm16231_vm2, %v16230_v6 }
0x4da7   : > { %15380 = vmatprep.subr.mxu1 %v16230_v6 }
0x4da8   : > { %15381 = vmatpush3.msra.mxu1 %v12317_v25 }
0x4da9   : > { %15382 = vmatprep.subr.mxu1 %v16230_v6 }
0x4daa   : > { %15383 = vmatpush3.msra.mxu1 %v12316_v18 }
0x4dab   : > { %15384 = vmatprep.subr.mxu1 %v16230_v6 }
0x4dac   : > { %15385 = vmatpush3.msra.mxu1 %v12315_v27 }
0x4dad   : > { %15394 = vmatprep.subr.mxu1 %v16230_v6 }
0x4e55   : > { %v12091_v31 = vpop.f32.mrf.mxu1 }
0x4e56   : > { %v12095_v41 = vadd.f32 %v12091_v31, %v11855_v32 }
0x4e57   : > { %v15325_v12 = vpop.f32.mrf.mxu1 }
0x4e58   : > { %15335 = vmatmul.mubr.msk.f32.vlgmr.msra.gmra.mxu0 %vm870_vm1, %v12095_v41 }
0x4e59   : > { %15349 = vmatpush3.msra.mxu0 %v18139_v7  ;;  %15364 = vmatprep.mubr.msk.f32.mxu0 %vm16231_vm2, %v16230_v6 }
0x4e5a   : > { %15350 = vmatprep.subr.mxu0 %v16230_v6 }
0x4e5b   : > { %15351 = vmatpush3.msra.mxu0 %v18141_v4 }
0x4e5c   : > { %15352 = vmatprep.subr.mxu0 %v16230_v6 }
0x4e5d   : > { %v12235_v59 = vpop.f32.mrf.mxu1  ;;  %15353 = vmatpush3.msra.mxu0 %v18145_v22 }
0x4e5e   : > { %15354 = vmatprep.subr.mxu0 %v16230_v6 }
0x4e5f   : > { %v15347_v30 = vpop.f32.mrf.mxu1  ;;  %15355 = vmatpush3.msra.mxu0 %v18149_v2 }
0x4e60   : > { %15356 = vmatprep.subr.mxu0 %v16230_v6 }
0x4e61   : > { %15357 = vmatpush3.msra.mxu0 %v18153_v0 }
0x4e62   : > { %15358 = vmatprep.subr.mxu0 %v16230_v6 }
0x4e63   : > { %15359 = vmatpush3.msra.mxu0 %v18176_v9 }
0x4e64   : > { %15360 = vmatprep.subr.mxu0 %v16230_v6 }
0x4e65   : > { %v12395_v7 = vpop.f32.mrf.mxu1  ;;  %15361 = vmatpush3.msra.mxu0 %v18180_v5 }
0x4e66   : > { %15362 = vmatprep.subr.mxu0 %v16230_v6  ;;  %v12396_v62 = vadd.f32 %v13797_v51, %v12395_v7 }
0x4e67   : > { %v15377_v4 = vpop.f32.mrf.mxu1  ;;  %15363 = vmatpush3.msra.mxu0 %v18184_v20  ;;  %v13158_v20 = vld [vmem:[%s18559_s16 + $0x18] sm:$0xff] }
0x4e68   : > { %15389 = vmatprep.subr.mxu0 %v16230_v6 }
0x4f18   : > { %v12165_v22 = vpop.f32.mrf.mxu0 }
0x4f19   : > { %v12236_v2 = vadd.f32 %v12235_v59, %v12165_v22 }
0x4f1a   : > { %v15336_v11 = vpop.f32.mrf.mxu0 }
0x4f1b   : > { %v12239_v0 = vadd.f32 %v18188_v60, %v12236_v2  ;;  %v13157_v60 = vld [vmem:[%s18559_s16 + $0x10] sm:$0xff] }
0x4f1d   : > { %v12240_v33 = vmax.f32 %v12239_v0, 0.0 }
0x4f1f   : > { %15365 = vmatmul.mubr.msk.f32.vlgmr.msra.gmra.mxu0 %vm2280_vm9, %v12240_v33 }
0x4f20   : > { %15391 = vmatprep.mubr.msk.f32.mxu0 %vm16231_vm2, %v16230_v6 }
0x4fdf   : > { %v12310_v9 = vpop.f32.mrf.mxu0 }
0x4fe0   : > { %v12311_v5 = vadd.f32 %v13773_v38, %v12310_v9 }
0x4fe1   : > { %v15366_v29 = vpop.f32.mrf.mxu0 }
0x4fe2   : > { %v12314_v57 = vadd.f32 %v12311_v5, %v17961_v16  ;;  %v13156_v16 = vld [vmem:[%s18559_s16 + $0x8] sm:$0xff] }
0x4fe4   : > { %15387 = vmatmul.mubr.msk.f32.vlgmr.msra.gmra.mxu1 %vm870_vm1, %v12314_v57 }
0x4fe5   : > { %15395 = vmatpush3.msra.mxu1 %v13158_v20  ;;  %15402 = vmatprep.mubr.msk.f32.mxu1 %vm16231_vm2, %v16230_v6 }
0x4fe6   : > { %15396 = vmatprep.subr.mxu1 %v16230_v6 }
0x4fe7   : > { %15397 = vmatpush3.msra.mxu1 %v13157_v60 }
0x4fe8   : > { %15398 = vmatprep.subr.mxu1 %v16230_v6 }
0x4fe9   : > { %15399 = vmatpush3.msra.mxu1 %v13156_v16 }
0x4fea   : > { %15400 = vmatprep.subr.mxu1 %v16230_v6 }
0x4feb   : > { %15401 = vmatpush3.msra.mxu1 %v13155_v48 }
0x4fec   : > { %15403 = vmatmul.mubr.msk.f32.vlgmr.msra.gmra.mxu1 %vm870_vm1, %v16781_v45  ;;  %v13237_v45 = vld [vmem:[%s18561_s18] sm:$0xff] }
0x50a4   : > { %v12468_v43 = vpop.f32.mrf.mxu1 }
0x50a5   : > { %v12469_v34 = vadd.f32 %v13797_v51, %v12468_v43 }
0x50a6   : > { %v15388_v54 = vpop.f32.mrf.mxu1 }
0x50a7   : > { %15390 = vmatpush3.xpose.msk.msra.mxu0 %vm870_vm1, %v12469_v34 }
0x50a8   : > { %15405 = vmatprep.subr.mxu0 %v16230_v6 }
0x50aa   : > { %15392 = vmatmul.mubr.msk.f32.vlgmr.msra.gmra.mxu0 %vm870_vm1, %v12396_v62  ;;  %vm13320_vm1 = vcmask 13312  }
0x50ab   : > { %15406 = vmatpush3.msra.mxu0 %v13238_v24  ;;  %15409 = vmatprep.mubr.msk.f32.mxu0 %vm16231_vm2, %v16230_v6  ;;  %v12565_v24 = vlaneseq }
0x50ac   : > { %v13232_v52 = vpop.f32.mrf.mxu1  ;;  %15407 = vmatprep.subr.mxu0 %v16230_v6  ;;  %v13806_v6 = vld [vmem:[%s18562_s19] ss:$0 sm:$0xff] }
0x50ad   : > { %v13233_v14 = vadd.f32 %v13804_v40, %v13232_v52  ;;  %15408 = vmatpush3.msra.mxu0 %v13237_v45  ;;  %v12566_v40 = vand.u32 127, %v12565_v24 }
0x50ae   : > { %v15404_v19 = vpop.f32.mrf.mxu1 }
0x50af   : > { %v13236_v35 = vmax.f32 %v13233_v14, 0.0  ;;  %vm12567_vm2 = vcmp.lt.s32.totalorder %v12566_v40, 6  ;;  %v16235_v14 = vmov -0.5596158  }
0x50b0   : > { %v18410_v19 = vsel %vm12567_vm2, -2.6390574, %v16235_v14 }
0x50b1   : > { %15410 = vmatmul.mubr.msk.f32.vlgmr.msra.gmra.mxu0 %vm13246_vm14, %v13236_v35 }
0x516a   : > { %v12544_v53 = vpop.f32.mrf.mxu0 }
0x516b   : > { %v12548_v42 = vmul.f32 0.17677669, %v12544_v53 }
0x516c   : > { %v15393_v61 = vpop.f32.mrf.mxu0 }
0x516d   : > { %12555 = vst.msk [vmem:[%s16559_s0] sm:$0xff] %vm2657_vm12, %v12548_v42 }
0x5171   : > { %v13316_v21 = vpop.f32.mrf.mxu0 }
0x5172   : > { %v13317_v37 = vadd.f32 %v13806_v6, %v13316_v21 }
0x5173   : > { %v15411_v13 = vpop.f32.mrf.mxu0 }
0x5174   : > { %v18394_v1 = vld [vmem:[%s16559_s0] sm:$0xff]  ;;  %13321 = vst.msk [vmem:[%s867_s5] sm:$0x3f] %vm13320_vm1, %v13317_v37 }
0x5175   : > { %v12571_v15 = vsel %vm12551_vm15, %v18394_v1, -inf }
0x5176   : > { %12572 = vmax.xlane.f32.xlu1 %v12571_v15 }
0x517a   : > { %12575 = vmax.xlane.f32.xlu1 %v12574_v46 }
0x51ff   : > { %v12573_v36 = vpop.xlane.xlu1 %12572 }
0x5200   : > { %v12577_v50 = vsub.f32 %v18394_v1, %v12573_v36 }
0x5202   : > { %v12579_v39 = vmul.f32 1.442695, %v12577_v50 }
0x5203   : > { %v12576_v44 = vpop.xlane.xlu1 %12575 }
0x5204   : > { %15697 = vpow2.f32 %v12579_v39  ;;  %v12578_v28 = vsub.f32 %v18391_v56, %v12576_v44 }
0x5206   : > { %v12581_v10 = vmul.f32 1.442695, %v12578_v28 }
0x5208   : > { %15699 = vpow2.f32 %v12581_v10 }
0x5211   : > { %v15698_v17 = vpop.eup %15697 }
0x5212   : > { %v12583_v32 = vsel %vm12551_vm15, %v15698_v17, 0.0 }
0x5213   : > { %12584 = vadd.xlane.f32.xlu1 %v12583_v32 }
0x5215   : > { %v15700_v49 = vpop.eup %15699 }
0x5216   : > { %v12586_v55 = vsel %vm12553_vm0, %v15700_v49, 0.0 }
0x5217   : > { %12587 = vadd.xlane.f32.xlu1 %v12586_v55 }
0x529c   : > { %v12585_v63 = vpop.xlane.xlu1 %12584 }
0x529d   : > { %15701 = vlog2.f32 %v12585_v63 }
0x52a0   : > { %v12588_v47 = vpop.xlane.xlu1 %12587 }
0x52a1   : > { %15703 = vlog2.f32 %v12588_v47 }
0x52aa   : > { %v15702_v8 = vpop.eup %15701 }
0x52ab   : > { %v12590_v3 = vmul.f32 0.6931472, %v15702_v8 }
0x52ad   : > { %v12593_v23 = vadd.f32 %v12590_v3, %v12573_v36 }
0x52ae   : > { %v15704_v38 = vpop.eup %15703 }
0x52af   : > { %v12595_v25 = vsub.f32 -2.6390574, %v12593_v23  ;;  %v12592_v58 = vmul.f32 0.6931472, %v15704_v38 }
0x52b1   : > { %v12594_v18 = vadd.f32 %v12592_v58, %v12576_v44  ;;  %v12597_v27 = vadd.f32 %v12595_v25, %v18394_v1 }
0x52b3   : > { %v12596_v26 = vsub.f32 -0.84729785, %v12594_v18  ;;  %v12599_v41 = vsel %vm12551_vm15, %v12597_v27, -inf }
0x52b5   : > { %v12598_v31 = vadd.f32 %v12596_v26, %v18391_v56 }
0x52b7   : > { %v12600_v12 = vsel %vm12553_vm0, %v12598_v31, -inf }
0x52b8   : > { %v12601_v59 = vmax.f32 %v12599_v41, %v12600_v12 }
0x52ba   : > { %v12602_v30 = vrot.slane %v12601_v59, 4 }
0x52bc   : > { %v12603_v7 = vmax.f32 %v12601_v59, %v12602_v30 }
0x52be   : > { %v12604_v4 = vrot.slane %v12603_v7, 2 }
0x52c0   : > { %v12605_v22 = vmax.f32 %v12603_v7, %v12604_v4 }
0x52c2   : > { %v12606_v2 = vrot.slane %v12605_v22, 1 }
0x52c4   : > { %v12607_v11 = vmax.f32 %v12605_v22, %v12606_v2 }
0x52c6   : > { %v12608_v0 = vsub.f32 %v12597_v27, %v12607_v11  ;;  %v12609_v33 = vsub.f32 %v12598_v31, %v12607_v11 }
0x52c8   : > { %v12610_v9 = vmul.f32 1.442695, %v12608_v0  ;;  %v12612_v5 = vmul.f32 1.442695, %v12609_v33 }
0x52ca   : > { %15705 = vpow2.f32 %v12610_v9 }
0x52cb   : > { %15707 = vpow2.f32 %v12612_v5 }
0x52d7   : > { %v15706_v29 = vpop.eup %15705 }
0x52d8   : > { %v15708_v57 = vpop.eup %15707  ;;  %v12614_v20 = vsel %vm12551_vm15, %v15706_v29, 0.0 }
0x52d9   : > { %v12615_v60 = vsel %vm12553_vm0, %v15708_v57, 0.0 }
0x52da   : > { %v12616_v16 = vadd.f32 %v12615_v60, %v12614_v20 }
0x52dc   : > { %v12617_v48 = vrot.slane %v12616_v16, 4 }
0x52de   : > { %v12618_v51 = vadd.f32 %v12617_v48, %v12616_v16 }
0x52e0   : > { %v12619_v43 = vrot.slane %v12618_v51, 2 }
0x52e2   : > { %v12620_v34 = vadd.f32 %v12619_v43, %v12618_v51 }
0x52e4   : > { %v12621_v54 = vrot.slane %v12620_v34, 1 }
0x52e6   : > { %v12622_v62 = vadd.f32 %v12621_v54, %v12620_v34 }
0x52e8   : > { %15709 = vlog2.f32 %v12622_v62 }
0x52f5   : > { %v15710_v45 = vpop.eup %15709 }
0x52f6   : > { %v12624_v52 = vmul.f32 0.6931472, %v15710_v45 }
0x52f8   : > { %v12625_v35 = vadd.f32 %v12624_v52, %v12607_v11 }
0x52fa   : > { %v12626_v53 = vsub.f32 %v18410_v19, %v12625_v35 }
0x52fc   : > { %v12628_v42 = vadd.f32 %v12626_v53, %v18391_v56  ;;  %v12627_v61 = vadd.f32 %v12626_v53, %v18394_v1 }
0x52fe   : > { %v12632_v6 = vsel %vm12553_vm0, %v12628_v42, -inf  ;;  %v12629_v21 = vsel %vm12551_vm15, %v12627_v61, -inf }
0x52ff   : > { %12633 = vmax.xlane.f32.xlu1 %v12632_v6  ;;  %12630 = vmax.xlane.f32.xlu0 %v12629_v21 }
0x5388   : > { %v12634_v37 = vpop.xlane.xlu1 %12633  ;;  %v12631_v13 = vpop.xlane.xlu0 %12630 }
0x5389   : > { %v12636_v15 = vsub.f32 %v12628_v42, %v12634_v37  ;;  %v12635_v46 = vsub.f32 %v12627_v61, %v12631_v13 }
0x538b   : > { %v12637_v36 = vmul.f32 1.442695, %v12635_v46  ;;  %v12639_v50 = vmul.f32 1.442695, %v12636_v15 }
0x538d   : > { %15711 = vpow2.f32 %v12637_v36 }
0x538e   : > { %15713 = vpow2.f32 %v12639_v50 }
0x539a   : > { %v15712_v39 = vpop.eup %15711 }
0x539b   : > { %v12641_v44 = vsel %vm12551_vm15, %v15712_v39, 0.0  ;;  %v15714_v28 = vpop.eup %15713 }
0x539c   : > { %12642 = vadd.xlane.f32.xlu1 %v12641_v44  ;;  %v12644_v10 = vsel %vm12553_vm0, %v15714_v28, 0.0 }
0x53a0   : > { %12645 = vadd.xlane.f32.xlu1 %v12644_v10 }
0x5425   : > { %v12643_v17 = vpop.xlane.xlu1 %12642 }
0x5426   : > { %15715 = vlog2.f32 %v12643_v17 }
0x5429   : > { %v12646_v32 = vpop.xlane.xlu1 %12645 }
0x542a   : > { %15717 = vlog2.f32 %v12646_v32 }
0x5433   : > { %v15716_v49 = vpop.eup %15715 }
0x5434   : > { %v12648_v55 = vmul.f32 0.6931472, %v15716_v49 }
0x5436   : > { %v12651_v63 = vadd.f32 %v12648_v55, %v12631_v13 }
0x5437   : > { %v15718_v47 = vpop.eup %15717 }
0x5438   : > { %v12653_v8 = vsub.f32 -2.6390574, %v12651_v63  ;;  %v12650_v3 = vmul.f32 0.6931472, %v15718_v47 }
0x543a   : > { %v12652_v23 = vadd.f32 %v12650_v3, %v12634_v37  ;;  %v12655_v38 = vadd.f32 %v12653_v8, %v18394_v1 }
0x543c   : > { %v12654_v25 = vsub.f32 -0.84729785, %v12652_v23  ;;  %v12657_v18 = vsel %vm12551_vm15, %v12655_v38, -inf }
0x543e   : > { %v12656_v58 = vadd.f32 %v12654_v25, %v18391_v56 }
0x5440   : > { %v12658_v27 = vsel %vm12553_vm0, %v12656_v58, -inf }
0x5441   : > { %v12659_v26 = vmax.f32 %v12657_v18, %v12658_v27 }
0x5443   : > { %v12660_v31 = vrot.slane %v12659_v26, 4 }
0x5445   : > { %v12661_v41 = vmax.f32 %v12659_v26, %v12660_v31 }
0x5447   : > { %v12662_v12 = vrot.slane %v12661_v41, 2 }
0x5449   : > { %v12663_v59 = vmax.f32 %v12661_v41, %v12662_v12 }
0x544b   : > { %v12664_v30 = vrot.slane %v12663_v59, 1 }
0x544d   : > { %v12665_v7 = vmax.f32 %v12663_v59, %v12664_v30 }
0x544f   : > { %v12666_v4 = vsub.f32 %v12655_v38, %v12665_v7  ;;  %v12667_v22 = vsub.f32 %v12656_v58, %v12665_v7 }
0x5451   : > { %v12668_v2 = vmul.f32 1.442695, %v12666_v4  ;;  %v12670_v11 = vmul.f32 1.442695, %v12667_v22 }
0x5453   : > { %15719 = vpow2.f32 %v12668_v2 }
0x5454   : > { %15721 = vpow2.f32 %v12670_v11 }
0x5460   : > { %v15720_v0 = vpop.eup %15719 }
0x5461   : > { %v15722_v33 = vpop.eup %15721  ;;  %v12672_v9 = vsel %vm12551_vm15, %v15720_v0, 0.0 }
0x5462   : > { %v12673_v5 = vsel %vm12553_vm0, %v15722_v33, 0.0 }
0x5463   : > { %v12674_v29 = vadd.f32 %v12673_v5, %v12672_v9 }
0x5465   : > { %v12675_v57 = vrot.slane %v12674_v29, 4 }
0x5467   : > { %v12676_v20 = vadd.f32 %v12675_v57, %v12674_v29 }
0x5469   : > { %v12677_v60 = vrot.slane %v12676_v20, 2 }
0x546b   : > { %v12678_v16 = vadd.f32 %v12677_v60, %v12676_v20 }
0x546d   : > { %v12679_v48 = vrot.slane %v12678_v16, 1 }
0x546f   : > { %v12680_v51 = vadd.f32 %v12679_v48, %v12678_v16 }
0x5471   : > { %15723 = vlog2.f32 %v12680_v51 }
0x547e   : > { %v15724_v43 = vpop.eup %15723 }
0x547f   : > { %v12682_v34 = vmul.f32 0.6931472, %v15724_v43 }
0x5481   : > { %v12683_v54 = vadd.f32 %v12682_v34, %v12665_v7 }
0x5483   : > { %v12684_v62 = vsub.f32 %v18410_v19, %v12683_v54 }
0x5485   : > { %v12685_v24 = vadd.f32 %v12684_v62, %v18394_v1  ;;  %v12686_v45 = vadd.f32 %v12684_v62, %v18391_v56 }
0x5487   : > { %v12687_v40 = vsel %vm12551_vm15, %v12685_v24, -inf  ;;  %v12690_v52 = vsel %vm12553_vm0, %v12686_v45, -inf }
0x5488   : > { %12688 = vmax.xlane.f32.xlu1 %v12687_v40 }
0x548c   : > { %12691 = vmax.xlane.f32.xlu1 %v12690_v52 }
0x5511   : > { %v12689_v14 = vpop.xlane.xlu1 %12688 }
0x5512   : > { %v12693_v35 = vsub.f32 %v12685_v24, %v12689_v14 }
0x5514   : > { %v12695_v53 = vmul.f32 1.442695, %v12693_v35 }
0x5515   : > { %v12692_v42 = vpop.xlane.xlu1 %12691 }
0x5516   : > { %15725 = vpow2.f32 %v12695_v53  ;;  %v12694_v61 = vsub.f32 %v12686_v45, %v12692_v42 }
0x5518   : > { %v12697_v6 = vmul.f32 1.442695, %v12694_v61 }
0x551a   : > { %15727 = vpow2.f32 %v12697_v6 }
0x5523   : > { %v15726_v21 = vpop.eup %15725 }
0x5524   : > { %v12699_v37 = vsel %vm12551_vm15, %v15726_v21, 0.0 }
0x5525   : > { %12700 = vadd.xlane.f32.xlu1 %v12699_v37 }
0x5527   : > { %v15728_v13 = vpop.eup %15727 }
0x5528   : > { %v12702_v15 = vsel %vm12553_vm0, %v15728_v13, 0.0 }
0x5529   : > { %12703 = vadd.xlane.f32.xlu1 %v12702_v15 }
0x55ae   : > { %v12701_v46 = vpop.xlane.xlu1 %12700 }
0x55af   : > { %15729 = vlog2.f32 %v12701_v46 }
0x55b2   : > { %v12704_v36 = vpop.xlane.xlu1 %12703 }
0x55b3   : > { %15731 = vlog2.f32 %v12704_v36 }
0x55bc   : > { %v15730_v50 = vpop.eup %15729 }
0x55bd   : > { %v12706_v39 = vmul.f32 0.6931472, %v15730_v50 }
0x55bf   : > { %v12709_v44 = vadd.f32 %v12706_v39, %v12689_v14 }
0x55c0   : > { %v15732_v28 = vpop.eup %15731 }
0x55c1   : > { %v12711_v10 = vsub.f32 -2.6390574, %v12709_v44  ;;  %v12708_v17 = vmul.f32 0.6931472, %v15732_v28 }
0x55c3   : > { %v12710_v32 = vadd.f32 %v12708_v17, %v12692_v42  ;;  %v12713_v49 = vadd.f32 %v12711_v10, %v18394_v1 }
0x55c5   : > { %v12712_v55 = vsub.f32 -0.84729785, %v12710_v32  ;;  %v12715_v47 = vsel %vm12551_vm15, %v12713_v49, -inf }
0x55c7   : > { %v12714_v63 = vadd.f32 %v12712_v55, %v18391_v56 }
0x55c9   : > { %v12716_v8 = vsel %vm12553_vm0, %v12714_v63, -inf }
0x55ca   : > { %v12717_v3 = vmax.f32 %v12715_v47, %v12716_v8 }
0x55cc   : > { %v12718_v23 = vrot.slane %v12717_v3, 4 }
0x55ce   : > { %v12719_v38 = vmax.f32 %v12717_v3, %v12718_v23 }
0x55d0   : > { %v12720_v25 = vrot.slane %v12719_v38, 2 }
0x55d2   : > { %v12721_v58 = vmax.f32 %v12719_v38, %v12720_v25 }
0x55d4   : > { %v12722_v18 = vrot.slane %v12721_v58, 1 }
0x55d6   : > { %v12723_v27 = vmax.f32 %v12721_v58, %v12722_v18 }
0x55d8   : > { %v12724_v26 = vsub.f32 %v12713_v49, %v12723_v27  ;;  %v12725_v31 = vsub.f32 %v12714_v63, %v12723_v27 }
0x55da   : > { %v12726_v41 = vmul.f32 1.442695, %v12724_v26  ;;  %v12728_v12 = vmul.f32 1.442695, %v12725_v31 }
0x55dc   : > { %15733 = vpow2.f32 %v12726_v41 }
0x55dd   : > { %15735 = vpow2.f32 %v12728_v12 }
0x55e9   : > { %v15734_v59 = vpop.eup %15733 }
0x55ea   : > { %v15736_v30 = vpop.eup %15735  ;;  %v12730_v7 = vsel %vm12551_vm15, %v15734_v59, 0.0 }
0x55eb   : > { %v12731_v4 = vsel %vm12553_vm0, %v15736_v30, 0.0 }
0x55ec   : > { %v12732_v22 = vadd.f32 %v12731_v4, %v12730_v7 }
0x55ee   : > { %v12733_v2 = vrot.slane %v12732_v22, 4 }
0x55f0   : > { %v12734_v11 = vadd.f32 %v12733_v2, %v12732_v22 }
0x55f2   : > { %v12735_v0 = vrot.slane %v12734_v11, 2 }
0x55f4   : > { %v12736_v33 = vadd.f32 %v12735_v0, %v12734_v11 }
0x55f6   : > { %v12737_v9 = vrot.slane %v12736_v33, 1 }
0x55f8   : > { %v12738_v5 = vadd.f32 %v12737_v9, %v12736_v33 }
0x55fa   : > { %15737 = vlog2.f32 %v12738_v5 }
0x5607   : > { %v15738_v29 = vpop.eup %15737 }
0x5608   : > { %v12740_v57 = vmul.f32 0.6931472, %v15738_v29 }
0x560a   : > { %v12741_v20 = vadd.f32 %v12740_v57, %v12723_v27 }
0x560c   : > { %v12742_v60 = vsub.f32 %v18410_v19, %v12741_v20 }
0x560e   : > { %v12744_v16 = vadd.f32 %v12742_v60, %v18391_v56  ;;  %v12743_v48 = vadd.f32 %v12742_v60, %v18394_v1 }
0x5610   : > { %v12748_v51 = vsel %vm12553_vm0, %v12744_v16, -inf  ;;  %v12745_v43 = vsel %vm12551_vm15, %v12743_v48, -inf }
0x5611   : > { %12749 = vmax.xlane.f32.xlu0 %v12748_v51  ;;  %12746 = vmax.xlane.f32.xlu1 %v12745_v43 }
0x569a   : > { %v12750_v34 = vpop.xlane.xlu0 %12749  ;;  %v12747_v54 = vpop.xlane.xlu1 %12746 }
0x569b   : > { %v12752_v62 = vsub.f32 %v12744_v16, %v12750_v34  ;;  %v12751_v24 = vsub.f32 %v12743_v48, %v12747_v54 }
0x569d   : > { %v12755_v40 = vmul.f32 1.442695, %v12752_v62  ;;  %v12753_v45 = vmul.f32 1.442695, %v12751_v24 }
0x569f   : > { %15739 = vpow2.f32 %v12755_v40 }
0x56a0   : > { %15741 = vpow2.f32 %v12753_v45 }
0x56ac   : > { %v15740_v52 = vpop.eup %15739 }
0x56ad   : > { %v15742_v14 = vpop.eup %15741  ;;  %v12760_v35 = vsel %vm12553_vm0, %v15740_v52, 0.0 }
0x56ae   : > { %12761 = vadd.xlane.f32.xlu0 %v12760_v35  ;;  %v12757_v53 = vsel %vm12551_vm15, %v15742_v14, 0.0 }
0x56af   : > { %12758 = vadd.xlane.f32.xlu1 %v12757_v53 }
0x5737   : > { %v12762_v42 = vpop.xlane.xlu0 %12761 }
0x5738   : > { %15743 = vlog2.f32 %v12762_v42  ;;  %v12759_v61 = vpop.xlane.xlu1 %12758 }
0x5739   : > { %15745 = vlog2.f32 %v12759_v61 }
0x5745   : > { %v15744_v6 = vpop.eup %15743 }
0x5746   : > { %v15746_v21 = vpop.eup %15745  ;;  %v12766_v37 = vmul.f32 0.6931472, %v15744_v6 }
0x5747   : > { %v12764_v13 = vmul.f32 0.6931472, %v15746_v21 }
0x5748   : > { %v12768_v15 = vadd.f32 %v12766_v37, %v12750_v34 }
0x5749   : > { %v12767_v46 = vadd.f32 %v12764_v13, %v12747_v54 }
0x574a   : > { %v12770_v36 = vsub.f32 -0.84729785, %v12768_v15 }
0x574b   : > { %v12769_v50 = vsub.f32 -2.6390574, %v12767_v46 }
0x574c   : > { %v12772_v39 = vadd.f32 %v12770_v36, %v18391_v56 }
0x574d   : > { %v12771_v44 = vadd.f32 %v12769_v50, %v18394_v1 }
0x574e   : > { %v12774_v28 = vsel %vm12553_vm0, %v12772_v39, -inf }
0x574f   : > { %v12773_v10 = vsel %vm12551_vm15, %v12771_v44, -inf }
0x5750   : > { %v12775_v17 = vmax.f32 %v12773_v10, %v12774_v28 }
0x5752   : > { %v12776_v32 = vrot.slane %v12775_v17, 4 }
0x5754   : > { %v12777_v49 = vmax.f32 %v12775_v17, %v12776_v32 }
0x5756   : > { %v12778_v55 = vrot.slane %v12777_v49, 2 }
0x5758   : > { %v12779_v63 = vmax.f32 %v12777_v49, %v12778_v55 }
0x575a   : > { %v12780_v47 = vrot.slane %v12779_v63, 1 }
0x575c   : > { %v12781_v8 = vmax.f32 %v12779_v63, %v12780_v47 }
0x575e   : > { %v12782_v3 = vsub.f32 %v12771_v44, %v12781_v8  ;;  %v12783_v23 = vsub.f32 %v12772_v39, %v12781_v8 }
0x5760   : > { %v12784_v38 = vmul.f32 1.442695, %v12782_v3  ;;  %v12786_v25 = vmul.f32 1.442695, %v12783_v23 }
0x5762   : > { %15747 = vpow2.f32 %v12784_v38 }
0x5763   : > { %15749 = vpow2.f32 %v12786_v25 }
0x576f   : > { %v15748_v58 = vpop.eup %15747 }
0x5770   : > { %v15750_v18 = vpop.eup %15749  ;;  %v12788_v27 = vsel %vm12551_vm15, %v15748_v58, 0.0 }
0x5771   : > { %v12789_v26 = vsel %vm12553_vm0, %v15750_v18, 0.0 }
0x5772   : > { %v12790_v31 = vadd.f32 %v12789_v26, %v12788_v27 }
0x5774   : > { %v12791_v41 = vrot.slane %v12790_v31, 4 }
0x5776   : > { %v12792_v12 = vadd.f32 %v12791_v41, %v12790_v31 }
0x5778   : > { %v12793_v59 = vrot.slane %v12792_v12, 2 }
0x577a   : > { %v12794_v30 = vadd.f32 %v12793_v59, %v12792_v12 }
0x577c   : > { %v12795_v7 = vrot.slane %v12794_v30, 1 }
0x577e   : > { %v12796_v4 = vadd.f32 %v12795_v7, %v12794_v30 }
0x5780   : > { %15751 = vlog2.f32 %v12796_v4 }
0x578d   : > { %v15752_v22 = vpop.eup %15751 }
0x578e   : > { %v12798_v2 = vmul.f32 0.6931472, %v15752_v22 }
0x5790   : > { %v12799_v11 = vadd.f32 %v12798_v2, %v12781_v8 }
0x5792   : > { %v12800_v0 = vsub.f32 %v18410_v19, %v12799_v11 }
0x5794   : > { %v12802_v33 = vadd.f32 %v12800_v0, %v18391_v56  ;;  %v12801_v9 = vadd.f32 %v12800_v0, %v18394_v1 }
0x5796   : > { %v12806_v5 = vsel %vm12553_vm0, %v12802_v33, -inf  ;;  %v12803_v29 = vsel %vm12551_vm15, %v12801_v9, -inf }
0x5797   : > { %12807 = vmax.xlane.f32.xlu0 %v12806_v5  ;;  %12804 = vmax.xlane.f32.xlu1 %v12803_v29 }
0x5820   : > { %v12808_v57 = vpop.xlane.xlu0 %12807  ;;  %v12805_v20 = vpop.xlane.xlu1 %12804 }
0x5821   : > { %v12810_v60 = vsub.f32 %v12802_v33, %v12808_v57  ;;  %v12809_v16 = vsub.f32 %v12801_v9, %v12805_v20 }
0x5823   : > { %v12813_v48 = vmul.f32 1.442695, %v12810_v60  ;;  %v12811_v51 = vmul.f32 1.442695, %v12809_v16 }
0x5825   : > { %15753 = vpow2.f32 %v12813_v48 }
0x5826   : > { %15755 = vpow2.f32 %v12811_v51 }
0x5832   : > { %v15754_v43 = vpop.eup %15753 }
0x5833   : > { %v15756_v34 = vpop.eup %15755  ;;  %v12818_v54 = vsel %vm12553_vm0, %v15754_v43, 0.0 }
0x5834   : > { %12819 = vadd.xlane.f32.xlu0 %v12818_v54  ;;  %v12815_v62 = vsel %vm12551_vm15, %v15756_v34, 0.0 }
0x5835   : > { %12816 = vadd.xlane.f32.xlu1 %v12815_v62 }
0x58bd   : > { %v12820_v24 = vpop.xlane.xlu0 %12819 }
0x58be   : > { %15757 = vlog2.f32 %v12820_v24  ;;  %v12817_v40 = vpop.xlane.xlu1 %12816 }
0x58bf   : > { %15759 = vlog2.f32 %v12817_v40 }
0x58cb   : > { %v15758_v45 = vpop.eup %15757 }
0x58cc   : > { %v15760_v52 = vpop.eup %15759  ;;  %v12824_v14 = vmul.f32 0.6931472, %v15758_v45 }
0x58cd   : > { %v12822_v35 = vmul.f32 0.6931472, %v15760_v52 }
0x58ce   : > { %v12826_v53 = vadd.f32 %v12824_v14, %v12808_v57 }
0x58cf   : > { %v12825_v42 = vadd.f32 %v12822_v35, %v12805_v20 }
0x58d0   : > { %v12828_v61 = vsub.f32 -0.84729785, %v12826_v53 }
0x58d1   : > { %v12827_v6 = vsub.f32 -2.6390574, %v12825_v42 }
0x58d2   : > { %v12830_v21 = vadd.f32 %v12828_v61, %v18391_v56 }
0x58d3   : > { %v12829_v37 = vadd.f32 %v12827_v6, %v18394_v1 }
0x58d4   : > { %v12832_v13 = vsel %vm12553_vm0, %v12830_v21, -inf }
0x58d5   : > { %v12831_v15 = vsel %vm12551_vm15, %v12829_v37, -inf }
0x58d6   : > { %v12833_v46 = vmax.f32 %v12831_v15, %v12832_v13 }
0x58d8   : > { %v12834_v36 = vrot.slane %v12833_v46, 4 }
0x58da   : > { %v12835_v50 = vmax.f32 %v12833_v46, %v12834_v36 }
0x58dc   : > { %v12836_v39 = vrot.slane %v12835_v50, 2 }
0x58de   : > { %v12837_v44 = vmax.f32 %v12835_v50, %v12836_v39 }
0x58e0   : > { %v12838_v28 = vrot.slane %v12837_v44, 1 }
0x58e2   : > { %v12839_v10 = vmax.f32 %v12837_v44, %v12838_v28 }
0x58e4   : > { %v12840_v17 = vsub.f32 %v12829_v37, %v12839_v10  ;;  %v12841_v32 = vsub.f32 %v12830_v21, %v12839_v10 }
0x58e6   : > { %v12842_v49 = vmul.f32 1.442695, %v12840_v17  ;;  %v12844_v55 = vmul.f32 1.442695, %v12841_v32 }
0x58e8   : > { %15761 = vpow2.f32 %v12842_v49 }
0x58e9   : > { %15763 = vpow2.f32 %v12844_v55 }
0x58f5   : > { %v15762_v63 = vpop.eup %15761 }
0x58f6   : > { %v15764_v47 = vpop.eup %15763  ;;  %v12846_v8 = vsel %vm12551_vm15, %v15762_v63, 0.0 }
0x58f7   : > { %v12847_v3 = vsel %vm12553_vm0, %v15764_v47, 0.0 }
0x58f8   : > { %v12848_v23 = vadd.f32 %v12847_v3, %v12846_v8 }
0x58fa   : > { %v12849_v38 = vrot.slane %v12848_v23, 4 }
0x58fc   : > { %v12850_v25 = vadd.f32 %v12849_v38, %v12848_v23 }
0x58fe   : > { %v12851_v58 = vrot.slane %v12850_v25, 2 }
0x5900   : > { %v12852_v18 = vadd.f32 %v12851_v58, %v12850_v25 }
0x5902   : > { %v12853_v27 = vrot.slane %v12852_v18, 1 }
0x5904   : > { %v12854_v26 = vadd.f32 %v12853_v27, %v12852_v18 }
0x5906   : > { %15765 = vlog2.f32 %v12854_v26 }
0x5913   : > { %v15766_v31 = vpop.eup %15765 }
0x5914   : > { %v12856_v41 = vmul.f32 0.6931472, %v15766_v31 }
0x5916   : > { %v12857_v12 = vadd.f32 %v12856_v41, %v12839_v10 }
0x5918   : > { %v12858_v59 = vsub.f32 %v18410_v19, %v12857_v12 }
0x591a   : > { %v12860_v30 = vadd.f32 %v12858_v59, %v18391_v56  ;;  %v12859_v7 = vadd.f32 %v12858_v59, %v18394_v1 }
0x591c   : > { %v12864_v4 = vsel %vm12553_vm0, %v12860_v30, -inf  ;;  %v12861_v22 = vsel %vm12551_vm15, %v12859_v7, -inf }
0x591d   : > { %12865 = vmax.xlane.f32.xlu0 %v12864_v4  ;;  %12862 = vmax.xlane.f32.xlu1 %v12861_v22 }
0x59a6   : > { %v12866_v2 = vpop.xlane.xlu0 %12865  ;;  %v12863_v11 = vpop.xlane.xlu1 %12862 }
0x59a7   : > { %v12868_v0 = vsub.f32 %v12860_v30, %v12866_v2  ;;  %v12867_v33 = vsub.f32 %v12859_v7, %v12863_v11 }
0x59a9   : > { %v12871_v9 = vmul.f32 1.442695, %v12868_v0  ;;  %v12869_v5 = vmul.f32 1.442695, %v12867_v33 }
0x59ab   : > { %15767 = vpow2.f32 %v12871_v9 }
0x59ac   : > { %15769 = vpow2.f32 %v12869_v5 }
0x59b8   : > { %v15768_v29 = vpop.eup %15767 }
0x59b9   : > { %v15770_v57 = vpop.eup %15769  ;;  %v12876_v20 = vsel %vm12553_vm0, %v15768_v29, 0.0 }
0x59ba   : > { %12877 = vadd.xlane.f32.xlu0 %v12876_v20  ;;  %v12873_v60 = vsel %vm12551_vm15, %v15770_v57, 0.0 }
0x59bb   : > { %12874 = vadd.xlane.f32.xlu1 %v12873_v60 }
0x5a43   : > { %v12878_v16 = vpop.xlane.xlu0 %12877 }
0x5a44   : > { %15771 = vlog2.f32 %v12878_v16  ;;  %v12875_v48 = vpop.xlane.xlu1 %12874 }
0x5a45   : > { %15773 = vlog2.f32 %v12875_v48 }
0x5a51   : > { %v15772_v51 = vpop.eup %15771 }
0x5a52   : > { %v15774_v43 = vpop.eup %15773  ;;  %v12882_v34 = vmul.f32 0.6931472, %v15772_v51 }
0x5a53   : > { %v12880_v54 = vmul.f32 0.6931472, %v15774_v43 }
0x5a54   : > { %v12884_v62 = vadd.f32 %v12882_v34, %v12866_v2 }
0x5a55   : > { %v12883_v24 = vadd.f32 %v12880_v54, %v12863_v11 }
0x5a56   : > { %v12886_v40 = vsub.f32 -0.84729785, %v12884_v62 }
0x5a57   : > { %v12885_v45 = vsub.f32 -2.6390574, %v12883_v24 }
0x5a58   : > { %v12888_v52 = vadd.f32 %v12886_v40, %v18391_v56 }
0x5a59   : > { %v12887_v14 = vadd.f32 %v12885_v45, %v18394_v1 }
0x5a5a   : > { %v12890_v35 = vsel %vm12553_vm0, %v12888_v52, -inf }
0x5a5b   : > { %v12889_v53 = vsel %vm12551_vm15, %v12887_v14, -inf }
0x5a5c   : > { %v12891_v42 = vmax.f32 %v12889_v53, %v12890_v35 }
0x5a5e   : > { %v12892_v61 = vrot.slane %v12891_v42, 4 }
0x5a60   : > { %v12893_v6 = vmax.f32 %v12891_v42, %v12892_v61 }
0x5a62   : > { %v12894_v21 = vrot.slane %v12893_v6, 2 }
0x5a64   : > { %v12895_v37 = vmax.f32 %v12893_v6, %v12894_v21 }
0x5a66   : > { %v12896_v13 = vrot.slane %v12895_v37, 1 }
0x5a68   : > { %v12897_v15 = vmax.f32 %v12895_v37, %v12896_v13 }
0x5a6a   : > { %v12898_v46 = vsub.f32 %v12887_v14, %v12897_v15  ;;  %v12899_v36 = vsub.f32 %v12888_v52, %v12897_v15 }
0x5a6c   : > { %v12900_v50 = vmul.f32 1.442695, %v12898_v46  ;;  %v12902_v39 = vmul.f32 1.442695, %v12899_v36 }
0x5a6e   : > { %15775 = vpow2.f32 %v12900_v50 }
0x5a6f   : > { %15777 = vpow2.f32 %v12902_v39 }
0x5a7b   : > { %v15776_v44 = vpop.eup %15775 }
0x5a7c   : > { %v15778_v28 = vpop.eup %15777  ;;  %v12904_v10 = vsel %vm12551_vm15, %v15776_v44, 0.0 }
0x5a7d   : > { %v12905_v17 = vsel %vm12553_vm0, %v15778_v28, 0.0 }
0x5a7e   : > { %v12906_v32 = vadd.f32 %v12905_v17, %v12904_v10 }
0x5a80   : > { %v12907_v49 = vrot.slane %v12906_v32, 4 }
0x5a82   : > { %v12908_v55 = vadd.f32 %v12907_v49, %v12906_v32 }
0x5a84   : > { %v12909_v63 = vrot.slane %v12908_v55, 2 }
0x5a86   : > { %v12910_v47 = vadd.f32 %v12909_v63, %v12908_v55 }
0x5a88   : > { %v12911_v8 = vrot.slane %v12910_v47, 1 }
0x5a8a   : > { %v12912_v3 = vadd.f32 %v12911_v8, %v12910_v47 }
0x5a8c   : > { %15779 = vlog2.f32 %v12912_v3 }
0x5a99   : > { %v15780_v23 = vpop.eup %15779 }
0x5a9a   : > { %v12914_v38 = vmul.f32 0.6931472, %v15780_v23 }
0x5a9c   : > { %v12915_v25 = vadd.f32 %v12914_v38, %v12897_v15 }
0x5a9e   : > { %v12916_v58 = vsub.f32 %v18410_v19, %v12915_v25 }
0x5aa0   : > { %v12918_v18 = vadd.f32 %v12916_v58, %v18391_v56  ;;  %v12917_v27 = vadd.f32 %v12916_v58, %v18394_v1 }
0x5aa2   : > { %v12922_v26 = vsel %vm12553_vm0, %v12918_v18, -inf  ;;  %v12919_v31 = vsel %vm12551_vm15, %v12917_v27, -inf }
0x5aa3   : > { %12923 = vmax.xlane.f32.xlu0 %v12922_v26  ;;  %12920 = vmax.xlane.f32.xlu1 %v12919_v31 }
0x5b2c   : > { %v12924_v41 = vpop.xlane.xlu0 %12923  ;;  %v12921_v12 = vpop.xlane.xlu1 %12920 }
0x5b2d   : > { %v12926_v59 = vsub.f32 %v12918_v18, %v12924_v41  ;;  %v12925_v30 = vsub.f32 %v12917_v27, %v12921_v12 }
0x5b2f   : > { %v12929_v7 = vmul.f32 1.442695, %v12926_v59  ;;  %v12927_v4 = vmul.f32 1.442695, %v12925_v30 }
0x5b31   : > { %15781 = vpow2.f32 %v12929_v7 }
0x5b32   : > { %15783 = vpow2.f32 %v12927_v4 }
0x5b3e   : > { %v15782_v22 = vpop.eup %15781 }
0x5b3f   : > { %v15784_v2 = vpop.eup %15783  ;;  %v12934_v11 = vsel %vm12553_vm0, %v15782_v22, 0.0 }
0x5b40   : > { %12935 = vadd.xlane.f32.xlu0 %v12934_v11  ;;  %v12931_v0 = vsel %vm12551_vm15, %v15784_v2, 0.0 }
0x5b41   : > { %12932 = vadd.xlane.f32.xlu1 %v12931_v0 }
0x5bc9   : > { %v12936_v33 = vpop.xlane.xlu0 %12935 }
0x5bca   : > { %15785 = vlog2.f32 %v12936_v33  ;;  %v12933_v9 = vpop.xlane.xlu1 %12932 }
0x5bcb   : > { %15787 = vlog2.f32 %v12933_v9 }
0x5bd7   : > { %v15786_v5 = vpop.eup %15785 }
0x5bd8   : > { %v15788_v29 = vpop.eup %15787  ;;  %v12940_v57 = vmul.f32 0.6931472, %v15786_v5 }
0x5bd9   : > { %v12938_v20 = vmul.f32 0.6931472, %v15788_v29 }
0x5bda   : > { %v12942_v60 = vadd.f32 %v12940_v57, %v12924_v41 }
0x5bdb   : > { %v12941_v16 = vadd.f32 %v12938_v20, %v12921_v12 }
0x5bdc   : > { %v12944_v48 = vsub.f32 -0.84729785, %v12942_v60 }
0x5bdd   : > { %v12943_v51 = vsub.f32 -2.6390574, %v12941_v16 }
0x5bde   : > { %v12946_v43 = vadd.f32 %v12944_v48, %v18391_v56 }
0x5bdf   : > { %v12945_v34 = vadd.f32 %v12943_v51, %v18394_v1 }
0x5be0   : > { %v12948_v54 = vsel %vm12553_vm0, %v12946_v43, -inf }
0x5be1   : > { %v12947_v62 = vsel %vm12551_vm15, %v12945_v34, -inf }
0x5be2   : > { %v12949_v24 = vmax.f32 %v12947_v62, %v12948_v54 }
0x5be4   : > { %v12950_v40 = vrot.slane %v12949_v24, 4 }
0x5be6   : > { %v12951_v45 = vmax.f32 %v12949_v24, %v12950_v40 }
0x5be8   : > { %v12952_v52 = vrot.slane %v12951_v45, 2 }
0x5bea   : > { %v12953_v14 = vmax.f32 %v12951_v45, %v12952_v52 }
0x5bec   : > { %v12954_v35 = vrot.slane %v12953_v14, 1 }
0x5bee   : > { %v12955_v53 = vmax.f32 %v12953_v14, %v12954_v35 }
0x5bf0   : > { %v12956_v42 = vsub.f32 %v12945_v34, %v12955_v53  ;;  %v12957_v61 = vsub.f32 %v12946_v43, %v12955_v53 }
0x5bf2   : > { %v12958_v6 = vmul.f32 1.442695, %v12956_v42  ;;  %v12960_v21 = vmul.f32 1.442695, %v12957_v61 }
0x5bf4   : > { %15789 = vpow2.f32 %v12958_v6 }
0x5bf5   : > { %15791 = vpow2.f32 %v12960_v21 }
0x5c01   : > { %v15790_v37 = vpop.eup %15789 }
0x5c02   : > { %v15792_v13 = vpop.eup %15791  ;;  %v12962_v15 = vsel %vm12551_vm15, %v15790_v37, 0.0 }
0x5c03   : > { %v12963_v46 = vsel %vm12553_vm0, %v15792_v13, 0.0 }
0x5c04   : > { %v12964_v36 = vadd.f32 %v12963_v46, %v12962_v15 }
0x5c06   : > { %v12965_v50 = vrot.slane %v12964_v36, 4 }
0x5c08   : > { %v12966_v39 = vadd.f32 %v12965_v50, %v12964_v36 }
0x5c0a   : > { %v12967_v44 = vrot.slane %v12966_v39, 2 }
0x5c0c   : > { %v12968_v28 = vadd.f32 %v12967_v44, %v12966_v39  ;;  %v18505_v39 = vld [vmem:[%s16559_s0 + $0x8] sm:$0x1] }
0x5c0e   : > { %v12969_v10 = vrot.slane %v12968_v28, 1 }
0x5c10   : > { %v12970_v17 = vadd.f32 %v12969_v10, %v12968_v28  ;;  %v18509_v28 = vld [vmem:[%s16559_s0] sm:$0xff] }
0x5c12   : > { %15793 = vlog2.f32 %v12970_v17 }
0x5c1f   : > { %v15794_v32 = vpop.eup %15793 }
0x5c20   : > { %v12972_v49 = vmul.f32 0.6931472, %v15794_v32 }
0x5c22   : > { %v12973_v55 = vadd.f32 %v12972_v49, %v12955_v53 }
0x5c24   : > { %v12974_v63 = vsub.f32 %v18410_v19, %v12973_v55 }
0x5c26   : > { %v12976_v47 = vadd.f32 %v12974_v63, %v18391_v56  ;;  %v12975_v8 = vadd.f32 %v12974_v63, %v18394_v1 }
0x5c28   : > { %v12980_v3 = vsel %vm12553_vm0, %v12976_v47, -inf  ;;  %v12977_v23 = vsel %vm12551_vm15, %v12975_v8, -inf }
0x5c29   : > { %12981 = vmax.xlane.f32.xlu0 %v12980_v3  ;;  %12978 = vmax.xlane.f32.xlu1 %v12977_v23 }
0x5cb2   : > { %v12982_v38 = vpop.xlane.xlu0 %12981  ;;  %v12979_v25 = vpop.xlane.xlu1 %12978 }
0x5cb3   : > { %v12984_v58 = vsub.f32 %v12976_v47, %v12982_v38  ;;  %v12983_v18 = vsub.f32 %v12975_v8, %v12979_v25 }
0x5cb5   : > { %v12987_v27 = vmul.f32 1.442695, %v12984_v58  ;;  %v12985_v26 = vmul.f32 1.442695, %v12983_v18 }
0x5cb7   : > { %15795 = vpow2.f32 %v12987_v27 }
0x5cb8   : > { %15797 = vpow2.f32 %v12985_v26 }
0x5cc4   : > { %v15796_v31 = vpop.eup %15795 }
0x5cc5   : > { %v15798_v41 = vpop.eup %15797  ;;  %v12992_v12 = vsel %vm12553_vm0, %v15796_v31, 0.0 }
0x5cc6   : > { %12993 = vadd.xlane.f32.xlu0 %v12992_v12  ;;  %v12989_v59 = vsel %vm12551_vm15, %v15798_v41, 0.0 }
0x5cc7   : > { %12990 = vadd.xlane.f32.xlu1 %v12989_v59 }
0x5d4f   : > { %v12994_v30 = vpop.xlane.xlu0 %12993 }
0x5d50   : > { %15799 = vlog2.f32 %v12994_v30  ;;  %v12991_v7 = vpop.xlane.xlu1 %12990 }
0x5d51   : > { %15801 = vlog2.f32 %v12991_v7 }
0x5d5d   : > { %v15800_v4 = vpop.eup %15799 }
0x5d5e   : > { %v15802_v22 = vpop.eup %15801  ;;  %v12998_v2 = vmul.f32 0.6931472, %v15800_v4 }
0x5d5f   : > { %v12996_v11 = vmul.f32 0.6931472, %v15802_v22 }
0x5d60   : > { %v13000_v0 = vadd.f32 %v12998_v2, %v12982_v38 }
0x5d61   : > { %v12999_v33 = vadd.f32 %v12996_v11, %v12979_v25 }
0x5d62   : > { %v13002_v9 = vsub.f32 -0.84729785, %v13000_v0 }
0x5d63   : > { %v13001_v5 = vsub.f32 -2.6390574, %v12999_v33 }
0x5d64   : > { %v13004_v29 = vadd.f32 %v13002_v9, %v18391_v56 }
0x5d65   : > { %v13003_v57 = vadd.f32 %v13001_v5, %v18394_v1 }
0x5d66   : > { %v13006_v20 = vsel %vm12553_vm0, %v13004_v29, -inf }
0x5d67   : > { %v13005_v60 = vsel %vm12551_vm15, %v13003_v57, -inf }
0x5d68   : > { %v13007_v16 = vmax.f32 %v13005_v60, %v13006_v20 }
0x5d6a   : > { %v13008_v48 = vrot.slane %v13007_v16, 4 }
0x5d6c   : > { %v13009_v51 = vmax.f32 %v13007_v16, %v13008_v48 }
0x5d6e   : > { %v13010_v43 = vrot.slane %v13009_v51, 2 }
0x5d70   : > { %v13011_v34 = vmax.f32 %v13009_v51, %v13010_v43 }
0x5d72   : > { %v13012_v54 = vrot.slane %v13011_v34, 1 }
0x5d74   : > { %v13013_v62 = vmax.f32 %v13011_v34, %v13012_v54 }
0x5d76   : > { %v13014_v24 = vsub.f32 %v13003_v57, %v13013_v62  ;;  %v13015_v40 = vsub.f32 %v13004_v29, %v13013_v62 }
0x5d78   : > { %v13016_v45 = vmul.f32 1.442695, %v13014_v24  ;;  %v13018_v52 = vmul.f32 1.442695, %v13015_v40 }
0x5d7a   : > { %15803 = vpow2.f32 %v13016_v45 }
0x5d7b   : > { %15805 = vpow2.f32 %v13018_v52 }
0x5d87   : > { %v15804_v56 = vpop.eup %15803 }
0x5d88   : > { %v15806_v1 = vpop.eup %15805  ;;  %v13020_v14 = vsel %vm12551_vm15, %v15804_v56, 0.0 }
0x5d89   : > { %v13021_v35 = vsel %vm12553_vm0, %v15806_v1, 0.0 }
0x5d8a   : > { %v13022_v53 = vadd.f32 %v13021_v35, %v13020_v14 }
0x5d8c   : > { %v13023_v42 = vrot.slane %v13022_v53, 4 }
0x5d8e   : > { %v13024_v61 = vadd.f32 %v13023_v42, %v13022_v53 }
0x5d90   : > { %v13025_v6 = vrot.slane %v13024_v61, 2 }
0x5d92   : > { %v13026_v21 = vadd.f32 %v13025_v6, %v13024_v61 }
0x5d94   : > { %v13027_v37 = vrot.slane %v13026_v21, 1 }
0x5d96   : > { %v13028_v13 = vadd.f32 %v13027_v37, %v13026_v21 }
0x5d98   : > { %15807 = vlog2.f32 %v13028_v13 }
0x5da5   : > { %v15808_v15 = vpop.eup %15807 }
0x5da6   : > { %v13030_v46 = vmul.f32 0.6931472, %v15808_v15 }
0x5da8   : > { %v13031_v36 = vadd.f32 %v13030_v46, %v13013_v62 }
0x5daa   : > { %v13032_v50 = vsub.f32 %v18410_v19, %v13031_v36 }
0x5dac   : > { %v13034_v44 = vadd.f32 %v18505_v39, %v13032_v50  ;;  %v13033_v10 = vadd.f32 %v18509_v28, %v13032_v50 }
0x5dae   : > { %v13038_v17 = vsel %vm12553_vm0, %v13034_v44, -inf  ;;  %v13035_v32 = vsel %vm12551_vm15, %v13033_v10, -inf }
0x5daf   : > { %13039 = vmax.xlane.f32.xlu0 %v13038_v17  ;;  %13036 = vmax.xlane.f32.xlu1 %v13035_v32 }
0x5e38   : > { %v13040_v49 = vpop.xlane.xlu0 %13039  ;;  %v13037_v55 = vpop.xlane.xlu1 %13036 }
0x5e39   : > { %v13042_v63 = vsub.f32 %v13034_v44, %v13040_v49  ;;  %v13041_v47 = vsub.f32 %v13033_v10, %v13037_v55 }
0x5e3b   : > { %v13045_v8 = vmul.f32 1.442695, %v13042_v63  ;;  %v13043_v3 = vmul.f32 1.442695, %v13041_v47 }
0x5e3d   : > { %15809 = vpow2.f32 %v13045_v8 }
0x5e3e   : > { %15811 = vpow2.f32 %v13043_v3 }
0x5e4a   : > { %v15810_v23 = vpop.eup %15809 }
0x5e4b   : > { %v15812_v38 = vpop.eup %15811  ;;  %v13050_v25 = vsel %vm12553_vm0, %v15810_v23, 0.0 }
0x5e4c   : > { %13051 = vadd.xlane.f32.xlu0 %v13050_v25  ;;  %v13047_v58 = vsel %vm12551_vm15, %v15812_v38, 0.0 }
0x5e4d   : > { %13048 = vadd.xlane.f32.xlu1 %v13047_v58 }
0x5ed5   : > { %v13052_v18 = vpop.xlane.xlu0 %13051 }
0x5ed6   : > { %15813 = vlog2.f32 %v13052_v18  ;;  %v13049_v27 = vpop.xlane.xlu1 %13048 }
0x5ed7   : > { %15815 = vlog2.f32 %v13049_v27 }
0x5ee3   : > { %v15814_v26 = vpop.eup %15813 }
0x5ee4   : > { %v15816_v31 = vpop.eup %15815  ;;  %v13056_v41 = vmul.f32 0.6931472, %v15814_v26 }
0x5ee5   : > { %v13054_v12 = vmul.f32 0.6931472, %v15816_v31 }
0x5ee6   : > { %v13058_v59 = vadd.f32 %v13056_v41, %v13040_v49 }
0x5ee7   : > { %v13057_v30 = vadd.f32 %v13054_v12, %v13037_v55 }
0x5ee8   : > { %v13060_v7 = vsub.f32 -0.84729785, %v13058_v59 }
0x5ee9   : > { %v13059_v4 = vsub.f32 -2.6390574, %v13057_v30 }
0x5eea   : > { %v13062_v22 = vadd.f32 %v18505_v39, %v13060_v7 }
0x5eeb   : > { %v13061_v2 = vadd.f32 %v18509_v28, %v13059_v4 }
0x5eec   : > { %v13064_v11 = vsel %vm12553_vm0, %v13062_v22, -inf }
0x5eed   : > { %v13063_v0 = vsel %vm12551_vm15, %v13061_v2, -inf }
0x5eee   : > { %v13065_v33 = vmax.f32 %v13063_v0, %v13064_v11 }
0x5ef0   : > { %v13066_v9 = vrot.slane %v13065_v33, 4 }
0x5ef2   : > { %v13067_v5 = vmax.f32 %v13065_v33, %v13066_v9 }
0x5ef4   : > { %v13068_v29 = vrot.slane %v13067_v5, 2 }
0x5ef6   : > { %v13069_v57 = vmax.f32 %v13067_v5, %v13068_v29 }
0x5ef8   : > { %v13070_v20 = vrot.slane %v13069_v57, 1 }
0x5efa   : > { %v13071_v60 = vmax.f32 %v13069_v57, %v13070_v20 }
0x5efc   : > { %v13072_v16 = vsub.f32 %v13061_v2, %v13071_v60  ;;  %v13073_v48 = vsub.f32 %v13062_v22, %v13071_v60 }
0x5efe   : > { %v13074_v51 = vmul.f32 1.442695, %v13072_v16  ;;  %v13076_v43 = vmul.f32 1.442695, %v13073_v48 }
0x5f00   : > { %15817 = vpow2.f32 %v13074_v51 }
0x5f01   : > { %15819 = vpow2.f32 %v13076_v43 }
0x5f0d   : > { %v15818_v34 = vpop.eup %15817 }
0x5f0e   : > { %v15820_v54 = vpop.eup %15819  ;;  %v13078_v62 = vsel %vm12551_vm15, %v15818_v34, 0.0 }
0x5f0f   : > { %v13079_v24 = vsel %vm12553_vm0, %v15820_v54, 0.0 }
0x5f10   : > { %v13080_v40 = vadd.f32 %v13079_v24, %v13078_v62 }
0x5f12   : > { %v13081_v45 = vrot.slane %v13080_v40, 4 }
0x5f14   : > { %v13082_v52 = vadd.f32 %v13081_v45, %v13080_v40 }
0x5f16   : > { %v13083_v56 = vrot.slane %v13082_v52, 2 }
0x5f18   : > { %v13084_v1 = vadd.f32 %v13083_v56, %v13082_v52 }
0x5f1a   : > { %v13085_v14 = vrot.slane %v13084_v1, 1 }
0x5f1c   : > { %v13086_v35 = vadd.f32 %v13085_v14, %v13084_v1 }
0x5f1e   : > { %15821 = vlog2.f32 %v13086_v35 }
0x5f2b   : > { %v15822_v53 = vpop.eup %15821 }
0x5f2c   : > { %v13088_v42 = vmul.f32 0.6931472, %v15822_v53 }
0x5f2e   : > { %v13089_v61 = vadd.f32 %v13088_v42, %v13071_v60 }
0x5f30   : > { %v13090_v6 = vsub.f32 %v18410_v19, %v13089_v61 }
0x5f32   : > { %v13092_v21 = vadd.f32 %v18505_v39, %v13090_v6  ;;  %v13091_v37 = vadd.f32 %v18509_v28, %v13090_v6 }
0x5f34   : > { %v13096_v13 = vsel %vm12553_vm0, %v13092_v21, -inf  ;;  %v13093_v15 = vsel %vm12551_vm15, %v13091_v37, -inf }
0x5f35   : > { %13097 = vmax.xlane.f32.xlu0 %v13096_v13  ;;  %13094 = vmax.xlane.f32.xlu1 %v13093_v15 }
0x5fbe   : > { %v13098_v46 = vpop.xlane.xlu0 %13097  ;;  %v13095_v36 = vpop.xlane.xlu1 %13094 }
0x5fbf   : > { %v13100_v50 = vsub.f32 %v13092_v21, %v13098_v46  ;;  %v13099_v44 = vsub.f32 %v13091_v37, %v13095_v36 }
0x5fc1   : > { %v13103_v10 = vmul.f32 1.442695, %v13100_v50  ;;  %v13101_v17 = vmul.f32 1.442695, %v13099_v44 }
0x5fc3   : > { %15823 = vpow2.f32 %v13103_v10 }
0x5fc4   : > { %15825 = vpow2.f32 %v13101_v17 }
0x5fd0   : > { %v15824_v32 = vpop.eup %15823 }
0x5fd1   : > { %v15826_v49 = vpop.eup %15825  ;;  %v13108_v55 = vsel %vm12553_vm0, %v15824_v32, 0.0 }
0x5fd2   : > { %13109 = vadd.xlane.f32.xlu0 %v13108_v55  ;;  %v13105_v63 = vsel %vm12551_vm15, %v15826_v49, 0.0 }
0x5fd3   : > { %13106 = vadd.xlane.f32.xlu1 %v13105_v63 }
0x605b   : > { %v13110_v47 = vpop.xlane.xlu0 %13109 }
0x605c   : > { %15827 = vlog2.f32 %v13110_v47  ;;  %v13107_v8 = vpop.xlane.xlu1 %13106 }
0x605d   : > { %15829 = vlog2.f32 %v13107_v8 }
0x6069   : > { %v15828_v3 = vpop.eup %15827 }
0x606a   : > { %v15830_v23 = vpop.eup %15829  ;;  %v13114_v38 = vmul.f32 0.6931472, %v15828_v3 }
0x606b   : > { %v13112_v25 = vmul.f32 0.6931472, %v15830_v23 }
0x606c   : > { %v13116_v58 = vadd.f32 %v13114_v38, %v13098_v46 }
0x606d   : > { %v13115_v18 = vadd.f32 %v13112_v25, %v13095_v36 }
0x606e   : > { %v13118_v27 = vsub.f32 -0.84729785, %v13116_v58 }
0x606f   : > { %v13117_v26 = vsub.f32 -2.6390574, %v13115_v18 }
0x6070   : > { %v13120_v31 = vadd.f32 %v18505_v39, %v13118_v27 }
0x6071   : > { %v13119_v41 = vadd.f32 %v18509_v28, %v13117_v26 }
0x6072   : > { %v13122_v12 = vsel %vm12553_vm0, %v13120_v31, -inf }
0x6073   : > { %v13121_v59 = vsel %vm12551_vm15, %v13119_v41, -inf }
0x6074   : > { %v13123_v30 = vmax.f32 %v13121_v59, %v13122_v12 }
0x6076   : > { %v13124_v7 = vrot.slane %v13123_v30, 4 }
0x6078   : > { %v13125_v4 = vmax.f32 %v13123_v30, %v13124_v7 }
0x607a   : > { %v13126_v22 = vrot.slane %v13125_v4, 2 }
0x607c   : > { %v13127_v2 = vmax.f32 %v13125_v4, %v13126_v22 }
0x607e   : > { %v13128_v11 = vrot.slane %v13127_v2, 1 }
0x6080   : > { %v13129_v0 = vmax.f32 %v13127_v2, %v13128_v11 }
0x6082   : > { %v13130_v33 = vsub.f32 %v13119_v41, %v13129_v0  ;;  %v13131_v9 = vsub.f32 %v13120_v31, %v13129_v0 }
0x6084   : > { %v13132_v5 = vmul.f32 1.442695, %v13130_v33  ;;  %v13134_v29 = vmul.f32 1.442695, %v13131_v9 }
0x6086   : > { %15831 = vpow2.f32 %v13132_v5 }
0x6087   : > { %15833 = vpow2.f32 %v13134_v29 }
0x6093   : > { %v15832_v39 = vpop.eup %15831 }
0x6094   : > { %v15834_v57 = vpop.eup %15833  ;;  %v13136_v28 = vsel %vm12551_vm15, %v15832_v39, 0.0 }
0x6095   : > { %v13137_v20 = vsel %vm12553_vm0, %v15834_v57, 0.0 }
0x6096   : > { %v13138_v60 = vadd.f32 %v13137_v20, %v13136_v28 }
0x6098   : > { %v13139_v16 = vrot.slane %v13138_v60, 4 }
0x609a   : > { %v13140_v48 = vadd.f32 %v13139_v16, %v13138_v60 }
0x609c   : > { %v13141_v51 = vrot.slane %v13140_v48, 2 }
0x609e   : > { %v13142_v43 = vadd.f32 %v13141_v51, %v13140_v48 }
0x60a0   : > { %v13143_v34 = vrot.slane %v13142_v43, 1 }
0x60a2   : > { %v13144_v54 = vadd.f32 %v13143_v34, %v13142_v43 }
0x60a4   : > { %15835 = vlog2.f32 %v13144_v54 }
0x60b1   : > { %v15836_v62 = vpop.eup %15835 }
0x60b2   : > { %v13146_v24 = vmul.f32 0.6931472, %v15836_v62 }
0x60b4   : > { %v13147_v40 = vadd.f32 %v13146_v24, %v13129_v0 }
0x60b6   : > { %v13148_v45 = vsub.f32 %v18410_v19, %v13147_v40 }
0x60b8   : > { %v13149_v52 = vadd.f32 %v13148_v45, %v13119_v41  ;;  %v13150_v56 = vadd.f32 %v13148_v45, %v13120_v31 }
0x60ba   : > { %v13802_v1 = vadd.f32 2.6390574, %v13149_v52  ;;  %v13803_v14 = vadd.f32 2.6390574, %v13150_v56 }
0x60bc   : > { %13153 = vst.msk [vmem:[%s16559_s0] sm:$0xff] %vm12551_vm15, %v13802_v1 }
0x60bd   : > { %13154 = vst.msk [vmem:[%s16559_s0 + $0x8] sm:$0x1] %vm12553_vm0, %v13803_v14 }
0x60be PF: > { %s40_s26 = sadd.s32 1, %s16211_s26  }
0x60bf   : > { %p37_p6 = scmp.ge.s32.totalorder %s40_s26, 4  }
0x60c1   :  { %39 = sbr.rel (!%p37_p6) target bundleno = 15 (0xf), region = 231 }
0x60c6   :  { %13357 = vsyncpa [#allocation4], 1 }
0x60c7   :  { %13359 = vsyncpa [#allocation4 + $0x1], 1 }
0x60c8   :  { %13360 = vsyncpa [#allocation6], 1 }
0x60c9   :  { %13361 = vsyncpa [#allocation9], 1 }
0x60ca   :  { %13362 = vsyncpa [#allocation12], 1 }
0x60cb   :  { %13363 = vsyncpa [#allocation15], 1 }
0x60cc   :  { %13364 = vsyncpa [#allocation18], 1 }
0x60cd   :  { %13365 = vsyncpa [#allocation21], 1 }

</bundles_post_ra>
